<compile_context>
chip_gen: v7x
topology: tpu7x:2x2x1
jax: 0.10.0
libtpu: 0.0.40
codegen_flags: <defaults>
</compile_context>

<pallas_src>
import numpy as np

import jax
import jax.numpy as jnp
from jax.experimental import pallas as pl
from jax.experimental.pallas import tpu as pltpu


# Architecture constants implied by fc3.in_features == 2592 (84x84 inputs).
OH1, OW1 = 20, 20          # conv1 output spatial
OH2, OW2 = 9, 9            # conv2 output spatial
P1 = OH1 * OW1             # 400 conv1 output positions
P2 = OH2 * OW2             # 81  conv2 output positions
C1, C2 = 16, 32            # conv1 / conv2 output channels
K2 = 4 * 4 * C1            # 256 conv2 patch features
F3 = 256                   # fc3 output features
LANE = 128                 # per-sample / per-channel lane stride (padding 81->128)
KF3 = C2 * LANE            # 4096 padded fc3 contraction length


# ----------------------------------------------------------------------------
# The fused kernel: TB samples per grid step, all weights resident in VMEM
# (constant index maps), all intermediates in VMEM/vregs.
# ----------------------------------------------------------------------------
def _make_kernel(TB):
    def kernel(p1_ref, w1t_ref, b1_ref, sel_ref, w2t_ref, b2_ref,
               w3t_ref, b3_ref, w4_ref, b4_ref, o_ref,
               p2t_ref, y2_ref, f2_ref):
        # Zero the fc3-input slab each step: the 47 pad lanes per channel block
        # hit zero rows of w3t, but uninitialized VMEM could hold NaN/Inf and
        # 0*NaN would poison the GEMM.  (Per-step zeroing is also megacore-safe.)
        f2_ref[...] = jnp.zeros_like(f2_ref)

        b1 = b1_ref[...]
        for t in range(TB):
            # conv1 as GEMM: channels on sublanes, 400 positions on lanes.
            # 1/255 is pre-folded into w1t.
            y1 = jnp.dot(w1t_ref[...], p1_ref[t],
                         preferred_element_type=jnp.float32)        # (16, 400)
            y1 = jnp.maximum(y1 + b1, 0.0).astype(jnp.bfloat16)

            # conv2 stride-2 im2col: ONE consolidated one-hot gather GEMM for
            # all 16 (kh,kw) taps, then 16 static slice-stores into batched p2^T.
            g = jnp.dot(y1, sel_ref[...],
                        preferred_element_type=jnp.float32)         # (16, 1296)
            g = g.astype(jnp.bfloat16)
            for s in range(16):
                p2t_ref[C1 * s:C1 * (s + 1), LANE * t:LANE * t + P2] = \
                    g[:, P2 * s:P2 * (s + 1)]

        # conv2 as ONE batched GEMM over the whole batch tile (lane-dense N).
        # Pad lanes of p2t are never written; their (possibly garbage) outputs
        # are never read below.
        y2 = jnp.dot(w2t_ref[...], p2t_ref[...],
                     preferred_element_type=jnp.float32)            # (32, TB*128)
        y2_ref[...] = jnp.maximum(y2 + b2_ref[...], 0.0)

        # Re-layout to (TB, 4096): samples on sublanes, flattened conv2 features
        # on lanes (81 valid + 47 zeros per channel block).  This makes fc3 a
        # single lane-dense MXU GEMM and fc4 a dense-lane reduce.
        for t in range(TB):
            for c in range(C2):
                f2_ref[t:t + 1, LANE * c:LANE * c + P2] = \
                    y2_ref[c:c + 1, LANE * t:LANE * t + P2]

        # fc3 as MXU GEMM (TB, 4096) @ (4096, 256); w3t is pre-permuted so the
        # NHWC flatten order of the PyTorch module is honoured exactly.
        y3 = jnp.dot(f2_ref[...].astype(jnp.bfloat16), w3t_ref[...],
                     preferred_element_type=jnp.float32)            # (TB, 256)
        y3 = jnp.maximum(y3 + b3_ref[...], 0.0)

        # fc4: VPU multiply + reduce over 256 dense lanes.
        y4 = jnp.sum(y3 * w4_ref[...], axis=1, keepdims=True) + b4_ref[...]
        o_ref[...] = y4                                             # (TB, 1)

    return kernel


# ----------------------------------------------------------------------------
# Parameters: PyTorch-layout init + one-time prep (transposes, scale folding,
# zero-padding, bf16 casts, one-hot gather matrix).  Done once, NOT per forward.
# ----------------------------------------------------------------------------
def init_params(key, channels):
    ks = jax.random.split(key, 8)

    def u(k, shape, fan_in):
        bound = 1.0 / (fan_in ** 0.5)
        return jax.random.uniform(k, shape, jnp.float32, -bound, bound)

    return {
        # PyTorch layouts: conv weight (out, in, kh, kw); linear weight (out, in)
        "w1": u(ks[0], (C1, channels, 8, 8), channels * 8 * 8),
        "b1": u(ks[1], (C1,), channels * 8 * 8),
        "w2": u(ks[2], (C2, C1, 4, 4), C1 * 4 * 4),
        "b2": u(ks[3], (C2,), C1 * 4 * 4),
        "w3": u(ks[4], (F3, P2 * C2), P2 * C2),
        "b3": u(ks[5], (F3,), P2 * C2),
        "w4": u(ks[6], (1, F3), F3),
        "b4": u(ks[7], (1,), F3),
    }


def prepare_params(params, channels):
    C = channels
    K1 = 8 * 8 * C
    # conv1: (out,in,kh,kw) -> (out, kh*kw*in), fold the 1/255 input scale in.
    w1t = params["w1"].transpose(0, 2, 3, 1).reshape(C1, K1) / 255.0
    # conv2: (out,in,kh,kw) -> (out, kh*kw*in)
    w2t = params["w2"].transpose(0, 2, 3, 1).reshape(C2, K2)

    # fc3: PyTorch NHWC flatten index = r2*32 + c.  Re-lay it out so row
    # (c*128 + r2) of w3t matches the kernel's f2 layout, with zero rows at the
    # per-channel lane padding r2 in [81, 128).
    w3r = params["w3"].reshape(F3, P2, C2)                     # [n, r2, c]
    w3t = jnp.transpose(w3r, (2, 1, 0))                        # [c, r2, n]
    w3t = jnp.pad(w3t, ((0, 0), (0, LANE - P2), (0, 0)))       # (32, 128, 256)
    w3t = w3t.reshape(KF3, F3)

    # Consolidated one-hot gather matrix for conv2's stride-2 im2col:
    # column 81*s + r2 selects y1 position (2*h2+i)*20 + (2*w2+j), s = i*4+j.
    sel = np.zeros((P1, 16 * P2), np.float32)
    for i in range(4):
        for j in range(4):
            s = i * 4 + j
            for h2 in range(OH2):
                for w2_ in range(OW2):
                    r2 = h2 * OW2 + w2_
                    k = (2 * h2 + i) * OW1 + (2 * w2_ + j)     # y1 spatial index
                    sel[k, P2 * s + r2] = 1.0

    return {
        "w1t": w1t.astype(jnp.bfloat16),
        "b1": params["b1"].reshape(C1, 1).astype(jnp.float32),
        "sel": jnp.asarray(sel, jnp.bfloat16),
        "w2t": w2t.astype(jnp.bfloat16),
        "b2": params["b2"].reshape(C2, 1).astype(jnp.float32),
        "w3t": w3t.astype(jnp.bfloat16),
        "b3": params["b3"].reshape(1, F3).astype(jnp.float32),
        "w4": params["w4"].reshape(1, F3).astype(jnp.float32),
        "b4": params["b4"].reshape(1, 1).astype(jnp.float32),
    }


# ----------------------------------------------------------------------------
# Forward pass: one pallas_call for the whole network, TB samples per grid step.
# ----------------------------------------------------------------------------
def nn_policy_critic_forward(prep, x):
    B, C, H, W = x.shape
    assert (H, W) == (84, 84), "fc3.in_features == 2592 implies 84x84 inputs"
    K1 = 8 * 8 * C

    # Batch tile: 8 samples/step keeps VMEM use ~7 MiB (safe on v5e/v6e/v7x);
    # clamp to B for tiny batches.  Batch is padded up to a multiple of TB.
    TB = 8 if B >= 8 else B
    nb = -(-B // TB)
    B_pad = nb * TB

    # conv1 patch extraction (pure data rearrangement, XLA, in bf16 — pixel
    # values 0..255 are exact in bf16).
    # TODO(synk): pull this input-side im2col into the kernel (manual DMA gather
    # from an NHWC HBM ref) to remove the remaining XLA glue / HBM round trip.
    xh = jnp.transpose(x, (0, 2, 3, 1)).astype(jnp.bfloat16)         # (B,84,84,C)
    cols = [xh[:, i:i + 4 * OH1 - 3:4, j:j + 4 * OW1 - 3:4, :]
            for i in range(8) for j in range(8)]
    p1 = jnp.stack(cols, axis=3).reshape(B, P1, K1)                  # (B,400,64C)
    p1t = jnp.transpose(p1, (0, 2, 1))                               # (B,64C,400)
    if B_pad != B:
        p1t = jnp.pad(p1t, ((0, B_pad - B), (0, 0), (0, 0)))

    NL = TB * LANE
    out = pl.pallas_call(
        _make_kernel(TB),
        out_shape=jax.ShapeDtypeStruct((B_pad, 1), jnp.float32),
        grid_spec=pltpu.PrefetchScalarGridSpec(
            num_scalar_prefetch=0,
            grid=(nb,),
            in_specs=[
                pl.BlockSpec((TB, K1, P1), lambda b: (b, 0, 0)),     # patches^T
                pl.BlockSpec((C1, K1), lambda b: (0, 0)),            # w1t
                pl.BlockSpec((C1, 1), lambda b: (0, 0)),             # b1
                pl.BlockSpec((P1, 16 * P2), lambda b: (0, 0)),       # sel (consolidated)
                pl.BlockSpec((C2, K2), lambda b: (0, 0)),            # w2t
                pl.BlockSpec((C2, 1), lambda b: (0, 0)),             # b2
                pl.BlockSpec((KF3, F3), lambda b: (0, 0)),           # w3t (padded)
                pl.BlockSpec((1, F3), lambda b: (0, 0)),             # b3
                pl.BlockSpec((1, F3), lambda b: (0, 0)),             # w4
                pl.BlockSpec((1, 1), lambda b: (0, 0)),              # b4
            ],
            out_specs=pl.BlockSpec((TB, 1), lambda b: (b, 0)),
            scratch_shapes=[
                pltpu.VMEM((K2, NL), jnp.bfloat16),                  # batched p2^T
                pltpu.VMEM((C2, NL), jnp.float32),                   # batched conv2 out
                pltpu.VMEM((TB, KF3), jnp.float32),                  # fc3 input slab
            ]),
        compiler_params=pltpu.CompilerParams(
            dimension_semantics=("parallel",),
            vmem_limit_bytes=32 * 1024 * 1024,
        ),
    )(p1t, prep["w1t"], prep["b1"], prep["sel"], prep["w2t"], prep["b2"],
      prep["w3t"], prep["b3"], prep["w4"], prep["b4"])

    return out[:B]                                                   # (B, 1)


# ----------------------------------------------------------------------------
# Pure-JAX reference (XLA convs, f32 HIGHEST) for a sanity check.
# ----------------------------------------------------------------------------
def reference_forward(params, x):
    out = x.astype(jnp.float32) / 255.0
    dn = jax.lax.conv_dimension_numbers(out.shape, params["w1"].shape,
                                        ("NCHW", "OIHW", "NCHW"))
    out = jax.lax.conv_general_dilated(out, params["w1"], (4, 4), "VALID",
                                       dimension_numbers=dn,
                                       precision=jax.lax.Precision.HIGHEST)
    out = jax.nn.relu(out + params["b1"][None, :, None, None])
    dn2 = jax.lax.conv_dimension_numbers(out.shape, params["w2"].shape,
                                         ("NCHW", "OIHW", "NCHW"))
    out = jax.lax.conv_general_dilated(out, params["w2"], (2, 2), "VALID",
                                       dimension_numbers=dn2,
                                       precision=jax.lax.Precision.HIGHEST)
    out = jax.nn.relu(out + params["b2"][None, :, None, None])
    B = out.shape[0]
    flat = jnp.transpose(out, (0, 2, 3, 1)).reshape(B, -1)    # NHWC flatten
    out = jax.nn.relu(flat @ params["w3"].T + params["b3"])
    out = out @ params["w4"].T + params["b4"]
    return out


if __name__ == "__main__":
    key = jax.random.PRNGKey(0)
    k_param, k_x = jax.random.split(key)

    batch, channels = 2, 4           # fc3 in_features=2592 forces 84x84 inputs
    params = init_params(k_param, channels)
    prep = prepare_params(params, channels)   # one-time weight prep (cached)
    x = jax.random.uniform(k_x, (batch, channels, 84, 84),
                           jnp.float32, 0.0, 255.0)

    fwd = jax.jit(nn_policy_critic_forward)
    out = jax.block_until_ready(fwd(prep, x))
    assert out.shape == (batch, 1), out.shape

    ref = jax.block_until_ready(reference_forward(params, x))
    # bf16 MXU operands vs. an f32-HIGHEST reference -> tolerance sized for bf16.
    assert jnp.allclose(out, ref, atol=2e-2, rtol=2e-2), (out, ref)

    print("KERNEL_OK")
</pallas_src>

<mosaic_0001>
module attributes {stable_mosaic.version = 11 : i64} {
  func.func @kernel(%arg0: i32, %arg1: memref<2x256x400xbf16, #tpu.memory_space<vmem>>, %arg2: memref<16x256xbf16, #tpu.memory_space<vmem>>, %arg3: memref<16x1xf32, #tpu.memory_space<vmem>>, %arg4: memref<400x1296xbf16, #tpu.memory_space<vmem>>, %arg5: memref<32x256xbf16, #tpu.memory_space<vmem>>, %arg6: memref<32x1xf32, #tpu.memory_space<vmem>>, %arg7: memref<4096x256xbf16, #tpu.memory_space<vmem>>, %arg8: memref<1x256xf32, #tpu.memory_space<vmem>>, %arg9: memref<1x256xf32, #tpu.memory_space<vmem>>, %arg10: memref<1x1xf32, #tpu.memory_space<vmem>>, %arg11: memref<2x1xf32, #tpu.memory_space<vmem>>, %arg12: memref<256x256xbf16, #tpu.memory_space<vmem>>, %arg13: memref<32x256xf32, #tpu.memory_space<vmem>>, %arg14: memref<2x4096xf32, #tpu.memory_space<vmem>>) attributes {dimension_semantics = [#tpu.dimension_semantics<parallel>], iteration_bounds = array<i64: 1>, scalar_prefetch = 0 : i64, scratch_operands = 3 : i64, tpu.core_type = #tpu.core_type<tc>, window_params = [{transform_indices = @transform_0, window_bounds = array<i64: 2, 256, 400>}, {pipeline_mode = #tpu.pipeline_mode<synchronous>, transform_indices = @transform_1, window_bounds = array<i64: 16, 256>}, {pipeline_mode = #tpu.pipeline_mode<synchronous>, transform_indices = @transform_2, window_bounds = array<i64: 16, 1>}, {pipeline_mode = #tpu.pipeline_mode<synchronous>, transform_indices = @transform_3, window_bounds = array<i64: 400, 1296>}, {pipeline_mode = #tpu.pipeline_mode<synchronous>, transform_indices = @transform_4, window_bounds = array<i64: 32, 256>}, {pipeline_mode = #tpu.pipeline_mode<synchronous>, transform_indices = @transform_5, window_bounds = array<i64: 32, 1>}, {pipeline_mode = #tpu.pipeline_mode<synchronous>, transform_indices = @transform_6, window_bounds = array<i64: 4096, 256>}, {pipeline_mode = #tpu.pipeline_mode<synchronous>, transform_indices = @transform_7, window_bounds = array<i64: 1, 256>}, {pipeline_mode = #tpu.pipeline_mode<synchronous>, transform_indices = @transform_8, window_bounds = array<i64: 1, 256>}, {pipeline_mode = #tpu.pipeline_mode<synchronous>, transform_indices = @transform_9, window_bounds = array<i64: 1, 1>}, {transform_indices = @transform_10, window_bounds = array<i64: 2, 1>}]} {
    %cst = arith.constant 0.000000e+00 : f32
    %0 = vector.broadcast %cst : f32 to vector<2x4096xf32>
    %c0 = arith.constant 0 : index
    %c0_0 = arith.constant 0 : index
    %1 = vector.load %arg14[%c0, %c0_0] : memref<2x4096xf32, #tpu.memory_space<vmem>>, vector<2x4096xf32>
    tpu.vector_store %arg14[%c0, %c0_0], %0 {strides = array<i32>} : memref<2x4096xf32, #tpu.memory_space<vmem>>, vector<2x4096xf32>,
    %c0_1 = arith.constant 0 : index
    %c0_2 = arith.constant 0 : index
    %2 = vector.load %arg3[%c0_1, %c0_2] : memref<16x1xf32, #tpu.memory_space<vmem>>, vector<16x1xf32>
    %c0_3 = arith.constant 0 : index
    %c0_4 = arith.constant 0 : index
    %3 = vector.load %arg2[%c0_3, %c0_4] : memref<16x256xbf16, #tpu.memory_space<vmem>>, vector<16x256xbf16>
    %c0_5 = arith.constant 0 : index
    %c0_6 = arith.constant 0 : index
    %c0_7 = arith.constant 0 : index
    %4 = vector.load %arg1[%c0_5, %c0_6, %c0_7] : memref<2x256x400xbf16, #tpu.memory_space<vmem>>, vector<1x256x400xbf16>
    %5 = vector.shape_cast %4 : vector<1x256x400xbf16> to vector<256x400xbf16>
    %cst_8 = arith.constant dense<0.000000e+00> : vector<16x400xf32>
    %6 = tpu.matmul %3, %5, %cst_8 {dimension_numbers = #tpu.dot_dimension_numbers<[1], [0], [0], [1], [0, 0, 1, 1], [], []>} : vector<16x256xbf16>, vector<256x400xbf16>, vector<16x400xf32> -> vector<16x400xf32>
    %7 = vector.broadcast %2 : vector<16x1xf32> to vector<16x400xf32>
    %8 = arith.addf %6, %7 : vector<16x400xf32>
    %cst_9 = arith.constant 0.000000e+00 : f32
    %9 = vector.broadcast %cst_9 : f32 to vector<16x400xf32>
    %10 = arith.maximumf %8, %9 : vector<16x400xf32>
    %11 = arith.truncf %10 : vector<16x400xf32> to vector<16x400xbf16>
    %c0_10 = arith.constant 0 : index
    %c0_11 = arith.constant 0 : index
    %12 = vector.load %arg4[%c0_10, %c0_11] : memref<400x1296xbf16, #tpu.memory_space<vmem>>, vector<400x1296xbf16>
    %cst_12 = arith.constant dense<0.000000e+00> : vector<16x1296xf32>
    %13 = tpu.matmul %11, %12, %cst_12 {dimension_numbers = #tpu.dot_dimension_numbers<[1], [0], [0], [1], [0, 0, 1, 1], [], []>} : vector<16x400xbf16>, vector<400x1296xbf16>, vector<16x1296xf32> -> vector<16x1296xf32>
    %14 = arith.truncf %13 : vector<16x1296xf32> to vector<16x1296xbf16>
    %15 = vector.extract_strided_slice %14 {offsets = [0, 0], sizes = [16, 81], strides = [1, 1]} : vector<16x1296xbf16> to vector<16x81xbf16>
    %c0_13 = arith.constant 0 : index
    %c0_14 = arith.constant 0 : index
    %16 = vector.load %arg12[%c0_13, %c0_14] : memref<256x256xbf16, #tpu.memory_space<vmem>>, vector<16x81xbf16>
    tpu.vector_store %arg12[%c0_13, %c0_14], %15 {strides = array<i32>} : memref<256x256xbf16, #tpu.memory_space<vmem>>, vector<16x81xbf16>,
    %17 = vector.extract_strided_slice %14 {offsets = [0, 81], sizes = [16, 81], strides = [1, 1]} : vector<16x1296xbf16> to vector<16x81xbf16>
    %c16 = arith.constant 16 : index
    %c0_15 = arith.constant 0 : index
    %18 = vector.load %arg12[%c16, %c0_15] : memref<256x256xbf16, #tpu.memory_space<vmem>>, vector<16x81xbf16>
    tpu.vector_store %arg12[%c16, %c0_15], %17 {strides = array<i32>} : memref<256x256xbf16, #tpu.memory_space<vmem>>, vector<16x81xbf16>,
    %19 = vector.extract_strided_slice %14 {offsets = [0, 162], sizes = [16, 81], strides = [1, 1]} : vector<16x1296xbf16> to vector<16x81xbf16>
    %c32 = arith.constant 32 : index
    %c0_16 = arith.constant 0 : index
    %20 = vector.load %arg12[%c32, %c0_16] : memref<256x256xbf16, #tpu.memory_space<vmem>>, vector<16x81xbf16>
    tpu.vector_store %arg12[%c32, %c0_16], %19 {strides = array<i32>} : memref<256x256xbf16, #tpu.memory_space<vmem>>, vector<16x81xbf16>,
    %21 = vector.extract_strided_slice %14 {offsets = [0, 243], sizes = [16, 81], strides = [1, 1]} : vector<16x1296xbf16> to vector<16x81xbf16>
    %c48 = arith.constant 48 : index
    %c0_17 = arith.constant 0 : index
    %22 = vector.load %arg12[%c48, %c0_17] : memref<256x256xbf16, #tpu.memory_space<vmem>>, vector<16x81xbf16>
    tpu.vector_store %arg12[%c48, %c0_17], %21 {strides = array<i32>} : memref<256x256xbf16, #tpu.memory_space<vmem>>, vector<16x81xbf16>,
    %23 = vector.extract_strided_slice %14 {offsets = [0, 324], sizes = [16, 81], strides = [1, 1]} : vector<16x1296xbf16> to vector<16x81xbf16>
    %c64 = arith.constant 64 : index
    %c0_18 = arith.constant 0 : index
    %24 = vector.load %arg12[%c64, %c0_18] : memref<256x256xbf16, #tpu.memory_space<vmem>>, vector<16x81xbf16>
    tpu.vector_store %arg12[%c64, %c0_18], %23 {strides = array<i32>} : memref<256x256xbf16, #tpu.memory_space<vmem>>, vector<16x81xbf16>,
    %25 = vector.extract_strided_slice %14 {offsets = [0, 405], sizes = [16, 81], strides = [1, 1]} : vector<16x1296xbf16> to vector<16x81xbf16>
    %c80 = arith.constant 80 : index
    %c0_19 = arith.constant 0 : index
    %26 = vector.load %arg12[%c80, %c0_19] : memref<256x256xbf16, #tpu.memory_space<vmem>>, vector<16x81xbf16>
    tpu.vector_store %arg12[%c80, %c0_19], %25 {strides = array<i32>} : memref<256x256xbf16, #tpu.memory_space<vmem>>, vector<16x81xbf16>,
    %27 = vector.extract_strided_slice %14 {offsets = [0, 486], sizes = [16, 81], strides = [1, 1]} : vector<16x1296xbf16> to vector<16x81xbf16>
    %c96 = arith.constant 96 : index
    %c0_20 = arith.constant 0 : index
    %28 = vector.load %arg12[%c96, %c0_20] : memref<256x256xbf16, #tpu.memory_space<vmem>>, vector<16x81xbf16>
    tpu.vector_store %arg12[%c96, %c0_20], %27 {strides = array<i32>} : memref<256x256xbf16, #tpu.memory_space<vmem>>, vector<16x81xbf16>,
    %29 = vector.extract_strided_slice %14 {offsets = [0, 567], sizes = [16, 81], strides = [1, 1]} : vector<16x1296xbf16> to vector<16x81xbf16>
    %c112 = arith.constant 112 : index
    %c0_21 = arith.constant 0 : index
    %30 = vector.load %arg12[%c112, %c0_21] : memref<256x256xbf16, #tpu.memory_space<vmem>>, vector<16x81xbf16>
    tpu.vector_store %arg12[%c112, %c0_21], %29 {strides = array<i32>} : memref<256x256xbf16, #tpu.memory_space<vmem>>, vector<16x81xbf16>,
    %31 = vector.extract_strided_slice %14 {offsets = [0, 648], sizes = [16, 81], strides = [1, 1]} : vector<16x1296xbf16> to vector<16x81xbf16>
    %c128 = arith.constant 128 : index
    %c0_22 = arith.constant 0 : index
    %32 = vector.load %arg12[%c128, %c0_22] : memref<256x256xbf16, #tpu.memory_space<vmem>>, vector<16x81xbf16>
    tpu.vector_store %arg12[%c128, %c0_22], %31 {strides = array<i32>} : memref<256x256xbf16, #tpu.memory_space<vmem>>, vector<16x81xbf16>,
    %33 = vector.extract_strided_slice %14 {offsets = [0, 729], sizes = [16, 81], strides = [1, 1]} : vector<16x1296xbf16> to vector<16x81xbf16>
    %c144 = arith.constant 144 : index
    %c0_23 = arith.constant 0 : index
    %34 = vector.load %arg12[%c144, %c0_23] : memref<256x256xbf16, #tpu.memory_space<vmem>>, vector<16x81xbf16>
    tpu.vector_store %arg12[%c144, %c0_23], %33 {strides = array<i32>} : memref<256x256xbf16, #tpu.memory_space<vmem>>, vector<16x81xbf16>,
    %35 = vector.extract_strided_slice %14 {offsets = [0, 810], sizes = [16, 81], strides = [1, 1]} : vector<16x1296xbf16> to vector<16x81xbf16>
    %c160 = arith.constant 160 : index
    %c0_24 = arith.constant 0 : index
    %36 = vector.load %arg12[%c160, %c0_24] : memref<256x256xbf16, #tpu.memory_space<vmem>>, vector<16x81xbf16>
    tpu.vector_store %arg12[%c160, %c0_24], %35 {strides = array<i32>} : memref<256x256xbf16, #tpu.memory_space<vmem>>, vector<16x81xbf16>,
    %37 = vector.extract_strided_slice %14 {offsets = [0, 891], sizes = [16, 81], strides = [1, 1]} : vector<16x1296xbf16> to vector<16x81xbf16>
    %c176 = arith.constant 176 : index
    %c0_25 = arith.constant 0 : index
    %38 = vector.load %arg12[%c176, %c0_25] : memref<256x256xbf16, #tpu.memory_space<vmem>>, vector<16x81xbf16>
    tpu.vector_store %arg12[%c176, %c0_25], %37 {strides = array<i32>} : memref<256x256xbf16, #tpu.memory_space<vmem>>, vector<16x81xbf16>,
    %39 = vector.extract_strided_slice %14 {offsets = [0, 972], sizes = [16, 81], strides = [1, 1]} : vector<16x1296xbf16> to vector<16x81xbf16>
    %c192 = arith.constant 192 : index
    %c0_26 = arith.constant 0 : index
    %40 = vector.load %arg12[%c192, %c0_26] : memref<256x256xbf16, #tpu.memory_space<vmem>>, vector<16x81xbf16>
    tpu.vector_store %arg12[%c192, %c0_26], %39 {strides = array<i32>} : memref<256x256xbf16, #tpu.memory_space<vmem>>, vector<16x81xbf16>,
    %41 = vector.extract_strided_slice %14 {offsets = [0, 1053], sizes = [16, 81], strides = [1, 1]} : vector<16x1296xbf16> to vector<16x81xbf16>
    %c208 = arith.constant 208 : index
    %c0_27 = arith.constant 0 : index
    %42 = vector.load %arg12[%c208, %c0_27] : memref<256x256xbf16, #tpu.memory_space<vmem>>, vector<16x81xbf16>
    tpu.vector_store %arg12[%c208, %c0_27], %41 {strides = array<i32>} : memref<256x256xbf16, #tpu.memory_space<vmem>>, vector<16x81xbf16>,
    %43 = vector.extract_strided_slice %14 {offsets = [0, 1134], sizes = [16, 81], strides = [1, 1]} : vector<16x1296xbf16> to vector<16x81xbf16>
    %c224 = arith.constant 224 : index
    %c0_28 = arith.constant 0 : index
    %44 = vector.load %arg12[%c224, %c0_28] : memref<256x256xbf16, #tpu.memory_space<vmem>>, vector<16x81xbf16>
    tpu.vector_store %arg12[%c224, %c0_28], %43 {strides = array<i32>} : memref<256x256xbf16, #tpu.memory_space<vmem>>, vector<16x81xbf16>,
    %45 = vector.extract_strided_slice %14 {offsets = [0, 1215], sizes = [16, 81], strides = [1, 1]} : vector<16x1296xbf16> to vector<16x81xbf16>
    %c240 = arith.constant 240 : index
    %c0_29 = arith.constant 0 : index
    %46 = vector.load %arg12[%c240, %c0_29] : memref<256x256xbf16, #tpu.memory_space<vmem>>, vector<16x81xbf16>
    tpu.vector_store %arg12[%c240, %c0_29], %45 {strides = array<i32>} : memref<256x256xbf16, #tpu.memory_space<vmem>>, vector<16x81xbf16>,
    %c0_30 = arith.constant 0 : index
    %c0_31 = arith.constant 0 : index
    %47 = vector.load %arg2[%c0_30, %c0_31] : memref<16x256xbf16, #tpu.memory_space<vmem>>, vector<16x256xbf16>
    %c1 = arith.constant 1 : index
    %c0_32 = arith.constant 0 : index
    %c0_33 = arith.constant 0 : index
    %48 = vector.load %arg1[%c1, %c0_32, %c0_33] : memref<2x256x400xbf16, #tpu.memory_space<vmem>>, vector<1x256x400xbf16>
    %49 = vector.shape_cast %48 : vector<1x256x400xbf16> to vector<256x400xbf16>
    %cst_34 = arith.constant dense<0.000000e+00> : vector<16x400xf32>
    %50 = tpu.matmul %47, %49, %cst_34 {dimension_numbers = #tpu.dot_dimension_numbers<[1], [0], [0], [1], [0, 0, 1, 1], [], []>} : vector<16x256xbf16>, vector<256x400xbf16>, vector<16x400xf32> -> vector<16x400xf32>
    %51 = vector.broadcast %2 : vector<16x1xf32> to vector<16x400xf32>
    %52 = arith.addf %50, %51 : vector<16x400xf32>
    %cst_35 = arith.constant 0.000000e+00 : f32
    %53 = vector.broadcast %cst_35 : f32 to vector<16x400xf32>
    %54 = arith.maximumf %52, %53 : vector<16x400xf32>
    %55 = arith.truncf %54 : vector<16x400xf32> to vector<16x400xbf16>
    %c0_36 = arith.constant 0 : index
    %c0_37 = arith.constant 0 : index
    %56 = vector.load %arg4[%c0_36, %c0_37] : memref<400x1296xbf16, #tpu.memory_space<vmem>>, vector<400x1296xbf16>
    %cst_38 = arith.constant dense<0.000000e+00> : vector<16x1296xf32>
    %57 = tpu.matmul %55, %56, %cst_38 {dimension_numbers = #tpu.dot_dimension_numbers<[1], [0], [0], [1], [0, 0, 1, 1], [], []>} : vector<16x400xbf16>, vector<400x1296xbf16>, vector<16x1296xf32> -> vector<16x1296xf32>
    %58 = arith.truncf %57 : vector<16x1296xf32> to vector<16x1296xbf16>
    %59 = vector.extract_strided_slice %58 {offsets = [0, 0], sizes = [16, 81], strides = [1, 1]} : vector<16x1296xbf16> to vector<16x81xbf16>
    %c0_39 = arith.constant 0 : index
    %c128_40 = arith.constant 128 : index
    %60 = vector.load %arg12[%c0_39, %c128_40] : memref<256x256xbf16, #tpu.memory_space<vmem>>, vector<16x81xbf16>
    tpu.vector_store %arg12[%c0_39, %c128_40], %59 {strides = array<i32>} : memref<256x256xbf16, #tpu.memory_space<vmem>>, vector<16x81xbf16>,
    %61 = vector.extract_strided_slice %58 {offsets = [0, 81], sizes = [16, 81], strides = [1, 1]} : vector<16x1296xbf16> to vector<16x81xbf16>
    %c16_41 = arith.constant 16 : index
    %c128_42 = arith.constant 128 : index
    %62 = vector.load %arg12[%c16_41, %c128_42] : memref<256x256xbf16, #tpu.memory_space<vmem>>, vector<16x81xbf16>
    tpu.vector_store %arg12[%c16_41, %c128_42], %61 {strides = array<i32>} : memref<256x256xbf16, #tpu.memory_space<vmem>>, vector<16x81xbf16>,
    %63 = vector.extract_strided_slice %58 {offsets = [0, 162], sizes = [16, 81], strides = [1, 1]} : vector<16x1296xbf16> to vector<16x81xbf16>
    %c32_43 = arith.constant 32 : index
    %c128_44 = arith.constant 128 : index
    %64 = vector.load %arg12[%c32_43, %c128_44] : memref<256x256xbf16, #tpu.memory_space<vmem>>, vector<16x81xbf16>
    tpu.vector_store %arg12[%c32_43, %c128_44], %63 {strides = array<i32>} : memref<256x256xbf16, #tpu.memory_space<vmem>>, vector<16x81xbf16>,
    %65 = vector.extract_strided_slice %58 {offsets = [0, 243], sizes = [16, 81], strides = [1, 1]} : vector<16x1296xbf16> to vector<16x81xbf16>
    %c48_45 = arith.constant 48 : index
    %c128_46 = arith.constant 128 : index
    %66 = vector.load %arg12[%c48_45, %c128_46] : memref<256x256xbf16, #tpu.memory_space<vmem>>, vector<16x81xbf16>
    tpu.vector_store %arg12[%c48_45, %c128_46], %65 {strides = array<i32>} : memref<256x256xbf16, #tpu.memory_space<vmem>>, vector<16x81xbf16>,
    %67 = vector.extract_strided_slice %58 {offsets = [0, 324], sizes = [16, 81], strides = [1, 1]} : vector<16x1296xbf16> to vector<16x81xbf16>
    %c64_47 = arith.constant 64 : index
    %c128_48 = arith.constant 128 : index
    %68 = vector.load %arg12[%c64_47, %c128_48] : memref<256x256xbf16, #tpu.memory_space<vmem>>, vector<16x81xbf16>
    tpu.vector_store %arg12[%c64_47, %c128_48], %67 {strides = array<i32>} : memref<256x256xbf16, #tpu.memory_space<vmem>>, vector<16x81xbf16>,
    %69 = vector.extract_strided_slice %58 {offsets = [0, 405], sizes = [16, 81], strides = [1, 1]} : vector<16x1296xbf16> to vector<16x81xbf16>
    %c80_49 = arith.constant 80 : index
    %c128_50 = arith.constant 128 : index
    %70 = vector.load %arg12[%c80_49, %c128_50] : memref<256x256xbf16, #tpu.memory_space<vmem>>, vector<16x81xbf16>
    tpu.vector_store %arg12[%c80_49, %c128_50], %69 {strides = array<i32>} : memref<256x256xbf16, #tpu.memory_space<vmem>>, vector<16x81xbf16>,
    %71 = vector.extract_strided_slice %58 {offsets = [0, 486], sizes = [16, 81], strides = [1, 1]} : vector<16x1296xbf16> to vector<16x81xbf16>
    %c96_51 = arith.constant 96 : index
    %c128_52 = arith.constant 128 : index
    %72 = vector.load %arg12[%c96_51, %c128_52] : memref<256x256xbf16, #tpu.memory_space<vmem>>, vector<16x81xbf16>
    tpu.vector_store %arg12[%c96_51, %c128_52], %71 {strides = array<i32>} : memref<256x256xbf16, #tpu.memory_space<vmem>>, vector<16x81xbf16>,
    %73 = vector.extract_strided_slice %58 {offsets = [0, 567], sizes = [16, 81], strides = [1, 1]} : vector<16x1296xbf16> to vector<16x81xbf16>
    %c112_53 = arith.constant 112 : index
    %c128_54 = arith.constant 128 : index
    %74 = vector.load %arg12[%c112_53, %c128_54] : memref<256x256xbf16, #tpu.memory_space<vmem>>, vector<16x81xbf16>
    tpu.vector_store %arg12[%c112_53, %c128_54], %73 {strides = array<i32>} : memref<256x256xbf16, #tpu.memory_space<vmem>>, vector<16x81xbf16>,
    %75 = vector.extract_strided_slice %58 {offsets = [0, 648], sizes = [16, 81], strides = [1, 1]} : vector<16x1296xbf16> to vector<16x81xbf16>
    %c128_55 = arith.constant 128 : index
    %c128_56 = arith.constant 128 : index
    %76 = vector.load %arg12[%c128_55, %c128_56] : memref<256x256xbf16, #tpu.memory_space<vmem>>, vector<16x81xbf16>
    tpu.vector_store %arg12[%c128_55, %c128_56], %75 {strides = array<i32>} : memref<256x256xbf16, #tpu.memory_space<vmem>>, vector<16x81xbf16>,
    %77 = vector.extract_strided_slice %58 {offsets = [0, 729], sizes = [16, 81], strides = [1, 1]} : vector<16x1296xbf16> to vector<16x81xbf16>
    %c144_57 = arith.constant 144 : index
    %c128_58 = arith.constant 128 : index
    %78 = vector.load %arg12[%c144_57, %c128_58] : memref<256x256xbf16, #tpu.memory_space<vmem>>, vector<16x81xbf16>
    tpu.vector_store %arg12[%c144_57, %c128_58], %77 {strides = array<i32>} : memref<256x256xbf16, #tpu.memory_space<vmem>>, vector<16x81xbf16>,
    %79 = vector.extract_strided_slice %58 {offsets = [0, 810], sizes = [16, 81], strides = [1, 1]} : vector<16x1296xbf16> to vector<16x81xbf16>
    %c160_59 = arith.constant 160 : index
    %c128_60 = arith.constant 128 : index
    %80 = vector.load %arg12[%c160_59, %c128_60] : memref<256x256xbf16, #tpu.memory_space<vmem>>, vector<16x81xbf16>
    tpu.vector_store %arg12[%c160_59, %c128_60], %79 {strides = array<i32>} : memref<256x256xbf16, #tpu.memory_space<vmem>>, vector<16x81xbf16>,
    %81 = vector.extract_strided_slice %58 {offsets = [0, 891], sizes = [16, 81], strides = [1, 1]} : vector<16x1296xbf16> to vector<16x81xbf16>
    %c176_61 = arith.constant 176 : index
    %c128_62 = arith.constant 128 : index
    %82 = vector.load %arg12[%c176_61, %c128_62] : memref<256x256xbf16, #tpu.memory_space<vmem>>, vector<16x81xbf16>
    tpu.vector_store %arg12[%c176_61, %c128_62], %81 {strides = array<i32>} : memref<256x256xbf16, #tpu.memory_space<vmem>>, vector<16x81xbf16>,
    %83 = vector.extract_strided_slice %58 {offsets = [0, 972], sizes = [16, 81], strides = [1, 1]} : vector<16x1296xbf16> to vector<16x81xbf16>
    %c192_63 = arith.constant 192 : index
    %c128_64 = arith.constant 128 : index
    %84 = vector.load %arg12[%c192_63, %c128_64] : memref<256x256xbf16, #tpu.memory_space<vmem>>, vector<16x81xbf16>
    tpu.vector_store %arg12[%c192_63, %c128_64], %83 {strides = array<i32>} : memref<256x256xbf16, #tpu.memory_space<vmem>>, vector<16x81xbf16>,
    %85 = vector.extract_strided_slice %58 {offsets = [0, 1053], sizes = [16, 81], strides = [1, 1]} : vector<16x1296xbf16> to vector<16x81xbf16>
    %c208_65 = arith.constant 208 : index
    %c128_66 = arith.constant 128 : index
    %86 = vector.load %arg12[%c208_65, %c128_66] : memref<256x256xbf16, #tpu.memory_space<vmem>>, vector<16x81xbf16>
    tpu.vector_store %arg12[%c208_65, %c128_66], %85 {strides = array<i32>} : memref<256x256xbf16, #tpu.memory_space<vmem>>, vector<16x81xbf16>,
    %87 = vector.extract_strided_slice %58 {offsets = [0, 1134], sizes = [16, 81], strides = [1, 1]} : vector<16x1296xbf16> to vector<16x81xbf16>
    %c224_67 = arith.constant 224 : index
    %c128_68 = arith.constant 128 : index
    %88 = vector.load %arg12[%c224_67, %c128_68] : memref<256x256xbf16, #tpu.memory_space<vmem>>, vector<16x81xbf16>
    tpu.vector_store %arg12[%c224_67, %c128_68], %87 {strides = array<i32>} : memref<256x256xbf16, #tpu.memory_space<vmem>>, vector<16x81xbf16>,
    %89 = vector.extract_strided_slice %58 {offsets = [0, 1215], sizes = [16, 81], strides = [1, 1]} : vector<16x1296xbf16> to vector<16x81xbf16>
    %c240_69 = arith.constant 240 : index
    %c128_70 = arith.constant 128 : index
    %90 = vector.load %arg12[%c240_69, %c128_70] : memref<256x256xbf16, #tpu.memory_space<vmem>>, vector<16x81xbf16>
    tpu.vector_store %arg12[%c240_69, %c128_70], %89 {strides = array<i32>} : memref<256x256xbf16, #tpu.memory_space<vmem>>, vector<16x81xbf16>,
    %c0_71 = arith.constant 0 : index
    %c0_72 = arith.constant 0 : index
    %91 = vector.load %arg5[%c0_71, %c0_72] : memref<32x256xbf16, #tpu.memory_space<vmem>>, vector<32x256xbf16>
    %c0_73 = arith.constant 0 : index
    %c0_74 = arith.constant 0 : index
    %92 = vector.load %arg12[%c0_73, %c0_74] : memref<256x256xbf16, #tpu.memory_space<vmem>>, vector<256x256xbf16>
    %cst_75 = arith.constant dense<0.000000e+00> : vector<32x256xf32>
    %93 = tpu.matmul %91, %92, %cst_75 {dimension_numbers = #tpu.dot_dimension_numbers<[1], [0], [0], [1], [0, 0, 1, 1], [], []>} : vector<32x256xbf16>, vector<256x256xbf16>, vector<32x256xf32> -> vector<32x256xf32>
    %c0_76 = arith.constant 0 : index
    %c0_77 = arith.constant 0 : index
    %94 = vector.load %arg6[%c0_76, %c0_77] : memref<32x1xf32, #tpu.memory_space<vmem>>, vector<32x1xf32>
    %95 = vector.broadcast %94 : vector<32x1xf32> to vector<32x256xf32>
    %96 = arith.addf %93, %95 : vector<32x256xf32>
    %cst_78 = arith.constant 0.000000e+00 : f32
    %97 = vector.broadcast %cst_78 : f32 to vector<32x256xf32>
    %98 = arith.maximumf %96, %97 : vector<32x256xf32>
    %c0_79 = arith.constant 0 : index
    %c0_80 = arith.constant 0 : index
    %99 = vector.load %arg13[%c0_79, %c0_80] : memref<32x256xf32, #tpu.memory_space<vmem>>, vector<32x256xf32>
    tpu.vector_store %arg13[%c0_79, %c0_80], %98 {strides = array<i32>} : memref<32x256xf32, #tpu.memory_space<vmem>>, vector<32x256xf32>,
    %c0_81 = arith.constant 0 : index
    %c0_82 = arith.constant 0 : index
    %100 = vector.load %arg13[%c0_81, %c0_82] : memref<32x256xf32, #tpu.memory_space<vmem>>, vector<1x81xf32>
    %c0_83 = arith.constant 0 : index
    %c0_84 = arith.constant 0 : index
    %101 = vector.load %arg14[%c0_83, %c0_84] : memref<2x4096xf32, #tpu.memory_space<vmem>>, vector<1x81xf32>
    tpu.vector_store %arg14[%c0_83, %c0_84], %100 {strides = array<i32>} : memref<2x4096xf32, #tpu.memory_space<vmem>>, vector<1x81xf32>,
    %c1_85 = arith.constant 1 : index
    %c0_86 = arith.constant 0 : index
    %102 = vector.load %arg13[%c1_85, %c0_86] : memref<32x256xf32, #tpu.memory_space<vmem>>, vector<1x81xf32>
    %c0_87 = arith.constant 0 : index
    %c128_88 = arith.constant 128 : index
    %103 = vector.load %arg14[%c0_87, %c128_88] : memref<2x4096xf32, #tpu.memory_space<vmem>>, vector<1x81xf32>
    tpu.vector_store %arg14[%c0_87, %c128_88], %102 {strides = array<i32>} : memref<2x4096xf32, #tpu.memory_space<vmem>>, vector<1x81xf32>,
    %c2 = arith.constant 2 : index
    %c0_89 = arith.constant 0 : index
    %104 = vector.load %arg13[%c2, %c0_89] : memref<32x256xf32, #tpu.memory_space<vmem>>, vector<1x81xf32>
    %c0_90 = arith.constant 0 : index
    %c256 = arith.constant 256 : index
    %105 = vector.load %arg14[%c0_90, %c256] : memref<2x4096xf32, #tpu.memory_space<vmem>>, vector<1x81xf32>
    tpu.vector_store %arg14[%c0_90, %c256], %104 {strides = array<i32>} : memref<2x4096xf32, #tpu.memory_space<vmem>>, vector<1x81xf32>,
    %c3 = arith.constant 3 : index
    %c0_91 = arith.constant 0 : index
    %106 = vector.load %arg13[%c3, %c0_91] : memref<32x256xf32, #tpu.memory_space<vmem>>, vector<1x81xf32>
    %c0_92 = arith.constant 0 : index
    %c384 = arith.constant 384 : index
    %107 = vector.load %arg14[%c0_92, %c384] : memref<2x4096xf32, #tpu.memory_space<vmem>>, vector<1x81xf32>
    tpu.vector_store %arg14[%c0_92, %c384], %106 {strides = array<i32>} : memref<2x4096xf32, #tpu.memory_space<vmem>>, vector<1x81xf32>,
    %c4 = arith.constant 4 : index
    %c0_93 = arith.constant 0 : index
    %108 = vector.load %arg13[%c4, %c0_93] : memref<32x256xf32, #tpu.memory_space<vmem>>, vector<1x81xf32>
    %c0_94 = arith.constant 0 : index
    %c512 = arith.constant 512 : index
    %109 = vector.load %arg14[%c0_94, %c512] : memref<2x4096xf32, #tpu.memory_space<vmem>>, vector<1x81xf32>
    tpu.vector_store %arg14[%c0_94, %c512], %108 {strides = array<i32>} : memref<2x4096xf32, #tpu.memory_space<vmem>>, vector<1x81xf32>,
    %c5 = arith.constant 5 : index
    %c0_95 = arith.constant 0 : index
    %110 = vector.load %arg13[%c5, %c0_95] : memref<32x256xf32, #tpu.memory_space<vmem>>, vector<1x81xf32>
    %c0_96 = arith.constant 0 : index
    %c640 = arith.constant 640 : index
    %111 = vector.load %arg14[%c0_96, %c640] : memref<2x4096xf32, #tpu.memory_space<vmem>>, vector<1x81xf32>
    tpu.vector_store %arg14[%c0_96, %c640], %110 {strides = array<i32>} : memref<2x4096xf32, #tpu.memory_space<vmem>>, vector<1x81xf32>,
    %c6 = arith.constant 6 : index
    %c0_97 = arith.constant 0 : index
    %112 = vector.load %arg13[%c6, %c0_97] : memref<32x256xf32, #tpu.memory_space<vmem>>, vector<1x81xf32>
    %c0_98 = arith.constant 0 : index
    %c768 = arith.constant 768 : index
    %113 = vector.load %arg14[%c0_98, %c768] : memref<2x4096xf32, #tpu.memory_space<vmem>>, vector<1x81xf32>
    tpu.vector_store %arg14[%c0_98, %c768], %112 {strides = array<i32>} : memref<2x4096xf32, #tpu.memory_space<vmem>>, vector<1x81xf32>,
    %c7 = arith.constant 7 : index
    %c0_99 = arith.constant 0 : index
    %114 = vector.load %arg13[%c7, %c0_99] : memref<32x256xf32, #tpu.memory_space<vmem>>, vector<1x81xf32>
    %c0_100 = arith.constant 0 : index
    %c896 = arith.constant 896 : index
    %115 = vector.load %arg14[%c0_100, %c896] : memref<2x4096xf32, #tpu.memory_space<vmem>>, vector<1x81xf32>
    tpu.vector_store %arg14[%c0_100, %c896], %114 {strides = array<i32>} : memref<2x4096xf32, #tpu.memory_space<vmem>>, vector<1x81xf32>,
    %c8 = arith.constant 8 : index
    %c0_101 = arith.constant 0 : index
    %116 = vector.load %arg13[%c8, %c0_101] : memref<32x256xf32, #tpu.memory_space<vmem>>, vector<1x81xf32>
    %c0_102 = arith.constant 0 : index
    %c1024 = arith.constant 1024 : index
    %117 = vector.load %arg14[%c0_102, %c1024] : memref<2x4096xf32, #tpu.memory_space<vmem>>, vector<1x81xf32>
    tpu.vector_store %arg14[%c0_102, %c1024], %116 {strides = array<i32>} : memref<2x4096xf32, #tpu.memory_space<vmem>>, vector<1x81xf32>,
    %c9 = arith.constant 9 : index
    %c0_103 = arith.constant 0 : index
    %118 = vector.load %arg13[%c9, %c0_103] : memref<32x256xf32, #tpu.memory_space<vmem>>, vector<1x81xf32>
    %c0_104 = arith.constant 0 : index
    %c1152 = arith.constant 1152 : index
    %119 = vector.load %arg14[%c0_104, %c1152] : memref<2x4096xf32, #tpu.memory_space<vmem>>, vector<1x81xf32>
    tpu.vector_store %arg14[%c0_104, %c1152], %118 {strides = array<i32>} : memref<2x4096xf32, #tpu.memory_space<vmem>>, vector<1x81xf32>,
    %c10 = arith.constant 10 : index
    %c0_105 = arith.constant 0 : index
    %120 = vector.load %arg13[%c10, %c0_105] : memref<32x256xf32, #tpu.memory_space<vmem>>, vector<1x81xf32>
    %c0_106 = arith.constant 0 : index
    %c1280 = arith.constant 1280 : index
    %121 = vector.load %arg14[%c0_106, %c1280] : memref<2x4096xf32, #tpu.memory_space<vmem>>, vector<1x81xf32>
    tpu.vector_store %arg14[%c0_106, %c1280], %120 {strides = array<i32>} : memref<2x4096xf32, #tpu.memory_space<vmem>>, vector<1x81xf32>,
    %c11 = arith.constant 11 : index
    %c0_107 = arith.constant 0 : index
    %122 = vector.load %arg13[%c11, %c0_107] : memref<32x256xf32, #tpu.memory_space<vmem>>, vector<1x81xf32>
    %c0_108 = arith.constant 0 : index
    %c1408 = arith.constant 1408 : index
    %123 = vector.load %arg14[%c0_108, %c1408] : memref<2x4096xf32, #tpu.memory_space<vmem>>, vector<1x81xf32>
    tpu.vector_store %arg14[%c0_108, %c1408], %122 {strides = array<i32>} : memref<2x4096xf32, #tpu.memory_space<vmem>>, vector<1x81xf32>,
    %c12 = arith.constant 12 : index
    %c0_109 = arith.constant 0 : index
    %124 = vector.load %arg13[%c12, %c0_109] : memref<32x256xf32, #tpu.memory_space<vmem>>, vector<1x81xf32>
    %c0_110 = arith.constant 0 : index
    %c1536 = arith.constant 1536 : index
    %125 = vector.load %arg14[%c0_110, %c1536] : memref<2x4096xf32, #tpu.memory_space<vmem>>, vector<1x81xf32>
    tpu.vector_store %arg14[%c0_110, %c1536], %124 {strides = array<i32>} : memref<2x4096xf32, #tpu.memory_space<vmem>>, vector<1x81xf32>,
    %c13 = arith.constant 13 : index
    %c0_111 = arith.constant 0 : index
    %126 = vector.load %arg13[%c13, %c0_111] : memref<32x256xf32, #tpu.memory_space<vmem>>, vector<1x81xf32>
    %c0_112 = arith.constant 0 : index
    %c1664 = arith.constant 1664 : index
    %127 = vector.load %arg14[%c0_112, %c1664] : memref<2x4096xf32, #tpu.memory_space<vmem>>, vector<1x81xf32>
    tpu.vector_store %arg14[%c0_112, %c1664], %126 {strides = array<i32>} : memref<2x4096xf32, #tpu.memory_space<vmem>>, vector<1x81xf32>,
    %c14 = arith.constant 14 : index
    %c0_113 = arith.constant 0 : index
    %128 = vector.load %arg13[%c14, %c0_113] : memref<32x256xf32, #tpu.memory_space<vmem>>, vector<1x81xf32>
    %c0_114 = arith.constant 0 : index
    %c1792 = arith.constant 1792 : index
    %129 = vector.load %arg14[%c0_114, %c1792] : memref<2x4096xf32, #tpu.memory_space<vmem>>, vector<1x81xf32>
    tpu.vector_store %arg14[%c0_114, %c1792], %128 {strides = array<i32>} : memref<2x4096xf32, #tpu.memory_space<vmem>>, vector<1x81xf32>,
    %c15 = arith.constant 15 : index
    %c0_115 = arith.constant 0 : index
    %130 = vector.load %arg13[%c15, %c0_115] : memref<32x256xf32, #tpu.memory_space<vmem>>, vector<1x81xf32>
    %c0_116 = arith.constant 0 : index
    %c1920 = arith.constant 1920 : index
    %131 = vector.load %arg14[%c0_116, %c1920] : memref<2x4096xf32, #tpu.memory_space<vmem>>, vector<1x81xf32>
    tpu.vector_store %arg14[%c0_116, %c1920], %130 {strides = array<i32>} : memref<2x4096xf32, #tpu.memory_space<vmem>>, vector<1x81xf32>,
    %c16_117 = arith.constant 16 : index
    %c0_118 = arith.constant 0 : index
    %132 = vector.load %arg13[%c16_117, %c0_118] : memref<32x256xf32, #tpu.memory_space<vmem>>, vector<1x81xf32>
    %c0_119 = arith.constant 0 : index
    %c2048 = arith.constant 2048 : index
    %133 = vector.load %arg14[%c0_119, %c2048] : memref<2x4096xf32, #tpu.memory_space<vmem>>, vector<1x81xf32>
    tpu.vector_store %arg14[%c0_119, %c2048], %132 {strides = array<i32>} : memref<2x4096xf32, #tpu.memory_space<vmem>>, vector<1x81xf32>,
    %c17 = arith.constant 17 : index
    %c0_120 = arith.constant 0 : index
    %134 = vector.load %arg13[%c17, %c0_120] : memref<32x256xf32, #tpu.memory_space<vmem>>, vector<1x81xf32>
    %c0_121 = arith.constant 0 : index
    %c2176 = arith.constant 2176 : index
    %135 = vector.load %arg14[%c0_121, %c2176] : memref<2x4096xf32, #tpu.memory_space<vmem>>, vector<1x81xf32>
    tpu.vector_store %arg14[%c0_121, %c2176], %134 {strides = array<i32>} : memref<2x4096xf32, #tpu.memory_space<vmem>>, vector<1x81xf32>,
    %c18 = arith.constant 18 : index
    %c0_122 = arith.constant 0 : index
    %136 = vector.load %arg13[%c18, %c0_122] : memref<32x256xf32, #tpu.memory_space<vmem>>, vector<1x81xf32>
    %c0_123 = arith.constant 0 : index
    %c2304 = arith.constant 2304 : index
    %137 = vector.load %arg14[%c0_123, %c2304] : memref<2x4096xf32, #tpu.memory_space<vmem>>, vector<1x81xf32>
    tpu.vector_store %arg14[%c0_123, %c2304], %136 {strides = array<i32>} : memref<2x4096xf32, #tpu.memory_space<vmem>>, vector<1x81xf32>,
    %c19 = arith.constant 19 : index
    %c0_124 = arith.constant 0 : index
    %138 = vector.load %arg13[%c19, %c0_124] : memref<32x256xf32, #tpu.memory_space<vmem>>, vector<1x81xf32>
    %c0_125 = arith.constant 0 : index
    %c2432 = arith.constant 2432 : index
    %139 = vector.load %arg14[%c0_125, %c2432] : memref<2x4096xf32, #tpu.memory_space<vmem>>, vector<1x81xf32>
    tpu.vector_store %arg14[%c0_125, %c2432], %138 {strides = array<i32>} : memref<2x4096xf32, #tpu.memory_space<vmem>>, vector<1x81xf32>,
    %c20 = arith.constant 20 : index
    %c0_126 = arith.constant 0 : index
    %140 = vector.load %arg13[%c20, %c0_126] : memref<32x256xf32, #tpu.memory_space<vmem>>, vector<1x81xf32>
    %c0_127 = arith.constant 0 : index
    %c2560 = arith.constant 2560 : index
    %141 = vector.load %arg14[%c0_127, %c2560] : memref<2x4096xf32, #tpu.memory_space<vmem>>, vector<1x81xf32>
    tpu.vector_store %arg14[%c0_127, %c2560], %140 {strides = array<i32>} : memref<2x4096xf32, #tpu.memory_space<vmem>>, vector<1x81xf32>,
    %c21 = arith.constant 21 : index
    %c0_128 = arith.constant 0 : index
    %142 = vector.load %arg13[%c21, %c0_128] : memref<32x256xf32, #tpu.memory_space<vmem>>, vector<1x81xf32>
    %c0_129 = arith.constant 0 : index
    %c2688 = arith.constant 2688 : index
    %143 = vector.load %arg14[%c0_129, %c2688] : memref<2x4096xf32, #tpu.memory_space<vmem>>, vector<1x81xf32>
    tpu.vector_store %arg14[%c0_129, %c2688], %142 {strides = array<i32>} : memref<2x4096xf32, #tpu.memory_space<vmem>>, vector<1x81xf32>,
    %c22 = arith.constant 22 : index
    %c0_130 = arith.constant 0 : index
    %144 = vector.load %arg13[%c22, %c0_130] : memref<32x256xf32, #tpu.memory_space<vmem>>, vector<1x81xf32>
    %c0_131 = arith.constant 0 : index
    %c2816 = arith.constant 2816 : index
    %145 = vector.load %arg14[%c0_131, %c2816] : memref<2x4096xf32, #tpu.memory_space<vmem>>, vector<1x81xf32>
    tpu.vector_store %arg14[%c0_131, %c2816], %144 {strides = array<i32>} : memref<2x4096xf32, #tpu.memory_space<vmem>>, vector<1x81xf32>,
    %c23 = arith.constant 23 : index
    %c0_132 = arith.constant 0 : index
    %146 = vector.load %arg13[%c23, %c0_132] : memref<32x256xf32, #tpu.memory_space<vmem>>, vector<1x81xf32>
    %c0_133 = arith.constant 0 : index
    %c2944 = arith.constant 2944 : index
    %147 = vector.load %arg14[%c0_133, %c2944] : memref<2x4096xf32, #tpu.memory_space<vmem>>, vector<1x81xf32>
    tpu.vector_store %arg14[%c0_133, %c2944], %146 {strides = array<i32>} : memref<2x4096xf32, #tpu.memory_space<vmem>>, vector<1x81xf32>,
    %c24 = arith.constant 24 : index
    %c0_134 = arith.constant 0 : index
    %148 = vector.load %arg13[%c24, %c0_134] : memref<32x256xf32, #tpu.memory_space<vmem>>, vector<1x81xf32>
    %c0_135 = arith.constant 0 : index
    %c3072 = arith.constant 3072 : index
    %149 = vector.load %arg14[%c0_135, %c3072] : memref<2x4096xf32, #tpu.memory_space<vmem>>, vector<1x81xf32>
    tpu.vector_store %arg14[%c0_135, %c3072], %148 {strides = array<i32>} : memref<2x4096xf32, #tpu.memory_space<vmem>>, vector<1x81xf32>,
    %c25 = arith.constant 25 : index
    %c0_136 = arith.constant 0 : index
    %150 = vector.load %arg13[%c25, %c0_136] : memref<32x256xf32, #tpu.memory_space<vmem>>, vector<1x81xf32>
    %c0_137 = arith.constant 0 : index
    %c3200 = arith.constant 3200 : index
    %151 = vector.load %arg14[%c0_137, %c3200] : memref<2x4096xf32, #tpu.memory_space<vmem>>, vector<1x81xf32>
    tpu.vector_store %arg14[%c0_137, %c3200], %150 {strides = array<i32>} : memref<2x4096xf32, #tpu.memory_space<vmem>>, vector<1x81xf32>,
    %c26 = arith.constant 26 : index
    %c0_138 = arith.constant 0 : index
    %152 = vector.load %arg13[%c26, %c0_138] : memref<32x256xf32, #tpu.memory_space<vmem>>, vector<1x81xf32>
    %c0_139 = arith.constant 0 : index
    %c3328 = arith.constant 3328 : index
    %153 = vector.load %arg14[%c0_139, %c3328] : memref<2x4096xf32, #tpu.memory_space<vmem>>, vector<1x81xf32>
    tpu.vector_store %arg14[%c0_139, %c3328], %152 {strides = array<i32>} : memref<2x4096xf32, #tpu.memory_space<vmem>>, vector<1x81xf32>,
    %c27 = arith.constant 27 : index
    %c0_140 = arith.constant 0 : index
    %154 = vector.load %arg13[%c27, %c0_140] : memref<32x256xf32, #tpu.memory_space<vmem>>, vector<1x81xf32>
    %c0_141 = arith.constant 0 : index
    %c3456 = arith.constant 3456 : index
    %155 = vector.load %arg14[%c0_141, %c3456] : memref<2x4096xf32, #tpu.memory_space<vmem>>, vector<1x81xf32>
    tpu.vector_store %arg14[%c0_141, %c3456], %154 {strides = array<i32>} : memref<2x4096xf32, #tpu.memory_space<vmem>>, vector<1x81xf32>,
    %c28 = arith.constant 28 : index
    %c0_142 = arith.constant 0 : index
    %156 = vector.load %arg13[%c28, %c0_142] : memref<32x256xf32, #tpu.memory_space<vmem>>, vector<1x81xf32>
    %c0_143 = arith.constant 0 : index
    %c3584 = arith.constant 3584 : index
    %157 = vector.load %arg14[%c0_143, %c3584] : memref<2x4096xf32, #tpu.memory_space<vmem>>, vector<1x81xf32>
    tpu.vector_store %arg14[%c0_143, %c3584], %156 {strides = array<i32>} : memref<2x4096xf32, #tpu.memory_space<vmem>>, vector<1x81xf32>,
    %c29 = arith.constant 29 : index
    %c0_144 = arith.constant 0 : index
    %158 = vector.load %arg13[%c29, %c0_144] : memref<32x256xf32, #tpu.memory_space<vmem>>, vector<1x81xf32>
    %c0_145 = arith.constant 0 : index
    %c3712 = arith.constant 3712 : index
    %159 = vector.load %arg14[%c0_145, %c3712] : memref<2x4096xf32, #tpu.memory_space<vmem>>, vector<1x81xf32>
    tpu.vector_store %arg14[%c0_145, %c3712], %158 {strides = array<i32>} : memref<2x4096xf32, #tpu.memory_space<vmem>>, vector<1x81xf32>,
    %c30 = arith.constant 30 : index
    %c0_146 = arith.constant 0 : index
    %160 = vector.load %arg13[%c30, %c0_146] : memref<32x256xf32, #tpu.memory_space<vmem>>, vector<1x81xf32>
    %c0_147 = arith.constant 0 : index
    %c3840 = arith.constant 3840 : index
    %161 = vector.load %arg14[%c0_147, %c3840] : memref<2x4096xf32, #tpu.memory_space<vmem>>, vector<1x81xf32>
    tpu.vector_store %arg14[%c0_147, %c3840], %160 {strides = array<i32>} : memref<2x4096xf32, #tpu.memory_space<vmem>>, vector<1x81xf32>,
    %c31 = arith.constant 31 : index
    %c0_148 = arith.constant 0 : index
    %162 = vector.load %arg13[%c31, %c0_148] : memref<32x256xf32, #tpu.memory_space<vmem>>, vector<1x81xf32>
    %c0_149 = arith.constant 0 : index
    %c3968 = arith.constant 3968 : index
    %163 = vector.load %arg14[%c0_149, %c3968] : memref<2x4096xf32, #tpu.memory_space<vmem>>, vector<1x81xf32>
    tpu.vector_store %arg14[%c0_149, %c3968], %162 {strides = array<i32>} : memref<2x4096xf32, #tpu.memory_space<vmem>>, vector<1x81xf32>,
    %c0_150 = arith.constant 0 : index
    %c128_151 = arith.constant 128 : index
    %164 = vector.load %arg13[%c0_150, %c128_151] : memref<32x256xf32, #tpu.memory_space<vmem>>, vector<1x81xf32>
    %c1_152 = arith.constant 1 : index
    %c0_153 = arith.constant 0 : index
    %165 = vector.load %arg14[%c1_152, %c0_153] : memref<2x4096xf32, #tpu.memory_space<vmem>>, vector<1x81xf32>
    tpu.vector_store %arg14[%c1_152, %c0_153], %164 {strides = array<i32>} : memref<2x4096xf32, #tpu.memory_space<vmem>>, vector<1x81xf32>,
    %c1_154 = arith.constant 1 : index
    %c128_155 = arith.constant 128 : index
    %166 = vector.load %arg13[%c1_154, %c128_155] : memref<32x256xf32, #tpu.memory_space<vmem>>, vector<1x81xf32>
    %c1_156 = arith.constant 1 : index
    %c128_157 = arith.constant 128 : index
    %167 = vector.load %arg14[%c1_156, %c128_157] : memref<2x4096xf32, #tpu.memory_space<vmem>>, vector<1x81xf32>
    tpu.vector_store %arg14[%c1_156, %c128_157], %166 {strides = array<i32>} : memref<2x4096xf32, #tpu.memory_space<vmem>>, vector<1x81xf32>,
    %c2_158 = arith.constant 2 : index
    %c128_159 = arith.constant 128 : index
    %168 = vector.load %arg13[%c2_158, %c128_159] : memref<32x256xf32, #tpu.memory_space<vmem>>, vector<1x81xf32>
    %c1_160 = arith.constant 1 : index
    %c256_161 = arith.constant 256 : index
    %169 = vector.load %arg14[%c1_160, %c256_161] : memref<2x4096xf32, #tpu.memory_space<vmem>>, vector<1x81xf32>
    tpu.vector_store %arg14[%c1_160, %c256_161], %168 {strides = array<i32>} : memref<2x4096xf32, #tpu.memory_space<vmem>>, vector<1x81xf32>,
    %c3_162 = arith.constant 3 : index
    %c128_163 = arith.constant 128 : index
    %170 = vector.load %arg13[%c3_162, %c128_163] : memref<32x256xf32, #tpu.memory_space<vmem>>, vector<1x81xf32>
    %c1_164 = arith.constant 1 : index
    %c384_165 = arith.constant 384 : index
    %171 = vector.load %arg14[%c1_164, %c384_165] : memref<2x4096xf32, #tpu.memory_space<vmem>>, vector<1x81xf32>
    tpu.vector_store %arg14[%c1_164, %c384_165], %170 {strides = array<i32>} : memref<2x4096xf32, #tpu.memory_space<vmem>>, vector<1x81xf32>,
    %c4_166 = arith.constant 4 : index
    %c128_167 = arith.constant 128 : index
    %172 = vector.load %arg13[%c4_166, %c128_167] : memref<32x256xf32, #tpu.memory_space<vmem>>, vector<1x81xf32>
    %c1_168 = arith.constant 1 : index
    %c512_169 = arith.constant 512 : index
    %173 = vector.load %arg14[%c1_168, %c512_169] : memref<2x4096xf32, #tpu.memory_space<vmem>>, vector<1x81xf32>
    tpu.vector_store %arg14[%c1_168, %c512_169], %172 {strides = array<i32>} : memref<2x4096xf32, #tpu.memory_space<vmem>>, vector<1x81xf32>,
    %c5_170 = arith.constant 5 : index
    %c128_171 = arith.constant 128 : index
    %174 = vector.load %arg13[%c5_170, %c128_171] : memref<32x256xf32, #tpu.memory_space<vmem>>, vector<1x81xf32>
    %c1_172 = arith.constant 1 : index
    %c640_173 = arith.constant 640 : index
    %175 = vector.load %arg14[%c1_172, %c640_173] : memref<2x4096xf32, #tpu.memory_space<vmem>>, vector<1x81xf32>
    tpu.vector_store %arg14[%c1_172, %c640_173], %174 {strides = array<i32>} : memref<2x4096xf32, #tpu.memory_space<vmem>>, vector<1x81xf32>,
    %c6_174 = arith.constant 6 : index
    %c128_175 = arith.constant 128 : index
    %176 = vector.load %arg13[%c6_174, %c128_175] : memref<32x256xf32, #tpu.memory_space<vmem>>, vector<1x81xf32>
    %c1_176 = arith.constant 1 : index
    %c768_177 = arith.constant 768 : index
    %177 = vector.load %arg14[%c1_176, %c768_177] : memref<2x4096xf32, #tpu.memory_space<vmem>>, vector<1x81xf32>
    tpu.vector_store %arg14[%c1_176, %c768_177], %176 {strides = array<i32>} : memref<2x4096xf32, #tpu.memory_space<vmem>>, vector<1x81xf32>,
    %c7_178 = arith.constant 7 : index
    %c128_179 = arith.constant 128 : index
    %178 = vector.load %arg13[%c7_178, %c128_179] : memref<32x256xf32, #tpu.memory_space<vmem>>, vector<1x81xf32>
    %c1_180 = arith.constant 1 : index
    %c896_181 = arith.constant 896 : index
    %179 = vector.load %arg14[%c1_180, %c896_181] : memref<2x4096xf32, #tpu.memory_space<vmem>>, vector<1x81xf32>
    tpu.vector_store %arg14[%c1_180, %c896_181], %178 {strides = array<i32>} : memref<2x4096xf32, #tpu.memory_space<vmem>>, vector<1x81xf32>,
    %c8_182 = arith.constant 8 : index
    %c128_183 = arith.constant 128 : index
    %180 = vector.load %arg13[%c8_182, %c128_183] : memref<32x256xf32, #tpu.memory_space<vmem>>, vector<1x81xf32>
    %c1_184 = arith.constant 1 : index
    %c1024_185 = arith.constant 1024 : index
    %181 = vector.load %arg14[%c1_184, %c1024_185] : memref<2x4096xf32, #tpu.memory_space<vmem>>, vector<1x81xf32>
    tpu.vector_store %arg14[%c1_184, %c1024_185], %180 {strides = array<i32>} : memref<2x4096xf32, #tpu.memory_space<vmem>>, vector<1x81xf32>,
    %c9_186 = arith.constant 9 : index
    %c128_187 = arith.constant 128 : index
    %182 = vector.load %arg13[%c9_186, %c128_187] : memref<32x256xf32, #tpu.memory_space<vmem>>, vector<1x81xf32>
    %c1_188 = arith.constant 1 : index
    %c1152_189 = arith.constant 1152 : index
    %183 = vector.load %arg14[%c1_188, %c1152_189] : memref<2x4096xf32, #tpu.memory_space<vmem>>, vector<1x81xf32>
    tpu.vector_store %arg14[%c1_188, %c1152_189], %182 {strides = array<i32>} : memref<2x4096xf32, #tpu.memory_space<vmem>>, vector<1x81xf32>,
    %c10_190 = arith.constant 10 : index
    %c128_191 = arith.constant 128 : index
    %184 = vector.load %arg13[%c10_190, %c128_191] : memref<32x256xf32, #tpu.memory_space<vmem>>, vector<1x81xf32>
    %c1_192 = arith.constant 1 : index
    %c1280_193 = arith.constant 1280 : index
    %185 = vector.load %arg14[%c1_192, %c1280_193] : memref<2x4096xf32, #tpu.memory_space<vmem>>, vector<1x81xf32>
    tpu.vector_store %arg14[%c1_192, %c1280_193], %184 {strides = array<i32>} : memref<2x4096xf32, #tpu.memory_space<vmem>>, vector<1x81xf32>,
    %c11_194 = arith.constant 11 : index
    %c128_195 = arith.constant 128 : index
    %186 = vector.load %arg13[%c11_194, %c128_195] : memref<32x256xf32, #tpu.memory_space<vmem>>, vector<1x81xf32>
    %c1_196 = arith.constant 1 : index
    %c1408_197 = arith.constant 1408 : index
    %187 = vector.load %arg14[%c1_196, %c1408_197] : memref<2x4096xf32, #tpu.memory_space<vmem>>, vector<1x81xf32>
    tpu.vector_store %arg14[%c1_196, %c1408_197], %186 {strides = array<i32>} : memref<2x4096xf32, #tpu.memory_space<vmem>>, vector<1x81xf32>,
    %c12_198 = arith.constant 12 : index
    %c128_199 = arith.constant 128 : index
    %188 = vector.load %arg13[%c12_198, %c128_199] : memref<32x256xf32, #tpu.memory_space<vmem>>, vector<1x81xf32>
    %c1_200 = arith.constant 1 : index
    %c1536_201 = arith.constant 1536 : index
    %189 = vector.load %arg14[%c1_200, %c1536_201] : memref<2x4096xf32, #tpu.memory_space<vmem>>, vector<1x81xf32>
    tpu.vector_store %arg14[%c1_200, %c1536_201], %188 {strides = array<i32>} : memref<2x4096xf32, #tpu.memory_space<vmem>>, vector<1x81xf32>,
    %c13_202 = arith.constant 13 : index
    %c128_203 = arith.constant 128 : index
    %190 = vector.load %arg13[%c13_202, %c128_203] : memref<32x256xf32, #tpu.memory_space<vmem>>, vector<1x81xf32>
    %c1_204 = arith.constant 1 : index
    %c1664_205 = arith.constant 1664 : index
    %191 = vector.load %arg14[%c1_204, %c1664_205] : memref<2x4096xf32, #tpu.memory_space<vmem>>, vector<1x81xf32>
    tpu.vector_store %arg14[%c1_204, %c1664_205], %190 {strides = array<i32>} : memref<2x4096xf32, #tpu.memory_space<vmem>>, vector<1x81xf32>,
    %c14_206 = arith.constant 14 : index
    %c128_207 = arith.constant 128 : index
    %192 = vector.load %arg13[%c14_206, %c128_207] : memref<32x256xf32, #tpu.memory_space<vmem>>, vector<1x81xf32>
    %c1_208 = arith.constant 1 : index
    %c1792_209 = arith.constant 1792 : index
    %193 = vector.load %arg14[%c1_208, %c1792_209] : memref<2x4096xf32, #tpu.memory_space<vmem>>, vector<1x81xf32>
    tpu.vector_store %arg14[%c1_208, %c1792_209], %192 {strides = array<i32>} : memref<2x4096xf32, #tpu.memory_space<vmem>>, vector<1x81xf32>,
    %c15_210 = arith.constant 15 : index
    %c128_211 = arith.constant 128 : index
    %194 = vector.load %arg13[%c15_210, %c128_211] : memref<32x256xf32, #tpu.memory_space<vmem>>, vector<1x81xf32>
    %c1_212 = arith.constant 1 : index
    %c1920_213 = arith.constant 1920 : index
    %195 = vector.load %arg14[%c1_212, %c1920_213] : memref<2x4096xf32, #tpu.memory_space<vmem>>, vector<1x81xf32>
    tpu.vector_store %arg14[%c1_212, %c1920_213], %194 {strides = array<i32>} : memref<2x4096xf32, #tpu.memory_space<vmem>>, vector<1x81xf32>,
    %c16_214 = arith.constant 16 : index
    %c128_215 = arith.constant 128 : index
    %196 = vector.load %arg13[%c16_214, %c128_215] : memref<32x256xf32, #tpu.memory_space<vmem>>, vector<1x81xf32>
    %c1_216 = arith.constant 1 : index
    %c2048_217 = arith.constant 2048 : index
    %197 = vector.load %arg14[%c1_216, %c2048_217] : memref<2x4096xf32, #tpu.memory_space<vmem>>, vector<1x81xf32>
    tpu.vector_store %arg14[%c1_216, %c2048_217], %196 {strides = array<i32>} : memref<2x4096xf32, #tpu.memory_space<vmem>>, vector<1x81xf32>,
    %c17_218 = arith.constant 17 : index
    %c128_219 = arith.constant 128 : index
    %198 = vector.load %arg13[%c17_218, %c128_219] : memref<32x256xf32, #tpu.memory_space<vmem>>, vector<1x81xf32>
    %c1_220 = arith.constant 1 : index
    %c2176_221 = arith.constant 2176 : index
    %199 = vector.load %arg14[%c1_220, %c2176_221] : memref<2x4096xf32, #tpu.memory_space<vmem>>, vector<1x81xf32>
    tpu.vector_store %arg14[%c1_220, %c2176_221], %198 {strides = array<i32>} : memref<2x4096xf32, #tpu.memory_space<vmem>>, vector<1x81xf32>,
    %c18_222 = arith.constant 18 : index
    %c128_223 = arith.constant 128 : index
    %200 = vector.load %arg13[%c18_222, %c128_223] : memref<32x256xf32, #tpu.memory_space<vmem>>, vector<1x81xf32>
    %c1_224 = arith.constant 1 : index
    %c2304_225 = arith.constant 2304 : index
    %201 = vector.load %arg14[%c1_224, %c2304_225] : memref<2x4096xf32, #tpu.memory_space<vmem>>, vector<1x81xf32>
    tpu.vector_store %arg14[%c1_224, %c2304_225], %200 {strides = array<i32>} : memref<2x4096xf32, #tpu.memory_space<vmem>>, vector<1x81xf32>,
    %c19_226 = arith.constant 19 : index
    %c128_227 = arith.constant 128 : index
    %202 = vector.load %arg13[%c19_226, %c128_227] : memref<32x256xf32, #tpu.memory_space<vmem>>, vector<1x81xf32>
    %c1_228 = arith.constant 1 : index
    %c2432_229 = arith.constant 2432 : index
    %203 = vector.load %arg14[%c1_228, %c2432_229] : memref<2x4096xf32, #tpu.memory_space<vmem>>, vector<1x81xf32>
    tpu.vector_store %arg14[%c1_228, %c2432_229], %202 {strides = array<i32>} : memref<2x4096xf32, #tpu.memory_space<vmem>>, vector<1x81xf32>,
    %c20_230 = arith.constant 20 : index
    %c128_231 = arith.constant 128 : index
    %204 = vector.load %arg13[%c20_230, %c128_231] : memref<32x256xf32, #tpu.memory_space<vmem>>, vector<1x81xf32>
    %c1_232 = arith.constant 1 : index
    %c2560_233 = arith.constant 2560 : index
    %205 = vector.load %arg14[%c1_232, %c2560_233] : memref<2x4096xf32, #tpu.memory_space<vmem>>, vector<1x81xf32>
    tpu.vector_store %arg14[%c1_232, %c2560_233], %204 {strides = array<i32>} : memref<2x4096xf32, #tpu.memory_space<vmem>>, vector<1x81xf32>,
    %c21_234 = arith.constant 21 : index
    %c128_235 = arith.constant 128 : index
    %206 = vector.load %arg13[%c21_234, %c128_235] : memref<32x256xf32, #tpu.memory_space<vmem>>, vector<1x81xf32>
    %c1_236 = arith.constant 1 : index
    %c2688_237 = arith.constant 2688 : index
    %207 = vector.load %arg14[%c1_236, %c2688_237] : memref<2x4096xf32, #tpu.memory_space<vmem>>, vector<1x81xf32>
    tpu.vector_store %arg14[%c1_236, %c2688_237], %206 {strides = array<i32>} : memref<2x4096xf32, #tpu.memory_space<vmem>>, vector<1x81xf32>,
    %c22_238 = arith.constant 22 : index
    %c128_239 = arith.constant 128 : index
    %208 = vector.load %arg13[%c22_238, %c128_239] : memref<32x256xf32, #tpu.memory_space<vmem>>, vector<1x81xf32>
    %c1_240 = arith.constant 1 : index
    %c2816_241 = arith.constant 2816 : index
    %209 = vector.load %arg14[%c1_240, %c2816_241] : memref<2x4096xf32, #tpu.memory_space<vmem>>, vector<1x81xf32>
    tpu.vector_store %arg14[%c1_240, %c2816_241], %208 {strides = array<i32>} : memref<2x4096xf32, #tpu.memory_space<vmem>>, vector<1x81xf32>,
    %c23_242 = arith.constant 23 : index
    %c128_243 = arith.constant 128 : index
    %210 = vector.load %arg13[%c23_242, %c128_243] : memref<32x256xf32, #tpu.memory_space<vmem>>, vector<1x81xf32>
    %c1_244 = arith.constant 1 : index
    %c2944_245 = arith.constant 2944 : index
    %211 = vector.load %arg14[%c1_244, %c2944_245] : memref<2x4096xf32, #tpu.memory_space<vmem>>, vector<1x81xf32>
    tpu.vector_store %arg14[%c1_244, %c2944_245], %210 {strides = array<i32>} : memref<2x4096xf32, #tpu.memory_space<vmem>>, vector<1x81xf32>,
    %c24_246 = arith.constant 24 : index
    %c128_247 = arith.constant 128 : index
    %212 = vector.load %arg13[%c24_246, %c128_247] : memref<32x256xf32, #tpu.memory_space<vmem>>, vector<1x81xf32>
    %c1_248 = arith.constant 1 : index
    %c3072_249 = arith.constant 3072 : index
    %213 = vector.load %arg14[%c1_248, %c3072_249] : memref<2x4096xf32, #tpu.memory_space<vmem>>, vector<1x81xf32>
    tpu.vector_store %arg14[%c1_248, %c3072_249], %212 {strides = array<i32>} : memref<2x4096xf32, #tpu.memory_space<vmem>>, vector<1x81xf32>,
    %c25_250 = arith.constant 25 : index
    %c128_251 = arith.constant 128 : index
    %214 = vector.load %arg13[%c25_250, %c128_251] : memref<32x256xf32, #tpu.memory_space<vmem>>, vector<1x81xf32>
    %c1_252 = arith.constant 1 : index
    %c3200_253 = arith.constant 3200 : index
    %215 = vector.load %arg14[%c1_252, %c3200_253] : memref<2x4096xf32, #tpu.memory_space<vmem>>, vector<1x81xf32>
    tpu.vector_store %arg14[%c1_252, %c3200_253], %214 {strides = array<i32>} : memref<2x4096xf32, #tpu.memory_space<vmem>>, vector<1x81xf32>,
    %c26_254 = arith.constant 26 : index
    %c128_255 = arith.constant 128 : index
    %216 = vector.load %arg13[%c26_254, %c128_255] : memref<32x256xf32, #tpu.memory_space<vmem>>, vector<1x81xf32>
    %c1_256 = arith.constant 1 : index
    %c3328_257 = arith.constant 3328 : index
    %217 = vector.load %arg14[%c1_256, %c3328_257] : memref<2x4096xf32, #tpu.memory_space<vmem>>, vector<1x81xf32>
    tpu.vector_store %arg14[%c1_256, %c3328_257], %216 {strides = array<i32>} : memref<2x4096xf32, #tpu.memory_space<vmem>>, vector<1x81xf32>,
    %c27_258 = arith.constant 27 : index
    %c128_259 = arith.constant 128 : index
    %218 = vector.load %arg13[%c27_258, %c128_259] : memref<32x256xf32, #tpu.memory_space<vmem>>, vector<1x81xf32>
    %c1_260 = arith.constant 1 : index
    %c3456_261 = arith.constant 3456 : index
    %219 = vector.load %arg14[%c1_260, %c3456_261] : memref<2x4096xf32, #tpu.memory_space<vmem>>, vector<1x81xf32>
    tpu.vector_store %arg14[%c1_260, %c3456_261], %218 {strides = array<i32>} : memref<2x4096xf32, #tpu.memory_space<vmem>>, vector<1x81xf32>,
    %c28_262 = arith.constant 28 : index
    %c128_263 = arith.constant 128 : index
    %220 = vector.load %arg13[%c28_262, %c128_263] : memref<32x256xf32, #tpu.memory_space<vmem>>, vector<1x81xf32>
    %c1_264 = arith.constant 1 : index
    %c3584_265 = arith.constant 3584 : index
    %221 = vector.load %arg14[%c1_264, %c3584_265] : memref<2x4096xf32, #tpu.memory_space<vmem>>, vector<1x81xf32>
    tpu.vector_store %arg14[%c1_264, %c3584_265], %220 {strides = array<i32>} : memref<2x4096xf32, #tpu.memory_space<vmem>>, vector<1x81xf32>,
    %c29_266 = arith.constant 29 : index
    %c128_267 = arith.constant 128 : index
    %222 = vector.load %arg13[%c29_266, %c128_267] : memref<32x256xf32, #tpu.memory_space<vmem>>, vector<1x81xf32>
    %c1_268 = arith.constant 1 : index
    %c3712_269 = arith.constant 3712 : index
    %223 = vector.load %arg14[%c1_268, %c3712_269] : memref<2x4096xf32, #tpu.memory_space<vmem>>, vector<1x81xf32>
    tpu.vector_store %arg14[%c1_268, %c3712_269], %222 {strides = array<i32>} : memref<2x4096xf32, #tpu.memory_space<vmem>>, vector<1x81xf32>,
    %c30_270 = arith.constant 30 : index
    %c128_271 = arith.constant 128 : index
    %224 = vector.load %arg13[%c30_270, %c128_271] : memref<32x256xf32, #tpu.memory_space<vmem>>, vector<1x81xf32>
    %c1_272 = arith.constant 1 : index
    %c3840_273 = arith.constant 3840 : index
    %225 = vector.load %arg14[%c1_272, %c3840_273] : memref<2x4096xf32, #tpu.memory_space<vmem>>, vector<1x81xf32>
    tpu.vector_store %arg14[%c1_272, %c3840_273], %224 {strides = array<i32>} : memref<2x4096xf32, #tpu.memory_space<vmem>>, vector<1x81xf32>,
    %c31_274 = arith.constant 31 : index
    %c128_275 = arith.constant 128 : index
    %226 = vector.load %arg13[%c31_274, %c128_275] : memref<32x256xf32, #tpu.memory_space<vmem>>, vector<1x81xf32>
    %c1_276 = arith.constant 1 : index
    %c3968_277 = arith.constant 3968 : index
    %227 = vector.load %arg14[%c1_276, %c3968_277] : memref<2x4096xf32, #tpu.memory_space<vmem>>, vector<1x81xf32>
    tpu.vector_store %arg14[%c1_276, %c3968_277], %226 {strides = array<i32>} : memref<2x4096xf32, #tpu.memory_space<vmem>>, vector<1x81xf32>,
    %c0_278 = arith.constant 0 : index
    %c0_279 = arith.constant 0 : index
    %228 = vector.load %arg14[%c0_278, %c0_279] : memref<2x4096xf32, #tpu.memory_space<vmem>>, vector<2x4096xf32>
    %229 = arith.truncf %228 : vector<2x4096xf32> to vector<2x4096xbf16>
    %c0_280 = arith.constant 0 : index
    %c0_281 = arith.constant 0 : index
    %230 = vector.load %arg7[%c0_280, %c0_281] : memref<4096x256xbf16, #tpu.memory_space<vmem>>, vector<4096x256xbf16>
    %cst_282 = arith.constant dense<0.000000e+00> : vector<2x256xf32>
    %231 = tpu.matmul %229, %230, %cst_282 {dimension_numbers = #tpu.dot_dimension_numbers<[1], [0], [0], [1], [0, 0, 1, 1], [], []>} : vector<2x4096xbf16>, vector<4096x256xbf16>, vector<2x256xf32> -> vector<2x256xf32>
    %c0_283 = arith.constant 0 : index
    %c0_284 = arith.constant 0 : index
    %232 = vector.load %arg8[%c0_283, %c0_284] : memref<1x256xf32, #tpu.memory_space<vmem>>, vector<1x256xf32>
    %233 = vector.broadcast %232 : vector<1x256xf32> to vector<2x256xf32>
    %234 = arith.addf %231, %233 : vector<2x256xf32>
    %cst_285 = arith.constant 0.000000e+00 : f32
    %235 = vector.broadcast %cst_285 : f32 to vector<2x256xf32>
    %236 = arith.maximumf %234, %235 : vector<2x256xf32>
    %c0_286 = arith.constant 0 : index
    %c0_287 = arith.constant 0 : index
    %237 = vector.load %arg9[%c0_286, %c0_287] : memref<1x256xf32, #tpu.memory_space<vmem>>, vector<1x256xf32>
    %238 = vector.broadcast %237 : vector<1x256xf32> to vector<2x256xf32>
    %239 = arith.mulf %236, %238 : vector<2x256xf32>
    %cst_288 = arith.constant dense<0.000000e+00> : vector<2xf32>
    %240 = vector.multi_reduction <add>, %239, %cst_288 [1] : vector<2x256xf32> to vector<2xf32>
    %241 = vector.shape_cast %240 : vector<2xf32> to vector<2x1xf32>
    %c0_289 = arith.constant 0 : index
    %c0_290 = arith.constant 0 : index
    %242 = vector.load %arg10[%c0_289, %c0_290] : memref<1x1xf32, #tpu.memory_space<vmem>>, vector<1x1xf32>
    %243 = vector.broadcast %242 : vector<1x1xf32> to vector<2x1xf32>
    %244 = arith.addf %241, %243 : vector<2x1xf32>
    %c0_291 = arith.constant 0 : index
    %c0_292 = arith.constant 0 : index
    %245 = vector.load %arg11[%c0_291, %c0_292] : memref<2x1xf32, #tpu.memory_space<vmem>>, vector<2x1xf32>
    tpu.vector_store %arg11[%c0_291, %c0_292], %244 {strides = array<i32>} : memref<2x1xf32, #tpu.memory_space<vmem>>, vector<2x1xf32>,
    return
  }
  func.func @transform_0(%arg0: i32) -> (i32, i32, i32) {
    %c0_i32 = arith.constant 0 : i32
    %c0_i32_0 = arith.constant 0 : i32
    %c0_i32_1 = arith.constant 0 : i32
    return %arg0, %c0_i32, %c0_i32_0 : i32, i32, i32
  }
  func.func @transform_1(%arg0: i32) -> (i32, i32) {
    %c0_i32 = arith.constant 0 : i32
    %c0_i32_0 = arith.constant 0 : i32
    %c0_i32_1 = arith.constant 0 : i32
    return %c0_i32, %c0_i32_0 : i32, i32
  }
  func.func @transform_2(%arg0: i32) -> (i32, i32) {
    %c0_i32 = arith.constant 0 : i32
    %c0_i32_0 = arith.constant 0 : i32
    %c0_i32_1 = arith.constant 0 : i32
    return %c0_i32, %c0_i32_0 : i32, i32
  }
  func.func @transform_3(%arg0: i32) -> (i32, i32) {
    %c0_i32 = arith.constant 0 : i32
    %c0_i32_0 = arith.constant 0 : i32
    %c0_i32_1 = arith.constant 0 : i32
    return %c0_i32, %c0_i32_0 : i32, i32
  }
  func.func @transform_4(%arg0: i32) -> (i32, i32) {
    %c0_i32 = arith.constant 0 : i32
    %c0_i32_0 = arith.constant 0 : i32
    %c0_i32_1 = arith.constant 0 : i32
    return %c0_i32, %c0_i32_0 : i32, i32
  }
  func.func @transform_5(%arg0: i32) -> (i32, i32) {
    %c0_i32 = arith.constant 0 : i32
    %c0_i32_0 = arith.constant 0 : i32
    %c0_i32_1 = arith.constant 0 : i32
    return %c0_i32, %c0_i32_0 : i32, i32
  }
  func.func @transform_6(%arg0: i32) -> (i32, i32) {
    %c0_i32 = arith.constant 0 : i32
    %c0_i32_0 = arith.constant 0 : i32
    %c0_i32_1 = arith.constant 0 : i32
    return %c0_i32, %c0_i32_0 : i32, i32
  }
  func.func @transform_7(%arg0: i32) -> (i32, i32) {
    %c0_i32 = arith.constant 0 : i32
    %c0_i32_0 = arith.constant 0 : i32
    %c0_i32_1 = arith.constant 0 : i32
    return %c0_i32, %c0_i32_0 : i32, i32
  }
  func.func @transform_8(%arg0: i32) -> (i32, i32) {
    %c0_i32 = arith.constant 0 : i32
    %c0_i32_0 = arith.constant 0 : i32
    %c0_i32_1 = arith.constant 0 : i32
    return %c0_i32, %c0_i32_0 : i32, i32
  }
  func.func @transform_9(%arg0: i32) -> (i32, i32) {
    %c0_i32 = arith.constant 0 : i32
    %c0_i32_0 = arith.constant 0 : i32
    %c0_i32_1 = arith.constant 0 : i32
    return %c0_i32, %c0_i32_0 : i32, i32
  }
  func.func @transform_10(%arg0: i32) -> (i32, i32) {
    %c0_i32 = arith.constant 0 : i32
    %c0_i32_0 = arith.constant 0 : i32
    return %arg0, %c0_i32 : i32, i32
  }
}

</mosaic_0001>

<bundles_post_ra>
// kernel: nn_policy_critic_forward.1
= control target key start
LH: loop header
LB: loop body
LE: loop exit
PB: predicated region body
PF: predicated region fallthrough
CT: control target
= control target key end

     0   :  { %v13205_v4 = vmov 0   ;;  %vm2252_vm0 = vcmask 130048   ;;  %vm2779_vm1 = vcmask 662528   ;;  %s13206_s17 = smov 47   ;;  %s13207_s22 = smov 13   ;;  %vm2787_vm2 = vcmask 384000   ;;  %s17443_s0 = inlined_call_operand.vmem [shape: bf16[2,256,400], index: 0, kind: input, shape index: {}]   ;;  %s17444_s1 = inlined_call_operand.vmem [shape: bf16[16,256], index: 1, kind: input, shape index: {}]   ;;  %s17445_s2 = inlined_call_operand.vmem [shape: f32[16,1], index: 2, kind: input, shape index: {}]   ;;  %s17446_s3 = inlined_call_operand.vmem [shape: bf16[400,1296], index: 3, kind: input, shape index: {}]   ;;  %s17447_s5 = inlined_call_operand.vmem [shape: f32[32,1], index: 5, kind: input, shape index: {}]   ;;  %s17448_s4 = inlined_call_operand.vmem [shape: bf16[32,256], index: 4, kind: input, shape index: {}]   ;;  %s17449_s6 = inlined_call_operand.vmem [shape: bf16[4096,256], index: 6, kind: input, shape index: {}]   ;;  %s17450_s9 = inlined_call_operand.<no memory space> [shape: f32[1,1], index: 9, kind: input, shape index: {}]   ;;  %s17451_s7 = inlined_call_operand.vmem [shape: f32[1,256], index: 7, kind: input, shape index: {}]   ;;  %s17452_s8 = inlined_call_operand.vmem [shape: f32[1,256], index: 8, kind: input, shape index: {}]   ;;  %s17453_s10 = inlined_call_operand.vmem [shape: f32[2,1], index: 10, kind: output, shape index: {}]  }
   0x1   :  { %v11426_v0 = vld [vmem:[%s17443_s0 + $0x4] ss:$16 sps:$4 sm:$0xff]   ;;  %v11428_v1 = vld [vmem:[%s17443_s0] ss:$16 sps:$4 sm:$0xff]   ;;  %11424 = vset.pattern.permute.xlu0 %v13205_v4  ;;  %11425 = vset.pattern.permute.xlu1 %v13205_v4  ;;  %v47_v28 = vld [vmem:[%s17445_s2 + $0x8] sm:$0xff]  ;;  %s13208_s23 = smov 94  }
   0x2   :  { %454 = vmatprep.subr.bf16.mxu0 %v11426_v0  ;;  %v11429_v2 = vld [vmem:[%s17443_s0 + $0x24] ss:$16 sps:$4 sm:$0xff]   ;;  %v11431_v3 = vld [vmem:[%s17443_s0 + $0x20] ss:$16 sps:$4 sm:$0xff]   ;;  %v11479_v36 = vld [vmem:[%s17443_s0 + $0xc] ss:$16 sps:$4 sm:$0xff]  }
   0x3   :  { %455 = vmatpush1.bf16.msra.mxu0 %v11428_v1  ;;  %v11432_v5 = vld [vmem:[%s17443_s0 + $0x44] ss:$16 sps:$4 sm:$0xff]   ;;  %v11434_v6 = vld [vmem:[%s17443_s0 + $0x40] ss:$16 sps:$4 sm:$0xff]   ;;  %v11477_v38 = vld [vmem:[%s17443_s0 + $0x8] ss:$16 sps:$4 sm:$0xff]  }
   0x4   :  { %456 = vmatprep.subr.bf16.mxu0 %v11429_v2  ;;  %v11435_v7 = vld [vmem:[%s17443_s0 + $0x64] ss:$16 sps:$4 sm:$0xff]   ;;  %v11437_v8 = vld [vmem:[%s17443_s0 + $0x60] ss:$16 sps:$4 sm:$0xff]   ;;  %v11482_v39 = vld [vmem:[%s17443_s0 + $0x2c] ss:$16 sps:$4 sm:$0xff]  }
   0x5   :  { %v11438_v9 = vld [vmem:[%s17443_s0 + $0x84] ss:$16 sps:$4 sm:$0xff]   ;;  %v11440_v10 = vld [vmem:[%s17443_s0 + $0x80] ss:$16 sps:$4 sm:$0xff]   ;;  %v11480_v40 = vld [vmem:[%s17443_s0 + $0x28] ss:$16 sps:$4 sm:$0xff]  }
   0x6   :  { %v11441_v11 = vld [vmem:[%s17443_s0 + $0xa4] ss:$16 sps:$4 sm:$0xff]   ;;  %v11443_v12 = vld [vmem:[%s17443_s0 + $0xa0] ss:$16 sps:$4 sm:$0xff]   ;;  %v11485_v41 = vld [vmem:[%s17443_s0 + $0x4c] ss:$16 sps:$4 sm:$0xff]  }
   0x7   :  { %457 = vmatpush1.bf16.msra.mxu0 %v11431_v3  ;;  %v11444_v13 = vld [vmem:[%s17443_s0 + $0xc4] ss:$16 sps:$4 sm:$0xff]   ;;  %v11446_v15 = vld [vmem:[%s17443_s0 + $0xc0] ss:$16 sps:$4 sm:$0xff]   ;;  %v11483_v42 = vld [vmem:[%s17443_s0 + $0x48] ss:$16 sps:$4 sm:$0xff]  }
   0x8   :  { %458 = vmatprep.subr.bf16.mxu0 %v11432_v5  ;;  %v11476_v14 = vld [vmem:[%s17444_s1 + $0x4] ss:$8 sps:$4 sm:$0xff]   ;;  %v11449_v17 = vld [vmem:[%s17443_s0 + $0xe0] ss:$16 sps:$4 sm:$0xff]   ;;  %v11486_v44 = vld [vmem:[%s17443_s0 + $0x68] ss:$16 sps:$4 sm:$0xff]  }
   0x9   :  { %v11447_v16 = vld [vmem:[%s17443_s0 + $0xe4] ss:$16 sps:$4 sm:$0xff]   ;;  %486 = vmatprep.mubr.bf16.mxu0 %v11476_v14  ;;  %v11452_v19 = vld [vmem:[%s17443_s0 + $0x100] ss:$16 sps:$4 sm:$0xff]   ;;  %v11488_v43 = vld [vmem:[%s17443_s0 + $0x6c] ss:$16 sps:$4 sm:$0xff]  }
   0xa   :  { %v11450_v18 = vld [vmem:[%s17443_s0 + $0x104] ss:$16 sps:$4 sm:$0xff]   ;;  %v11455_v21 = vld [vmem:[%s17443_s0 + $0x120] ss:$16 sps:$4 sm:$0xff]   ;;  %v11491_v45 = vld [vmem:[%s17443_s0 + $0x8c] ss:$16 sps:$4 sm:$0xff]  }
   0xb   :  { %459 = vmatpush1.bf16.msra.mxu0 %v11434_v6  ;;  %v11453_v20 = vld [vmem:[%s17443_s0 + $0x124] ss:$16 sps:$4 sm:$0xff]   ;;  %v11458_v23 = vld [vmem:[%s17443_s0 + $0x140] ss:$16 sps:$4 sm:$0xff]   ;;  %v11489_v46 = vld [vmem:[%s17443_s0 + $0x88] ss:$16 sps:$4 sm:$0xff]  }
   0xc   :  { %460 = vmatprep.subr.bf16.mxu0 %v11435_v7  ;;  %v11456_v22 = vld [vmem:[%s17443_s0 + $0x144] ss:$16 sps:$4 sm:$0xff]   ;;  %v11461_v25 = vld [vmem:[%s17443_s0 + $0x160] ss:$16 sps:$4 sm:$0xff]   ;;  %v11494_v47 = vld [vmem:[%s17443_s0 + $0xac] ss:$16 sps:$4 sm:$0xff]  }
   0xd   :  { %v11459_v24 = vld [vmem:[%s17443_s0 + $0x164] ss:$16 sps:$4 sm:$0xff]   ;;  %v11464_v29 = vld [vmem:[%s17443_s0 + $0x180] ss:$16 sps:$4 sm:$0xff]   ;;  %v11492_v48 = vld [vmem:[%s17443_s0 + $0xa8] ss:$16 sps:$4 sm:$0xff]  }
   0xe   :  { %v11462_v26 = vld [vmem:[%s17443_s0 + $0x184] ss:$16 sps:$4 sm:$0xff]   ;;  %v11467_v31 = vld [vmem:[%s17443_s0 + $0x1a0] ss:$16 sps:$4 sm:$0xff]   ;;  %v11497_v49 = vld [vmem:[%s17443_s0 + $0xcc] ss:$16 sps:$4 sm:$0xff]  }
   0xf   :  { %461 = vmatpush1.bf16.msra.mxu0 %v11437_v8  ;;  %v46_v27 = vld [vmem:[%s17445_s2] sm:$0xff]  ;;  %v11495_v50 = vld [vmem:[%s17443_s0 + $0xc8] ss:$16 sps:$4 sm:$0xff]   ;;  %v11500_v51 = vld [vmem:[%s17443_s0 + $0xec] ss:$16 sps:$4 sm:$0xff]   ;;  %s13209_s12 = smov 60  }
  0x10   :  { %462 = vmatprep.subr.bf16.mxu0 %v11438_v9  ;;  %116 = vperm.xlu0 %11424, %v46_v27   ;;  %v11465_v30 = vld [vmem:[%s17443_s0 + $0x1a4] ss:$16 sps:$4 sm:$0xff]   ;;  %v11470_v33 = vld [vmem:[%s17443_s0 + $0x1c0] ss:$16 sps:$4 sm:$0xff]   ;;  %v11498_v52 = vld [vmem:[%s17443_s0 + $0xe8] ss:$16 sps:$4 sm:$0xff]  }
  0x11   :  { %v11468_v32 = vld [vmem:[%s17443_s0 + $0x1c4] ss:$16 sps:$4 sm:$0xff]   ;;  %v11473_v35 = vld [vmem:[%s17443_s0 + $0x1e0] ss:$16 sps:$4 sm:$0xff]   ;;  %v11503_v53 = vld [vmem:[%s17443_s0 + $0x10c] ss:$16 sps:$4 sm:$0xff]  }
  0x12   :  { %v11471_v34 = vld [vmem:[%s17443_s0 + $0x1e4] ss:$16 sps:$4 sm:$0xff]   ;;  %v13391_v37 = vld [vmem:[%s17444_s1] ss:$8 sps:$4 sm:$0xff]   ;;  %v11506_v55 = vld [vmem:[%s17443_s0 + $0x12c] ss:$16 sps:$4 sm:$0xff]  }
  0x13   :  { %463 = vmatpush1.bf16.msra.mxu0 %v11440_v10  ;;  %v11501_v54 = vld [vmem:[%s17443_s0 + $0x108] ss:$16 sps:$4 sm:$0xff]   ;;  %v11509_v57 = vld [vmem:[%s17443_s0 + $0x14c] ss:$16 sps:$4 sm:$0xff]   ;;  %v11527_v6 = vld [vmem:[%s17446_s3 + $0x4] ss:$44 sps:$4 sm:$0xff]  }
  0x14   :  { %464 = vmatprep.subr.bf16.mxu0 %v11441_v11  ;;  %121 = vperm.xlu0 %11424, %v47_v28   ;;  %v11504_v56 = vld [vmem:[%s17443_s0 + $0x128] ss:$16 sps:$4 sm:$0xff]   ;;  %v11512_v59 = vld [vmem:[%s17443_s0 + $0x16c] ss:$16 sps:$4 sm:$0xff]   ;;  %v11533_v10 = vld [vmem:[%s17446_s3 + $0xb4] ss:$44 sps:$4 sm:$0xff]  }
  0x15   :  { %v11507_v58 = vld [vmem:[%s17443_s0 + $0x148] ss:$16 sps:$4 sm:$0xff]   ;;  %v11515_v61 = vld [vmem:[%s17443_s0 + $0x18c] ss:$16 sps:$4 sm:$0xff]   ;;  %v11557_v28 = vld [vmem:[%s17446_s3 + $0x374] ss:$44 sps:$4 sm:$0xff]  }
  0x16   :  { %v11510_v60 = vld [vmem:[%s17443_s0 + $0x168] ss:$16 sps:$4 sm:$0xff]   ;;  %v11518_v63 = vld [vmem:[%s17443_s0 + $0x1ac] ss:$16 sps:$4 sm:$0xff]   ;;  %s13210_s2 = smov 26   ;;  %s13211_s24 = smov 107  }
  0x17   :  { %465 = vmatpush1.bf16.msra.mxu0 %v11443_v12  ;;  %v11513_v62 = vld [vmem:[%s17443_s0 + $0x188] ss:$16 sps:$4 sm:$0xff]   ;;  %v11521_v1 = vld [vmem:[%s17443_s0 + $0x1cc] ss:$16 sps:$4 sm:$0xff]   ;;  %s13212_s27 = smov 73   ;;  %s13213_s13 = smov 39  }
  0x18   :  { %466 = vmatprep.subr.bf16.mxu0 %v11444_v13  ;;  %v11516_v0 = vld [vmem:[%s17443_s0 + $0x1a8] ss:$16 sps:$4 sm:$0xff]   ;;  %v11524_v3 = vld [vmem:[%s17443_s0 + $0x1ec] ss:$16 sps:$4 sm:$0xff]   ;;  %s13214_s19 = smov 120   ;;  %vm2800_vm3 = vcmask 105472  }
  0x19   :  { %v11519_v2 = vld [vmem:[%s17443_s0 + $0x1c8] ss:$16 sps:$4 sm:$0xff]   ;;  %v11525_v7 = vld [vmem:[%s17446_s3] ss:$44 sps:$4 sm:$0xff]   ;;  %v11531_v11 = vld [vmem:[%s17446_s3 + $0xb0] ss:$44 sps:$4 sm:$0xff]  }
  0x1a   :  { %v11522_v5 = vld [vmem:[%s17443_s0 + $0x1e8] ss:$16 sps:$4 sm:$0xff]   ;;  %vm2809_vm4 = vcmask 490496   ;;  %s13215_s16 = smov 5   ;;  %vm2822_vm5 = vcmask 211968   ;;  %vm2831_vm6 = vcmask 596992  }
  0x1b   :  { %467 = vmatpush1.bf16.msra.mxu0 %v11446_v15  ;;  %v11530_v8 = vld [vmem:[%s17446_s3 + $0x5c] ss:$44 sps:$4 sm:$0xff]   ;;  %v11528_v9 = vld [vmem:[%s17446_s3 + $0x58] ss:$44 sps:$4 sm:$0xff]   ;;  %v11537_v15 = vld [vmem:[%s17446_s3 + $0x160] ss:$44 sps:$4 sm:$0xff]  }
  0x1c   :  { %468 = vmatprep.subr.bf16.mxu0 %v11447_v16  ;;  %v11536_v12 = vld [vmem:[%s17446_s3 + $0x10c] ss:$44 sps:$4 sm:$0xff]   ;;  %v11534_v13 = vld [vmem:[%s17446_s3 + $0x108] ss:$44 sps:$4 sm:$0xff]   ;;  %vm2844_vm7 = vcmask 318464   ;;  %vm2857_vm8 = vcmask 39936  }
  0x1d   :  { %v11542_v16 = vld [vmem:[%s17446_s3 + $0x1bc] ss:$44 sps:$4 sm:$0xff]   ;;  %vm2866_vm9 = vcmask 424960   ;;  %vm2879_vm10 = vcmask 146432   ;;  %vm2888_vm11 = vcmask 531456   ;;  %vm5865_vm12 = vcmask 655360  }
  0x1e   :  { %v11578_v27 = vld [vmem:[%s17446_s3 + $0x588] ss:$44 sps:$4 sm:$0xff]   ;;  %vm9965_vm13 = vcmask 1041408   ;;  %vm9979_vm14 = vcmask 1024  }
  0x1f   :  { %469 = vmatpush1.bf16.msra.mxu0 %v11449_v17  ;;  %v11540_v17 = vld [vmem:[%s17446_s3 + $0x1b8] ss:$44 sps:$4 sm:$0xff]  }
  0x20   :  { %470 = vmatprep.subr.bf16.mxu0 %v11450_v18  ;;  %v11545_v18 = vld [vmem:[%s17446_s3 + $0x214] ss:$44 sps:$4 sm:$0xff]  }
  0x23   :  { %471 = vmatpush1.bf16.msra.mxu0 %v11452_v19  ;;  %v11543_v19 = vld [vmem:[%s17446_s3 + $0x210] ss:$44 sps:$4 sm:$0xff]  }
  0x24   :  { %472 = vmatprep.subr.bf16.mxu0 %v11453_v20  ;;  %v11548_v20 = vld [vmem:[%s17446_s3 + $0x26c] ss:$44 sps:$4 sm:$0xff]  }
  0x27   :  { %473 = vmatpush1.bf16.msra.mxu0 %v11455_v21  ;;  %v11546_v21 = vld [vmem:[%s17446_s3 + $0x268] ss:$44 sps:$4 sm:$0xff]  }
  0x28   :  { %474 = vmatprep.subr.bf16.mxu0 %v11456_v22  ;;  %v11551_v22 = vld [vmem:[%s17446_s3 + $0x2c4] ss:$44 sps:$4 sm:$0xff]  }
  0x2b   :  { %475 = vmatpush1.bf16.msra.mxu0 %v11458_v23  ;;  %v11549_v23 = vld [vmem:[%s17446_s3 + $0x2c0] ss:$44 sps:$4 sm:$0xff]  }
  0x2c   :  { %476 = vmatprep.subr.bf16.mxu0 %v11459_v24  ;;  %v11554_v24 = vld [vmem:[%s17446_s3 + $0x31c] ss:$44 sps:$4 sm:$0xff]  }
  0x2f   :  { %477 = vmatpush1.bf16.msra.mxu0 %v11461_v25  ;;  %v11576_v25 = vld [vmem:[%s17446_s3 + $0x58c] ss:$44 sps:$4 sm:$0xff]  }
  0x30   :  { %478 = vmatprep.subr.bf16.mxu0 %v11462_v26  ;;  %v11552_v26 = vld [vmem:[%s17446_s3 + $0x318] ss:$44 sps:$4 sm:$0xff]   ;;  %2385 = vmatprep.subr.bf16.mxu1 %v11576_v25  ;;  %v11615_v25 = vld [vmem:[%s17446_s3 + $0x7e8] ss:$44 sps:$4 sm:$0xff]  }
  0x31   :  { %2386 = vmatpush1.bf16.msra.mxu1 %v11578_v27  ;;  %v11621_v27 = vld [vmem:[%s17446_s3 + $0x840] ss:$44 sps:$4 sm:$0xff]  }
  0x33   :  { %479 = vmatpush1.bf16.msra.mxu0 %v11464_v29  ;;  %v11582_v29 = vld [vmem:[%s17446_s3 + $0x5e4] ss:$44 sps:$4 sm:$0xff]  }
  0x34   :  { %480 = vmatprep.subr.bf16.mxu0 %v11465_v30  ;;  %2387 = vmatprep.subr.bf16.mxu1 %v11582_v29  ;;  %v11555_v30 = vld [vmem:[%s17446_s3 + $0x370] ss:$44 sps:$4 sm:$0xff]  }
  0x37   :  { %481 = vmatpush1.bf16.msra.mxu0 %v11467_v31  ;;  %v11584_v31 = vld [vmem:[%s17446_s3 + $0x5e0] ss:$44 sps:$4 sm:$0xff]  }
  0x38   :  { %482 = vmatprep.subr.bf16.mxu0 %v11468_v32  ;;  %v11560_v32 = vld [vmem:[%s17446_s3 + $0x3cc] ss:$44 sps:$4 sm:$0xff]   ;;  %2388 = vmatpush1.bf16.msra.mxu1 %v11584_v31 }
  0x3b   :  { %483 = vmatpush1.bf16.msra.mxu0 %v11470_v33  ;;  %v11588_v33 = vld [vmem:[%s17446_s3 + $0x63c] ss:$44 sps:$4 sm:$0xff]  }
  0x3c   :  { %484 = vmatprep.subr.bf16.mxu0 %v11471_v34  ;;  %2389 = vmatprep.subr.bf16.mxu1 %v11588_v33  ;;  %v11558_v34 = vld [vmem:[%s17446_s3 + $0x3c8] ss:$44 sps:$4 sm:$0xff]  }
  0x3f   :  { %485 = vmatpush1.bf16.msra.mxu0 %v11473_v35  ;;  %v11590_v35 = vld [vmem:[%s17446_s3 + $0x638] ss:$44 sps:$4 sm:$0xff]  }
  0x40   :  { %497 = vmatprep.subr.bf16.mxu0 %v11479_v36  ;;  %v11563_v36 = vld [vmem:[%s17446_s3 + $0x424] ss:$44 sps:$4 sm:$0xff]   ;;  %2390 = vmatpush1.bf16.msra.mxu1 %v11590_v35 }
  0x42   :  { %487 = vmatmul.mubr.bf16.vlgmr.msra.gmra.mrb[0].mxu0 %v13391_v37 }
  0x43   :  { %498 = vmatpush1.bf16.msra.mxu0 %v11477_v38  ;;  %529 = vmatprep.mubr.bf16.mxu0 %v11476_v14  ;;  %v11539_v14 = vld [vmem:[%s17446_s3 + $0x164] ss:$44 sps:$4 sm:$0xff]   ;;  %v11561_v38 = vld [vmem:[%s17446_s3 + $0x420] ss:$44 sps:$4 sm:$0xff]  }
  0x44   :  { %499 = vmatprep.subr.bf16.mxu0 %v11482_v39  ;;  %v11596_v39 = vld [vmem:[%s17446_s3 + $0x690] ss:$44 sps:$4 sm:$0xff]  }
  0x47   :  { %500 = vmatpush1.bf16.msra.mxu0 %v11480_v40  ;;  %v11566_v40 = vld [vmem:[%s17446_s3 + $0x47c] ss:$44 sps:$4 sm:$0xff]  }
  0x48   :  { %501 = vmatprep.subr.bf16.mxu0 %v11485_v41  ;;  %v11600_v41 = vld [vmem:[%s17446_s3 + $0x6ec] ss:$44 sps:$4 sm:$0xff]  }
  0x4b   :  { %502 = vmatpush1.bf16.msra.mxu0 %v11483_v42  ;;  %v11564_v42 = vld [vmem:[%s17446_s3 + $0x478] ss:$44 sps:$4 sm:$0xff]  }
  0x4c   :  { %503 = vmatprep.subr.bf16.mxu0 %v11488_v43  ;;  %v11602_v43 = vld [vmem:[%s17446_s3 + $0x6e8] ss:$44 sps:$4 sm:$0xff]  }
  0x4f   :  { %504 = vmatpush1.bf16.msra.mxu0 %v11486_v44  ;;  %v11569_v44 = vld [vmem:[%s17446_s3 + $0x4d4] ss:$44 sps:$4 sm:$0xff]  }
  0x50   :  { %505 = vmatprep.subr.bf16.mxu0 %v11491_v45  ;;  %v11606_v45 = vld [vmem:[%s17446_s3 + $0x744] ss:$44 sps:$4 sm:$0xff]  }
  0x53   :  { %506 = vmatpush1.bf16.msra.mxu0 %v11489_v46  ;;  %v11567_v46 = vld [vmem:[%s17446_s3 + $0x4d0] ss:$44 sps:$4 sm:$0xff]  }
  0x54   :  { %507 = vmatprep.subr.bf16.mxu0 %v11494_v47  ;;  %v11608_v47 = vld [vmem:[%s17446_s3 + $0x740] ss:$44 sps:$4 sm:$0xff]  }
  0x57   :  { %508 = vmatpush1.bf16.msra.mxu0 %v11492_v48  ;;  %v11572_v48 = vld [vmem:[%s17446_s3 + $0x52c] ss:$44 sps:$4 sm:$0xff]  }
  0x58   :  { %509 = vmatprep.subr.bf16.mxu0 %v11497_v49  ;;  %v11612_v49 = vld [vmem:[%s17446_s3 + $0x79c] ss:$44 sps:$4 sm:$0xff]  }
  0x5b   :  { %510 = vmatpush1.bf16.msra.mxu0 %v11495_v50  ;;  %v11570_v50 = vld [vmem:[%s17446_s3 + $0x528] ss:$44 sps:$4 sm:$0xff]  }
  0x5c   :  { %511 = vmatprep.subr.bf16.mxu0 %v11500_v51  ;;  %v11614_v51 = vld [vmem:[%s17446_s3 + $0x798] ss:$44 sps:$4 sm:$0xff]  }
  0x5f   :  { %512 = vmatpush1.bf16.msra.mxu0 %v11498_v52  ;;  %v11575_v52 = vld [vmem:[%s17446_s3 + $0x584] ss:$44 sps:$4 sm:$0xff]  }
  0x60   :  { %513 = vmatprep.subr.bf16.mxu0 %v11503_v53  ;;  %v11618_v53 = vld [vmem:[%s17446_s3 + $0x7f4] ss:$44 sps:$4 sm:$0xff]  }
  0x63   :  { %514 = vmatpush1.bf16.msra.mxu0 %v11501_v54  ;;  %v11620_v54 = vld [vmem:[%s17446_s3 + $0x7f0] ss:$44 sps:$4 sm:$0xff]  }
  0x64   :  { %515 = vmatprep.subr.bf16.mxu0 %v11506_v55  ;;  %v11624_v55 = vld [vmem:[%s17446_s3 + $0x84c] ss:$44 sps:$4 sm:$0xff]  }
  0x67   :  { %516 = vmatpush1.bf16.msra.mxu0 %v11504_v56  ;;  %v11626_v56 = vld [vmem:[%s17446_s3 + $0x848] ss:$44 sps:$4 sm:$0xff]  }
  0x68   :  { %517 = vmatprep.subr.bf16.mxu0 %v11509_v57  ;;  %v11632_v57 = vld [vmem:[%s17446_s3 + $0x59c] ss:$44 sps:$4 sm:$0xff]  }
  0x6b   :  { %518 = vmatpush1.bf16.msra.mxu0 %v11507_v58 }
  0x6c   :  { %519 = vmatprep.subr.bf16.mxu0 %v11512_v59 }
  0x6f   :  { %520 = vmatpush1.bf16.msra.mxu0 %v11510_v60 }
  0x70   :  { %521 = vmatprep.subr.bf16.mxu0 %v11515_v61 }
  0x73   :  { %522 = vmatpush1.bf16.msra.mxu0 %v11513_v62 }
  0x74   :  { %523 = vmatprep.subr.bf16.mxu0 %v11518_v63 }
  0x77   :  { %524 = vmatpush1.bf16.msra.mxu0 %v11516_v0 }
  0x78   :  { %525 = vmatprep.subr.bf16.mxu0 %v11521_v1 }
  0x7b   :  { %526 = vmatpush1.bf16.msra.mxu0 %v11519_v2 }
  0x7c   :  { %527 = vmatprep.subr.bf16.mxu0 %v11524_v3 }
  0x7f   :  { %528 = vmatpush1.bf16.msra.mxu0 %v11522_v5 }
  0x80   :  { %2256 = vmatprep.subr.bf16.mxu0 %v11527_v6 }
  0x82   :  { %530 = vmatmul.mubr.bf16.vlgmr.msra.gmra.mrb[4].mxu0 %v13391_v37  ;;  %v11594_v37 = vld [vmem:[%s17446_s3 + $0x694] ss:$44 sps:$4 sm:$0xff]  }
  0x83   :  { %2257 = vmatpush1.bf16.msra.mxu0 %v11525_v7  ;;  %2391 = vmatprep.subr.bf16.mxu1 %v11594_v37 }
  0x84   :  { %2258 = vmatprep.subr.bf16.mxu0 %v11530_v8  ;;  %2392 = vmatpush1.bf16.msra.mxu1 %v11596_v39 }
  0x85   :  { %2393 = vmatprep.subr.bf16.mxu1 %v11600_v41 }
  0x87   :  { %2259 = vmatpush1.bf16.msra.mxu0 %v11528_v9  ;;  %v11573_v9 = vld [vmem:[%s17446_s3 + $0x580] ss:$44 sps:$4 sm:$0xff]  }
  0x88   :  { %2260 = vmatprep.subr.bf16.mxu0 %v11533_v10  ;;  %2394 = vmatpush1.bf16.msra.mxu1 %v11602_v43  ;;  %v11627_v43 = vld [vmem:[%s17446_s3 + $0x8] ss:$44 sps:$4 sm:$0xff]  }
  0x89   :  { %2395 = vmatprep.subr.bf16.mxu1 %v11606_v45  ;;  %v11635_v45 = vld [vmem:[%s17446_s3 + $0x64] ss:$44 sps:$4 sm:$0xff]  }
  0x8b   :  { %2261 = vmatpush1.bf16.msra.mxu0 %v11531_v11  ;;  %v11581_v11 = vld [vmem:[%s17446_s3 + $0x5dc] ss:$44 sps:$4 sm:$0xff]  }
  0x8c   :  { %2262 = vmatprep.subr.bf16.mxu0 %v11536_v12  ;;  %2396 = vmatpush1.bf16.msra.mxu1 %v11608_v47  ;;  %v11633_v47 = vld [vmem:[%s17446_s3 + $0x60] ss:$44 sps:$4 sm:$0xff]  }
  0x8d   :  { %2397 = vmatprep.subr.bf16.mxu1 %v11612_v49  ;;  %v11641_v49 = vld [vmem:[%s17446_s3 + $0xbc] ss:$44 sps:$4 sm:$0xff]  }
  0x8f   :  { %2263 = vmatpush1.bf16.msra.mxu0 %v11534_v13  ;;  %v13644_v58 = vpop.permute.xlu0 %116  ;;  %v11579_v13 = vld [vmem:[%s17446_s3 + $0x5d8] ss:$44 sps:$4 sm:$0xff]  }
  0x90   :  { %2264 = vmatprep.subr.bf16.mxu0 %v11539_v14  ;;  %2398 = vmatpush1.bf16.msra.mxu1 %v11614_v51  ;;  %v11587_v14 = vld [vmem:[%s17446_s3 + $0x634] ss:$44 sps:$4 sm:$0xff]   ;;  %v11639_v51 = vld [vmem:[%s17446_s3 + $0xb8] ss:$44 sps:$4 sm:$0xff]  }
  0x91   :  { %2399 = vmatprep.subr.bf16.mxu1 %v11618_v53  ;;  %v11647_v53 = vld [vmem:[%s17446_s3 + $0x114] ss:$44 sps:$4 sm:$0xff]  }
  0x93   :  { %2265 = vmatpush1.bf16.msra.mxu0 %v11537_v15  ;;  %v13646_v60 = vpop.permute.xlu0 %121  ;;  %v11585_v15 = vld [vmem:[%s17446_s3 + $0x630] ss:$44 sps:$4 sm:$0xff]  }
  0x94   :  { %2266 = vmatprep.subr.bf16.mxu0 %v11542_v16  ;;  %2400 = vmatpush1.bf16.msra.mxu1 %v11620_v54  ;;  %v11593_v16 = vld [vmem:[%s17446_s3 + $0x68c] ss:$44 sps:$4 sm:$0xff]   ;;  %v11650_v54 = vld [vmem:[%s17446_s3 + $0x6a4] ss:$44 sps:$4 sm:$0xff]  }
  0x95   :  { %2401 = vmatprep.subr.bf16.mxu1 %v11624_v55  ;;  %v11645_v55 = vld [vmem:[%s17446_s3 + $0x110] ss:$44 sps:$4 sm:$0xff]  }
  0x97   :  { %2267 = vmatpush1.bf16.msra.mxu0 %v11540_v17  ;;  %v11591_v17 = vld [vmem:[%s17446_s3 + $0x688] ss:$44 sps:$4 sm:$0xff]  }
  0x98   :  { %2268 = vmatprep.subr.bf16.mxu0 %v11545_v18  ;;  %2402 = vmatpush1.bf16.msra.mxu1 %v11626_v56  ;;  %v11599_v18 = vld [vmem:[%s17446_s3 + $0x6e4] ss:$44 sps:$4 sm:$0xff]   ;;  %v11648_v56 = vld [vmem:[%s17446_s3 + $0x6a0] ss:$44 sps:$4 sm:$0xff]  }
  0x99   :  { %2557 = vmatprep.subr.bf16.mxu1 %v11632_v57  ;;  %v11653_v57 = vld [vmem:[%s17446_s3 + $0x16c] ss:$44 sps:$4 sm:$0xff]  }
  0x9b   :  { %2269 = vmatpush1.bf16.msra.mxu0 %v11543_v19  ;;  %v11597_v19 = vld [vmem:[%s17446_s3 + $0x6e0] ss:$44 sps:$4 sm:$0xff]  }
  0x9c   :  { %2270 = vmatprep.subr.bf16.mxu0 %v11548_v20  ;;  %v11605_v20 = vld [vmem:[%s17446_s3 + $0x73c] ss:$44 sps:$4 sm:$0xff]  }
  0x9f   :  { %2271 = vmatpush1.bf16.msra.mxu0 %v11546_v21  ;;  %v11603_v21 = vld [vmem:[%s17446_s3 + $0x738] ss:$44 sps:$4 sm:$0xff]  }
  0xa0   :  { %2272 = vmatprep.subr.bf16.mxu0 %v11551_v22  ;;  %v11611_v22 = vld [vmem:[%s17446_s3 + $0x794] ss:$44 sps:$4 sm:$0xff]  }
  0xa3   :  { %2273 = vmatpush1.bf16.msra.mxu0 %v11549_v23  ;;  %v11609_v23 = vld [vmem:[%s17446_s3 + $0x790] ss:$44 sps:$4 sm:$0xff]  }
  0xa4   :  { %2274 = vmatprep.subr.bf16.mxu0 %v11554_v24  ;;  %v11617_v24 = vld [vmem:[%s17446_s3 + $0x7ec] ss:$44 sps:$4 sm:$0xff]  }
  0xa7   :  { %2275 = vmatpush1.bf16.msra.mxu0 %v11552_v26  ;;  %v11623_v26 = vld [vmem:[%s17446_s3 + $0x844] ss:$44 sps:$4 sm:$0xff]  }
  0xa8   :  { %2276 = vmatprep.subr.bf16.mxu0 %v11557_v28  ;;  %v11629_v28 = vld [vmem:[%s17446_s3 + $0xc] ss:$44 sps:$4 sm:$0xff]  }
  0xab   :  { %2277 = vmatpush1.bf16.msra.mxu0 %v11555_v30 }
  0xac   :  { %2278 = vmatprep.subr.bf16.mxu0 %v11560_v32 }
  0xaf   :  { %2279 = vmatpush1.bf16.msra.mxu0 %v11558_v34 }
  0xb0   :  { %2280 = vmatprep.subr.bf16.mxu0 %v11563_v36 }
  0xb3   :  { %2281 = vmatpush1.bf16.msra.mxu0 %v11561_v38 }
  0xb4   :  { %2282 = vmatprep.subr.bf16.mxu0 %v11566_v40 }
  0xb7   :  { %2283 = vmatpush1.bf16.msra.mxu0 %v11564_v42 }
  0xb8   :  { %2284 = vmatprep.subr.bf16.mxu0 %v11569_v44  ;;  %v11630_v44 = vld [vmem:[%s17446_s3 + $0x598] ss:$44 sps:$4 sm:$0xff]  }
  0xbb   :  { %2285 = vmatpush1.bf16.msra.mxu0 %v11567_v46  ;;  %v11638_v46 = vld [vmem:[%s17446_s3 + $0x5f4] ss:$44 sps:$4 sm:$0xff]  }
  0xbc   :  { %2286 = vmatprep.subr.bf16.mxu0 %v11572_v48  ;;  %v11636_v48 = vld [vmem:[%s17446_s3 + $0x5f0] ss:$44 sps:$4 sm:$0xff]  }
  0xbf   :  { %2287 = vmatpush1.bf16.msra.mxu0 %v11570_v50  ;;  %v11644_v50 = vld [vmem:[%s17446_s3 + $0x64c] ss:$44 sps:$4 sm:$0xff]  }
  0xc0   :  { %2299 = vmatprep.subr.bf16.mxu0 %v11575_v52  ;;  %v11642_v52 = vld [vmem:[%s17446_s3 + $0x648] ss:$44 sps:$4 sm:$0xff]  }
 0x115   :  { %v488_v59 = vpop.f32.mrb[0].mxu0 }
 0x116   :  { %v489_v61 = vadd.f32 %v488_v59, %v13644_v58  ;;  %v490_v62 = vpop.f32.mrb[1].mxu0  ;;  %v11656_v59 = vld [vmem:[%s17446_s3 + $0x6fc] ss:$44 sps:$4 sm:$0xff]  }
 0x117   :  { %v491_v63 = vadd.f32 %v490_v62, %v13644_v58  ;;  %v492_v0 = vpop.f32.mrb[2].mxu0  ;;  %v11654_v62 = vld [vmem:[%s17446_s3 + $0x6f8] ss:$44 sps:$4 sm:$0xff]  }
 0x118   :  { %v540_v1 = vmax.f32 %v489_v61, 0.0  ;;  %v493_v2 = vadd.f32 %v492_v0, %v13646_v60  ;;  %v494_v3 = vpop.f32.mrb[3].mxu0  ;;  %v11651_v61 = vld [vmem:[%s17446_s3 + $0x168] ss:$44 sps:$4 sm:$0xff]  }
 0x119   :  { %v495_v5 = vadd.f32 %v494_v3, %v13646_v60  ;;  %v541_v7 = vmax.f32 %v491_v63, 0.0  ;;  %v11659_v63 = vld [vmem:[%s17446_s3 + $0x1c4] ss:$44 sps:$4 sm:$0xff]   ;;  %v11662_v0 = vld [vmem:[%s17446_s3 + $0x754] ss:$44 sps:$4 sm:$0xff]  }
 0x11a   :  { %v544_v6 = vmax.f32 %v493_v2, 0.0  ;;  %v11660_v2 = vld [vmem:[%s17446_s3 + $0x750] ss:$44 sps:$4 sm:$0xff]  }
 0x11b   :  { %v545_v8 = vmax.f32 %v495_v5, 0.0  ;;  %v11665_v3 = vld [vmem:[%s17446_s3 + $0x21c] ss:$44 sps:$4 sm:$0xff]   ;;  %v11668_v5 = vld [vmem:[%s17446_s3 + $0x7ac] ss:$44 sps:$4 sm:$0xff]  }
 0x11c   :  { %v13655_v10 = vpack.c.bf16 %v544_v6, %v540_v1  ;;  %v11657_v1 = vld [vmem:[%s17446_s3 + $0x1c0] ss:$44 sps:$4 sm:$0xff]   ;;  %v11663_v6 = vld [vmem:[%s17446_s3 + $0x218] ss:$44 sps:$4 sm:$0xff]  }
 0x11d   :  { %v13660_v12 = vpack.c.bf16 %v545_v8, %v541_v7  ;;  %v11666_v7 = vld [vmem:[%s17446_s3 + $0x7a8] ss:$44 sps:$4 sm:$0xff]  }
 0x11e   :  { %v11671_v8 = vld [vmem:[%s17446_s3 + $0x274] ss:$44 sps:$4 sm:$0xff]  }
 0x11f   :  { %2288 = vmatprep.mubr.bf16.mxu0 %v13660_v12 }
 0x120   :  { %2289 = vmatmul.mubr.bf16.vlgmr.msra.gmra.mrb[8].mxu0 %v13655_v10 }
 0x121   :  { %2300 = vmatpush1.bf16.msra.mxu0 %v11573_v9  ;;  %v11674_v9 = vld [vmem:[%s17446_s3 + $0x804] ss:$44 sps:$4 sm:$0xff]  }
 0x122   :  { %2301 = vmatprep.subr.bf16.mxu0 %v11581_v11  ;;  %v11669_v11 = vld [vmem:[%s17446_s3 + $0x270] ss:$44 sps:$4 sm:$0xff]  }
 0x125   :  { %2302 = vmatpush1.bf16.msra.mxu0 %v11579_v13  ;;  %v11672_v13 = vld [vmem:[%s17446_s3 + $0x800] ss:$44 sps:$4 sm:$0xff]  }
 0x126   :  { %2303 = vmatprep.subr.bf16.mxu0 %v11587_v14  ;;  %v11677_v14 = vld [vmem:[%s17446_s3 + $0x2cc] ss:$44 sps:$4 sm:$0xff]  }
 0x129   :  { %2304 = vmatpush1.bf16.msra.mxu0 %v11585_v15  ;;  %v11680_v15 = vld [vmem:[%s17446_s3 + $0x85c] ss:$44 sps:$4 sm:$0xff]  }
 0x12a   :  { %2305 = vmatprep.subr.bf16.mxu0 %v11593_v16  ;;  %v11675_v16 = vld [vmem:[%s17446_s3 + $0x2c8] ss:$44 sps:$4 sm:$0xff]  }
 0x12d   :  { %2306 = vmatpush1.bf16.msra.mxu0 %v11591_v17  ;;  %v11678_v17 = vld [vmem:[%s17446_s3 + $0x858] ss:$44 sps:$4 sm:$0xff]  }
 0x12e   :  { %2307 = vmatprep.subr.bf16.mxu0 %v11599_v18  ;;  %v11683_v18 = vld [vmem:[%s17446_s3 + $0x324] ss:$44 sps:$4 sm:$0xff]  }
 0x131   :  { %2308 = vmatpush1.bf16.msra.mxu0 %v11597_v19  ;;  %v11681_v19 = vld [vmem:[%s17446_s3 + $0x320] ss:$44 sps:$4 sm:$0xff]  }
 0x132   :  { %2309 = vmatprep.subr.bf16.mxu0 %v11605_v20  ;;  %v11684_v20 = vld [vmem:[%s17446_s3 + $0x5a8] ss:$44 sps:$4 sm:$0xff]  }
 0x135   :  { %2310 = vmatpush1.bf16.msra.mxu0 %v11603_v21  ;;  %v11687_v21 = vld [vmem:[%s17446_s3 + $0x37c] ss:$44 sps:$4 sm:$0xff]  }
 0x136   :  { %2311 = vmatprep.subr.bf16.mxu0 %v11611_v22  ;;  %v11685_v22 = vld [vmem:[%s17446_s3 + $0x378] ss:$44 sps:$4 sm:$0xff]  }
 0x139   :  { %2312 = vmatpush1.bf16.msra.mxu0 %v11609_v23  ;;  %v11688_v23 = vld [vmem:[%s17446_s3 + $0x600] ss:$44 sps:$4 sm:$0xff]  }
 0x13a   :  { %2313 = vmatprep.subr.bf16.mxu0 %v11617_v24  ;;  %v11691_v24 = vld [vmem:[%s17446_s3 + $0x3d4] ss:$44 sps:$4 sm:$0xff]  }
 0x13d   :  { %2314 = vmatpush1.bf16.msra.mxu0 %v11615_v25  ;;  %v11689_v25 = vld [vmem:[%s17446_s3 + $0x3d0] ss:$44 sps:$4 sm:$0xff]  }
 0x13e   :  { %2315 = vmatprep.subr.bf16.mxu0 %v11623_v26  ;;  %v11692_v26 = vld [vmem:[%s17446_s3 + $0x658] ss:$44 sps:$4 sm:$0xff]  }
 0x141   :  { %2316 = vmatpush1.bf16.msra.mxu0 %v11621_v27  ;;  %v11695_v27 = vld [vmem:[%s17446_s3 + $0x42c] ss:$44 sps:$4 sm:$0xff]  }
 0x142   :  { %2342 = vmatprep.subr.bf16.mxu0 %v11629_v28  ;;  %v11693_v28 = vld [vmem:[%s17446_s3 + $0x428] ss:$44 sps:$4 sm:$0xff]  }
 0x155   :  { %v531_v29 = vpop.f32.mrb[4].mxu0 }
 0x156   :  { %v532_v30 = vadd.f32 %v531_v29, %v13644_v58  ;;  %v533_v31 = vpop.f32.mrb[5].mxu0  ;;  %v11696_v29 = vld [vmem:[%s17446_s3 + $0x6b0] ss:$44 sps:$4 sm:$0xff]  }
 0x157   :  { %v534_v32 = vadd.f32 %v533_v31, %v13644_v58  ;;  %v535_v33 = vpop.f32.mrb[6].mxu0  ;;  %v11697_v31 = vld [vmem:[%s17446_s3 + $0x480] ss:$44 sps:$4 sm:$0xff]  }
 0x158   :  { %v536_v34 = vadd.f32 %v535_v33, %v13646_v60  ;;  %v537_v35 = vpop.f32.mrb[7].mxu0  ;;  %v542_v37 = vmax.f32 %v532_v30, 0.0  ;;  %v11699_v30 = vld [vmem:[%s17446_s3 + $0x484] ss:$44 sps:$4 sm:$0xff]   ;;  %v11703_v33 = vld [vmem:[%s17446_s3 + $0x4dc] ss:$44 sps:$4 sm:$0xff]  }
 0x159   :  { %v538_v36 = vadd.f32 %v537_v35, %v13646_v60  ;;  %v543_v39 = vmax.f32 %v534_v32, 0.0  ;;  %v11700_v32 = vld [vmem:[%s17446_s3 + $0x708] ss:$44 sps:$4 sm:$0xff]   ;;  %v11704_v35 = vld [vmem:[%s17446_s3 + $0x760] ss:$44 sps:$4 sm:$0xff]  }
 0x15a   :  { %v546_v38 = vmax.f32 %v536_v34, 0.0  ;;  %v11701_v34 = vld [vmem:[%s17446_s3 + $0x4d8] ss:$44 sps:$4 sm:$0xff]  }
 0x15b   :  { %v547_v40 = vmax.f32 %v538_v36, 0.0  ;;  %v11707_v36 = vld [vmem:[%s17446_s3 + $0x534] ss:$44 sps:$4 sm:$0xff]  }
 0x15c   :  { %v13716_v41 = vpack.c.bf16 %v546_v38, %v542_v37  ;;  %v11705_v37 = vld [vmem:[%s17446_s3 + $0x530] ss:$44 sps:$4 sm:$0xff]   ;;  %v11708_v38 = vld [vmem:[%s17446_s3 + $0x7b8] ss:$44 sps:$4 sm:$0xff]  }
 0x15d   :  { %v13718_v42 = vpack.c.bf16 %v547_v40, %v543_v39  ;;  %v11711_v39 = vld [vmem:[%s17446_s3 + $0x14] ss:$44 sps:$4 sm:$0xff]   ;;  %v11709_v40 = vld [vmem:[%s17446_s3 + $0x10] ss:$44 sps:$4 sm:$0xff]  }
 0x15f   :  { %10326 = vmatprep.mubr.msk.bf16.mxu0 %vm2252_vm0, %v13718_v42  ;;  %10327 = vmatprep.mubr.msk.bf16.mxu1 %vm2252_vm0, %v13718_v42 }
 0x160   :  { %2332 = vmatmul.mubr.bf16.vlgmr.msra.gmra.mrb[8].mxu0 %v13716_v41  ;;  %2418 = vmatmul.mubr.bf16.vlgmr.msra.gmra.mrb[0].mxu1 %v13716_v41 }
 0x161   :  { %2343 = vmatpush1.bf16.msra.mxu0 %v11627_v43  ;;  %2558 = vmatpush1.bf16.msra.mxu1 %v11630_v44  ;;  %v11712_v43 = vld [vmem:[%s17446_s3 + $0x810] ss:$44 sps:$4 sm:$0xff]   ;;  %v11715_v44 = vld [vmem:[%s17446_s3 + $0x6c] ss:$44 sps:$4 sm:$0xff]  }
 0x162   :  { %2374 = vmatprep.mubr.bf16.mxu0 %v13660_v12  ;;  %10329 = vmatprep.mubr.msk.bf16.mxu1 %vm2252_vm0, %v13718_v42 }
 0x163   :  { %2344 = vmatprep.subr.bf16.mxu0 %v11635_v45  ;;  %2559 = vmatprep.subr.bf16.mxu1 %v11638_v46  ;;  %v11713_v45 = vld [vmem:[%s17446_s3 + $0x68] ss:$44 sps:$4 sm:$0xff]  }
 0x164   :  { %v11716_v46 = vld [vmem:[%s17446_s3 + $0x868] ss:$44 sps:$4 sm:$0xff]  }
 0x165   :  { %2345 = vmatpush1.bf16.msra.mxu0 %v11633_v47  ;;  %2560 = vmatpush1.bf16.msra.mxu1 %v11636_v48  ;;  %v11719_v47 = vld [vmem:[%s17446_s3 + $0xc4] ss:$44 sps:$4 sm:$0xff]   ;;  %v11717_v48 = vld [vmem:[%s17446_s3 + $0xc0] ss:$44 sps:$4 sm:$0xff]  }
 0x166   :  { %2346 = vmatprep.subr.bf16.mxu0 %v11641_v49  ;;  %2561 = vmatprep.subr.bf16.mxu1 %v11644_v50  ;;  %v11722_v49 = vld [vmem:[%s17446_s3 + $0x11c] ss:$44 sps:$4 sm:$0xff]   ;;  %v11720_v50 = vld [vmem:[%s17446_s3 + $0x118] ss:$44 sps:$4 sm:$0xff]  }
 0x169   :  { %2347 = vmatpush1.bf16.msra.mxu0 %v11639_v51  ;;  %2562 = vmatpush1.bf16.msra.mxu1 %v11642_v52  ;;  %v11725_v51 = vld [vmem:[%s17446_s3 + $0x174] ss:$44 sps:$4 sm:$0xff]   ;;  %v11723_v52 = vld [vmem:[%s17446_s3 + $0x170] ss:$44 sps:$4 sm:$0xff]  }
 0x16a   :  { %2348 = vmatprep.subr.bf16.mxu0 %v11647_v53  ;;  %2563 = vmatprep.subr.bf16.mxu1 %v11650_v54  ;;  %v11728_v53 = vld [vmem:[%s17446_s3 + $0x1cc] ss:$44 sps:$4 sm:$0xff]   ;;  %v11726_v54 = vld [vmem:[%s17446_s3 + $0x1c8] ss:$44 sps:$4 sm:$0xff]  }
 0x16d   :  { %2349 = vmatpush1.bf16.msra.mxu0 %v11645_v55  ;;  %2564 = vmatpush1.bf16.msra.mxu1 %v11648_v56  ;;  %v11731_v55 = vld [vmem:[%s17446_s3 + $0x224] ss:$44 sps:$4 sm:$0xff]   ;;  %v11729_v56 = vld [vmem:[%s17446_s3 + $0x220] ss:$44 sps:$4 sm:$0xff]  }
 0x16e   :  { %2350 = vmatprep.subr.bf16.mxu0 %v11653_v57  ;;  %2565 = vmatprep.subr.bf16.mxu1 %v11656_v59  ;;  %v11734_v57 = vld [vmem:[%s17446_s3 + $0x27c] ss:$44 sps:$4 sm:$0xff]   ;;  %v11732_v59 = vld [vmem:[%s17446_s3 + $0x278] ss:$44 sps:$4 sm:$0xff]  }
 0x171   :  { %2351 = vmatpush1.bf16.msra.mxu0 %v11651_v61  ;;  %2566 = vmatpush1.bf16.msra.mxu1 %v11654_v62  ;;  %v11737_v61 = vld [vmem:[%s17446_s3 + $0x2d4] ss:$44 sps:$4 sm:$0xff]   ;;  %v11735_v62 = vld [vmem:[%s17446_s3 + $0x2d0] ss:$44 sps:$4 sm:$0xff]  }
 0x172   :  { %2352 = vmatprep.subr.bf16.mxu0 %v11659_v63  ;;  %2567 = vmatprep.subr.bf16.mxu1 %v11662_v0  ;;  %v11740_v63 = vld [vmem:[%s17446_s3 + $0x32c] ss:$44 sps:$4 sm:$0xff]   ;;  %v11738_v0 = vld [vmem:[%s17446_s3 + $0x328] ss:$44 sps:$4 sm:$0xff]  }
 0x175   :  { %2353 = vmatpush1.bf16.msra.mxu0 %v11657_v1  ;;  %2568 = vmatpush1.bf16.msra.mxu1 %v11660_v2  ;;  %v11743_v1 = vld [vmem:[%s17446_s3 + $0x384] ss:$44 sps:$4 sm:$0xff]   ;;  %v11741_v2 = vld [vmem:[%s17446_s3 + $0x380] ss:$44 sps:$4 sm:$0xff]  }
 0x176   :  { %2354 = vmatprep.subr.bf16.mxu0 %v11665_v3  ;;  %2569 = vmatprep.subr.bf16.mxu1 %v11668_v5  ;;  %v11746_v3 = vld [vmem:[%s17446_s3 + $0x3dc] ss:$44 sps:$4 sm:$0xff]   ;;  %v11744_v5 = vld [vmem:[%s17446_s3 + $0x3d8] ss:$44 sps:$4 sm:$0xff]  }
 0x179   :  { %2355 = vmatpush1.bf16.msra.mxu0 %v11663_v6  ;;  %2570 = vmatpush1.bf16.msra.mxu1 %v11666_v7  ;;  %v11749_v6 = vld [vmem:[%s17446_s3 + $0x434] ss:$44 sps:$4 sm:$0xff]   ;;  %v11747_v7 = vld [vmem:[%s17446_s3 + $0x430] ss:$44 sps:$4 sm:$0xff]  }
 0x17a   :  { %2356 = vmatprep.subr.bf16.mxu0 %v11671_v8  ;;  %2571 = vmatprep.subr.bf16.mxu1 %v11674_v9  ;;  %v11752_v8 = vld [vmem:[%s17446_s3 + $0x48c] ss:$44 sps:$4 sm:$0xff]   ;;  %v11750_v9 = vld [vmem:[%s17446_s3 + $0x488] ss:$44 sps:$4 sm:$0xff]  }
 0x17d   :  { %2357 = vmatpush1.bf16.msra.mxu0 %v11669_v11  ;;  %2572 = vmatpush1.bf16.msra.mxu1 %v11672_v13  ;;  %v11755_v11 = vld [vmem:[%s17446_s3 + $0x4e4] ss:$44 sps:$4 sm:$0xff]   ;;  %v11753_v13 = vld [vmem:[%s17446_s3 + $0x4e0] ss:$44 sps:$4 sm:$0xff]  }
 0x17e   :  { %2358 = vmatprep.subr.bf16.mxu0 %v11677_v14  ;;  %2573 = vmatprep.subr.bf16.mxu1 %v11680_v15  ;;  %v11758_v14 = vld [vmem:[%s17446_s3 + $0x53c] ss:$44 sps:$4 sm:$0xff]   ;;  %v11756_v15 = vld [vmem:[%s17446_s3 + $0x538] ss:$44 sps:$4 sm:$0xff]  }
 0x181   :  { %2359 = vmatpush1.bf16.msra.mxu0 %v11675_v16  ;;  %2574 = vmatpush1.bf16.msra.mxu1 %v11678_v17  ;;  %v11761_v16 = vld [vmem:[%s17446_s3 + $0x594] ss:$44 sps:$4 sm:$0xff]   ;;  %v11759_v17 = vld [vmem:[%s17446_s3 + $0x590] ss:$44 sps:$4 sm:$0xff]  }
 0x182   :  { %2360 = vmatprep.subr.bf16.mxu0 %v11683_v18  ;;  %2727 = vmatprep.subr.bf16.mxu1 %v13205_v4  ;;  %v11764_v18 = vld [vmem:[%s17446_s3 + $0x5ec] ss:$44 sps:$4 sm:$0xff]  }
 0x184   :  { %2590 = vmatmul.mubr.bf16.vlgmr.msra.gmra.mrb[4].mxu1 %v13716_v41 }
 0x185   :  { %2361 = vmatpush1.bf16.msra.mxu0 %v11681_v19  ;;  %2728 = vmatpush1.bf16.msra.mxu1 %v11684_v20  ;;  %v11762_v19 = vld [vmem:[%s17446_s3 + $0x5e8] ss:$44 sps:$4 sm:$0xff]   ;;  %v11767_v20 = vld [vmem:[%s17446_s3 + $0x644] ss:$44 sps:$4 sm:$0xff]  }
 0x186   :  { %10331 = vmatprep.mubr.msk.bf16.mxu1 %vm2252_vm0, %v13718_v42  ;;  %2362 = vmatprep.subr.bf16.mxu0 %v11687_v21  ;;  %v11765_v21 = vld [vmem:[%s17446_s3 + $0x640] ss:$44 sps:$4 sm:$0xff]  }
 0x187   :  { %2729 = vmatprep.subr.bf16.mxu1 %v13205_v4 }
 0x189   :  { %2363 = vmatpush1.bf16.msra.mxu0 %v11685_v22  ;;  %2730 = vmatpush1.bf16.msra.mxu1 %v11688_v23  ;;  %v11770_v22 = vld [vmem:[%s17446_s3 + $0x69c] ss:$44 sps:$4 sm:$0xff]   ;;  %v11768_v23 = vld [vmem:[%s17446_s3 + $0x698] ss:$44 sps:$4 sm:$0xff]  }
 0x18a   :  { %2364 = vmatprep.subr.bf16.mxu0 %v11691_v24  ;;  %2731 = vmatprep.subr.bf16.mxu1 %v13205_v4  ;;  %v11773_v24 = vld [vmem:[%s17446_s3 + $0x6f4] ss:$44 sps:$4 sm:$0xff]  }
 0x18d   :  { %2365 = vmatpush1.bf16.msra.mxu0 %v11689_v25  ;;  %2732 = vmatpush1.bf16.msra.mxu1 %v11692_v26  ;;  %v11771_v25 = vld [vmem:[%s17446_s3 + $0x6f0] ss:$44 sps:$4 sm:$0xff]   ;;  %v11776_v26 = vld [vmem:[%s17446_s3 + $0x74c] ss:$44 sps:$4 sm:$0xff]  }
 0x18e   :  { %2366 = vmatprep.subr.bf16.mxu0 %v11695_v27  ;;  %2733 = vmatprep.subr.bf16.mxu1 %v13205_v4  ;;  %v11774_v27 = vld [vmem:[%s17446_s3 + $0x748] ss:$44 sps:$4 sm:$0xff]  }
 0x191   :  { %2367 = vmatpush1.bf16.msra.mxu0 %v11693_v28  ;;  %2734 = vmatpush1.bf16.msra.mxu1 %v11696_v29  ;;  %v11779_v28 = vld [vmem:[%s17446_s3 + $0x7a4] ss:$44 sps:$4 sm:$0xff]   ;;  %v11777_v29 = vld [vmem:[%s17446_s3 + $0x7a0] ss:$44 sps:$4 sm:$0xff]  }
 0x192   :  { %2368 = vmatprep.subr.bf16.mxu0 %v11699_v30  ;;  %2735 = vmatprep.subr.bf16.mxu1 %v13205_v4  ;;  %v11782_v30 = vld [vmem:[%s17446_s3 + $0x7fc] ss:$44 sps:$4 sm:$0xff]  }
 0x195   :  { %2369 = vmatpush1.bf16.msra.mxu0 %v11697_v31  ;;  %2736 = vmatpush1.bf16.msra.mxu1 %v11700_v32  ;;  %v11780_v31 = vld [vmem:[%s17446_s3 + $0x7f8] ss:$44 sps:$4 sm:$0xff]   ;;  %v11785_v32 = vld [vmem:[%s17446_s3 + $0x854] ss:$44 sps:$4 sm:$0xff]  }
 0x196   :  { %2370 = vmatprep.subr.bf16.mxu0 %v11703_v33  ;;  %2737 = vmatprep.subr.bf16.mxu1 %v13205_v4  ;;  %v11783_v33 = vld [vmem:[%s17446_s3 + $0x850] ss:$44 sps:$4 sm:$0xff]  }
 0x199   :  { %2371 = vmatpush1.bf16.msra.mxu0 %v11701_v34  ;;  %2738 = vmatpush1.bf16.msra.mxu1 %v11704_v35  ;;  %v11788_v34 = vld [vmem:[%s17446_s3 + $0x1c] ss:$44 sps:$4 sm:$0xff]   ;;  %v11786_v35 = vld [vmem:[%s17446_s3 + $0x18] ss:$44 sps:$4 sm:$0xff]  }
 0x19a   :  { %2372 = vmatprep.subr.bf16.mxu0 %v11707_v36  ;;  %2739 = vmatprep.subr.bf16.mxu1 %v13205_v4  ;;  %v11791_v36 = vld [vmem:[%s17446_s3 + $0x74] ss:$44 sps:$4 sm:$0xff]  }
 0x19d   :  { %2373 = vmatpush1.bf16.msra.mxu0 %v11705_v37  ;;  %2740 = vmatpush1.bf16.msra.mxu1 %v11708_v38  ;;  %v11789_v37 = vld [vmem:[%s17446_s3 + $0x70] ss:$44 sps:$4 sm:$0xff]   ;;  %v11794_v38 = vld [vmem:[%s17446_s3 + $0xcc] ss:$44 sps:$4 sm:$0xff]  }
 0x19e   :  { %2428 = vmatprep.subr.bf16.mxu0 %v11711_v39  ;;  %2741 = vmatprep.subr.bf16.mxu1 %v13205_v4  ;;  %v11792_v39 = vld [vmem:[%s17446_s3 + $0xc8] ss:$44 sps:$4 sm:$0xff]  }
 0x1a0   :  { %2375 = vmatmul.mubr.bf16.vlgmr.msra.gmra.mrb[12].mxu0 %v13655_v10 }
 0x1a1   :  { %2429 = vmatpush1.bf16.msra.mxu0 %v11709_v40  ;;  %2460 = vmatprep.mubr.bf16.mxu0 %v13660_v12  ;;  %v11797_v40 = vld [vmem:[%s17446_s3 + $0x124] ss:$44 sps:$4 sm:$0xff]  }
 0x1a2   :  { %2742 = vmatpush1.bf16.msra.mxu1 %v11712_v43  ;;  %2430 = vmatprep.subr.bf16.mxu0 %v11715_v44  ;;  %v11795_v43 = vld [vmem:[%s17446_s3 + $0x120] ss:$44 sps:$4 sm:$0xff]   ;;  %v11800_v44 = vld [vmem:[%s17446_s3 + $0x17c] ss:$44 sps:$4 sm:$0xff]  }
 0x1a3   :  { %2743 = vmatprep.subr.bf16.mxu1 %v13205_v4 }
 0x1a5   :  { %2431 = vmatpush1.bf16.msra.mxu0 %v11713_v45  ;;  %v11798_v45 = vld [vmem:[%s17446_s3 + $0x178] ss:$44 sps:$4 sm:$0xff]  }
 0x1a6   :  { %2744 = vmatpush1.bf16.msra.mxu1 %v11716_v46  ;;  %2432 = vmatprep.subr.bf16.mxu0 %v11719_v47  ;;  %v11803_v46 = vld [vmem:[%s17446_s3 + $0x1d4] ss:$44 sps:$4 sm:$0xff]   ;;  %v11801_v47 = vld [vmem:[%s17446_s3 + $0x1d0] ss:$44 sps:$4 sm:$0xff]  }
 0x1a9   :  { %2760 = vmatmul.mubr.bf16.vlgmr.msra.gmra.mrb[8].mxu1 %v13716_v41  ;;  %2433 = vmatpush1.bf16.msra.mxu0 %v11717_v48  ;;  %v11806_v48 = vld [vmem:[%s17446_s3 + $0x22c] ss:$44 sps:$4 sm:$0xff]  }
 0x1aa   :  { %2434 = vmatprep.subr.bf16.mxu0 %v11722_v49  ;;  %v11804_v49 = vld [vmem:[%s17446_s3 + $0x228] ss:$44 sps:$4 sm:$0xff]  }
 0x1ad   :  { %2435 = vmatpush1.bf16.msra.mxu0 %v11720_v50  ;;  %v11809_v50 = vld [vmem:[%s17446_s3 + $0x284] ss:$44 sps:$4 sm:$0xff]  }
 0x1ae   :  { %2436 = vmatprep.subr.bf16.mxu0 %v11725_v51  ;;  %v11807_v51 = vld [vmem:[%s17446_s3 + $0x280] ss:$44 sps:$4 sm:$0xff]  }
 0x1b1   :  { %2437 = vmatpush1.bf16.msra.mxu0 %v11723_v52  ;;  %v11812_v52 = vld [vmem:[%s17446_s3 + $0x2dc] ss:$44 sps:$4 sm:$0xff]  }
 0x1b2   :  { %2438 = vmatprep.subr.bf16.mxu0 %v11728_v53  ;;  %v11810_v53 = vld [vmem:[%s17446_s3 + $0x2d8] ss:$44 sps:$4 sm:$0xff]  }
 0x1b5   :  { %2439 = vmatpush1.bf16.msra.mxu0 %v11726_v54  ;;  %v11815_v54 = vld [vmem:[%s17446_s3 + $0x334] ss:$44 sps:$4 sm:$0xff]  }
 0x1b6   :  { %2440 = vmatprep.subr.bf16.mxu0 %v11731_v55  ;;  %v11813_v55 = vld [vmem:[%s17446_s3 + $0x330] ss:$44 sps:$4 sm:$0xff]  }
 0x1b9   :  { %2441 = vmatpush1.bf16.msra.mxu0 %v11729_v56  ;;  %v11818_v56 = vld [vmem:[%s17446_s3 + $0x38c] ss:$44 sps:$4 sm:$0xff]  }
 0x1ba   :  { %2442 = vmatprep.subr.bf16.mxu0 %v11734_v57  ;;  %v11816_v57 = vld [vmem:[%s17446_s3 + $0x388] ss:$44 sps:$4 sm:$0xff]  }
 0x1bd   :  { %2443 = vmatpush1.bf16.msra.mxu0 %v11732_v59  ;;  %v11821_v59 = vld [vmem:[%s17446_s3 + $0x3e4] ss:$44 sps:$4 sm:$0xff]  }
 0x1be   :  { %2444 = vmatprep.subr.bf16.mxu0 %v11737_v61  ;;  %v11819_v61 = vld [vmem:[%s17446_s3 + $0x3e0] ss:$44 sps:$4 sm:$0xff]  }
 0x1c1   :  { %2445 = vmatpush1.bf16.msra.mxu0 %v11735_v62  ;;  %v11824_v62 = vld [vmem:[%s17446_s3 + $0x43c] ss:$44 sps:$4 sm:$0xff]  }
 0x1c2   :  { %2446 = vmatprep.subr.bf16.mxu0 %v11740_v63  ;;  %v11822_v63 = vld [vmem:[%s17446_s3 + $0x438] ss:$44 sps:$4 sm:$0xff]  }
 0x1c5   :  { %2447 = vmatpush1.bf16.msra.mxu0 %v11738_v0  ;;  %v11827_v0 = vld [vmem:[%s17446_s3 + $0x494] ss:$44 sps:$4 sm:$0xff]  }
 0x1c6   :  { %2448 = vmatprep.subr.bf16.mxu0 %v11743_v1 }
 0x1c9   :  { %2449 = vmatpush1.bf16.msra.mxu0 %v11741_v2 }
 0x1ca   :  { %2450 = vmatprep.subr.bf16.mxu0 %v11746_v3 }
 0x1cd   :  { %2451 = vmatpush1.bf16.msra.mxu0 %v11744_v5 }
 0x1ce   :  { %2452 = vmatprep.subr.bf16.mxu0 %v11749_v6 }
 0x1d1   :  { %2453 = vmatpush1.bf16.msra.mxu0 %v11747_v7 }
 0x1d2   :  { %2454 = vmatprep.subr.bf16.mxu0 %v11752_v8  ;;  %v11825_v8 = vld [vmem:[%s17446_s3 + $0x490] ss:$44 sps:$4 sm:$0xff]  }
 0x1d5   :  { %2455 = vmatpush1.bf16.msra.mxu0 %v11750_v9 }
 0x1d6   :  { %2456 = vmatprep.subr.bf16.mxu0 %v11755_v11 }
 0x1d9   :  { %2457 = vmatpush1.bf16.msra.mxu0 %v11753_v13 }
 0x1da   :  { %2458 = vmatprep.subr.bf16.mxu0 %v11758_v14  ;;  %v11830_v14 = vld [vmem:[%s17446_s3 + $0x4ec] ss:$44 sps:$4 sm:$0xff]  }
 0x1dd   :  { %2459 = vmatpush1.bf16.msra.mxu0 %v11756_v15 }
 0x1de   :  { %2471 = vmatprep.subr.bf16.mxu0 %v11761_v16  ;;  %v11828_v16 = vld [vmem:[%s17446_s3 + $0x4e8] ss:$44 sps:$4 sm:$0xff]  }
 0x1e0   :  { %2461 = vmatmul.mubr.bf16.vlgmr.msra.gmra.mrb[16].mxu0 %v13655_v10 }
 0x1e1   :  { %2472 = vmatpush1.bf16.msra.mxu0 %v11759_v17  ;;  %10328 = vmatprep.mubr.msk.bf16.mxu0 %vm2252_vm0, %v13718_v42  ;;  %v11833_v17 = vld [vmem:[%s17446_s3 + $0x544] ss:$44 sps:$4 sm:$0xff]  }
 0x1e2   :  { %2473 = vmatprep.subr.bf16.mxu0 %v11764_v18  ;;  %v11831_v18 = vld [vmem:[%s17446_s3 + $0x540] ss:$44 sps:$4 sm:$0xff]  }
 0x1e5   :  { %2474 = vmatpush1.bf16.msra.mxu0 %v11762_v19  ;;  %v11836_v19 = vld [vmem:[%s17446_s3 + $0x24] ss:$44 sps:$4 sm:$0xff]  }
 0x1e6   :  { %2475 = vmatprep.subr.bf16.mxu0 %v11767_v20  ;;  %v11834_v20 = vld [vmem:[%s17446_s3 + $0x20] ss:$44 sps:$4 sm:$0xff]  }
 0x1e9   :  { %2476 = vmatpush1.bf16.msra.mxu0 %v11765_v21  ;;  %v11839_v21 = vld [vmem:[%s17446_s3 + $0x7c] ss:$44 sps:$4 sm:$0xff]  }
 0x1ea   :  { %2477 = vmatprep.subr.bf16.mxu0 %v11770_v22  ;;  %v11837_v22 = vld [vmem:[%s17446_s3 + $0x78] ss:$44 sps:$4 sm:$0xff]  }
 0x1ed   :  { %2478 = vmatpush1.bf16.msra.mxu0 %v11768_v23  ;;  %v11842_v23 = vld [vmem:[%s17446_s3 + $0xd4] ss:$44 sps:$4 sm:$0xff]  }
 0x1ee   :  { %2479 = vmatprep.subr.bf16.mxu0 %v11773_v24  ;;  %v11840_v24 = vld [vmem:[%s17446_s3 + $0xd0] ss:$44 sps:$4 sm:$0xff]  }
 0x1f1   :  { %2480 = vmatpush1.bf16.msra.mxu0 %v11771_v25  ;;  %v11845_v25 = vld [vmem:[%s17446_s3 + $0x12c] ss:$44 sps:$4 sm:$0xff]  }
 0x1f2   :  { %2481 = vmatprep.subr.bf16.mxu0 %v11776_v26  ;;  %v11843_v26 = vld [vmem:[%s17446_s3 + $0x128] ss:$44 sps:$4 sm:$0xff]  }
 0x1f5   :  { %2482 = vmatpush1.bf16.msra.mxu0 %v11774_v27  ;;  %v11848_v27 = vld [vmem:[%s17446_s3 + $0x184] ss:$44 sps:$4 sm:$0xff]  }
 0x1f6   :  { %2483 = vmatprep.subr.bf16.mxu0 %v11779_v28  ;;  %v11846_v28 = vld [vmem:[%s17446_s3 + $0x180] ss:$44 sps:$4 sm:$0xff]  }
 0x1f9   :  { %2484 = vmatpush1.bf16.msra.mxu0 %v11777_v29  ;;  %v11851_v29 = vld [vmem:[%s17446_s3 + $0x1dc] ss:$44 sps:$4 sm:$0xff]  }
 0x1fa   :  { %2485 = vmatprep.subr.bf16.mxu0 %v11782_v30  ;;  %v11849_v30 = vld [vmem:[%s17446_s3 + $0x1d8] ss:$44 sps:$4 sm:$0xff]  }
 0x1fd   :  { %2486 = vmatpush1.bf16.msra.mxu0 %v11780_v31  ;;  %v11854_v31 = vld [vmem:[%s17446_s3 + $0x234] ss:$44 sps:$4 sm:$0xff]  }
 0x1fe   :  { %2487 = vmatprep.subr.bf16.mxu0 %v11785_v32 }
 0x201   :  { %2488 = vmatpush1.bf16.msra.mxu0 %v11783_v33 }
 0x202   :  { %2514 = vmatprep.subr.bf16.mxu0 %v11788_v34 }
 0x204   :  { %2504 = vmatmul.mubr.bf16.vlgmr.msra.gmra.mrb[16].mxu0 %v13716_v41 }
 0x205   :  { %2515 = vmatpush1.bf16.msra.mxu0 %v11786_v35  ;;  %2546 = vmatprep.mubr.bf16.mxu0 %v13660_v12  ;;  %v11852_v35 = vld [vmem:[%s17446_s3 + $0x230] ss:$44 sps:$4 sm:$0xff]  }
 0x206   :  { %2516 = vmatprep.subr.bf16.mxu0 %v11791_v36 }
 0x209   :  { %2517 = vmatpush1.bf16.msra.mxu0 %v11789_v37  ;;  %v11857_v37 = vld [vmem:[%s17446_s3 + $0x28c] ss:$44 sps:$4 sm:$0xff]  }
 0x20a   :  { %2518 = vmatprep.subr.bf16.mxu0 %v11794_v38  ;;  %v11855_v38 = vld [vmem:[%s17446_s3 + $0x288] ss:$44 sps:$4 sm:$0xff]  }
 0x20d   :  { %2519 = vmatpush1.bf16.msra.mxu0 %v11792_v39  ;;  %v11860_v39 = vld [vmem:[%s17446_s3 + $0x2e4] ss:$44 sps:$4 sm:$0xff]  }
 0x20e   :  { %2520 = vmatprep.subr.bf16.mxu0 %v11797_v40  ;;  %v11858_v40 = vld [vmem:[%s17446_s3 + $0x2e0] ss:$44 sps:$4 sm:$0xff]  }
 0x211   :  { %2521 = vmatpush1.bf16.msra.mxu0 %v11795_v43  ;;  %v11863_v43 = vld [vmem:[%s17446_s3 + $0x33c] ss:$44 sps:$4 sm:$0xff]  }
 0x212   :  { %2522 = vmatprep.subr.bf16.mxu0 %v11800_v44  ;;  %v11861_v44 = vld [vmem:[%s17446_s3 + $0x338] ss:$44 sps:$4 sm:$0xff]  }
 0x215   :  { %2523 = vmatpush1.bf16.msra.mxu0 %v11798_v45  ;;  %v11866_v45 = vld [vmem:[%s17446_s3 + $0x394] ss:$44 sps:$4 sm:$0xff]  }
 0x216   :  { %2524 = vmatprep.subr.bf16.mxu0 %v11803_v46  ;;  %v11864_v46 = vld [vmem:[%s17446_s3 + $0x390] ss:$44 sps:$4 sm:$0xff]  }
 0x219   :  { %2525 = vmatpush1.bf16.msra.mxu0 %v11801_v47  ;;  %v11869_v47 = vld [vmem:[%s17446_s3 + $0x3ec] ss:$44 sps:$4 sm:$0xff]  }
 0x21a   :  { %2526 = vmatprep.subr.bf16.mxu0 %v11806_v48  ;;  %v11867_v48 = vld [vmem:[%s17446_s3 + $0x3e8] ss:$44 sps:$4 sm:$0xff]  }
 0x21d   :  { %2527 = vmatpush1.bf16.msra.mxu0 %v11804_v49  ;;  %v11872_v49 = vld [vmem:[%s17446_s3 + $0x444] ss:$44 sps:$4 sm:$0xff]  }
 0x21e   :  { %2528 = vmatprep.subr.bf16.mxu0 %v11809_v50  ;;  %v11870_v50 = vld [vmem:[%s17446_s3 + $0x440] ss:$44 sps:$4 sm:$0xff]  }
 0x221   :  { %2529 = vmatpush1.bf16.msra.mxu0 %v11807_v51  ;;  %v11875_v51 = vld [vmem:[%s17446_s3 + $0x49c] ss:$44 sps:$4 sm:$0xff]  }
 0x222   :  { %2530 = vmatprep.subr.bf16.mxu0 %v11812_v52 }
 0x225   :  { %2531 = vmatpush1.bf16.msra.mxu0 %v11810_v53 }
 0x226   :  { %2532 = vmatprep.subr.bf16.mxu0 %v11815_v54 }
 0x229   :  { %2533 = vmatpush1.bf16.msra.mxu0 %v11813_v55 }
 0x22a   :  { %2534 = vmatprep.subr.bf16.mxu0 %v11818_v56 }
 0x22d   :  { %2535 = vmatpush1.bf16.msra.mxu0 %v11816_v57  ;;  %v11873_v57 = vld [vmem:[%s17446_s3 + $0x498] ss:$44 sps:$4 sm:$0xff]  }
 0x22e   :  { %2536 = vmatprep.subr.bf16.mxu0 %v11821_v59 }
 0x231   :  { %2537 = vmatpush1.bf16.msra.mxu0 %v11819_v61 }
 0x232   :  { %2538 = vmatprep.subr.bf16.mxu0 %v11824_v62 }
 0x233   :  { %v2333_v1 = vpop.f32.mrb[8].mxu0  ;;  %v14151_v2 = vpop.f32.mrb[0].mxu1 }
 0x234   :  { %v2335_v3 = vpop.f32.mrb[9].mxu0  ;;  %v14153_v5 = vpop.f32.mrb[1].mxu1 }
 0x235   :  { %2539 = vmatpush1.bf16.msra.mxu0 %v11822_v63  ;;  %v2337_v6 = vpop.f32.mrb[10].mxu0  ;;  %v14155_v7 = vpop.f32.mrb[2].mxu1  ;;  %v11878_v63 = vld [vmem:[%s17446_s3 + $0x4f4] ss:$44 sps:$4 sm:$0xff]  }
 0x236   :  { %v2768_v9 = vpack.c.bf16 %v2337_v6, %v2333_v1  ;;  %v2339_v11 = vpop.f32.mrb[11].mxu0  ;;  %v14160_v13 = vpop.f32.mrb[3].mxu1  ;;  %2540 = vmatprep.subr.bf16.mxu0 %v11827_v0 }
 0x237   :  { %v2769_v15 = vpack.c.bf16 %v2339_v11, %v2335_v3  ;;  %v11881_v3 = vld [vmem:[%s17446_s3 + $0x54c] ss:$44 sps:$4 sm:$0xff]  }
 0x238   :  { %2780 = vst.msk [vmem:[#allocation2] sm:$0xff] %vm2779_vm1, %v2768_v9  ;;  %2783 = vrot.lane.b32.xlu0 %v2768_v9, %s13206_s17  ;;  %v11884_v9 = vld [vmem:[%s17446_s3 + $0x5a4] ss:$44 sps:$4 sm:$0xff]  }
 0x239   :  { %2541 = vmatpush1.bf16.msra.mxu0 %v11825_v8  ;;  %2785 = vrot.lane.b32.xlu1 %v2769_v15, %s13206_s17 }
 0x23a   :  { %2542 = vmatprep.subr.bf16.mxu0 %v11830_v14  ;;  %v11887_v14 = vld [vmem:[%s17446_s3 + $0x5fc] ss:$44 sps:$4 sm:$0xff]  }
 0x23c   :  { %2796 = vrot.lane.b32.xlu0 %v2769_v15, %s13207_s22 }
 0x23d   :  { %2543 = vmatpush1.bf16.msra.mxu0 %v11828_v16  ;;  %2791 = vrot.lane.b32.xlu1 %v2769_v15, %s13208_s23  ;;  %v11885_v15 = vld [vmem:[%s17446_s3 + $0x5f8] ss:$44 sps:$4 sm:$0xff]   ;;  %v11890_v16 = vld [vmem:[%s17446_s3 + $0x654] ss:$44 sps:$4 sm:$0xff]  }
 0x23e   :  { %2544 = vmatprep.subr.bf16.mxu0 %v11833_v17  ;;  %v11888_v17 = vld [vmem:[%s17446_s3 + $0x650] ss:$44 sps:$4 sm:$0xff]  }
 0x241   :  { %2545 = vmatpush1.bf16.msra.mxu0 %v11831_v18  ;;  %v11893_v18 = vld [vmem:[%s17446_s3 + $0x6ac] ss:$44 sps:$4 sm:$0xff]  }
 0x242   :  { %2600 = vmatprep.subr.bf16.mxu0 %v11836_v19  ;;  %v11896_v19 = vld [vmem:[%s17446_s3 + $0x704] ss:$44 sps:$4 sm:$0xff]  }
 0x244   :  { %2547 = vmatmul.mubr.bf16.vlgmr.msra.gmra.mrb[20].mxu0 %v13655_v10 }
 0x245   :  { %2601 = vmatpush1.bf16.msra.mxu0 %v11834_v20  ;;  %2632 = vmatprep.mubr.bf16.mxu0 %v13660_v12  ;;  %v11894_v20 = vld [vmem:[%s17446_s3 + $0x700] ss:$44 sps:$4 sm:$0xff]  }
 0x246   :  { %2602 = vmatprep.subr.bf16.mxu0 %v11839_v21  ;;  %v11899_v21 = vld [vmem:[%s17446_s3 + $0x75c] ss:$44 sps:$4 sm:$0xff]  }
 0x249   :  { %2603 = vmatpush1.bf16.msra.mxu0 %v11837_v22  ;;  %v11897_v22 = vld [vmem:[%s17446_s3 + $0x758] ss:$44 sps:$4 sm:$0xff]  }
 0x24a   :  { %2604 = vmatprep.subr.bf16.mxu0 %v11842_v23  ;;  %v11902_v23 = vld [vmem:[%s17446_s3 + $0x7b4] ss:$44 sps:$4 sm:$0xff]  }
 0x24d   :  { %2605 = vmatpush1.bf16.msra.mxu0 %v11840_v24  ;;  %v11900_v24 = vld [vmem:[%s17446_s3 + $0x7b0] ss:$44 sps:$4 sm:$0xff]  }
 0x24e   :  { %2606 = vmatprep.subr.bf16.mxu0 %v11845_v25  ;;  %v11905_v25 = vld [vmem:[%s17446_s3 + $0x80c] ss:$44 sps:$4 sm:$0xff]  }
 0x251   :  { %2607 = vmatpush1.bf16.msra.mxu0 %v11843_v26  ;;  %v11903_v26 = vld [vmem:[%s17446_s3 + $0x808] ss:$44 sps:$4 sm:$0xff]  }
 0x252   :  { %2608 = vmatprep.subr.bf16.mxu0 %v11848_v27  ;;  %v11908_v27 = vld [vmem:[%s17446_s3 + $0x864] ss:$44 sps:$4 sm:$0xff]  }
 0x255   :  { %2609 = vmatpush1.bf16.msra.mxu0 %v11846_v28  ;;  %v11906_v28 = vld [vmem:[%s17446_s3 + $0x860] ss:$44 sps:$4 sm:$0xff]  }
 0x256   :  { %2610 = vmatprep.subr.bf16.mxu0 %v11851_v29  ;;  %v11909_v29 = vld [vmem:[%s17446_s3 + $0x2e8] ss:$44 sps:$4 sm:$0xff]  }
 0x257   :  { %v14220_v32 = vpop.f32.mrb[4].mxu1 }
 0x258   :  { %v14222_v33 = vpop.f32.mrb[5].mxu1 }
 0x259   :  { %v14224_v34 = vpop.f32.mrb[6].mxu1  ;;  %2611 = vmatpush1.bf16.msra.mxu0 %v11849_v30  ;;  %v11910_v30 = vld [vmem:[%s17446_s3 + $0x28] ss:$44 sps:$4 sm:$0xff]  }
 0x25a   :  { %v14229_v36 = vpop.f32.mrb[7].mxu1  ;;  %2612 = vmatprep.subr.bf16.mxu0 %v11854_v31  ;;  %v11911_v31 = vld [vmem:[%s17446_s3 + $0x340] ss:$44 sps:$4 sm:$0xff]  }
 0x25d   :  { %2613 = vmatpush1.bf16.msra.mxu0 %v11852_v35  ;;  %v11912_v35 = vld [vmem:[%s17446_s3 + $0x80] ss:$44 sps:$4 sm:$0xff]  }
 0x25e   :  { %2614 = vmatprep.subr.bf16.mxu0 %v11857_v37 }
 0x261   :  { %2615 = vmatpush1.bf16.msra.mxu0 %v11855_v38  ;;  %v11913_v38 = vld [vmem:[%s17446_s3 + $0x398] ss:$44 sps:$4 sm:$0xff]  }
 0x262   :  { %2616 = vmatprep.subr.bf16.mxu0 %v11860_v39 }
 0x265   :  { %2617 = vmatpush1.bf16.msra.mxu0 %v11858_v40 }
 0x266   :  { %2618 = vmatprep.subr.bf16.mxu0 %v11863_v43 }
 0x269   :  { %2619 = vmatpush1.bf16.msra.mxu0 %v11861_v44  ;;  %v11916_v44 = vld [vmem:[%s17446_s3 + $0x130] ss:$44 sps:$4 sm:$0xff]  }
 0x26a   :  { %2620 = vmatprep.subr.bf16.mxu0 %v11866_v45  ;;  %v11917_v45 = vld [vmem:[%s17446_s3 + $0x448] ss:$44 sps:$4 sm:$0xff]  }
 0x26d   :  { %2621 = vmatpush1.bf16.msra.mxu0 %v11864_v46  ;;  %v11918_v46 = vld [vmem:[%s17446_s3 + $0x188] ss:$44 sps:$4 sm:$0xff]  }
 0x26e   :  { %2622 = vmatprep.subr.bf16.mxu0 %v11869_v47  ;;  %v11919_v47 = vld [vmem:[%s17446_s3 + $0x4a0] ss:$44 sps:$4 sm:$0xff]  }
 0x271   :  { %2623 = vmatpush1.bf16.msra.mxu0 %v11867_v48  ;;  %v11920_v48 = vld [vmem:[%s17446_s3 + $0x1e0] ss:$44 sps:$4 sm:$0xff]  }
 0x272   :  { %2624 = vmatprep.subr.bf16.mxu0 %v11872_v49  ;;  %v11921_v49 = vld [vmem:[%s17446_s3 + $0x4f8] ss:$44 sps:$4 sm:$0xff]  }
 0x273   :  { %v2376_v52 = vpop.f32.mrb[12].mxu0 }
 0x274   :  { %v2420_v53 = vadd.f32 %v14151_v2, %v2376_v52  ;;  %v2378_v54 = vpop.f32.mrb[13].mxu0  ;;  %v11876_v2 = vld [vmem:[%s17446_s3 + $0x4f0] ss:$44 sps:$4 sm:$0xff]  }
 0x275   :  { %v2422_v55 = vadd.f32 %v14153_v5, %v2378_v54  ;;  %v2380_v56 = vpop.f32.mrb[14].mxu0  ;;  %2625 = vmatpush1.bf16.msra.mxu0 %v11870_v50  ;;  %v11922_v50 = vld [vmem:[%s17446_s3 + $0x238] ss:$44 sps:$4 sm:$0xff]   ;;  %v11924_v52 = vld [vmem:[%s17446_s3 + $0x290] ss:$44 sps:$4 sm:$0xff]  }
 0x276   :  { %v2424_v59 = vadd.f32 %v14155_v7, %v2380_v56  ;;  %v2382_v61 = vpop.f32.mrb[15].mxu0  ;;  %2626 = vmatprep.subr.bf16.mxu0 %v11875_v51  ;;  %v11879_v7 = vld [vmem:[%s17446_s3 + $0x548] ss:$44 sps:$4 sm:$0xff]   ;;  %v11923_v51 = vld [vmem:[%s17446_s3 + $0x550] ss:$44 sps:$4 sm:$0xff]  }
 0x277   :  { %v2426_v62 = vadd.f32 %v14160_v13, %v2382_v61  ;;  %v11882_v13 = vld [vmem:[%s17446_s3 + $0x5a0] ss:$44 sps:$4 sm:$0xff]   ;;  %v11930_v56 = vld [vmem:[%s17443_s0 + $0x224] ss:$16 sps:$4 sm:$0xff]  }
 0x278   :  { %v2770_v0 = vpack.c.bf16 %v2424_v59, %v2420_v53  ;;  %v11927_v53 = vld [vmem:[%s17443_s0 + $0x204] ss:$16 sps:$4 sm:$0xff]   ;;  %v11925_v54 = vld [vmem:[%s17443_s0 + $0x200] ss:$16 sps:$4 sm:$0xff]  }
 0x279   :  { %v2771_v1 = vpack.c.bf16 %v2426_v62, %v2422_v55  ;;  %2627 = vmatpush1.bf16.msra.mxu0 %v11873_v57  ;;  %v14417_v55 = vld [vmem:[%s17444_s1 + $0x4] ss:$8 sps:$4 sm:$0xff]   ;;  %v11928_v57 = vld [vmem:[%s17443_s0 + $0x220] ss:$16 sps:$4 sm:$0xff]  }
 0x27a   :  { %2805 = vrot.lane.b32.xlu0 %v2770_v0, %s13209_s12  ;;  %2798 = vrot.lane.b32.xlu1 %v2770_v0, %s13207_s22  ;;  %v11933_v59 = vld [vmem:[%s17443_s0 + $0x244] ss:$16 sps:$4 sm:$0xff]   ;;  %v11931_v61 = vld [vmem:[%s17443_s0 + $0x240] ss:$16 sps:$4 sm:$0xff]  }
 0x27b   :  { %2628 = vmatprep.subr.bf16.mxu0 %v11878_v63  ;;  %v11934_v62 = vld [vmem:[%s17443_s0 + $0x260] ss:$16 sps:$4 sm:$0xff]   ;;  %v11939_v63 = vld [vmem:[%s17443_s0 + $0x284] ss:$16 sps:$4 sm:$0xff]  }
 0x27c   :  { %v14288_v5 = vpop.f32.mrb[8].mxu1  ;;  %v11937_v0 = vld [vmem:[%s17443_s0 + $0x280] ss:$16 sps:$4 sm:$0xff]  }
 0x27d   :  { %v2763_v6 = vpop.f32.mrb[9].mxu1  ;;  %2629 = vmatpush1.bf16.msra.mxu0 %v11876_v2 }
 0x27e   :  { %v14293_v8 = vpop.f32.mrb[10].mxu1  ;;  %2818 = vrot.lane.b32.xlu0 %v2771_v1, %s13210_s2  ;;  %2807 = vrot.lane.b32.xlu1 %v2771_v1, %s13209_s12 }
 0x27f   :  { %v2766_v11 = vpop.f32.mrb[11].mxu1  ;;  %2630 = vmatprep.subr.bf16.mxu0 %v11881_v3 }
 0x281   :  { %2631 = vmatpush1.bf16.msra.mxu0 %v11879_v7  ;;  %v11940_v7 = vld [vmem:[%s17443_s0 + $0x2a0] ss:$16 sps:$4 sm:$0xff]  }
 0x282   :  { %2813 = vrot.lane.b32.xlu1 %v2771_v1, %s13211_s24  ;;  %2643 = vmatprep.subr.bf16.mxu0 %v11884_v9  ;;  %v11942_v1 = vld [vmem:[%s17443_s0 + $0x2a4] ss:$16 sps:$4 sm:$0xff]  }
 0x284   :  { %2633 = vmatmul.mubr.bf16.vlgmr.msra.gmra.mrb[24].mxu0 %v13655_v10 }
 0x285   :  { %2644 = vmatpush1.bf16.msra.mxu0 %v11882_v13  ;;  %10330 = vmatprep.mubr.msk.bf16.mxu0 %vm2252_vm0, %v13718_v42  ;;  %v11891_v42 = vld [vmem:[%s17446_s3 + $0x6a8] ss:$44 sps:$4 sm:$0xff]  }
 0x286   :  { %2645 = vmatprep.subr.bf16.mxu0 %v11887_v14  ;;  %v11945_v13 = vld [vmem:[%s17443_s0 + $0x2c4] ss:$16 sps:$4 sm:$0xff]  }
 0x289   :  { %2646 = vmatpush1.bf16.msra.mxu0 %v11885_v15  ;;  %v11943_v15 = vld [vmem:[%s17443_s0 + $0x2c0] ss:$16 sps:$4 sm:$0xff]  }
 0x28a   :  { %2647 = vmatprep.subr.bf16.mxu0 %v11890_v16  ;;  %v11948_v16 = vld [vmem:[%s17443_s0 + $0x2e4] ss:$16 sps:$4 sm:$0xff]  }
 0x28d   :  { %2648 = vmatpush1.bf16.msra.mxu0 %v11888_v17  ;;  %v11946_v17 = vld [vmem:[%s17443_s0 + $0x2e0] ss:$16 sps:$4 sm:$0xff]  }
 0x28e   :  { %2649 = vmatprep.subr.bf16.mxu0 %v11893_v18  ;;  %v11951_v18 = vld [vmem:[%s17443_s0 + $0x304] ss:$16 sps:$4 sm:$0xff]  }
 0x291   :  { %2650 = vmatpush1.bf16.msra.mxu0 %v11891_v42  ;;  %v11949_v42 = vld [vmem:[%s17443_s0 + $0x300] ss:$16 sps:$4 sm:$0xff]  }
 0x292   :  { %2651 = vmatprep.subr.bf16.mxu0 %v11896_v19  ;;  %v11954_v19 = vld [vmem:[%s17443_s0 + $0x324] ss:$16 sps:$4 sm:$0xff]  }
 0x295   :  { %2652 = vmatpush1.bf16.msra.mxu0 %v11894_v20  ;;  %v11952_v20 = vld [vmem:[%s17443_s0 + $0x320] ss:$16 sps:$4 sm:$0xff]  }
 0x296   :  { %2653 = vmatprep.subr.bf16.mxu0 %v11899_v21  ;;  %v11957_v21 = vld [vmem:[%s17443_s0 + $0x344] ss:$16 sps:$4 sm:$0xff]  }
 0x299   :  { %2654 = vmatpush1.bf16.msra.mxu0 %v11897_v22 }
 0x29a   :  { %2655 = vmatprep.subr.bf16.mxu0 %v11902_v23 }
 0x29d   :  { %2656 = vmatpush1.bf16.msra.mxu0 %v11900_v24 }
 0x29e   :  { %2657 = vmatprep.subr.bf16.mxu0 %v11905_v25  ;;  %v11955_v25 = vld [vmem:[%s17443_s0 + $0x340] ss:$16 sps:$4 sm:$0xff]  }
 0x2a1   :  { %2658 = vmatpush1.bf16.msra.mxu0 %v11903_v26  ;;  %v11960_v26 = vld [vmem:[%s17443_s0 + $0x364] ss:$16 sps:$4 sm:$0xff]  }
 0x2a2   :  { %2659 = vmatprep.subr.bf16.mxu0 %v11908_v27 }
 0x2a5   :  { %2660 = vmatpush1.bf16.msra.mxu0 %v11906_v28 }
 0x2a6   :  { %11260 = vmatprep.subr.bf16.mxu0 %v11909_v29 }
 0x2a8   :  { %2676 = vmatmul.mubr.bf16.vlgmr.msra.gmra.mrb[24].mxu0 %v13716_v41  ;;  %v11915_v41 = vld [vmem:[%s17446_s3 + $0x3f0] ss:$44 sps:$4 sm:$0xff]  }
 0x2a9   :  { %11261 = vmatpush3.bf16.msra.mxu0 %v11910_v30  ;;  %2718 = vmatprep.mubr.bf16.mxu0 %v13660_v12  ;;  %v11914_v12 = vld [vmem:[%s17446_s3 + $0xd8] ss:$44 sps:$4 sm:$0xff]   ;;  %v11958_v30 = vld [vmem:[%s17443_s0 + $0x360] ss:$16 sps:$4 sm:$0xff]  }
 0x2aa   :  { %v2784_v37 = vpop.permute.xlu0 %2783  ;;  %11262 = vmatprep.subr.bf16.mxu0 %v11911_v31  ;;  %v11963_v31 = vld [vmem:[%s17443_s0 + $0x384] ss:$16 sps:$4 sm:$0xff]  }
 0x2ab   :  { %v2786_v39 = vpop.permute.xlu1 %2785 }
 0x2ac   :  { %v2788_v40 = vsel %vm2787_vm2, %v2784_v37, %v2786_v39  ;;  %v11961_v37 = vld [vmem:[%s17443_s0 + $0x380] ss:$16 sps:$4 sm:$0xff]  }
 0x2ad   :  { %2790 = vst.msk [vmem:[#allocation2 + $0x10] sm:$0xff] %vm2779_vm1, %v2788_v40  ;;  %11263 = vmatpush3.bf16.msra.mxu0 %v11912_v35  ;;  %v11964_v39 = vld [vmem:[%s17443_s0 + $0x3a0] ss:$16 sps:$4 sm:$0xff]   ;;  %v11969_v40 = vld [vmem:[%s17443_s0 + $0x3c4] ss:$16 sps:$4 sm:$0xff]  }
 0x2ae   :  { %11264 = vmatprep.subr.bf16.mxu0 %v11913_v38  ;;  %v2797_v22 = vpop.permute.xlu0 %2796  ;;  %v11966_v38 = vld [vmem:[%s17443_s0 + $0x3a4] ss:$16 sps:$4 sm:$0xff]  }
 0x2af   :  { %v2792_v43 = vpop.permute.xlu1 %2791 }
 0x2b0   :  { %2794 = vst.msk [vmem:[#allocation2 + $0x20] sm:$0xff] %vm2779_vm1, %v2792_v43  ;;  %v11970_v43 = vld [vmem:[%s17443_s0 + $0x3e0] ss:$16 sps:$4 sm:$0xff]  }
 0x2b1   :  { %11265 = vmatpush3.bf16.msra.mxu0 %v11914_v12  ;;  %v11967_v12 = vld [vmem:[%s17443_s0 + $0x3c0] ss:$16 sps:$4 sm:$0xff]  }
 0x2b2   :  { %11266 = vmatprep.subr.bf16.mxu0 %v11915_v41  ;;  %v11972_v41 = vld [vmem:[%s17443_s0 + $0x3e4] ss:$16 sps:$4 sm:$0xff]  }
 0x2b5   :  { %11267 = vmatpush3.bf16.msra.mxu0 %v11916_v44  ;;  %v11978_v44 = vld [vmem:[%s17443_s0 + $0x20c] ss:$16 sps:$4 sm:$0xff]  }
 0x2b6   :  { %11268 = vmatprep.subr.bf16.mxu0 %v11917_v45  ;;  %v14527_v45 = vld [vmem:[%s17444_s1] ss:$8 sps:$4 sm:$0xff]  }
 0x2b9   :  { %11269 = vmatpush3.bf16.msra.mxu0 %v11918_v46  ;;  %v11976_v46 = vld [vmem:[%s17443_s0 + $0x208] ss:$16 sps:$4 sm:$0xff]  }
 0x2ba   :  { %11270 = vmatprep.subr.bf16.mxu0 %v11919_v47  ;;  %v11981_v47 = vld [vmem:[%s17443_s0 + $0x22c] ss:$16 sps:$4 sm:$0xff]  }
 0x2bd   :  { %11271 = vmatpush3.bf16.msra.mxu0 %v11920_v48  ;;  %v11979_v48 = vld [vmem:[%s17443_s0 + $0x228] ss:$16 sps:$4 sm:$0xff]  }
 0x2be   :  { %11272 = vmatprep.subr.bf16.mxu0 %v11921_v49  ;;  %v11984_v49 = vld [vmem:[%s17443_s0 + $0x24c] ss:$16 sps:$4 sm:$0xff]  }
 0x2c1   :  { %11273 = vmatpush3.bf16.msra.mxu0 %v11922_v50  ;;  %v11982_v50 = vld [vmem:[%s17443_s0 + $0x248] ss:$16 sps:$4 sm:$0xff]  }
 0x2c2   :  { %11274 = vmatprep.subr.bf16.mxu0 %v11923_v51  ;;  %v11987_v51 = vld [vmem:[%s17443_s0 + $0x26c] ss:$16 sps:$4 sm:$0xff]  }
 0x2c5   :  { %11275 = vmatpush3.bf16.msra.mxu0 %v11924_v52  ;;  %v11985_v52 = vld [vmem:[%s17443_s0 + $0x268] ss:$16 sps:$4 sm:$0xff]  }
 0x2c6   :  { %3289 = vmatprep.subr.bf16.mxu0 %v11927_v53  ;;  %v11990_v53 = vld [vmem:[%s17443_s0 + $0x28c] ss:$16 sps:$4 sm:$0xff]  }
 0x2c8   :  { %2719 = vmatmul.mubr.bf16.vlgmr.msra.gmra.mrb[28].mxu0 %v13655_v10  ;;  %v11936_v10 = vld [vmem:[%s17443_s0 + $0x264] ss:$16 sps:$4 sm:$0xff]  }
 0x2c9   :  { %3290 = vmatpush1.bf16.msra.mxu0 %v11925_v54  ;;  %3321 = vmatprep.mubr.bf16.mxu0 %v14417_v55  ;;  %v11988_v54 = vld [vmem:[%s17443_s0 + $0x288] ss:$16 sps:$4 sm:$0xff]  }
 0x2ca   :  { %3291 = vmatprep.subr.bf16.mxu0 %v11930_v56 }
 0x2cd   :  { %3292 = vmatpush1.bf16.msra.mxu0 %v11928_v57 }
 0x2ce   :  { %3293 = vmatprep.subr.bf16.mxu0 %v11933_v59 }
 0x2d1   :  { %3294 = vmatpush1.bf16.msra.mxu0 %v11931_v61 }
 0x2d2   :  { %3295 = vmatprep.subr.bf16.mxu0 %v11936_v10 }
 0x2d5   :  { %3296 = vmatpush1.bf16.msra.mxu0 %v11934_v62  ;;  %v11991_v62 = vld [vmem:[%s17443_s0 + $0x2a8] ss:$16 sps:$4 sm:$0xff]  }
 0x2d6   :  { %3297 = vmatprep.subr.bf16.mxu0 %v11939_v63 }
 0x2d7   :  { %v2505_v2 = vpop.f32.mrb[16].mxu0 }
 0x2d8   :  { %v2507_v3 = vpop.f32.mrb[17].mxu0 }
 0x2d9   :  { %v2509_v6 = vpop.f32.mrb[18].mxu0  ;;  %3298 = vmatpush1.bf16.msra.mxu0 %v11937_v0 }
 0x2da   :  { %v2772_v9 = vpack.c.bf16 %v2509_v6, %v2505_v2  ;;  %v2511_v11 = vpop.f32.mrb[19].mxu0  ;;  %3299 = vmatprep.subr.bf16.mxu0 %v11942_v1  ;;  %v11996_v2 = vld [vmem:[%s17443_s0 + $0x2cc] ss:$16 sps:$4 sm:$0xff]  }
 0x2db   :  { %v2773_v14 = vpack.c.bf16 %v2511_v11, %v2507_v3  ;;  %v12002_v6 = vld [vmem:[%s17443_s0 + $0x30c] ss:$16 sps:$4 sm:$0xff]   ;;  %v12003_v11 = vld [vmem:[%s17443_s0 + $0x328] ss:$16 sps:$4 sm:$0xff]  }
 0x2dc   :  { %2827 = vrot.lane.b32.xlu0 %v2772_v9, %s13212_s27  ;;  %2820 = vrot.lane.b32.xlu1 %v2772_v9, %s13210_s2  ;;  %v12005_v9 = vld [vmem:[%s17443_s0 + $0x32c] ss:$16 sps:$4 sm:$0xff]  }
 0x2dd   :  { %3300 = vmatpush1.bf16.msra.mxu0 %v11940_v7  ;;  %v12000_v7 = vld [vmem:[%s17443_s0 + $0x308] ss:$16 sps:$4 sm:$0xff]  }
 0x2de   :  { %3301 = vmatprep.subr.bf16.mxu0 %v11945_v13  ;;  %v12008_v13 = vld [vmem:[%s17443_s0 + $0x34c] ss:$16 sps:$4 sm:$0xff]  }
 0x2e0   :  { %2840 = vrot.lane.b32.xlu0 %v2773_v14, %s13213_s13  ;;  %2829 = vrot.lane.b32.xlu1 %v2773_v14, %s13212_s27 }
 0x2e1   :  { %3302 = vmatpush1.bf16.msra.mxu0 %v11943_v15  ;;  %v12011_v15 = vld [vmem:[%s17443_s0 + $0x36c] ss:$16 sps:$4 sm:$0xff]  }
 0x2e2   :  { %3303 = vmatprep.subr.bf16.mxu0 %v11948_v16  ;;  %v12009_v16 = vld [vmem:[%s17443_s0 + $0x368] ss:$16 sps:$4 sm:$0xff]  }
 0x2e4   :  { %2835 = vrot.lane.b32.xlu1 %v2773_v14, %s13214_s19  ;;  %v12006_v14 = vld [vmem:[%s17443_s0 + $0x348] ss:$16 sps:$4 sm:$0xff]  }
 0x2e5   :  { %3304 = vmatpush1.bf16.msra.mxu0 %v11946_v17  ;;  %v12014_v17 = vld [vmem:[%s17443_s0 + $0x38c] ss:$16 sps:$4 sm:$0xff]  }
 0x2e6   :  { %3305 = vmatprep.subr.bf16.mxu0 %v11951_v18  ;;  %v12012_v18 = vld [vmem:[%s17443_s0 + $0x388] ss:$16 sps:$4 sm:$0xff]  }
 0x2e9   :  { %3306 = vmatpush1.bf16.msra.mxu0 %v11949_v42  ;;  %v12017_v42 = vld [vmem:[%s17443_s0 + $0x3ac] ss:$16 sps:$4 sm:$0xff]  }
 0x2ea   :  { %3307 = vmatprep.subr.bf16.mxu0 %v11954_v19  ;;  %v12015_v19 = vld [vmem:[%s17443_s0 + $0x3a8] ss:$16 sps:$4 sm:$0xff]  }
 0x2ec   :  { %v2799_v23 = vpop.permute.xlu1 %2798  ;;  %v2806_v27 = vpop.permute.xlu0 %2805 }
 0x2ed   :  { %v2801_v24 = vsel %vm2800_vm3, %v2797_v22, %v2799_v23  ;;  %3308 = vmatpush1.bf16.msra.mxu0 %v11952_v20  ;;  %v12020_v20 = vld [vmem:[%s17443_s0 + $0x3cc] ss:$16 sps:$4 sm:$0xff]   ;;  %v12021_v23 = vld [vmem:[%s17443_s0 + $0x3e8] ss:$16 sps:$4 sm:$0xff]  }
 0x2ee   :  { %2803 = vst.msk [vmem:[#allocation2 + $0x30] sm:$0xff] %vm2779_vm1, %v2801_v24  ;;  %3309 = vmatprep.subr.bf16.mxu0 %v11957_v21  ;;  %v12018_v21 = vld [vmem:[%s17443_s0 + $0x3c8] ss:$16 sps:$4 sm:$0xff]   ;;  %v12023_v22 = vld [vmem:[%s17443_s0 + $0x3ec] ss:$16 sps:$4 sm:$0xff]  }
 0x2ef   :  { %v12026_v24 = vld [vmem:[%s17446_s3 + $0x4] ss:$44 sps:$4 sm:$0xff]  }
 0x2f0   :  { %v2808_v28 = vpop.permute.xlu1 %2807 }
 0x2f1   :  { %v2810_v29 = vsel %vm2809_vm4, %v2806_v27, %v2808_v28  ;;  %3310 = vmatpush1.bf16.msra.mxu0 %v11955_v25  ;;  %v12024_v25 = vld [vmem:[%s17446_s3] ss:$44 sps:$4 sm:$0xff]   ;;  %v12027_v27 = vld [vmem:[%s17446_s3 + $0x58] ss:$44 sps:$4 sm:$0xff]  }
 0x2f2   :  { %2812 = vst.msk [vmem:[#allocation2 + $0x40] sm:$0xff] %vm2779_vm1, %v2810_v29  ;;  %3311 = vmatprep.subr.bf16.mxu0 %v11960_v26  ;;  %v12029_v26 = vld [vmem:[%s17446_s3 + $0x5c] ss:$44 sps:$4 sm:$0xff]   ;;  %v12032_v28 = vld [vmem:[%s17446_s3 + $0xb4] ss:$44 sps:$4 sm:$0xff]  }
 0x2f3   :  { %v12030_v29 = vld [vmem:[%s17446_s3 + $0xb0] ss:$44 sps:$4 sm:$0xff]  }
 0x2f4   :  { %v2814_v35 = vpop.permute.xlu1 %2813 }
 0x2f5   :  { %2816 = vst.msk [vmem:[#allocation2 + $0x50] sm:$0xff] %vm2779_vm1, %v2814_v35  ;;  %3312 = vmatpush1.bf16.msra.mxu0 %v11958_v30  ;;  %v2819_v30 = vpop.permute.xlu0 %2818  ;;  %v12035_v35 = vld [vmem:[%s17446_s3 + $0x10c] ss:$44 sps:$4 sm:$0xff]  }
 0x2f6   :  { %3313 = vmatprep.subr.bf16.mxu0 %v11963_v31 }
 0x2f9   :  { %3314 = vmatpush1.bf16.msra.mxu0 %v11961_v37 }
 0x2fa   :  { %3315 = vmatprep.subr.bf16.mxu0 %v11966_v38  ;;  %v12033_v38 = vld [vmem:[%s17446_s3 + $0x108] ss:$44 sps:$4 sm:$0xff]  }
 0x2fd   :  { %3316 = vmatpush1.bf16.msra.mxu0 %v11964_v39 }
 0x2fe   :  { %3317 = vmatprep.subr.bf16.mxu0 %v11969_v40 }
 0x301   :  { %3318 = vmatpush1.bf16.msra.mxu0 %v11967_v12  ;;  %v12038_v12 = vld [vmem:[%s17446_s3 + $0x164] ss:$44 sps:$4 sm:$0xff]  }
 0x302   :  { %3319 = vmatprep.subr.bf16.mxu0 %v11972_v41 }
 0x305   :  { %3320 = vmatpush1.bf16.msra.mxu0 %v11970_v43  ;;  %v12036_v43 = vld [vmem:[%s17446_s3 + $0x160] ss:$44 sps:$4 sm:$0xff]  }
 0x306   :  { %3332 = vmatprep.subr.bf16.mxu0 %v11978_v44 }
 0x308   :  { %3322 = vmatmul.mubr.bf16.vlgmr.msra.gmra.mrb[32].mxu0 %v14527_v45 }
 0x309   :  { %3333 = vmatpush1.bf16.msra.mxu0 %v11976_v46  ;;  %3364 = vmatprep.mubr.bf16.mxu0 %v14417_v55  ;;  %v11993_v55 = vld [vmem:[%s17443_s0 + $0x2ac] ss:$16 sps:$4 sm:$0xff]   ;;  %v12039_v46 = vld [vmem:[%s17446_s3 + $0x1b8] ss:$44 sps:$4 sm:$0xff]  }
 0x30a   :  { %3334 = vmatprep.subr.bf16.mxu0 %v11981_v47  ;;  %v12044_v47 = vld [vmem:[%s17446_s3 + $0x214] ss:$44 sps:$4 sm:$0xff]  }
 0x30d   :  { %3335 = vmatpush1.bf16.msra.mxu0 %v11979_v48  ;;  %v12042_v48 = vld [vmem:[%s17446_s3 + $0x210] ss:$44 sps:$4 sm:$0xff]  }
 0x30e   :  { %3336 = vmatprep.subr.bf16.mxu0 %v11984_v49  ;;  %v12047_v49 = vld [vmem:[%s17446_s3 + $0x26c] ss:$44 sps:$4 sm:$0xff]  }
 0x311   :  { %3337 = vmatpush1.bf16.msra.mxu0 %v11982_v50  ;;  %v12045_v50 = vld [vmem:[%s17446_s3 + $0x268] ss:$44 sps:$4 sm:$0xff]  }
 0x312   :  { %3338 = vmatprep.subr.bf16.mxu0 %v11987_v51  ;;  %v12050_v51 = vld [vmem:[%s17446_s3 + $0x2c4] ss:$44 sps:$4 sm:$0xff]  }
 0x315   :  { %3339 = vmatpush1.bf16.msra.mxu0 %v11985_v52  ;;  %v12048_v52 = vld [vmem:[%s17446_s3 + $0x2c0] ss:$44 sps:$4 sm:$0xff]  }
 0x316   :  { %3340 = vmatprep.subr.bf16.mxu0 %v11990_v53  ;;  %v12053_v53 = vld [vmem:[%s17446_s3 + $0x31c] ss:$44 sps:$4 sm:$0xff]  }
 0x317   :  { %v2548_v56 = vpop.f32.mrb[20].mxu0 }
 0x318   :  { %v2592_v57 = vadd.f32 %v14220_v32, %v2548_v56  ;;  %v2550_v59 = vpop.f32.mrb[21].mxu0  ;;  %v12054_v56 = vld [vmem:[%s17446_s3 + $0x370] ss:$44 sps:$4 sm:$0xff]  }
 0x319   :  { %v2594_v61 = vadd.f32 %v14222_v33, %v2550_v59  ;;  %v2552_v10 = vpop.f32.mrb[22].mxu0  ;;  %3341 = vmatpush1.bf16.msra.mxu0 %v11988_v54  ;;  %v11994_v33 = vld [vmem:[%s17443_s0 + $0x2c8] ss:$16 sps:$4 sm:$0xff]  }
 0x31a   :  { %v2596_v63 = vadd.f32 %v14224_v34, %v2552_v10  ;;  %v2554_v0 = vpop.f32.mrb[23].mxu0  ;;  %3342 = vmatprep.subr.bf16.mxu0 %v11993_v55  ;;  %v11999_v34 = vld [vmem:[%s17443_s0 + $0x2ec] ss:$16 sps:$4 sm:$0xff]   ;;  %v12051_v54 = vld [vmem:[%s17446_s3 + $0x318] ss:$44 sps:$4 sm:$0xff]  }
 0x31b   :  { %v2598_v1 = vadd.f32 %v14229_v36, %v2554_v0  ;;  %v11997_v36 = vld [vmem:[%s17443_s0 + $0x2e8] ss:$16 sps:$4 sm:$0xff]   ;;  %v12056_v55 = vld [vmem:[%s17446_s3 + $0x374] ss:$44 sps:$4 sm:$0xff]  }
 0x31c   :  { %v14571_v32 = vpack.c.bf16 %v2596_v63, %v2592_v57  ;;  %v12059_v57 = vld [vmem:[%s17446_s3 + $0x3cc] ss:$44 sps:$4 sm:$0xff]   ;;  %v12057_v59 = vld [vmem:[%s17446_s3 + $0x3c8] ss:$44 sps:$4 sm:$0xff]  }
 0x31d   :  { %v14573_v3 = vpack.c.bf16 %v2598_v1, %v2594_v61  ;;  %3343 = vmatpush1.bf16.msra.mxu0 %v11991_v62  ;;  %v12062_v61 = vld [vmem:[%s17446_s3 + $0x424] ss:$44 sps:$4 sm:$0xff]   ;;  %v12060_v10 = vld [vmem:[%s17446_s3 + $0x420] ss:$44 sps:$4 sm:$0xff]   ;;  %v12065_v62 = vld [vmem:[%s17446_s3 + $0x47c] ss:$44 sps:$4 sm:$0xff]  }
 0x31e   :  { %2853 = vrot.lane.b32.xlu0 %v14571_v32, %s13215_s16  ;;  %2842 = vrot.lane.b32.xlu1 %v14571_v32, %s13213_s13  ;;  %v12063_v63 = vld [vmem:[%s17446_s3 + $0x478] ss:$44 sps:$4 sm:$0xff]   ;;  %v12068_v0 = vld [vmem:[%s17446_s3 + $0x4d4] ss:$44 sps:$4 sm:$0xff]  }
 0x31f   :  { %3344 = vmatprep.subr.bf16.mxu0 %v11996_v2 }
 0x321   :  { %3345 = vmatpush1.bf16.msra.mxu0 %v11994_v33 }
 0x322   :  { %3346 = vmatprep.subr.bf16.mxu0 %v11999_v34  ;;  %v12066_v34 = vld [vmem:[%s17446_s3 + $0x4d0] ss:$44 sps:$4 sm:$0xff]  }
 0x325   :  { %3347 = vmatpush1.bf16.msra.mxu0 %v11997_v36 }
 0x326   :  { %3348 = vmatprep.subr.bf16.mxu0 %v12002_v6 }
 0x329   :  { %3349 = vmatpush1.bf16.msra.mxu0 %v12000_v7  ;;  %v12071_v7 = vld [vmem:[%s17446_s3 + $0x52c] ss:$44 sps:$4 sm:$0xff]  }
 0x32a   :  { %3350 = vmatprep.subr.bf16.mxu0 %v12005_v9 }
 0x32d   :  { %3351 = vmatpush1.bf16.msra.mxu0 %v12003_v11  ;;  %v12093_v11 = vld [vmem:[%s17446_s3 + $0x580] ss:$44 sps:$4 sm:$0xff]  }
 0x32e   :  { %3352 = vmatprep.subr.bf16.mxu0 %v12008_v13  ;;  %v12095_v13 = vld [vmem:[%s17446_s3 + $0x584] ss:$44 sps:$4 sm:$0xff]  }
 0x32f   :  { %5133 = vmatprep.subr.bf16.mxu1 %v12095_v13  ;;  %v12092_v13 = vld [vmem:[%s17446_s3 + $0x21c] ss:$44 sps:$4 sm:$0xff]  }
 0x330   :  { %5134 = vmatpush1.bf16.msra.mxu1 %v12093_v11  ;;  %v12087_v11 = vld [vmem:[%s17446_s3 + $0x1c0] ss:$44 sps:$4 sm:$0xff]  }
 0x331   :  { %3353 = vmatpush1.bf16.msra.mxu0 %v12006_v14  ;;  %v12069_v14 = vld [vmem:[%s17446_s3 + $0x528] ss:$44 sps:$4 sm:$0xff]  }
 0x332   :  { %3354 = vmatprep.subr.bf16.mxu0 %v12011_v15  ;;  %v12074_v15 = vld [vmem:[%s17446_s3 + $0xc] ss:$44 sps:$4 sm:$0xff]  }
 0x335   :  { %3355 = vmatpush1.bf16.msra.mxu0 %v12009_v16  ;;  %v12099_v16 = vld [vmem:[%s17446_s3 + $0x5d8] ss:$44 sps:$4 sm:$0xff]  }
 0x336   :  { %3356 = vmatprep.subr.bf16.mxu0 %v12014_v17  ;;  %v12101_v17 = vld [vmem:[%s17446_s3 + $0x5dc] ss:$44 sps:$4 sm:$0xff]  }
 0x337   :  { %5135 = vmatprep.subr.bf16.mxu1 %v12101_v17  ;;  %v12104_v17 = vld [vmem:[%s17446_s3 + $0x2cc] ss:$44 sps:$4 sm:$0xff]  }
 0x338   :  { %5136 = vmatpush1.bf16.msra.mxu1 %v12099_v16  ;;  %v12096_v16 = vld [vmem:[%s17446_s3 + $0x270] ss:$44 sps:$4 sm:$0xff]  }
 0x339   :  { %3357 = vmatpush1.bf16.msra.mxu0 %v12012_v18  ;;  %v12105_v18 = vld [vmem:[%s17446_s3 + $0x630] ss:$44 sps:$4 sm:$0xff]  }
 0x33a   :  { %3358 = vmatprep.subr.bf16.mxu0 %v12017_v42  ;;  %v12107_v42 = vld [vmem:[%s17446_s3 + $0x634] ss:$44 sps:$4 sm:$0xff]  }
 0x33b   :  { %5137 = vmatprep.subr.bf16.mxu1 %v12107_v42  ;;  %v12110_v42 = vld [vmem:[%s17446_s3 + $0x324] ss:$44 sps:$4 sm:$0xff]  }
 0x33c   :  { %5138 = vmatpush1.bf16.msra.mxu1 %v12105_v18  ;;  %v12102_v18 = vld [vmem:[%s17446_s3 + $0x2c8] ss:$44 sps:$4 sm:$0xff]  }
 0x33d   :  { %3359 = vmatpush1.bf16.msra.mxu0 %v12015_v19  ;;  %v12111_v19 = vld [vmem:[%s17446_s3 + $0x688] ss:$44 sps:$4 sm:$0xff]  }
 0x33e   :  { %3360 = vmatprep.subr.bf16.mxu0 %v12020_v20  ;;  %v12113_v20 = vld [vmem:[%s17446_s3 + $0x68c] ss:$44 sps:$4 sm:$0xff]  }
 0x33f   :  { %5139 = vmatprep.subr.bf16.mxu1 %v12113_v20  ;;  %v12116_v20 = vld [vmem:[%s17446_s3 + $0x37c] ss:$44 sps:$4 sm:$0xff]  }
 0x340   :  { %5140 = vmatpush1.bf16.msra.mxu1 %v12111_v19  ;;  %v12108_v19 = vld [vmem:[%s17446_s3 + $0x320] ss:$44 sps:$4 sm:$0xff]  }
 0x341   :  { %3361 = vmatpush1.bf16.msra.mxu0 %v12018_v21  ;;  %v12117_v21 = vld [vmem:[%s17446_s3 + $0x6e0] ss:$44 sps:$4 sm:$0xff]  }
 0x342   :  { %3362 = vmatprep.subr.bf16.mxu0 %v12023_v22  ;;  %v12119_v22 = vld [vmem:[%s17446_s3 + $0x6e4] ss:$44 sps:$4 sm:$0xff]  }
 0x343   :  { %5141 = vmatprep.subr.bf16.mxu1 %v12119_v22  ;;  %v12122_v22 = vld [vmem:[%s17446_s3 + $0x3d4] ss:$44 sps:$4 sm:$0xff]  }
 0x344   :  { %5142 = vmatpush1.bf16.msra.mxu1 %v12117_v21  ;;  %v12114_v21 = vld [vmem:[%s17446_s3 + $0x378] ss:$44 sps:$4 sm:$0xff]  }
 0x345   :  { %3363 = vmatpush1.bf16.msra.mxu0 %v12021_v23 }
 0x346   :  { %5090 = vmatprep.subr.bf16.mxu0 %v12026_v24 }
 0x348   :  { %3365 = vmatmul.mubr.bf16.vlgmr.msra.gmra.mrb[36].mxu0 %v14527_v45  ;;  %v12041_v45 = vld [vmem:[%s17446_s3 + $0x1bc] ss:$44 sps:$4 sm:$0xff]  }
 0x349   :  { %5091 = vmatpush1.bf16.msra.mxu0 %v12024_v25 }
 0x34a   :  { %5092 = vmatprep.subr.bf16.mxu0 %v12029_v26  ;;  %v12123_v26 = vld [vmem:[%s17446_s3 + $0x738] ss:$44 sps:$4 sm:$0xff]  }
 0x34d   :  { %5093 = vmatpush1.bf16.msra.mxu0 %v12027_v27  ;;  %v12125_v27 = vld [vmem:[%s17446_s3 + $0x73c] ss:$44 sps:$4 sm:$0xff]  }
 0x34e   :  { %v2821_v31 = vpop.permute.xlu1 %2820  ;;  %5094 = vmatprep.subr.bf16.mxu0 %v12032_v28  ;;  %v2828_v39 = vpop.permute.xlu0 %2827  ;;  %5143 = vmatprep.subr.bf16.mxu1 %v12125_v27  ;;  %v12129_v28 = vld [vmem:[%s17446_s3 + $0x790] ss:$44 sps:$4 sm:$0xff]   ;;  %v12132_v27 = vld [vmem:[%s17446_s3 + $0x480] ss:$44 sps:$4 sm:$0xff]  }
 0x34f   :  { %v2823_v37 = vsel %vm2822_vm5, %v2819_v30, %v2821_v31  ;;  %5144 = vmatpush1.bf16.msra.mxu1 %v12123_v26  ;;  %v12134_v26 = vld [vmem:[%s17446_s3 + $0x484] ss:$44 sps:$4 sm:$0xff]  }
 0x350   :  { %2825 = vst.msk [vmem:[#allocation2 + $0x60] sm:$0xff] %vm2779_vm1, %v2823_v37 }
 0x351   :  { %5095 = vmatpush1.bf16.msra.mxu0 %v12030_v29  ;;  %v12131_v29 = vld [vmem:[%s17446_s3 + $0x794] ss:$44 sps:$4 sm:$0xff]  }
 0x352   :  { %v2830_v40 = vpop.permute.xlu1 %2829  ;;  %5096 = vmatprep.subr.bf16.mxu0 %v12035_v35  ;;  %v2841_v23 = vpop.permute.xlu0 %2840  ;;  %5145 = vmatprep.subr.bf16.mxu1 %v12131_v29  ;;  %v12137_v35 = vld [vmem:[%s17446_s3 + $0x7ec] ss:$44 sps:$4 sm:$0xff]  }
 0x353   :  { %v2832_v41 = vsel %vm2831_vm6, %v2828_v39, %v2830_v40  ;;  %5146 = vmatpush1.bf16.msra.mxu1 %v12129_v28  ;;  %v12135_v39 = vld [vmem:[%s17446_s3 + $0x7e8] ss:$44 sps:$4 sm:$0xff]  }
 0x354   :  { %2834 = vst.msk [vmem:[#allocation2 + $0x70] sm:$0xff] %vm2779_vm1, %v2832_v41  ;;  %5147 = vmatprep.subr.bf16.mxu1 %v12137_v35  ;;  %v12140_v28 = vld [vmem:[%s17446_s3 + $0x4dc] ss:$44 sps:$4 sm:$0xff]  }
 0x355   :  { %5097 = vmatpush1.bf16.msra.mxu0 %v12033_v38 }
 0x356   :  { %v2836_v44 = vpop.permute.xlu1 %2835  ;;  %5098 = vmatprep.subr.bf16.mxu0 %v12038_v12 }
 0x357   :  { %2838 = vst.msk [vmem:[#allocation2 + $0x80] sm:$0xff] %vm2779_vm1, %v2836_v44  ;;  %5148 = vmatpush1.bf16.msra.mxu1 %v12135_v39 }
 0x359   :  { %5099 = vmatpush1.bf16.msra.mxu0 %v12036_v43  ;;  %v12143_v43 = vld [vmem:[%s17446_s3 + $0x844] ss:$44 sps:$4 sm:$0xff]  }
 0x35a   :  { %5100 = vmatprep.subr.bf16.mxu0 %v12041_v45  ;;  %v12141_v45 = vld [vmem:[%s17446_s3 + $0x840] ss:$44 sps:$4 sm:$0xff]   ;;  %5149 = vmatprep.subr.bf16.mxu1 %v12143_v43 }
 0x35b   :  { %5150 = vmatpush1.bf16.msra.mxu1 %v12141_v45  ;;  %v12144_v45 = vld [vmem:[%s17446_s3 + $0x530] ss:$44 sps:$4 sm:$0xff]  }
 0x35d   :  { %5101 = vmatpush1.bf16.msra.mxu0 %v12039_v46 }
 0x35e   :  { %5102 = vmatprep.subr.bf16.mxu0 %v12044_v47 }
 0x361   :  { %5103 = vmatpush1.bf16.msra.mxu0 %v12042_v48 }
 0x362   :  { %5104 = vmatprep.subr.bf16.mxu0 %v12047_v49 }
 0x365   :  { %5105 = vmatpush1.bf16.msra.mxu0 %v12045_v50 }
 0x366   :  { %5106 = vmatprep.subr.bf16.mxu0 %v12050_v51 }
 0x369   :  { %5107 = vmatpush1.bf16.msra.mxu0 %v12048_v52 }
 0x36a   :  { %5108 = vmatprep.subr.bf16.mxu0 %v12053_v53 }
 0x36d   :  { %5109 = vmatpush1.bf16.msra.mxu0 %v12051_v54 }
 0x36e   :  { %5110 = vmatprep.subr.bf16.mxu0 %v12056_v55 }
 0x371   :  { %5111 = vmatpush1.bf16.msra.mxu0 %v12054_v56 }
 0x372   :  { %5112 = vmatprep.subr.bf16.mxu0 %v12059_v57 }
 0x375   :  { %5113 = vmatpush1.bf16.msra.mxu0 %v12057_v59 }
 0x376   :  { %5114 = vmatprep.subr.bf16.mxu0 %v12062_v61 }
 0x379   :  { %5115 = vmatpush1.bf16.msra.mxu0 %v12060_v10  ;;  %v12072_v10 = vld [vmem:[%s17446_s3 + $0x8] ss:$44 sps:$4 sm:$0xff]  }
 0x37a   :  { %5116 = vmatprep.subr.bf16.mxu0 %v12065_v62  ;;  %v12077_v62 = vld [vmem:[%s17446_s3 + $0x64] ss:$44 sps:$4 sm:$0xff]  }
 0x37b   :  { %v2677_v1 = vpop.f32.mrb[24].mxu0 }
 0x37c   :  { %v2679_v2 = vpop.f32.mrb[25].mxu0 }
 0x37d   :  { %v2681_v33 = vpop.f32.mrb[26].mxu0  ;;  %5117 = vmatpush1.bf16.msra.mxu0 %v12063_v63  ;;  %v12075_v63 = vld [vmem:[%s17446_s3 + $0x60] ss:$44 sps:$4 sm:$0xff]  }
 0x37e   :  { %v14732_v36 = vpack.c.bf16 %v2681_v33, %v2677_v1  ;;  %v2683_v6 = vpop.f32.mrb[27].mxu0  ;;  %5118 = vmatprep.subr.bf16.mxu0 %v12068_v0  ;;  %v12080_v0 = vld [vmem:[%s17446_s3 + $0xbc] ss:$44 sps:$4 sm:$0xff]   ;;  %v12078_v1 = vld [vmem:[%s17446_s3 + $0xb8] ss:$44 sps:$4 sm:$0xff]  }
 0x37f   :  { %v14737_v9 = vpack.c.bf16 %v2683_v6, %v2679_v2  ;;  %v12083_v2 = vld [vmem:[%s17446_s3 + $0x114] ss:$44 sps:$4 sm:$0xff]   ;;  %v12081_v33 = vld [vmem:[%s17446_s3 + $0x110] ss:$44 sps:$4 sm:$0xff]  }
 0x380   :  { %v12084_v6 = vld [vmem:[%s17446_s3 + $0x168] ss:$44 sps:$4 sm:$0xff]  }
 0x381   :  { %5119 = vmatpush1.bf16.msra.mxu0 %v12066_v34  ;;  %v12086_v34 = vld [vmem:[%s17446_s3 + $0x16c] ss:$44 sps:$4 sm:$0xff]  }
 0x382   :  { %5120 = vmatprep.subr.bf16.mxu0 %v12071_v7  ;;  %v12089_v7 = vld [vmem:[%s17446_s3 + $0x1c4] ss:$44 sps:$4 sm:$0xff]  }
 0x385   :  { %5121 = vmatpush1.bf16.msra.mxu0 %v12069_v14  ;;  %v12090_v14 = vld [vmem:[%s17446_s3 + $0x218] ss:$44 sps:$4 sm:$0xff]  }
 0x386   :  { %5176 = vmatprep.subr.bf16.mxu0 %v12074_v15  ;;  %v12098_v15 = vld [vmem:[%s17446_s3 + $0x274] ss:$44 sps:$4 sm:$0xff]  }
 0x390   :  { %v2843_v24 = vpop.permute.xlu1 %2842 }
 0x391   :  { %v2845_v25 = vsel %vm2844_vm7, %v2841_v23, %v2843_v24  ;;  %v12120_v23 = vld [vmem:[%s17446_s3 + $0x3d0] ss:$44 sps:$4 sm:$0xff]   ;;  %v12128_v24 = vld [vmem:[%s17446_s3 + $0x42c] ss:$44 sps:$4 sm:$0xff]  }
 0x392   :  { %2847 = vst.msk [vmem:[#allocation2 + $0x90] sm:$0xff] %vm2779_vm1, %v2845_v25  ;;  %v12126_v25 = vld [vmem:[%s17446_s3 + $0x428] ss:$44 sps:$4 sm:$0xff]  }
 0x39b   :  { %v11276_v30 = vpop.f32.mrb[28].mxu0 }
 0x39c   :  { %v11277_v31 = vpop.f32.mrb[29].mxu0 }
 0x39d   :  { %v11278_v37 = vadd.f32 %v11277_v31, %v11276_v30  ;;  %v11279_v38 = vpop.f32.mrb[30].mxu0  ;;  %v12138_v30 = vld [vmem:[%s17446_s3 + $0x4d8] ss:$44 sps:$4 sm:$0xff]  }
 0x39e   :  { %v11280_v40 = vpop.f32.mrb[31].mxu0 }
 0x39f   :  { %v14796_v12 = vadd.f32 %v11278_v37, %v14288_v5  ;;  %v11281_v41 = vadd.f32 %v11280_v40, %v11279_v38  ;;  %v12152_v5 = vld [vmem:[%s17446_s3 + $0x594] ss:$44 sps:$4 sm:$0xff]  }
 0x3a0   :  { %5305 = vmatprep.subr.bf16.mxu1 %v12152_v5  ;;  %v12146_v37 = vld [vmem:[%s17446_s3 + $0x534] ss:$44 sps:$4 sm:$0xff]  }
 0x3a1   :  { %v14802_v44 = vadd.f32 %v11281_v41, %v14293_v8 }
 0x3a3   :  { %v2778_v46 = vpack.c.bf16 %v14802_v44, %v14796_v12  ;;  %v12432_v12 = vld [vmem:[%s17449_s6 + $0x4] ss:$8 sps:$4 sm:$0xff]   ;;  %v12435_v44 = vld [vmem:[%s17449_s6 + $0x14] ss:$8 sps:$4 sm:$0xff]  }
 0x3db   :  { %v3323_v47 = vpop.f32.mrb[32].mxu0 }
 0x3dc   :  { %v3324_v48 = vadd.f32 %v3323_v47, %v13644_v58  ;;  %v3325_v49 = vpop.f32.mrb[33].mxu0 }
 0x3dd   :  { %v3326_v8 = vadd.f32 %v3325_v49, %v13644_v58  ;;  %v3327_v50 = vpop.f32.mrb[34].mxu0 }
 0x3de   :  { %v3328_v51 = vadd.f32 %v3327_v50, %v13646_v60  ;;  %v3329_v52 = vpop.f32.mrb[35].mxu0  ;;  %v3375_v54 = vmax.f32 %v3324_v48, 0.0  ;;  %v12149_v48 = vld [vmem:[%s17446_s3 + $0x58c] ss:$44 sps:$4 sm:$0xff]  }
 0x3df   :  { %v3330_v53 = vadd.f32 %v3329_v52, %v13646_v60  ;;  %v3376_v56 = vmax.f32 %v3326_v8, 0.0  ;;  %v12155_v52 = vld [vmem:[%s17446_s3 + $0x5e4] ss:$44 sps:$4 sm:$0xff]  }
 0x3e0   :  { %v3379_v55 = vmax.f32 %v3328_v51, 0.0  ;;  %v12150_v51 = vld [vmem:[%s17446_s3 + $0x590] ss:$44 sps:$4 sm:$0xff]  }
 0x3e1   :  { %v3380_v57 = vmax.f32 %v3330_v53, 0.0  ;;  %v12158_v53 = vld [vmem:[%s17446_s3 + $0x5ec] ss:$44 sps:$4 sm:$0xff]  }
 0x3e2   :  { %v14816_v59 = vpack.c.bf16 %v3379_v55, %v3375_v54  ;;  %v12153_v54 = vld [vmem:[%s17446_s3 + $0x5e0] ss:$44 sps:$4 sm:$0xff]   ;;  %v12156_v55 = vld [vmem:[%s17446_s3 + $0x5e8] ss:$44 sps:$4 sm:$0xff]  }
 0x3e3   :  { %v14818_v61 = vpack.c.bf16 %v3380_v57, %v3376_v56  ;;  %v12161_v56 = vld [vmem:[%s17446_s3 + $0x63c] ss:$44 sps:$4 sm:$0xff]   ;;  %v12164_v57 = vld [vmem:[%s17446_s3 + $0x644] ss:$44 sps:$4 sm:$0xff]  }
 0x3e5   :  { %5122 = vmatprep.mubr.bf16.mxu0 %v14818_v61 }
 0x3e6   :  { %5123 = vmatmul.mubr.bf16.vlgmr.msra.gmra.mrb[40].mxu0 %v14816_v59 }
 0x3e7   :  { %5177 = vmatpush1.bf16.msra.mxu0 %v12072_v10  ;;  %5208 = vmatprep.mubr.bf16.mxu0 %v14818_v61  ;;  %v12159_v10 = vld [vmem:[%s17446_s3 + $0x638] ss:$44 sps:$4 sm:$0xff]  }
 0x3e8   :  { %5178 = vmatprep.subr.bf16.mxu0 %v12077_v62  ;;  %v12162_v62 = vld [vmem:[%s17446_s3 + $0x640] ss:$44 sps:$4 sm:$0xff]  }
 0x3eb   :  { %5179 = vmatpush1.bf16.msra.mxu0 %v12075_v63  ;;  %v12167_v63 = vld [vmem:[%s17446_s3 + $0x694] ss:$44 sps:$4 sm:$0xff]  }
 0x3ec   :  { %5180 = vmatprep.subr.bf16.mxu0 %v12080_v0  ;;  %v12170_v0 = vld [vmem:[%s17446_s3 + $0x69c] ss:$44 sps:$4 sm:$0xff]  }
 0x3ef   :  { %5181 = vmatpush1.bf16.msra.mxu0 %v12078_v1  ;;  %v12165_v1 = vld [vmem:[%s17446_s3 + $0x690] ss:$44 sps:$4 sm:$0xff]  }
 0x3f0   :  { %5182 = vmatprep.subr.bf16.mxu0 %v12083_v2  ;;  %v12168_v2 = vld [vmem:[%s17446_s3 + $0x698] ss:$44 sps:$4 sm:$0xff]  }
 0x3f3   :  { %5183 = vmatpush1.bf16.msra.mxu0 %v12081_v33  ;;  %v12173_v33 = vld [vmem:[%s17446_s3 + $0x6ec] ss:$44 sps:$4 sm:$0xff]  }
 0x3f4   :  { %5184 = vmatprep.subr.bf16.mxu0 %v12086_v34  ;;  %v12176_v34 = vld [vmem:[%s17446_s3 + $0x6f4] ss:$44 sps:$4 sm:$0xff]  }
 0x3f7   :  { %5185 = vmatpush1.bf16.msra.mxu0 %v12084_v6  ;;  %v12171_v6 = vld [vmem:[%s17446_s3 + $0x6e8] ss:$44 sps:$4 sm:$0xff]  }
 0x3f8   :  { %5186 = vmatprep.subr.bf16.mxu0 %v12089_v7  ;;  %v12174_v7 = vld [vmem:[%s17446_s3 + $0x6f0] ss:$44 sps:$4 sm:$0xff]  }
 0x3fb   :  { %5187 = vmatpush1.bf16.msra.mxu0 %v12087_v11  ;;  %v12179_v11 = vld [vmem:[%s17446_s3 + $0x744] ss:$44 sps:$4 sm:$0xff]  }
 0x3fc   :  { %5188 = vmatprep.subr.bf16.mxu0 %v12092_v13  ;;  %v12182_v13 = vld [vmem:[%s17446_s3 + $0x74c] ss:$44 sps:$4 sm:$0xff]  }
 0x3ff   :  { %5189 = vmatpush1.bf16.msra.mxu0 %v12090_v14  ;;  %v12177_v14 = vld [vmem:[%s17446_s3 + $0x740] ss:$44 sps:$4 sm:$0xff]  }
 0x400   :  { %5190 = vmatprep.subr.bf16.mxu0 %v12098_v15  ;;  %v12180_v15 = vld [vmem:[%s17446_s3 + $0x748] ss:$44 sps:$4 sm:$0xff]  }
 0x403   :  { %5191 = vmatpush1.bf16.msra.mxu0 %v12096_v16  ;;  %v12185_v16 = vld [vmem:[%s17446_s3 + $0x79c] ss:$44 sps:$4 sm:$0xff]  }
 0x404   :  { %5192 = vmatprep.subr.bf16.mxu0 %v12104_v17  ;;  %v12188_v17 = vld [vmem:[%s17446_s3 + $0x7a4] ss:$44 sps:$4 sm:$0xff]  }
 0x407   :  { %5193 = vmatpush1.bf16.msra.mxu0 %v12102_v18  ;;  %v12183_v18 = vld [vmem:[%s17446_s3 + $0x798] ss:$44 sps:$4 sm:$0xff]  }
 0x408   :  { %5194 = vmatprep.subr.bf16.mxu0 %v12110_v42  ;;  %v12186_v42 = vld [vmem:[%s17446_s3 + $0x7a0] ss:$44 sps:$4 sm:$0xff]  }
 0x40b   :  { %5195 = vmatpush1.bf16.msra.mxu0 %v12108_v19  ;;  %v12191_v19 = vld [vmem:[%s17446_s3 + $0x7f4] ss:$44 sps:$4 sm:$0xff]  }
 0x40c   :  { %5196 = vmatprep.subr.bf16.mxu0 %v12116_v20  ;;  %v12194_v20 = vld [vmem:[%s17446_s3 + $0x7fc] ss:$44 sps:$4 sm:$0xff]  }
 0x40f   :  { %5197 = vmatpush1.bf16.msra.mxu0 %v12114_v21  ;;  %v12189_v21 = vld [vmem:[%s17446_s3 + $0x7f0] ss:$44 sps:$4 sm:$0xff]  }
 0x410   :  { %5198 = vmatprep.subr.bf16.mxu0 %v12122_v22  ;;  %v12192_v22 = vld [vmem:[%s17446_s3 + $0x7f8] ss:$44 sps:$4 sm:$0xff]  }
 0x413   :  { %5199 = vmatpush1.bf16.msra.mxu0 %v12120_v23  ;;  %v12197_v23 = vld [vmem:[%s17446_s3 + $0x84c] ss:$44 sps:$4 sm:$0xff]  }
 0x414   :  { %5200 = vmatprep.subr.bf16.mxu0 %v12128_v24  ;;  %v12200_v24 = vld [vmem:[%s17446_s3 + $0x854] ss:$44 sps:$4 sm:$0xff]  }
 0x417   :  { %5201 = vmatpush1.bf16.msra.mxu0 %v12126_v25  ;;  %v12195_v25 = vld [vmem:[%s17446_s3 + $0x848] ss:$44 sps:$4 sm:$0xff]  }
 0x418   :  { %5202 = vmatprep.subr.bf16.mxu0 %v12134_v26  ;;  %v12198_v26 = vld [vmem:[%s17446_s3 + $0x850] ss:$44 sps:$4 sm:$0xff]  }
 0x41b   :  { %5203 = vmatpush1.bf16.msra.mxu0 %v12132_v27  ;;  %v3366_v29 = vpop.f32.mrb[36].mxu0  ;;  %v12203_v27 = vld [vmem:[%s17446_s3 + $0x14] ss:$44 sps:$4 sm:$0xff]  }
 0x41c   :  { %v3367_v31 = vadd.f32 %v3366_v29, %v13644_v58  ;;  %v3368_v35 = vpop.f32.mrb[37].mxu0  ;;  %5204 = vmatprep.subr.bf16.mxu0 %v12140_v28  ;;  %v12206_v28 = vld [vmem:[%s17446_s3 + $0x5a4] ss:$44 sps:$4 sm:$0xff]  }
 0x41d   :  { %v3369_v38 = vadd.f32 %v3368_v35, %v13644_v58  ;;  %v3370_v39 = vpop.f32.mrb[38].mxu0  ;;  %v12201_v29 = vld [vmem:[%s17446_s3 + $0x10] ss:$44 sps:$4 sm:$0xff]  }
 0x41e   :  { %v3371_v40 = vadd.f32 %v3370_v39, %v13646_v60  ;;  %v3372_v41 = vpop.f32.mrb[39].mxu0  ;;  %v3377_v5 = vmax.f32 %v3367_v31, 0.0  ;;  %v12209_v31 = vld [vmem:[%s17446_s3 + $0x6c] ss:$44 sps:$4 sm:$0xff]   ;;  %v12212_v35 = vld [vmem:[%s17446_s3 + $0x5fc] ss:$44 sps:$4 sm:$0xff]  }
 0x41f   :  { %v3373_v43 = vadd.f32 %v3372_v41, %v13646_v60  ;;  %5205 = vmatpush1.bf16.msra.mxu0 %v12138_v30  ;;  %v3378_v49 = vmax.f32 %v3369_v38, 0.0  ;;  %v12147_v60 = vld [vmem:[%s17446_s3 + $0x588] ss:$44 sps:$4 sm:$0xff]   ;;  %v12204_v30 = vld [vmem:[%s17446_s3 + $0x5a0] ss:$44 sps:$4 sm:$0xff]  }
 0x420   :  { %v3381_v47 = vmax.f32 %v3371_v40, 0.0  ;;  %5206 = vmatprep.subr.bf16.mxu0 %v12146_v37  ;;  %v12207_v37 = vld [vmem:[%s17446_s3 + $0x68] ss:$44 sps:$4 sm:$0xff]   ;;  %v12210_v38 = vld [vmem:[%s17446_s3 + $0x5f8] ss:$44 sps:$4 sm:$0xff]  }
 0x421   :  { %v3382_v58 = vmax.f32 %v3373_v43, 0.0  ;;  %v12215_v39 = vld [vmem:[%s17446_s3 + $0xc4] ss:$44 sps:$4 sm:$0xff]   ;;  %v12218_v40 = vld [vmem:[%s17446_s3 + $0x654] ss:$44 sps:$4 sm:$0xff]  }
 0x422   :  { %v14923_v8 = vpack.c.bf16 %v3381_v47, %v3377_v5  ;;  %v12213_v41 = vld [vmem:[%s17446_s3 + $0xc0] ss:$44 sps:$4 sm:$0xff]   ;;  %v12216_v43 = vld [vmem:[%s17446_s3 + $0x650] ss:$44 sps:$4 sm:$0xff]   ;;  %v12219_v47 = vld [vmem:[%s17446_s3 + $0x118] ss:$44 sps:$4 sm:$0xff]  }
 0x423   :  { %v14925_v50 = vpack.c.bf16 %v3382_v58, %v3378_v49  ;;  %5207 = vmatpush1.bf16.msra.mxu0 %v12144_v45  ;;  %v12221_v45 = vld [vmem:[%s17446_s3 + $0x11c] ss:$44 sps:$4 sm:$0xff]   ;;  %v12224_v5 = vld [vmem:[%s17446_s3 + $0x6ac] ss:$44 sps:$4 sm:$0xff]   ;;  %v12227_v49 = vld [vmem:[%s17446_s3 + $0x174] ss:$44 sps:$4 sm:$0xff]  }
 0x424   :  { %5219 = vmatprep.subr.bf16.mxu0 %v12149_v48  ;;  %v12222_v48 = vld [vmem:[%s17446_s3 + $0x6a8] ss:$44 sps:$4 sm:$0xff]   ;;  %v12230_v58 = vld [vmem:[%s17446_s3 + $0x704] ss:$44 sps:$4 sm:$0xff]  }
 0x425   :  { %10737 = vmatprep.mubr.msk.bf16.mxu1 %vm2252_vm0, %v14925_v50 }
 0x426   :  { %5209 = vmatmul.mubr.bf16.vlgmr.msra.gmra.mrb[44].mxu0 %v14816_v59  ;;  %5166 = vmatmul.mubr.bf16.vlgmr.msra.gmra.mrb[12].mxu1 %v14923_v8 }
 0x427   :  { %5220 = vmatpush1.bf16.msra.mxu0 %v12147_v60  ;;  %10738 = vmatprep.mubr.msk.bf16.mxu0 %vm2252_vm0, %v14925_v50  ;;  %v12225_v60 = vld [vmem:[%s17446_s3 + $0x170] ss:$44 sps:$4 sm:$0xff]  }
 0x428   :  { %5306 = vmatpush1.bf16.msra.mxu1 %v12150_v51  ;;  %10739 = vmatprep.mubr.msk.bf16.mxu1 %vm2252_vm0, %v14925_v50  ;;  %v12228_v51 = vld [vmem:[%s17446_s3 + $0x700] ss:$44 sps:$4 sm:$0xff]  }
 0x429   :  { %5221 = vmatprep.subr.bf16.mxu0 %v12155_v52  ;;  %5307 = vmatprep.subr.bf16.mxu1 %v12158_v53  ;;  %v12233_v52 = vld [vmem:[%s17446_s3 + $0x1cc] ss:$44 sps:$4 sm:$0xff]   ;;  %v12236_v53 = vld [vmem:[%s17446_s3 + $0x75c] ss:$44 sps:$4 sm:$0xff]  }
 0x42b   :  { %5222 = vmatpush1.bf16.msra.mxu0 %v12153_v54  ;;  %v12231_v54 = vld [vmem:[%s17446_s3 + $0x1c8] ss:$44 sps:$4 sm:$0xff]  }
 0x42c   :  { %5308 = vmatpush1.bf16.msra.mxu1 %v12156_v55  ;;  %5223 = vmatprep.subr.bf16.mxu0 %v12161_v56  ;;  %v12234_v55 = vld [vmem:[%s17446_s3 + $0x758] ss:$44 sps:$4 sm:$0xff]  }
 0x42d   :  { %5309 = vmatprep.subr.bf16.mxu1 %v12164_v57  ;;  %v12239_v56 = vld [vmem:[%s17446_s3 + $0x224] ss:$44 sps:$4 sm:$0xff]   ;;  %v12242_v57 = vld [vmem:[%s17446_s3 + $0x7b4] ss:$44 sps:$4 sm:$0xff]  }
 0x42f   :  { %5224 = vmatpush1.bf16.msra.mxu0 %v12159_v10  ;;  %v12237_v10 = vld [vmem:[%s17446_s3 + $0x220] ss:$44 sps:$4 sm:$0xff]  }
 0x430   :  { %5310 = vmatpush1.bf16.msra.mxu1 %v12162_v62  ;;  %5225 = vmatprep.subr.bf16.mxu0 %v12167_v63  ;;  %v12240_v62 = vld [vmem:[%s17446_s3 + $0x7b0] ss:$44 sps:$4 sm:$0xff]  }
 0x431   :  { %5311 = vmatprep.subr.bf16.mxu1 %v12170_v0  ;;  %v12245_v63 = vld [vmem:[%s17446_s3 + $0x27c] ss:$44 sps:$4 sm:$0xff]   ;;  %v12248_v0 = vld [vmem:[%s17446_s3 + $0x80c] ss:$44 sps:$4 sm:$0xff]  }
 0x433   :  { %5226 = vmatpush1.bf16.msra.mxu0 %v12165_v1  ;;  %v12243_v1 = vld [vmem:[%s17446_s3 + $0x278] ss:$44 sps:$4 sm:$0xff]  }
 0x434   :  { %5312 = vmatpush1.bf16.msra.mxu1 %v12168_v2  ;;  %5227 = vmatprep.subr.bf16.mxu0 %v12173_v33  ;;  %v12246_v2 = vld [vmem:[%s17446_s3 + $0x808] ss:$44 sps:$4 sm:$0xff]  }
 0x435   :  { %5313 = vmatprep.subr.bf16.mxu1 %v12176_v34  ;;  %v12251_v33 = vld [vmem:[%s17446_s3 + $0x2d4] ss:$44 sps:$4 sm:$0xff]   ;;  %v12254_v34 = vld [vmem:[%s17446_s3 + $0x864] ss:$44 sps:$4 sm:$0xff]  }
 0x437   :  { %5228 = vmatpush1.bf16.msra.mxu0 %v12171_v6  ;;  %v12249_v6 = vld [vmem:[%s17446_s3 + $0x2d0] ss:$44 sps:$4 sm:$0xff]  }
 0x438   :  { %5314 = vmatpush1.bf16.msra.mxu1 %v12174_v7  ;;  %5229 = vmatprep.subr.bf16.mxu0 %v12179_v11  ;;  %v12252_v7 = vld [vmem:[%s17446_s3 + $0x860] ss:$44 sps:$4 sm:$0xff]  }
 0x439   :  { %5315 = vmatprep.subr.bf16.mxu1 %v12182_v13  ;;  %v12257_v11 = vld [vmem:[%s17446_s3 + $0x32c] ss:$44 sps:$4 sm:$0xff]   ;;  %v12255_v13 = vld [vmem:[%s17446_s3 + $0x328] ss:$44 sps:$4 sm:$0xff]  }
 0x43b   :  { %5230 = vmatpush1.bf16.msra.mxu0 %v12177_v14  ;;  %v12260_v14 = vld [vmem:[%s17446_s3 + $0x384] ss:$44 sps:$4 sm:$0xff]  }
 0x43c   :  { %5316 = vmatpush1.bf16.msra.mxu1 %v12180_v15  ;;  %5231 = vmatprep.subr.bf16.mxu0 %v12185_v16  ;;  %v12258_v15 = vld [vmem:[%s17446_s3 + $0x380] ss:$44 sps:$4 sm:$0xff]   ;;  %v12263_v16 = vld [vmem:[%s17446_s3 + $0x3dc] ss:$44 sps:$4 sm:$0xff]  }
 0x43d   :  { %5317 = vmatprep.subr.bf16.mxu1 %v12188_v17  ;;  %v12261_v17 = vld [vmem:[%s17446_s3 + $0x3d8] ss:$44 sps:$4 sm:$0xff]  }
 0x43f   :  { %5232 = vmatpush1.bf16.msra.mxu0 %v12183_v18  ;;  %v12266_v18 = vld [vmem:[%s17446_s3 + $0x434] ss:$44 sps:$4 sm:$0xff]  }
 0x440   :  { %5318 = vmatpush1.bf16.msra.mxu1 %v12186_v42  ;;  %5233 = vmatprep.subr.bf16.mxu0 %v12191_v19  ;;  %v12264_v42 = vld [vmem:[%s17446_s3 + $0x430] ss:$44 sps:$4 sm:$0xff]   ;;  %v12269_v19 = vld [vmem:[%s17446_s3 + $0x48c] ss:$44 sps:$4 sm:$0xff]  }
 0x441   :  { %5319 = vmatprep.subr.bf16.mxu1 %v12194_v20  ;;  %v12267_v20 = vld [vmem:[%s17446_s3 + $0x488] ss:$44 sps:$4 sm:$0xff]  }
 0x443   :  { %5234 = vmatpush1.bf16.msra.mxu0 %v12189_v21  ;;  %v12272_v21 = vld [vmem:[%s17446_s3 + $0x4e4] ss:$44 sps:$4 sm:$0xff]  }
 0x444   :  { %5320 = vmatpush1.bf16.msra.mxu1 %v12192_v22  ;;  %5235 = vmatprep.subr.bf16.mxu0 %v12197_v23  ;;  %v12270_v22 = vld [vmem:[%s17446_s3 + $0x4e0] ss:$44 sps:$4 sm:$0xff]   ;;  %v12275_v23 = vld [vmem:[%s17446_s3 + $0x53c] ss:$44 sps:$4 sm:$0xff]  }
 0x445   :  { %5321 = vmatprep.subr.bf16.mxu1 %v12200_v24  ;;  %v12273_v24 = vld [vmem:[%s17446_s3 + $0x538] ss:$44 sps:$4 sm:$0xff]  }
 0x447   :  { %5236 = vmatpush1.bf16.msra.mxu0 %v12195_v25  ;;  %v12278_v25 = vld [vmem:[%s17446_s3 + $0x1c] ss:$44 sps:$4 sm:$0xff]  }
 0x448   :  { %5322 = vmatpush1.bf16.msra.mxu1 %v12198_v26  ;;  %5262 = vmatprep.subr.bf16.mxu0 %v12203_v27  ;;  %v12276_v26 = vld [vmem:[%s17446_s3 + $0x18] ss:$44 sps:$4 sm:$0xff]   ;;  %v12281_v27 = vld [vmem:[%s17446_s3 + $0x74] ss:$44 sps:$4 sm:$0xff]  }
 0x449   :  { %5477 = vmatprep.subr.bf16.mxu1 %v12206_v28  ;;  %v12279_v28 = vld [vmem:[%s17446_s3 + $0x70] ss:$44 sps:$4 sm:$0xff]  }
 0x44a   :  { %5252 = vmatmul.mubr.bf16.vlgmr.msra.gmra.mrb[44].mxu0 %v14923_v8 }
 0x44b   :  { %5338 = vmatmul.mubr.bf16.vlgmr.msra.gmra.mrb[16].mxu1 %v14923_v8  ;;  %5263 = vmatpush1.bf16.msra.mxu0 %v12201_v29  ;;  %v12284_v29 = vld [vmem:[%s17446_s3 + $0xcc] ss:$44 sps:$4 sm:$0xff]  }
 0x44c   :  { %5294 = vmatprep.mubr.bf16.mxu0 %v14818_v61  ;;  %5478 = vmatpush1.bf16.msra.mxu1 %v12204_v30  ;;  %v12282_v30 = vld [vmem:[%s17446_s3 + $0xc8] ss:$44 sps:$4 sm:$0xff]  }
 0x44d   :  { %10741 = vmatprep.mubr.msk.bf16.mxu1 %vm2252_vm0, %v14925_v50  ;;  %5264 = vmatprep.subr.bf16.mxu0 %v12209_v31  ;;  %v12287_v31 = vld [vmem:[%s17446_s3 + $0x124] ss:$44 sps:$4 sm:$0xff]  }
 0x44e   :  { %5479 = vmatprep.subr.bf16.mxu1 %v12212_v35  ;;  %v12285_v35 = vld [vmem:[%s17446_s3 + $0x120] ss:$44 sps:$4 sm:$0xff]  }
 0x44f   :  { %5265 = vmatpush1.bf16.msra.mxu0 %v12207_v37  ;;  %v12290_v37 = vld [vmem:[%s17446_s3 + $0x17c] ss:$44 sps:$4 sm:$0xff]  }
 0x450   :  { %5480 = vmatpush1.bf16.msra.mxu1 %v12210_v38  ;;  %5266 = vmatprep.subr.bf16.mxu0 %v12215_v39  ;;  %v12288_v38 = vld [vmem:[%s17446_s3 + $0x178] ss:$44 sps:$4 sm:$0xff]   ;;  %v12293_v39 = vld [vmem:[%s17446_s3 + $0x1d4] ss:$44 sps:$4 sm:$0xff]  }
 0x451   :  { %5481 = vmatprep.subr.bf16.mxu1 %v12218_v40  ;;  %v12291_v40 = vld [vmem:[%s17446_s3 + $0x1d0] ss:$44 sps:$4 sm:$0xff]  }
 0x453   :  { %5267 = vmatpush1.bf16.msra.mxu0 %v12213_v41  ;;  %v12296_v41 = vld [vmem:[%s17446_s3 + $0x22c] ss:$44 sps:$4 sm:$0xff]  }
 0x454   :  { %5482 = vmatpush1.bf16.msra.mxu1 %v12216_v43  ;;  %5268 = vmatprep.subr.bf16.mxu0 %v12221_v45  ;;  %v12294_v43 = vld [vmem:[%s17446_s3 + $0x228] ss:$44 sps:$4 sm:$0xff]   ;;  %v12299_v45 = vld [vmem:[%s17446_s3 + $0x284] ss:$44 sps:$4 sm:$0xff]  }
 0x455   :  { %5483 = vmatprep.subr.bf16.mxu1 %v12224_v5  ;;  %v12297_v5 = vld [vmem:[%s17446_s3 + $0x280] ss:$44 sps:$4 sm:$0xff]  }
 0x457   :  { %5269 = vmatpush1.bf16.msra.mxu0 %v12219_v47  ;;  %v12302_v47 = vld [vmem:[%s17446_s3 + $0x2dc] ss:$44 sps:$4 sm:$0xff]  }
 0x458   :  { %5484 = vmatpush1.bf16.msra.mxu1 %v12222_v48  ;;  %5270 = vmatprep.subr.bf16.mxu0 %v12227_v49  ;;  %v12300_v48 = vld [vmem:[%s17446_s3 + $0x2d8] ss:$44 sps:$4 sm:$0xff]   ;;  %v12305_v49 = vld [vmem:[%s17446_s3 + $0x334] ss:$44 sps:$4 sm:$0xff]  }
 0x459   :  { %5485 = vmatprep.subr.bf16.mxu1 %v12230_v58  ;;  %v12303_v58 = vld [vmem:[%s17446_s3 + $0x330] ss:$44 sps:$4 sm:$0xff]  }
 0x45b   :  { %5271 = vmatpush1.bf16.msra.mxu0 %v12225_v60  ;;  %v12308_v60 = vld [vmem:[%s17446_s3 + $0x38c] ss:$44 sps:$4 sm:$0xff]  }
 0x45c   :  { %5486 = vmatpush1.bf16.msra.mxu1 %v12228_v51  ;;  %5272 = vmatprep.subr.bf16.mxu0 %v12233_v52  ;;  %v12306_v51 = vld [vmem:[%s17446_s3 + $0x388] ss:$44 sps:$4 sm:$0xff]   ;;  %v12311_v52 = vld [vmem:[%s17446_s3 + $0x3e4] ss:$44 sps:$4 sm:$0xff]  }
 0x45d   :  { %5487 = vmatprep.subr.bf16.mxu1 %v12236_v53  ;;  %v12309_v53 = vld [vmem:[%s17446_s3 + $0x3e0] ss:$44 sps:$4 sm:$0xff]  }
 0x45f   :  { %5273 = vmatpush1.bf16.msra.mxu0 %v12231_v54  ;;  %v12314_v54 = vld [vmem:[%s17446_s3 + $0x43c] ss:$44 sps:$4 sm:$0xff]  }
 0x460   :  { %5488 = vmatpush1.bf16.msra.mxu1 %v12234_v55  ;;  %5274 = vmatprep.subr.bf16.mxu0 %v12239_v56  ;;  %v12312_v55 = vld [vmem:[%s17446_s3 + $0x438] ss:$44 sps:$4 sm:$0xff]   ;;  %v12317_v56 = vld [vmem:[%s17446_s3 + $0x494] ss:$44 sps:$4 sm:$0xff]  }
 0x461   :  { %5489 = vmatprep.subr.bf16.mxu1 %v12242_v57 }
 0x463   :  { %5275 = vmatpush1.bf16.msra.mxu0 %v12237_v10 }
 0x464   :  { %5490 = vmatpush1.bf16.msra.mxu1 %v12240_v62  ;;  %5276 = vmatprep.subr.bf16.mxu0 %v12245_v63  ;;  %v12315_v63 = vld [vmem:[%s17446_s3 + $0x490] ss:$44 sps:$4 sm:$0xff]  }
 0x465   :  { %5491 = vmatprep.subr.bf16.mxu1 %v12248_v0 }
 0x467   :  { %5277 = vmatpush1.bf16.msra.mxu0 %v12243_v1  ;;  %v12320_v1 = vld [vmem:[%s17446_s3 + $0x4ec] ss:$44 sps:$4 sm:$0xff]  }
 0x468   :  { %5492 = vmatpush1.bf16.msra.mxu1 %v12246_v2  ;;  %5278 = vmatprep.subr.bf16.mxu0 %v12251_v33  ;;  %v12318_v2 = vld [vmem:[%s17446_s3 + $0x4e8] ss:$44 sps:$4 sm:$0xff]   ;;  %v12323_v33 = vld [vmem:[%s17446_s3 + $0x544] ss:$44 sps:$4 sm:$0xff]  }
 0x469   :  { %5493 = vmatprep.subr.bf16.mxu1 %v12254_v34  ;;  %v12321_v34 = vld [vmem:[%s17446_s3 + $0x540] ss:$44 sps:$4 sm:$0xff]  }
 0x46b   :  { %5279 = vmatpush1.bf16.msra.mxu0 %v12249_v6  ;;  %v12326_v6 = vld [vmem:[%s17446_s3 + $0x59c] ss:$44 sps:$4 sm:$0xff]  }
 0x46c   :  { %5494 = vmatpush1.bf16.msra.mxu1 %v12252_v7  ;;  %5280 = vmatprep.subr.bf16.mxu0 %v12257_v11  ;;  %v12324_v7 = vld [vmem:[%s17446_s3 + $0x598] ss:$44 sps:$4 sm:$0xff]   ;;  %v12329_v11 = vld [vmem:[%s17446_s3 + $0x5f4] ss:$44 sps:$4 sm:$0xff]  }
 0x46d   :  { %9293 = vmatprep.subr.bf16.mxu1 %v12432_v12 }
 0x46f   :  { %5510 = vmatmul.mubr.bf16.vlgmr.msra.gmra.mrb[20].mxu1 %v14923_v8  ;;  %5281 = vmatpush1.bf16.msra.mxu0 %v12255_v13  ;;  %v12327_v13 = vld [vmem:[%s17446_s3 + $0x5f0] ss:$44 sps:$4 sm:$0xff]  }
 0x470   :  { %5282 = vmatprep.subr.bf16.mxu0 %v12260_v14  ;;  %v12332_v14 = vld [vmem:[%s17446_s3 + $0x64c] ss:$44 sps:$4 sm:$0xff]  }
 0x473   :  { %5283 = vmatpush1.bf16.msra.mxu0 %v12258_v15  ;;  %v12330_v15 = vld [vmem:[%s17446_s3 + $0x648] ss:$44 sps:$4 sm:$0xff]  }
 0x474   :  { %5284 = vmatprep.subr.bf16.mxu0 %v12263_v16  ;;  %v12335_v16 = vld [vmem:[%s17446_s3 + $0x6a4] ss:$44 sps:$4 sm:$0xff]  }
 0x477   :  { %5285 = vmatpush1.bf16.msra.mxu0 %v12261_v17  ;;  %v12333_v17 = vld [vmem:[%s17446_s3 + $0x6a0] ss:$44 sps:$4 sm:$0xff]  }
 0x478   :  { %5286 = vmatprep.subr.bf16.mxu0 %v12266_v18  ;;  %v12338_v18 = vld [vmem:[%s17446_s3 + $0x6fc] ss:$44 sps:$4 sm:$0xff]  }
 0x47b   :  { %5287 = vmatpush1.bf16.msra.mxu0 %v12264_v42  ;;  %v12336_v42 = vld [vmem:[%s17446_s3 + $0x6f8] ss:$44 sps:$4 sm:$0xff]  }
 0x47c   :  { %5288 = vmatprep.subr.bf16.mxu0 %v12269_v19  ;;  %v12341_v19 = vld [vmem:[%s17446_s3 + $0x754] ss:$44 sps:$4 sm:$0xff]  }
 0x47f   :  { %5289 = vmatpush1.bf16.msra.mxu0 %v12267_v20  ;;  %v12339_v20 = vld [vmem:[%s17446_s3 + $0x750] ss:$44 sps:$4 sm:$0xff]  }
 0x480   :  { %5290 = vmatprep.subr.bf16.mxu0 %v12272_v21  ;;  %v12344_v21 = vld [vmem:[%s17446_s3 + $0x7ac] ss:$44 sps:$4 sm:$0xff]  }
 0x483   :  { %5291 = vmatpush1.bf16.msra.mxu0 %v12270_v22  ;;  %v12342_v22 = vld [vmem:[%s17446_s3 + $0x7a8] ss:$44 sps:$4 sm:$0xff]  }
 0x484   :  { %5292 = vmatprep.subr.bf16.mxu0 %v12275_v23  ;;  %v12347_v23 = vld [vmem:[%s17446_s3 + $0x804] ss:$44 sps:$4 sm:$0xff]  }
 0x487   :  { %5293 = vmatpush1.bf16.msra.mxu0 %v12273_v24  ;;  %v12345_v24 = vld [vmem:[%s17446_s3 + $0x800] ss:$44 sps:$4 sm:$0xff]  }
 0x488   :  { %5348 = vmatprep.subr.bf16.mxu0 %v12278_v25  ;;  %v12350_v25 = vld [vmem:[%s17446_s3 + $0x85c] ss:$44 sps:$4 sm:$0xff]  }
 0x48a   :  { %5295 = vmatmul.mubr.bf16.vlgmr.msra.gmra.mrb[48].mxu0 %v14816_v59 }
 0x48b   :  { %5349 = vmatpush1.bf16.msra.mxu0 %v12276_v26  ;;  %5380 = vmatprep.mubr.bf16.mxu0 %v14818_v61  ;;  %v12348_v26 = vld [vmem:[%s17446_s3 + $0x858] ss:$44 sps:$4 sm:$0xff]  }
 0x48c   :  { %5350 = vmatprep.subr.bf16.mxu0 %v12281_v27  ;;  %v12353_v27 = vld [vmem:[%s17446_s3 + $0x24] ss:$44 sps:$4 sm:$0xff]  }
 0x48f   :  { %5351 = vmatpush1.bf16.msra.mxu0 %v12279_v28  ;;  %v12351_v28 = vld [vmem:[%s17446_s3 + $0x20] ss:$44 sps:$4 sm:$0xff]  }
 0x490   :  { %5352 = vmatprep.subr.bf16.mxu0 %v12284_v29  ;;  %v12356_v29 = vld [vmem:[%s17446_s3 + $0x7c] ss:$44 sps:$4 sm:$0xff]  }
 0x493   :  { %5353 = vmatpush1.bf16.msra.mxu0 %v12282_v30  ;;  %v12354_v30 = vld [vmem:[%s17446_s3 + $0x78] ss:$44 sps:$4 sm:$0xff]  }
 0x494   :  { %5354 = vmatprep.subr.bf16.mxu0 %v12287_v31  ;;  %v12359_v31 = vld [vmem:[%s17446_s3 + $0xd4] ss:$44 sps:$4 sm:$0xff]  }
 0x497   :  { %5355 = vmatpush1.bf16.msra.mxu0 %v12285_v35  ;;  %v12357_v35 = vld [vmem:[%s17446_s3 + $0xd0] ss:$44 sps:$4 sm:$0xff]  }
 0x498   :  { %5356 = vmatprep.subr.bf16.mxu0 %v12290_v37  ;;  %v12362_v37 = vld [vmem:[%s17446_s3 + $0x12c] ss:$44 sps:$4 sm:$0xff]  }
 0x49b   :  { %5357 = vmatpush1.bf16.msra.mxu0 %v12288_v38  ;;  %v12360_v38 = vld [vmem:[%s17446_s3 + $0x128] ss:$44 sps:$4 sm:$0xff]  }
 0x49c   :  { %5358 = vmatprep.subr.bf16.mxu0 %v12293_v39  ;;  %v12365_v39 = vld [vmem:[%s17446_s3 + $0x184] ss:$44 sps:$4 sm:$0xff]  }
 0x49f   :  { %5359 = vmatpush1.bf16.msra.mxu0 %v12291_v40 }
 0x4a0   :  { %5360 = vmatprep.subr.bf16.mxu0 %v12296_v41 }
 0x4a3   :  { %5361 = vmatpush1.bf16.msra.mxu0 %v12294_v43 }
 0x4a4   :  { %5362 = vmatprep.subr.bf16.mxu0 %v12299_v45 }
 0x4a7   :  { %5363 = vmatpush1.bf16.msra.mxu0 %v12297_v5 }
 0x4a8   :  { %5364 = vmatprep.subr.bf16.mxu0 %v12302_v47  ;;  %v12363_v47 = vld [vmem:[%s17446_s3 + $0x180] ss:$44 sps:$4 sm:$0xff]  }
 0x4ab   :  { %5365 = vmatpush1.bf16.msra.mxu0 %v12300_v48 }
 0x4ac   :  { %5366 = vmatprep.subr.bf16.mxu0 %v12305_v49 }
 0x4af   :  { %5367 = vmatpush1.bf16.msra.mxu0 %v12303_v58  ;;  %v12368_v58 = vld [vmem:[%s17446_s3 + $0x1dc] ss:$44 sps:$4 sm:$0xff]  }
 0x4b0   :  { %5368 = vmatprep.subr.bf16.mxu0 %v12308_v60 }
 0x4b3   :  { %5369 = vmatpush1.bf16.msra.mxu0 %v12306_v51 }
 0x4b4   :  { %5370 = vmatprep.subr.bf16.mxu0 %v12311_v52 }
 0x4b7   :  { %5371 = vmatpush1.bf16.msra.mxu0 %v12309_v53  ;;  %v12366_v53 = vld [vmem:[%s17446_s3 + $0x1d8] ss:$44 sps:$4 sm:$0xff]  }
 0x4b8   :  { %5372 = vmatprep.subr.bf16.mxu0 %v12314_v54  ;;  %v12371_v54 = vld [vmem:[%s17446_s3 + $0x234] ss:$44 sps:$4 sm:$0xff]  }
 0x4b9   :  { %v15276_v57 = vpop.f32.mrb[40].mxu0 }
 0x4ba   :  { %v15278_v10 = vpop.f32.mrb[41].mxu0 }
 0x4bb   :  { %5373 = vmatpush1.bf16.msra.mxu0 %v12312_v55  ;;  %v15280_v62 = vpop.f32.mrb[42].mxu0  ;;  %v12369_v55 = vld [vmem:[%s17446_s3 + $0x230] ss:$44 sps:$4 sm:$0xff]  }
 0x4bc   :  { %v15285_v0 = vpop.f32.mrb[43].mxu0  ;;  %5374 = vmatprep.subr.bf16.mxu0 %v12317_v56  ;;  %v12374_v56 = vld [vmem:[%s17446_s3 + $0x28c] ss:$44 sps:$4 sm:$0xff]  }
 0x4bf   :  { %5375 = vmatpush1.bf16.msra.mxu0 %v12315_v63  ;;  %v12380_v63 = vld [vmem:[%s17446_s3 + $0x33c] ss:$44 sps:$4 sm:$0xff]  }
 0x4c0   :  { %5376 = vmatprep.subr.bf16.mxu0 %v12320_v1  ;;  %v12381_v1 = vld [vmem:[%s17446_s3 + $0x390] ss:$44 sps:$4 sm:$0xff]  }
 0x4c3   :  { %5377 = vmatpush1.bf16.msra.mxu0 %v12318_v2  ;;  %v12386_v2 = vld [vmem:[%s17446_s3 + $0x3ec] ss:$44 sps:$4 sm:$0xff]  }
 0x4c4   :  { %5378 = vmatprep.subr.bf16.mxu0 %v12323_v33  ;;  %v12384_v33 = vld [vmem:[%s17446_s3 + $0x3e8] ss:$44 sps:$4 sm:$0xff]  }
 0x4c7   :  { %5379 = vmatpush1.bf16.msra.mxu0 %v12321_v34  ;;  %v12389_v34 = vld [vmem:[%s17446_s3 + $0x444] ss:$44 sps:$4 sm:$0xff]  }
 0x4c8   :  { %5391 = vmatprep.subr.bf16.mxu0 %v12326_v6  ;;  %v12387_v6 = vld [vmem:[%s17446_s3 + $0x440] ss:$44 sps:$4 sm:$0xff]  }
 0x4ca   :  { %5381 = vmatmul.mubr.bf16.vlgmr.msra.gmra.mrb[52].mxu0 %v14816_v59 }
 0x4cb   :  { %5392 = vmatpush1.bf16.msra.mxu0 %v12324_v7  ;;  %10740 = vmatprep.mubr.msk.bf16.mxu0 %vm2252_vm0, %v14925_v50  ;;  %v12392_v7 = vld [vmem:[%s17446_s3 + $0x49c] ss:$44 sps:$4 sm:$0xff]  }
 0x4cc   :  { %5393 = vmatprep.subr.bf16.mxu0 %v12329_v11 }
 0x4cf   :  { %5394 = vmatpush1.bf16.msra.mxu0 %v12327_v13 }
 0x4d0   :  { %5395 = vmatprep.subr.bf16.mxu0 %v12332_v14 }
 0x4d3   :  { %5396 = vmatpush1.bf16.msra.mxu0 %v12330_v15 }
 0x4d4   :  { %5397 = vmatprep.subr.bf16.mxu0 %v12335_v16 }
 0x4d7   :  { %5398 = vmatpush1.bf16.msra.mxu0 %v12333_v17  ;;  %v12390_v17 = vld [vmem:[%s17446_s3 + $0x498] ss:$44 sps:$4 sm:$0xff]  }
 0x4d8   :  { %5399 = vmatprep.subr.bf16.mxu0 %v12338_v18 }
 0x4db   :  { %5400 = vmatpush1.bf16.msra.mxu0 %v12336_v42 }
 0x4dc   :  { %5401 = vmatprep.subr.bf16.mxu0 %v12341_v19 }
 0x4df   :  { %5402 = vmatpush1.bf16.msra.mxu0 %v12339_v20  ;;  %v12395_v20 = vld [vmem:[%s17446_s3 + $0x4f4] ss:$44 sps:$4 sm:$0xff]  }
 0x4e0   :  { %5403 = vmatprep.subr.bf16.mxu0 %v12344_v21 }
 0x4e3   :  { %5404 = vmatpush1.bf16.msra.mxu0 %v12342_v22 }
 0x4e4   :  { %5405 = vmatprep.subr.bf16.mxu0 %v12347_v23  ;;  %v12393_v23 = vld [vmem:[%s17446_s3 + $0x4f0] ss:$44 sps:$4 sm:$0xff]  }
 0x4e7   :  { %5406 = vmatpush1.bf16.msra.mxu0 %v12345_v24  ;;  %v12398_v24 = vld [vmem:[%s17446_s3 + $0x54c] ss:$44 sps:$4 sm:$0xff]  }
 0x4e8   :  { %5407 = vmatprep.subr.bf16.mxu0 %v12350_v25  ;;  %v12396_v25 = vld [vmem:[%s17446_s3 + $0x548] ss:$44 sps:$4 sm:$0xff]  }
 0x4eb   :  { %5408 = vmatpush1.bf16.msra.mxu0 %v12348_v26  ;;  %v12399_v26 = vld [vmem:[%s17446_s3 + $0x2e8] ss:$44 sps:$4 sm:$0xff]  }
 0x4ec   :  { %5434 = vmatprep.subr.bf16.mxu0 %v12353_v27  ;;  %v12400_v27 = vld [vmem:[%s17446_s3 + $0x28] ss:$44 sps:$4 sm:$0xff]  }
 0x4ee   :  { %5424 = vmatmul.mubr.bf16.vlgmr.msra.gmra.mrb[52].mxu0 %v14923_v8 }
 0x4ef   :  { %5435 = vmatpush1.bf16.msra.mxu0 %v12351_v28  ;;  %5466 = vmatprep.mubr.bf16.mxu0 %v14818_v61  ;;  %v12401_v28 = vld [vmem:[%s17446_s3 + $0x340] ss:$44 sps:$4 sm:$0xff]  }
 0x4f0   :  { %5436 = vmatprep.subr.bf16.mxu0 %v12356_v29  ;;  %v12403_v29 = vld [vmem:[%s17446_s3 + $0x398] ss:$44 sps:$4 sm:$0xff]  }
 0x4f3   :  { %5437 = vmatpush1.bf16.msra.mxu0 %v12354_v30  ;;  %v12404_v30 = vld [vmem:[%s17446_s3 + $0xd8] ss:$44 sps:$4 sm:$0xff]  }
 0x4f4   :  { %5438 = vmatprep.subr.bf16.mxu0 %v12359_v31  ;;  %v12405_v31 = vld [vmem:[%s17446_s3 + $0x3f0] ss:$44 sps:$4 sm:$0xff]  }
 0x4f7   :  { %5439 = vmatpush1.bf16.msra.mxu0 %v12357_v35  ;;  %v12407_v35 = vld [vmem:[%s17446_s3 + $0x448] ss:$44 sps:$4 sm:$0xff]  }
 0x4f8   :  { %5440 = vmatprep.subr.bf16.mxu0 %v12362_v37  ;;  %v12408_v37 = vld [vmem:[%s17446_s3 + $0x188] ss:$44 sps:$4 sm:$0xff]  }
 0x4f9   :  { %v5167_v40 = vpop.f32.mrb[12].mxu1 }
 0x4fa   :  { %v5168_v41 = vadd.f32 %v5167_v40, %v15276_v57  ;;  %v5169_v43 = vpop.f32.mrb[13].mxu1  ;;  %v12372_v57 = vld [vmem:[%s17446_s3 + $0x288] ss:$44 sps:$4 sm:$0xff]   ;;  %v12411_v40 = vld [vmem:[%s17446_s3 + $0x4f8] ss:$44 sps:$4 sm:$0xff]  }
 0x4fb   :  { %v5170_v45 = vadd.f32 %v5169_v43, %v15278_v10  ;;  %5441 = vmatpush1.bf16.msra.mxu0 %v12360_v38  ;;  %v5171_v5 = vpop.f32.mrb[14].mxu1  ;;  %v12377_v10 = vld [vmem:[%s17446_s3 + $0x2e4] ss:$44 sps:$4 sm:$0xff]   ;;  %v12409_v38 = vld [vmem:[%s17446_s3 + $0x4a0] ss:$44 sps:$4 sm:$0xff]  }
 0x4fc   :  { %v5172_v48 = vadd.f32 %v5171_v5, %v15280_v62  ;;  %v5173_v49 = vpop.f32.mrb[15].mxu1  ;;  %5442 = vmatprep.subr.bf16.mxu0 %v12365_v39  ;;  %v12375_v62 = vld [vmem:[%s17446_s3 + $0x2e0] ss:$44 sps:$4 sm:$0xff]  }
 0x4fd   :  { %v5174_v60 = vadd.f32 %v5173_v49, %v15285_v0  ;;  %v12383_v0 = vld [vmem:[%s17446_s3 + $0x394] ss:$44 sps:$4 sm:$0xff]   ;;  %v12414_v49 = vld [vmem:[%s17446_s3 + $0x290] ss:$44 sps:$4 sm:$0xff]  }
 0x4fe   :  { %v5602_v51 = vpack.c.bf16 %v5172_v48, %v5168_v41  ;;  %v12410_v39 = vld [vmem:[%s17446_s3 + $0x1e0] ss:$44 sps:$4 sm:$0xff]  }
 0x4ff   :  { %v5603_v52 = vpack.c.bf16 %v5174_v60, %v5170_v45  ;;  %5443 = vmatpush1.bf16.msra.mxu0 %v12363_v47  ;;  %v12412_v45 = vld [vmem:[%s17446_s3 + $0x238] ss:$44 sps:$4 sm:$0xff]   ;;  %v12413_v47 = vld [vmem:[%s17446_s3 + $0x550] ss:$44 sps:$4 sm:$0xff]   ;;  %v12416_v60 = vld [vmem:[%s17446_s3 + $0x600] ss:$44 sps:$4 sm:$0xff]  }
 0x500   :  { %5613 = vst.msk [vmem:[#allocation2 + $0x8] sm:$0xff] %vm2779_vm1, %v5602_v51  ;;  %5616 = vrot.lane.b32.xlu1 %v5602_v51, %s13206_s17  ;;  %5444 = vmatprep.subr.bf16.mxu0 %v12368_v58  ;;  %v12415_v58 = vld [vmem:[%s17446_s3 + $0x5a8] ss:$44 sps:$4 sm:$0xff]   ;;  %v12417_v51 = vld [vmem:[%s17446_s3 + $0x658] ss:$44 sps:$4 sm:$0xff]  }
 0x501   :  { %5623 = vrot.lane.b32.xlu0 %v5603_v52, %s13208_s23  ;;  %s13216_s23 = smov 86  }
 0x503   :  { %5445 = vmatpush1.bf16.msra.mxu0 %v12366_v53 }
 0x504   :  { %5618 = vrot.lane.b32.xlu1 %v5603_v52, %s13206_s17  ;;  %5446 = vmatprep.subr.bf16.mxu0 %v12371_v54  ;;  %s13217_s17 = smov 52  }
 0x505   :  { %5628 = vrot.lane.b32.xlu0 %v5603_v52, %s13207_s22 }
 0x507   :  { %5447 = vmatpush1.bf16.msra.mxu0 %v12369_v55 }
 0x508   :  { %2848 = vrot.lane.b32.xlu1 %v14571_v32, %s13216_s23  ;;  %5448 = vmatprep.subr.bf16.mxu0 %v12374_v56  ;;  %v12378_v32 = vld [vmem:[%s17446_s3 + $0x338] ss:$44 sps:$4 sm:$0xff]  }
 0x50b   :  { %5449 = vmatpush1.bf16.msra.mxu0 %v12372_v57  ;;  %v12420_v57 = vld [vmem:[%s17446_s3 + $0x760] ss:$44 sps:$4 sm:$0xff]  }
 0x50c   :  { %5450 = vmatprep.subr.bf16.mxu0 %v12377_v10 }
 0x50f   :  { %5451 = vmatpush1.bf16.msra.mxu0 %v12375_v62 }
 0x510   :  { %5452 = vmatprep.subr.bf16.mxu0 %v12380_v63 }
 0x513   :  { %5453 = vmatpush1.bf16.msra.mxu0 %v12378_v32 }
 0x514   :  { %5454 = vmatprep.subr.bf16.mxu0 %v12383_v0 }
 0x517   :  { %5455 = vmatpush1.bf16.msra.mxu0 %v12381_v1  ;;  %v12421_v1 = vld [vmem:[%s17446_s3 + $0x7b8] ss:$44 sps:$4 sm:$0xff]  }
 0x518   :  { %5456 = vmatprep.subr.bf16.mxu0 %v12386_v2  ;;  %v12422_v2 = vld [vmem:[%s17446_s3 + $0x810] ss:$44 sps:$4 sm:$0xff]  }
 0x51b   :  { %5457 = vmatpush1.bf16.msra.mxu0 %v12384_v33  ;;  %v12423_v33 = vld [vmem:[%s17446_s3 + $0x868] ss:$44 sps:$4 sm:$0xff]  }
 0x51c   :  { %5458 = vmatprep.subr.bf16.mxu0 %v12389_v34  ;;  %v2854_v34 = vpop.permute.xlu0 %2853 }
 0x51d   :  { %v5253_v11 = vpop.f32.mrb[44].mxu0 }
 0x51e   :  { %v15450_v13 = vpop.f32.mrb[16].mxu1  ;;  %v5255_v14 = vpop.f32.mrb[45].mxu0 }
 0x51f   :  { %v15452_v15 = vpop.f32.mrb[17].mxu1  ;;  %v5257_v16 = vpop.f32.mrb[46].mxu0  ;;  %5459 = vmatpush1.bf16.msra.mxu0 %v12387_v6  ;;  %v5720_v6 = vld [vmem:[#allocation2 + $0x8] sm:$0xff] }
 0x520   :  { %v5604_v18 = vpack.c.bf16 %v5257_v16, %v5253_v11  ;;  %v15457_v42 = vpop.f32.mrb[18].mxu1  ;;  %v5259_v19 = vpop.f32.mrb[47].mxu0  ;;  %5460 = vmatprep.subr.bf16.mxu0 %v12392_v7  ;;  %v5719_v7 = vld [vmem:[#allocation2] sm:$0xff] }
 0x521   :  { %v5605_v21 = vpack.c.bf16 %v5259_v19, %v5255_v14  ;;  %v15462_v22 = vpop.f32.mrb[19].mxu1 }
 0x522   :  { %5636 = vrot.lane.b32.xlu0 %v5604_v18, %s13209_s12  ;;  %5630 = vrot.lane.b32.xlu1 %v5604_v18, %s13207_s22 }
 0x523   :  { %5461 = vmatpush1.bf16.msra.mxu0 %v12390_v17  ;;  %v5721_v17 = vld [vmem:[#allocation2 + $0x10] sm:$0xff] }
 0x524   :  { %5462 = vmatprep.subr.bf16.mxu0 %v12395_v20 }
 0x526   :  { %2862 = vrot.lane.b32.xlu0 %v14573_v3, %s13217_s17  ;;  %5638 = vrot.lane.b32.xlu1 %v5605_v21, %s13209_s12 }
 0x527   :  { %5463 = vmatpush1.bf16.msra.mxu0 %v12393_v23 }
 0x528   :  { %5464 = vmatprep.subr.bf16.mxu0 %v12398_v24 }
 0x52a   :  { %5643 = vrot.lane.b32.xlu0 %v5605_v21, %s13211_s24  ;;  %2855 = vrot.lane.b32.xlu1 %v14573_v3, %s13215_s16  ;;  %v12402_v3 = vld [vmem:[%s17446_s3 + $0x80] ss:$44 sps:$4 sm:$0xff]  }
 0x52b   :  { %5465 = vmatpush1.bf16.msra.mxu0 %v12396_v25 }
 0x52c   :  { %11282 = vmatprep.subr.bf16.mxu0 %v12399_v26 }
 0x52e   :  { %5467 = vmatmul.mubr.bf16.vlgmr.msra.gmra.mrb[56].mxu0 %v14816_v59  ;;  %5648 = vrot.lane.b32.xlu0 %v5605_v21, %s13210_s2 }
 0x52f   :  { %11283 = vmatpush3.bf16.msra.mxu0 %v12400_v27  ;;  %5552 = vmatprep.mubr.bf16.mxu0 %v14818_v61  ;;  %v12406_v61 = vld [vmem:[%s17446_s3 + $0x130] ss:$44 sps:$4 sm:$0xff]  }
 0x530   :  { %11284 = vmatprep.subr.bf16.mxu0 %v12401_v28 }
 0x533   :  { %11285 = vmatpush3.bf16.msra.mxu0 %v12402_v3  ;;  %v5725_v3 = vld [vmem:[#allocation2 + $0x30] sm:$0xff] }
 0x534   :  { %11286 = vmatprep.subr.bf16.mxu0 %v12403_v29 }
 0x537   :  { %11287 = vmatpush3.bf16.msra.mxu0 %v12404_v30  ;;  %v5727_v30 = vld [vmem:[#allocation2 + $0x40] sm:$0xff] }
 0x538   :  { %11288 = vmatprep.subr.bf16.mxu0 %v12405_v31 }
 0x53b   :  { %11289 = vmatpush3.bf16.msra.mxu0 %v12406_v61  ;;  %v5729_v61 = vld [vmem:[#allocation2 + $0x50] sm:$0xff] }
 0x53c   :  { %11290 = vmatprep.subr.bf16.mxu0 %v12407_v35 }
 0x53f   :  { %11291 = vmatpush3.bf16.msra.mxu0 %v12408_v37 }
 0x540   :  { %11292 = vmatprep.subr.bf16.mxu0 %v12409_v38 }
 0x542   :  { %v15523_v41 = vpop.f32.mrb[20].mxu1 }
 0x543   :  { %v15525_v43 = vpop.f32.mrb[21].mxu1  ;;  %11293 = vmatpush3.bf16.msra.mxu0 %v12410_v39 }
 0x544   :  { %v15530_v5 = vpop.f32.mrb[22].mxu1  ;;  %11294 = vmatprep.subr.bf16.mxu0 %v12411_v40 }
 0x545   :  { %v15535_v48 = vpop.f32.mrb[23].mxu1 }
 0x547   :  { %11295 = vmatpush3.bf16.msra.mxu0 %v12412_v45 }
 0x548   :  { %11296 = vmatprep.subr.bf16.mxu0 %v12413_v47 }
 0x54b   :  { %11297 = vmatpush3.bf16.msra.mxu0 %v12414_v49 }
 0x54c   :  { %5561 = vmatprep.subr.bf16.mxu0 %v13205_v4 }
 0x54e   :  { %5553 = vmatmul.mubr.bf16.vlgmr.msra.gmra.mrb[60].mxu0 %v14816_v59  ;;  %v12418_v59 = vld [vmem:[%s17446_s3 + $0x6b0] ss:$44 sps:$4 sm:$0xff]  }
 0x54f   :  { %5562 = vmatpush1.bf16.msra.mxu0 %v12415_v58  ;;  %10742 = vmatprep.mubr.msk.bf16.mxu0 %vm2252_vm0, %v14925_v50  ;;  %v12419_v50 = vld [vmem:[%s17446_s3 + $0x708] ss:$44 sps:$4 sm:$0xff]   ;;  %s13219_s3 = smov 99  }
 0x550   :  { %5563 = vmatprep.subr.bf16.mxu0 %v13205_v4 }
 0x553   :  { %5564 = vmatpush1.bf16.msra.mxu0 %v12416_v60 }
 0x554   :  { %5565 = vmatprep.subr.bf16.mxu0 %v13205_v4 }
 0x557   :  { %5566 = vmatpush1.bf16.msra.mxu0 %v12417_v51 }
 0x558   :  { %5567 = vmatprep.subr.bf16.mxu0 %v13205_v4 }
 0x55b   :  { %5568 = vmatpush1.bf16.msra.mxu0 %v12418_v59 }
 0x55c   :  { %5569 = vmatprep.subr.bf16.mxu0 %v13205_v4 }
 0x55d   :  { %v5296_v52 = vpop.f32.mrb[48].mxu0 }
 0x55e   :  { %v5340_v53 = vadd.f32 %v15450_v13, %v5296_v52  ;;  %v5298_v54 = vpop.f32.mrb[49].mxu0 }
 0x55f   :  { %v5342_v55 = vadd.f32 %v15452_v15, %v5298_v54  ;;  %v5300_v56 = vpop.f32.mrb[50].mxu0  ;;  %5570 = vmatpush1.bf16.msra.mxu0 %v12419_v50  ;;  %v5731_v54 = vld [vmem:[#allocation2 + $0x60] sm:$0xff] }
 0x560   :  { %v5344_v10 = vadd.f32 %v15457_v42, %v5300_v56  ;;  %v5302_v62 = vpop.f32.mrb[51].mxu0  ;;  %5571 = vmatprep.subr.bf16.mxu0 %v13205_v4  ;;  %v5733_v56 = vld [vmem:[#allocation2 + $0x70] sm:$0xff] }
 0x561   :  { %v5346_v63 = vadd.f32 %v15462_v22, %v5302_v62 }
 0x562   :  { %v5606_v32 = vpack.c.bf16 %v5344_v10, %v5340_v53  ;;  %v5735_v10 = vld [vmem:[#allocation2 + $0x80] sm:$0xff] }
 0x563   :  { %v5607_v0 = vpack.c.bf16 %v5346_v63, %v5342_v55  ;;  %5572 = vmatpush1.bf16.msra.mxu0 %v12420_v57 }
 0x564   :  { %5656 = vrot.lane.b32.xlu0 %v5606_v32, %s13212_s27  ;;  %5650 = vrot.lane.b32.xlu1 %v5606_v32, %s13210_s2  ;;  %s13218_s2 = smov 18  }
 0x565   :  { %5573 = vmatprep.subr.bf16.mxu0 %v13205_v4 }
 0x567   :  { %5574 = vmatpush1.bf16.msra.mxu0 %v12421_v1 }
 0x568   :  { %5663 = vrot.lane.b32.xlu0 %v5607_v0, %s13214_s19  ;;  %5658 = vrot.lane.b32.xlu1 %v5607_v0, %s13212_s27  ;;  %s13220_s27 = smov 65  }
 0x569   :  { %5575 = vmatprep.subr.bf16.mxu0 %v13205_v4 }
 0x56b   :  { %5576 = vmatpush1.bf16.msra.mxu0 %v12422_v2 }
 0x56c   :  { %5668 = vrot.lane.b32.xlu0 %v5607_v0, %s13213_s13  ;;  %2864 = vrot.lane.b32.xlu1 %v14732_v36, %s13217_s17 }
 0x56d   :  { %5577 = vmatprep.subr.bf16.mxu0 %v13205_v4 }
 0x56f   :  { %5578 = vmatpush1.bf16.msra.mxu0 %v12423_v33 }
 0x570   :  { %5795 = vmatprep.subr.bf16.mxu0 %v5720_v6  ;;  %2875 = vrot.lane.b32.xlu0 %v14732_v36, %s13218_s2 }
 0x572   :  { %5594 = vmatmul.mubr.bf16.vlgmr.msra.gmra.mrb[64].mxu0 %v14923_v8  ;;  %v5617_v11 = vpop.permute.xlu1 %5616  ;;  %v5723_v8 = vld [vmem:[#allocation2 + $0x20] sm:$0xff] }
 0x573   :  { %5796 = vmatpush1.bf16.msra.mxu0 %v5719_v7  ;;  %v5624_v13 = vpop.permute.xlu0 %5623 }
 0x574   :  { %5626 = vst.msk [vmem:[#allocation2 + $0x28] sm:$0xff] %vm2779_vm1, %v5624_v13 }
 0x576   :  { %v5619_v14 = vpop.permute.xlu1 %5618 }
 0x577   :  { %v5620_v15 = vsel %vm2787_vm2, %v5617_v11, %v5619_v14  ;;  %v5629_v42 = vpop.permute.xlu0 %5628 }
 0x578   :  { %5622 = vst.msk [vmem:[#allocation2 + $0x18] sm:$0xff] %vm2779_vm1, %v5620_v15 }
 0x57a   :  { %v2849_v4 = vpop.permute.xlu1 %2848 }
 0x57b   :  { %2851 = vst.msk [vmem:[#allocation2 + $0xa0] sm:$0xff] %vm2779_vm1, %v2849_v4  ;;  %v5724_v18 = vld [vmem:[#allocation2 + $0x28] sm:$0xff] }
 0x57f   :  { %v5722_v16 = vld [vmem:[#allocation2 + $0x18] sm:$0xff] }
 0x580   :  { %5797 = vmatprep.subr.bf16.mxu0 %v5722_v16 }
 0x581   :  { %5798 = vmatpush1.bf16.msra.mxu0 %v5721_v17 }
 0x582   :  { %5799 = vmatprep.subr.bf16.mxu0 %v5724_v18 }
 0x585   :  { %5800 = vmatpush1.bf16.msra.mxu0 %v5723_v8 }
 0x594   :  { %v5637_v19 = vpop.permute.xlu0 %5636  ;;  %v5631_v20 = vpop.permute.xlu1 %5630 }
 0x595   :  { %v5632_v21 = vsel %vm2800_vm3, %v5629_v42, %v5631_v20 }
 0x596   :  { %5634 = vst.msk [vmem:[#allocation2 + $0x38] sm:$0xff] %vm2779_vm1, %v5632_v21 }
 0x598   :  { %v2863_v22 = vpop.permute.xlu0 %2862  ;;  %v5639_v23 = vpop.permute.xlu1 %5638 }
 0x599   :  { %v5640_v24 = vsel %vm2809_vm4, %v5637_v19, %v5639_v23 }
 0x59a   :  { %5642 = vst.msk [vmem:[#allocation2 + $0x48] sm:$0xff] %vm2779_vm1, %v5640_v24 }
 0x59c   :  { %v5644_v25 = vpop.permute.xlu0 %5643  ;;  %v2856_v26 = vpop.permute.xlu1 %2855 }
 0x59d   :  { %5646 = vst.msk [vmem:[#allocation2 + $0x58] sm:$0xff] %vm2779_vm1, %v5644_v25  ;;  %v2858_v27 = vsel %vm2857_vm8, %v2854_v34, %v2856_v26  ;;  %v5726_v28 = vld [vmem:[#allocation2 + $0x38] sm:$0xff] }
 0x59e   :  { %2860 = vst.msk [vmem:[#allocation2 + $0xb0] sm:$0xff] %vm2779_vm1, %v2858_v27  ;;  %5801 = vmatprep.subr.bf16.mxu0 %v5726_v28  ;;  %v5739_v27 = vld [vmem:[#allocation2 + $0xa0] sm:$0xff] }
 0x59f   :  { %5802 = vmatpush1.bf16.msra.mxu0 %v5725_v3 }
 0x5a0   :  { %v5649_v47 = vpop.permute.xlu0 %5648 }
 0x5a1   :  { %v5728_v29 = vld [vmem:[#allocation2 + $0x48] sm:$0xff] }
 0x5a2   :  { %5803 = vmatprep.subr.bf16.mxu0 %v5728_v29 }
 0x5a3   :  { %5804 = vmatpush1.bf16.msra.mxu0 %v5727_v30 }
 0x5a4   :  { %v5730_v31 = vld [vmem:[#allocation2 + $0x58] sm:$0xff] }
 0x5a5   :  { %5805 = vmatprep.subr.bf16.mxu0 %v5730_v31 }
 0x5a7   :  { %5806 = vmatpush1.bf16.msra.mxu0 %v5729_v61  ;;  %v5741_v61 = vld [vmem:[#allocation2 + $0xb0] sm:$0xff] }
 0x5c1   :  { %v5425_v35 = vpop.f32.mrb[52].mxu0 }
 0x5c2   :  { %v5427_v37 = vpop.f32.mrb[53].mxu0 }
 0x5c3   :  { %v5429_v38 = vpop.f32.mrb[54].mxu0 }
 0x5c4   :  { %v5608_v39 = vpack.c.bf16 %v5429_v38, %v5425_v35  ;;  %v5431_v40 = vpop.f32.mrb[55].mxu0  ;;  %v12426_v35 = vld [vmem:[%s17448_s4 + $0x4] ss:$8 sps:$4 sm:$0xff]   ;;  %v12430_v38 = vld [vmem:[%s17449_s6] ss:$8 sps:$4 sm:$0xff]  }
 0x5c5   :  { %v5609_v45 = vpack.c.bf16 %v5431_v40, %v5427_v37  ;;  %5827 = vmatprep.mubr.bf16.mxu0 %v12426_v35  ;;  %v5752_v37 = vld [vmem:[%s17447_s5 + $0x8] sm:$0xff]  ;;  %9294 = vmatpush1.bf16.msra.mxu1 %v12430_v38 }
 0x5c6   :  { %5675 = vrot.lane.b32.xlu0 %v5608_v39, %s13216_s23  ;;  %5670 = vrot.lane.b32.xlu1 %v5608_v39, %s13213_s13  ;;  %v12438_v40 = vld [vmem:[%s17449_s6 + $0x24] ss:$8 sps:$4 sm:$0xff]  }
 0x5c7   :  { %9295 = vmatprep.subr.bf16.mxu1 %v12435_v44 }
 0x5ca   :  { %5680 = vrot.lane.b32.xlu0 %v5608_v39, %s13215_s16  ;;  %2870 = vrot.lane.b32.xlu1 %v14732_v36, %s13219_s3  ;;  %v13221_v39 = vmov 0.0  }
 0x5cb   :  { %38 = vst [vmem:[#allocation4] sm:$0xff] %v13221_v39  ;;  %39 = vst [vmem:[#allocation4 + $0x8] sm:$0xff] %v13221_v39 }
 0x5cc   :  { %40 = vst [vmem:[#allocation4 + $0x10] sm:$0xff] %v13221_v39  ;;  %41 = vst [vmem:[#allocation4 + $0x18] sm:$0xff] %v13221_v39 }
 0x5cd   :  { %42 = vst [vmem:[#allocation4 + $0x20] sm:$0xff] %v13221_v39  ;;  %43 = vst [vmem:[#allocation4 + $0x28] sm:$0xff] %v13221_v39 }
 0x5ce   :  { %5688 = vrot.lane.b32.xlu0 %v5609_v45, %s13217_s17  ;;  %5682 = vrot.lane.b32.xlu1 %v5609_v45, %s13215_s16  ;;  %44 = vst [vmem:[#allocation4 + $0x30] sm:$0xff] %v13221_v39  ;;  %45 = vst [vmem:[#allocation4 + $0x38] sm:$0xff] %v13221_v39  ;;  %v12436_v45 = vld [vmem:[%s17449_s6 + $0x20] ss:$8 sps:$4 sm:$0xff]  }
 0x5d6   :  { %v5657_v49 = vpop.permute.xlu0 %5656  ;;  %v5651_v58 = vpop.permute.xlu1 %5650 }
 0x5d7   :  { %v5652_v60 = vsel %vm2822_vm5, %v5649_v47, %v5651_v58  ;;  %v12441_v47 = vld [vmem:[%s17449_s6 + $0x34] ss:$8 sps:$4 sm:$0xff]   ;;  %v12444_v58 = vld [vmem:[%s17449_s6 + $0x44] ss:$8 sps:$4 sm:$0xff]  }
 0x5d8   :  { %5654 = vst.msk [vmem:[#allocation2 + $0x68] sm:$0xff] %vm2779_vm1, %v5652_v60  ;;  %v12442_v60 = vld [vmem:[%s17449_s6 + $0x40] ss:$8 sps:$4 sm:$0xff]  }
 0x5da   :  { %v5664_v51 = vpop.permute.xlu0 %5663  ;;  %v5659_v59 = vpop.permute.xlu1 %5658 }
 0x5db   :  { %5666 = vst.msk [vmem:[#allocation2 + $0x88] sm:$0xff] %vm2779_vm1, %v5664_v51  ;;  %v5660_v50 = vsel %vm2831_vm6, %v5657_v49, %v5659_v59  ;;  %v12439_v49 = vld [vmem:[%s17449_s6 + $0x30] ss:$8 sps:$4 sm:$0xff]   ;;  %v12447_v51 = vld [vmem:[%s17449_s6 + $0x54] ss:$8 sps:$4 sm:$0xff]  }
 0x5dc   :  { %5662 = vst.msk [vmem:[#allocation2 + $0x78] sm:$0xff] %vm2779_vm1, %v5660_v50  ;;  %v12445_v59 = vld [vmem:[%s17449_s6 + $0x50] ss:$8 sps:$4 sm:$0xff]   ;;  %v12450_v50 = vld [vmem:[%s17449_s6 + $0x64] ss:$8 sps:$4 sm:$0xff]  }
 0x5de   :  { %v2865_v36 = vpop.permute.xlu1 %2864  ;;  %v5669_v4 = vpop.permute.xlu0 %5668 }
 0x5df   :  { %v2867_v52 = vsel %vm2866_vm9, %v2863_v22, %v2865_v36  ;;  %v5732_v53 = vld [vmem:[#allocation2 + $0x68] sm:$0xff]  ;;  %v5737_v22 = vld [vmem:[#allocation2 + $0x90] sm:$0xff] }
 0x5e0   :  { %2869 = vst.msk [vmem:[#allocation2 + $0xc0] sm:$0xff] %vm2779_vm1, %v2867_v52  ;;  %5807 = vmatprep.subr.bf16.mxu0 %v5732_v53  ;;  %v12448_v36 = vld [vmem:[%s17449_s6 + $0x60] ss:$8 sps:$4 sm:$0xff]   ;;  %v12453_v52 = vld [vmem:[%s17449_s6 + $0x74] ss:$8 sps:$4 sm:$0xff]  }
 0x5e1   :  { %5808 = vmatpush1.bf16.msra.mxu0 %v5731_v54  ;;  %v12451_v53 = vld [vmem:[%s17449_s6 + $0x70] ss:$8 sps:$4 sm:$0xff]   ;;  %v12456_v54 = vld [vmem:[%s17449_s6 + $0x84] ss:$8 sps:$4 sm:$0xff]  }
 0x5e2   :  { %v5736_v57 = vld [vmem:[#allocation2 + $0x88] sm:$0xff]  ;;  %v15637_v16 = vpop.permute.xlu0 %2875 }
 0x5e3   :  { %v5734_v55 = vld [vmem:[#allocation2 + $0x78] sm:$0xff] }
 0x5e4   :  { %5809 = vmatprep.subr.bf16.mxu0 %v5734_v55 }
 0x5e5   :  { %5810 = vmatpush1.bf16.msra.mxu0 %v5733_v56  ;;  %v12454_v56 = vld [vmem:[%s17449_s6 + $0x80] ss:$8 sps:$4 sm:$0xff]  }
 0x5e6   :  { %5811 = vmatprep.subr.bf16.mxu0 %v5736_v57 }
 0x5e9   :  { %5812 = vmatpush1.bf16.msra.mxu0 %v5735_v10 }
 0x601   :  { %v5468_v62 = vpop.f32.mrb[56].mxu0 }
 0x602   :  { %v5512_v63 = vadd.f32 %v15523_v41, %v5468_v62  ;;  %v5470_v32 = vpop.f32.mrb[57].mxu0  ;;  %v5751_v41 = vld [vmem:[%s17447_s5] sm:$0xff] }
 0x603   :  { %v5514_v0 = vadd.f32 %v15525_v43, %v5470_v32  ;;  %v5472_v1 = vpop.f32.mrb[58].mxu0  ;;  %v5753_v43 = vld [vmem:[%s17447_s5 + $0x10] sm:$0xff] }
 0x604   :  { %v5516_v2 = vadd.f32 %v15530_v5, %v5472_v1  ;;  %v5474_v33 = vpop.f32.mrb[59].mxu0 }
 0x605   :  { %v5518_v34 = vadd.f32 %v15535_v48, %v5474_v33 }
 0x606   :  { %v5610_v6 = vpack.c.bf16 %v5516_v2, %v5512_v63  ;;  %v5743_v2 = vld [vmem:[#allocation2 + $0xc0] sm:$0xff] }
 0x607   :  { %v5611_v7 = vpack.c.bf16 %v5518_v34, %v5514_v0 }
 0x608   :  { %5695 = vrot.lane.b32.xlu0 %v5610_v6, %s13219_s3  ;;  %5690 = vrot.lane.b32.xlu1 %v5610_v6, %s13217_s17 }
 0x60c   :  { %5700 = vrot.lane.b32.xlu0 %v5610_v6, %s13218_s2  ;;  %2877 = vrot.lane.b32.xlu1 %v14737_v9, %s13218_s2 }
 0x610   :  { %5708 = vrot.lane.b32.xlu0 %v5611_v7, %s13220_s27  ;;  %5702 = vrot.lane.b32.xlu1 %v5611_v7, %s13218_s2 }
 0x614   :  { %2884 = vrot.lane.b32.xlu0 %v14737_v9, %s13220_s27 }
 0x618   :  { %5757 = vperm.xlu0 %11424, %v5751_v41  }
 0x61c   :  { %5767 = vperm.xlu0 %11424, %v5753_v43  }
 0x621   :  { %v11298_v5 = vpop.f32.mrb[60].mxu0 }
 0x622   :  { %v11299_v48 = vpop.f32.mrb[61].mxu0 }
 0x623   :  { %v11300_v11 = vadd.f32 %v11299_v48, %v11298_v5  ;;  %v11301_v13 = vpop.f32.mrb[62].mxu0 }
 0x624   :  { %v11302_v14 = vpop.f32.mrb[63].mxu0 }
 0x625   :  { %v11303_v15 = vadd.f32 %v11302_v14, %v11301_v13 }
 0x638   :  { %v5676_v9 = vpop.permute.xlu0 %5675  ;;  %v5671_v17 = vpop.permute.xlu1 %5670 }
 0x639   :  { %5678 = vst.msk [vmem:[#allocation2 + $0xa8] sm:$0xff] %vm2779_vm1, %v5676_v9  ;;  %v5672_v18 = vsel %vm2844_vm7, %v5669_v4, %v5671_v17  ;;  %v12427_v9 = vld [vmem:[%s17448_s4 + $0x14] ss:$8 sps:$4 sm:$0xff]  }
 0x63a   :  { %5674 = vst.msk [vmem:[#allocation2 + $0x98] sm:$0xff] %vm2779_vm1, %v5672_v18  ;;  %v12429_v18 = vld [vmem:[%s17448_s4 + $0x10] ss:$8 sps:$4 sm:$0xff]  }
 0x63c   :  { %v2871_v8 = vpop.permute.xlu1 %2870  ;;  %v5681_v42 = vpop.permute.xlu0 %5680 }
 0x63d   :  { %2873 = vst.msk [vmem:[#allocation2 + $0xd0] sm:$0xff] %vm2779_vm1, %v2871_v8  ;;  %v12459_v8 = vld [vmem:[%s17449_s6 + $0x94] ss:$8 sps:$4 sm:$0xff]  }
 0x640   :  { %v5683_v19 = vpop.permute.xlu1 %5682  ;;  %v5740_v23 = vld [vmem:[#allocation2 + $0xa8] sm:$0xff]  ;;  %v5689_v55 = vpop.permute.xlu0 %5688 }
 0x641   :  { %v5684_v20 = vsel %vm2857_vm8, %v5681_v42, %v5683_v19  ;;  %v5738_v21 = vld [vmem:[#allocation2 + $0x98] sm:$0xff]  ;;  %v12462_v19 = vld [vmem:[%s17449_s6 + $0xa4] ss:$8 sps:$4 sm:$0xff]  }
 0x642   :  { %5686 = vst.msk [vmem:[#allocation2 + $0xb8] sm:$0xff] %vm2779_vm1, %v5684_v20  ;;  %5813 = vmatprep.subr.bf16.mxu0 %v5738_v21  ;;  %v12457_v42 = vld [vmem:[%s17449_s6 + $0x90] ss:$8 sps:$4 sm:$0xff]   ;;  %v12460_v20 = vld [vmem:[%s17449_s6 + $0xa0] ss:$8 sps:$4 sm:$0xff]  }
 0x643   :  { %5814 = vmatpush1.bf16.msra.mxu0 %v5737_v22  ;;  %v12465_v21 = vld [vmem:[%s17449_s6 + $0xb4] ss:$8 sps:$4 sm:$0xff]   ;;  %v12463_v22 = vld [vmem:[%s17449_s6 + $0xb0] ss:$8 sps:$4 sm:$0xff]  }
 0x644   :  { %5815 = vmatprep.subr.bf16.mxu0 %v5740_v23  ;;  %v5745_v7 = vld [vmem:[#allocation2 + $0xd0] sm:$0xff]  ;;  %v12468_v23 = vld [vmem:[%s17449_s6 + $0xc4] ss:$8 sps:$4 sm:$0xff]  }
 0x645   :  { %v5595_v24 = vpop.f32.mrb[64].mxu0 }
 0x646   :  { %v5596_v25 = vadd.f32 %v11300_v11, %v5595_v24  ;;  %v5597_v26 = vpop.f32.mrb[65].mxu0  ;;  %v12466_v24 = vld [vmem:[%s17449_s6 + $0xc0] ss:$8 sps:$4 sm:$0xff]  }
 0x647   :  { %v5598_v28 = vpop.f32.mrb[66].mxu0  ;;  %5816 = vmatpush1.bf16.msra.mxu0 %v5739_v27  ;;  %v12469_v26 = vld [vmem:[%s17449_s6 + $0xd0] ss:$8 sps:$4 sm:$0xff]   ;;  %v12474_v27 = vld [vmem:[%s17449_s6 + $0xe4] ss:$8 sps:$4 sm:$0xff]  }
 0x648   :  { %v5599_v3 = vadd.f32 %v11303_v15, %v5598_v28  ;;  %v5600_v29 = vpop.f32.mrb[67].mxu0  ;;  %v12472_v28 = vld [vmem:[%s17449_s6 + $0xe0] ss:$8 sps:$4 sm:$0xff]  }
 0x649   :  { %v5742_v30 = vld [vmem:[#allocation2 + $0xb8] sm:$0xff] }
 0x64a   :  { %v5612_v31 = vpack.c.bf16 %v5599_v3, %v5596_v25  ;;  %5817 = vmatprep.subr.bf16.mxu0 %v5742_v30  ;;  %v12471_v25 = vld [vmem:[%s17449_s6 + $0xd4] ss:$8 sps:$4 sm:$0xff]   ;;  %v12475_v3 = vld [vmem:[%s17449_s6 + $0xf0] ss:$8 sps:$4 sm:$0xff]   ;;  %v12480_v30 = vld [vmem:[%s17449_s6 + $0x104] ss:$8 sps:$4 sm:$0xff]  }
 0x64b   :  { %5818 = vmatpush1.bf16.msra.mxu0 %v5741_v61  ;;  %v12477_v29 = vld [vmem:[%s17449_s6 + $0xf4] ss:$8 sps:$4 sm:$0xff]  }
 0x64c   :  { %5710 = vrot.lane.b32.xlu1 %v5612_v31, %s13220_s27 }
 0x650   :  { %2886 = vrot.lane.b32.xlu1 %v2778_v46, %s13220_s27  ;;  %v12433_v46 = vld [vmem:[%s17449_s6 + $0x10] ss:$8 sps:$4 sm:$0xff]  }
 0x651   :  { %9296 = vmatpush1.bf16.msra.mxu1 %v12433_v46 }
 0x652   :  { %9297 = vmatprep.subr.bf16.mxu1 %v12438_v40 }
 0x654   :  { %5762 = vperm.xlu1 %11425, %v5752_v37  }
 0x655   :  { %9298 = vmatpush1.bf16.msra.mxu1 %v12436_v45 }
 0x656   :  { %9299 = vmatprep.subr.bf16.mxu1 %v12441_v47 }
 0x659   :  { %9300 = vmatpush1.bf16.msra.mxu1 %v12439_v49 }
 0x65a   :  { %9301 = vmatprep.subr.bf16.mxu1 %v12444_v58 }
 0x65d   :  { %9302 = vmatpush1.bf16.msra.mxu1 %v12442_v60  ;;  %v5754_v60 = vld [vmem:[%s17447_s5 + $0x18] sm:$0xff] }
 0x65e   :  { %9303 = vmatprep.subr.bf16.mxu1 %v12447_v51  ;;  %v6013_v51 = vlaneseq  ;;  %5772 = vperm.xlu1 %11425, %v5754_v60  }
 0x661   :  { %9304 = vmatpush1.bf16.msra.mxu1 %v12445_v59 }
 0x662   :  { %9305 = vmatprep.subr.bf16.mxu1 %v12450_v50 }
 0x665   :  { %9306 = vmatpush1.bf16.msra.mxu1 %v12448_v36 }
 0x666   :  { %9307 = vmatprep.subr.bf16.mxu1 %v12453_v52 }
 0x669   :  { %9308 = vmatpush1.bf16.msra.mxu1 %v12451_v53 }
 0x66a   :  { %9309 = vmatprep.subr.bf16.mxu1 %v12456_v54  ;;  %v15780_v54 = vshrl.u32 %v6013_v51, 7  ;;  %v12482_v51 = vld [vmem:[%s17449_s6 + $0x110] ss:$8 sps:$4 sm:$0xff]  }
 0x66d   :  { %9310 = vmatpush1.bf16.msra.mxu1 %v12454_v56 }
 0x66e   :  { %9311 = vmatprep.subr.bf16.mxu1 %v12459_v8 }
 0x671   :  { %9312 = vmatpush1.bf16.msra.mxu1 %v12457_v42 }
 0x672   :  { %9313 = vmatprep.subr.bf16.mxu1 %v12462_v19 }
 0x675   :  { %9314 = vmatpush1.bf16.msra.mxu1 %v12460_v20 }
 0x676   :  { %9315 = vmatprep.subr.bf16.mxu1 %v12465_v21 }
 0x679   :  { %9316 = vmatpush1.bf16.msra.mxu1 %v12463_v22 }
 0x67a   :  { %v5696_v57 = vpop.permute.xlu0 %5695  ;;  %v5691_v10 = vpop.permute.xlu1 %5690  ;;  %9317 = vmatprep.subr.bf16.mxu1 %v12468_v23 }
 0x67b   :  { %5698 = vst.msk [vmem:[#allocation2 + $0xd8] sm:$0xff] %vm2779_vm1, %v5696_v57  ;;  %v5692_v62 = vsel %vm2866_vm9, %v5689_v55, %v5691_v10 }
 0x67c   :  { %5694 = vst.msk [vmem:[#allocation2 + $0xc8] sm:$0xff] %vm2779_vm1, %v5692_v62 }
 0x67d   :  { %9318 = vmatpush1.bf16.msra.mxu1 %v12466_v24 }
 0x67e   :  { %v2878_v63 = vpop.permute.xlu1 %2877  ;;  %v5701_v0 = vpop.permute.xlu0 %5700  ;;  %9319 = vmatprep.subr.bf16.mxu1 %v12471_v25 }
 0x67f   :  { %v2880_v32 = vsel %vm2879_vm10, %v15637_v16, %v2878_v63  ;;  %v12424_v16 = vld [vmem:[%s17448_s4] ss:$8 sps:$4 sm:$0xff]  }
 0x680   :  { %2882 = vst.msk [vmem:[#allocation2 + $0xe0] sm:$0xff] %vm2779_vm1, %v2880_v32 }
 0x681   :  { %9320 = vmatpush1.bf16.msra.mxu1 %v12469_v26 }
 0x682   :  { %v5703_v1 = vpop.permute.xlu1 %5702  ;;  %v5746_v6 = vld [vmem:[#allocation2 + $0xd8] sm:$0xff]  ;;  %v5709_v5 = vpop.permute.xlu0 %5708  ;;  %9321 = vmatprep.subr.bf16.mxu1 %v12474_v27 }
 0x683   :  { %v5704_v33 = vsel %vm2879_vm10, %v5701_v0, %v5703_v1  ;;  %v5744_v34 = vld [vmem:[#allocation2 + $0xc8] sm:$0xff] }
 0x684   :  { %5706 = vst.msk [vmem:[#allocation2 + $0xe8] sm:$0xff] %vm2779_vm1, %v5704_v33  ;;  %5819 = vmatprep.subr.bf16.mxu0 %v5744_v34 }
 0x685   :  { %5820 = vmatpush1.bf16.msra.mxu0 %v5743_v2  ;;  %9322 = vmatpush1.bf16.msra.mxu1 %v12472_v28  ;;  %v13222_v2 = vmov 1983009808  }
 0x686   :  { %5821 = vmatprep.subr.bf16.mxu0 %v5746_v6  ;;  %v2885_v13 = vpop.permute.xlu0 %2884  ;;  %9323 = vmatprep.subr.bf16.mxu1 %v12477_v29  ;;  %v6011_v33 = vunpack.c.l.s4 %v13222_v2  ;;  %v12496_v2 = vld [vmem:[%s17449_s6 + $0x154] ss:$8 sps:$4 sm:$0xff]  }
 0x687   :  { %v5747_v41 = vld [vmem:[#allocation2 + $0xe0] sm:$0xff] }
 0x689   :  { %5822 = vmatpush1.bf16.msra.mxu0 %v5745_v7  ;;  %9324 = vmatpush1.bf16.msra.mxu1 %v12475_v3 }
 0x68a   :  { %9334 = vmatprep.subr.bf16.mxu1 %v12480_v30 }
 0x68b   :  { %v5748_v43 = vld [vmem:[#allocation2 + $0xe8] sm:$0xff] }
 0x68c   :  { %5823 = vmatprep.subr.bf16.mxu0 %v5748_v43 }
 0x68d   :  { %5824 = vmatpush1.bf16.msra.mxu0 %v5747_v41 }
 0x697   :  { %v5758_v31 = vpop.permute.xlu0 %5757 }
 0x69b   :  { %v15775_v59 = vpop.permute.xlu0 %5767 }
 0x6be   :  { %v5711_v48 = vpop.permute.xlu1 %5710 }
 0x6bf   :  { %v5712_v11 = vsel %vm2888_vm11, %v5709_v5, %v5711_v48 }
 0x6c0   :  { %5714 = vst.msk [vmem:[#allocation2 + $0xf8] sm:$0xff] %vm2779_vm1, %v5712_v11 }
 0x6c2   :  { %v2887_v14 = vpop.permute.xlu1 %2886 }
 0x6c3   :  { %v2889_v15 = vsel %vm2888_vm11, %v2885_v13, %v2887_v14 }
 0x6c4   :  { %2891 = vst.msk [vmem:[#allocation2 + $0xf0] sm:$0xff] %vm2779_vm1, %v2889_v15 }
 0x6c7   :  { %v5750_v4 = vld [vmem:[#allocation2 + $0xf8] sm:$0xff] }
 0x6c8   :  { %5825 = vmatprep.subr.bf16.mxu0 %v5750_v4 }
 0x6cb   :  { %v5749_v17 = vld [vmem:[#allocation2 + $0xf0] sm:$0xff] }
 0x6cc   :  { %5826 = vmatpush1.bf16.msra.mxu0 %v5749_v17 }
 0x6cf   :  { %5828 = vmatmul.mubr.bf16.vlgmr.msra.gmra.mrb[68].mxu0 %v12424_v16  ;;  %v6012_v16 = vunpack.c.0.s8 %v6011_v33  ;;  %v12494_v33 = vld [vmem:[%s17449_s6 + $0x150] ss:$8 sps:$4 sm:$0xff]  }
 0x6d0   :  { %5837 = vmatprep.mubr.bf16.mxu0 %v12427_v9 }
 0x6d1   :  { %v15815_v27 = vsub.s32 %v6012_v16, %v15780_v54  ;;  %v12517_v16 = vld [vmem:[%s17449_s6 + $0x1c4] ss:$8 sps:$4 sm:$0xff]  }
 0x6d3   :  { %v5763_v35 = vpop.permute.xlu1 %5762 }
 0x6d7   :  { %5838 = vmatmul.mubr.bf16.gmra.mrb[72].mxu0 %v12429_v18 }
 0x7a2   :  { %v5829_v61 = vpop.f32.mrb[68].mxu0 }
 0x7a3   :  { %v5830_v37 = vadd.f32 %v5829_v61, %v5758_v31  ;;  %v5831_v38 = vpop.f32.mrb[69].mxu0 }
 0x7a4   :  { %v5832_v39 = vadd.f32 %v5831_v38, %v5758_v31  ;;  %v5833_v12 = vpop.f32.mrb[70].mxu0 }
 0x7a5   :  { %v5848_v44 = vmax.f32 %v5830_v37, 0.0  ;;  %v5834_v46 = vadd.f32 %v5833_v12, %v5763_v35  ;;  %v5835_v40 = vpop.f32.mrb[71].mxu0 }
 0x7a6   :  { %v5849_v45 = vmax.f32 %v5832_v39, 0.0  ;;  %v5836_v47 = vadd.f32 %v5835_v40, %v5763_v35 }
 0x7a7   :  { %5856 = vst [vmem:[#allocation3] sm:$0xff] %v5848_v44  ;;  %v5850_v49 = vmax.f32 %v5834_v46, 0.0 }
 0x7a8   :  { %5857 = vst [vmem:[#allocation3 + $0x8] sm:$0xff] %v5849_v45  ;;  %v5851_v58 = vmax.f32 %v5836_v47, 0.0  ;;  %v12478_v45 = vld [vmem:[%s17449_s6 + $0x100] ss:$8 sps:$4 sm:$0xff]  }
 0x7a9   :  { %5858 = vst [vmem:[#allocation3 + $0x10] sm:$0xff] %v5850_v49 }
 0x7aa   :  { %5859 = vst [vmem:[#allocation3 + $0x18] sm:$0xff] %v5851_v58  ;;  %v5839_v50 = vpop.f32.mrb[72].mxu0  ;;  %v12484_v58 = vld [vmem:[%s17449_s6 + $0x114] ss:$8 sps:$4 sm:$0xff]  }
 0x7ab   :  { %v5840_v36 = vadd.f32 %v5839_v50, %v15775_v59  ;;  %v15778_v52 = vpop.f32.mrb[73].mxu0 }
 0x7ac   :  { %v5842_v23 = vadd.f32 %v15778_v52, %v15775_v59  ;;  %v12487_v59 = vld [vmem:[%s17449_s6 + $0x124] ss:$8 sps:$4 sm:$0xff]  }
 0x7ad   :  { %v5852_v53 = vmax.f32 %v5840_v36, 0.0 }
 0x7ae   :  { %v5864_v55 = vld [vmem:[#allocation3] ss:$0 sm:$0xff]  ;;  %v5867_v56 = vld [vmem:[#allocation3 + $0x1] ss:$0 sm:$0xff]  ;;  %v5869_v57 = vld [vmem:[#allocation3 + $0x2] ss:$0 sm:$0xff] }
 0x7af   :  { %5866 = vst.msk [vmem:[#allocation4] sm:$0x1] %vm5865_vm12, %v5864_v55  ;;  %5868 = vst.msk [vmem:[#allocation4 + $0x2] sm:$0x1] %vm5865_vm12, %v5867_v56  ;;  %v5871_v10 = vld [vmem:[#allocation3 + $0x3] ss:$0 sm:$0xff] }
 0x7b0   :  { %5870 = vst.msk [vmem:[#allocation4 + $0x4] sm:$0x1] %vm5865_vm12, %v5869_v57  ;;  %v5873_v62 = vld [vmem:[#allocation3 + $0x4] ss:$0 sm:$0xff]  ;;  %v5875_v63 = vld [vmem:[#allocation3 + $0x5] ss:$0 sm:$0xff] }
 0x7b1   :  { %5860 = vst [vmem:[#allocation3 + $0x20] sm:$0xff] %v5852_v53  ;;  %5872 = vst.msk [vmem:[#allocation4 + $0x6] sm:$0x1] %vm5865_vm12, %v5871_v10  ;;  %v5877_v32 = vld [vmem:[#allocation3 + $0x6] ss:$0 sm:$0xff]  ;;  %v5853_v37 = vmax.f32 %v5842_v23, 0.0 }
 0x7b2   :  { %5874 = vst.msk [vmem:[#allocation4 + $0x8] sm:$0x1] %vm5865_vm12, %v5873_v62  ;;  %5876 = vst.msk [vmem:[#allocation4 + $0xa] sm:$0x1] %vm5865_vm12, %v5875_v63  ;;  %v5879_v0 = vld [vmem:[#allocation3 + $0x7] ss:$0 sm:$0xff] }
 0x7b3   :  { %v5929_v1 = vld [vmem:[#allocation3 + $0x8] ss:$0 sm:$0xff]  ;;  %5878 = vst.msk [vmem:[#allocation4 + $0xc] sm:$0x1] %vm5865_vm12, %v5877_v32  ;;  %5880 = vst.msk [vmem:[#allocation4 + $0xe] sm:$0x1] %vm5865_vm12, %v5879_v0 }
 0x7b4   :  { %5930 = vst.msk [vmem:[#allocation4 + $0x1] sm:$0x1] %vm5865_vm12, %v5929_v1  ;;  %v5931_v34 = vld [vmem:[#allocation3 + $0x9] ss:$0 sm:$0xff]  ;;  %v5933_v6 = vld [vmem:[#allocation3 + $0xa] ss:$0 sm:$0xff] }
 0x7b5   :  { %v5935_v7 = vld [vmem:[#allocation3 + $0xb] ss:$0 sm:$0xff]  ;;  %5932 = vst.msk [vmem:[#allocation4 + $0x3] sm:$0x1] %vm5865_vm12, %v5931_v34  ;;  %5934 = vst.msk [vmem:[#allocation4 + $0x5] sm:$0x1] %vm5865_vm12, %v5933_v6 }
 0x7b6   :  { %5936 = vst.msk [vmem:[#allocation4 + $0x7] sm:$0x1] %vm5865_vm12, %v5935_v7  ;;  %v5937_v41 = vld [vmem:[#allocation3 + $0xc] ss:$0 sm:$0xff]  ;;  %v5939_v43 = vld [vmem:[#allocation3 + $0xd] ss:$0 sm:$0xff] }
 0x7b7   :  { %v5941_v5 = vld [vmem:[#allocation3 + $0xe] ss:$0 sm:$0xff]  ;;  %5938 = vst.msk [vmem:[#allocation4 + $0x9] sm:$0x1] %vm5865_vm12, %v5937_v41  ;;  %5940 = vst.msk [vmem:[#allocation4 + $0xb] sm:$0x1] %vm5865_vm12, %v5939_v43 }
 0x7b8   :  { %5942 = vst.msk [vmem:[#allocation4 + $0xd] sm:$0x1] %vm5865_vm12, %v5941_v5  ;;  %v5943_v48 = vld [vmem:[#allocation3 + $0xf] ss:$0 sm:$0xff]  ;;  %v5881_v11 = vld [vmem:[#allocation3 + $0x10] ss:$0 sm:$0xff] }
 0x7b9   :  { %v5883_v13 = vld [vmem:[#allocation3 + $0x11] ss:$0 sm:$0xff]  ;;  %5944 = vst.msk [vmem:[#allocation4 + $0xf] sm:$0x1] %vm5865_vm12, %v5943_v48  ;;  %5882 = vst.msk [vmem:[#allocation4 + $0x10] sm:$0x1] %vm5865_vm12, %v5881_v11 }
 0x7ba   :  { %5884 = vst.msk [vmem:[#allocation4 + $0x12] sm:$0x1] %vm5865_vm12, %v5883_v13  ;;  %v5885_v14 = vld [vmem:[#allocation3 + $0x12] ss:$0 sm:$0xff]  ;;  %v5887_v15 = vld [vmem:[#allocation3 + $0x13] ss:$0 sm:$0xff] }
 0x7bb   :  { %v5889_v4 = vld [vmem:[#allocation3 + $0x14] ss:$0 sm:$0xff]  ;;  %5886 = vst.msk [vmem:[#allocation4 + $0x14] sm:$0x1] %vm5865_vm12, %v5885_v14  ;;  %5888 = vst.msk [vmem:[#allocation4 + $0x16] sm:$0x1] %vm5865_vm12, %v5887_v15 }
 0x7bc   :  { %5890 = vst.msk [vmem:[#allocation4 + $0x18] sm:$0x1] %vm5865_vm12, %v5889_v4  ;;  %v5891_v9 = vld [vmem:[#allocation3 + $0x15] ss:$0 sm:$0xff]  ;;  %v5893_v17 = vld [vmem:[#allocation3 + $0x16] ss:$0 sm:$0xff] }
 0x7bd   :  { %v5895_v18 = vld [vmem:[#allocation3 + $0x17] ss:$0 sm:$0xff]  ;;  %5892 = vst.msk [vmem:[#allocation4 + $0x1a] sm:$0x1] %vm5865_vm12, %v5891_v9  ;;  %5894 = vst.msk [vmem:[#allocation4 + $0x1c] sm:$0x1] %vm5865_vm12, %v5893_v17 }
 0x7be   :  { %5896 = vst.msk [vmem:[#allocation4 + $0x1e] sm:$0x1] %vm5865_vm12, %v5895_v18  ;;  %v5945_v8 = vld [vmem:[#allocation3 + $0x18] ss:$0 sm:$0xff]  ;;  %v5947_v42 = vld [vmem:[#allocation3 + $0x19] ss:$0 sm:$0xff] }
 0x7bf   :  { %v5949_v19 = vld [vmem:[#allocation3 + $0x1a] ss:$0 sm:$0xff]  ;;  %5946 = vst.msk [vmem:[#allocation4 + $0x11] sm:$0x1] %vm5865_vm12, %v5945_v8  ;;  %5948 = vst.msk [vmem:[#allocation4 + $0x13] sm:$0x1] %vm5865_vm12, %v5947_v42 }
 0x7c0   :  { %5950 = vst.msk [vmem:[#allocation4 + $0x15] sm:$0x1] %vm5865_vm12, %v5949_v19  ;;  %v5951_v20 = vld [vmem:[#allocation3 + $0x1b] ss:$0 sm:$0xff]  ;;  %v5953_v21 = vld [vmem:[#allocation3 + $0x1c] ss:$0 sm:$0xff] }
 0x7c1   :  { %v5955_v22 = vld [vmem:[#allocation3 + $0x1d] ss:$0 sm:$0xff]  ;;  %5952 = vst.msk [vmem:[#allocation4 + $0x17] sm:$0x1] %vm5865_vm12, %v5951_v20  ;;  %5954 = vst.msk [vmem:[#allocation4 + $0x19] sm:$0x1] %vm5865_vm12, %v5953_v21 }
 0x7c2   :  { %5956 = vst.msk [vmem:[#allocation4 + $0x1b] sm:$0x1] %vm5865_vm12, %v5955_v22  ;;  %v5957_v24 = vld [vmem:[#allocation3 + $0x1e] ss:$0 sm:$0xff]  ;;  %v5959_v25 = vld [vmem:[#allocation3 + $0x1f] ss:$0 sm:$0xff] }
 0x7c3   :  { %v5897_v26 = vld [vmem:[#allocation3 + $0x20] ss:$0 sm:$0xff]  ;;  %5958 = vst.msk [vmem:[#allocation4 + $0x1d] sm:$0x1] %vm5865_vm12, %v5957_v24  ;;  %5960 = vst.msk [vmem:[#allocation4 + $0x1f] sm:$0x1] %vm5865_vm12, %v5959_v25 }
 0x7c4   :  { %5898 = vst.msk [vmem:[#allocation4 + $0x20] sm:$0x1] %vm5865_vm12, %v5897_v26  ;;  %v5899_v28 = vld [vmem:[#allocation3 + $0x21] ss:$0 sm:$0xff]  ;;  %v5901_v3 = vld [vmem:[#allocation3 + $0x22] ss:$0 sm:$0xff] }
 0x7c5   :  { %v5903_v29 = vld [vmem:[#allocation3 + $0x23] ss:$0 sm:$0xff]  ;;  %5900 = vst.msk [vmem:[#allocation4 + $0x22] sm:$0x1] %vm5865_vm12, %v5899_v28  ;;  %5902 = vst.msk [vmem:[#allocation4 + $0x24] sm:$0x1] %vm5865_vm12, %v5901_v3 }
 0x7c6   :  { %5904 = vst.msk [vmem:[#allocation4 + $0x26] sm:$0x1] %vm5865_vm12, %v5903_v29  ;;  %v5905_v30 = vld [vmem:[#allocation3 + $0x24] ss:$0 sm:$0xff]  ;;  %v5907_v31 = vld [vmem:[#allocation3 + $0x25] ss:$0 sm:$0xff] }
 0x7c7   :  { %v5909_v61 = vld [vmem:[#allocation3 + $0x26] ss:$0 sm:$0xff]  ;;  %5906 = vst.msk [vmem:[#allocation4 + $0x28] sm:$0x1] %vm5865_vm12, %v5905_v30  ;;  %5908 = vst.msk [vmem:[#allocation4 + $0x2a] sm:$0x1] %vm5865_vm12, %v5907_v31 }
 0x7c8   :  { %5910 = vst.msk [vmem:[#allocation4 + $0x2c] sm:$0x1] %vm5865_vm12, %v5909_v61  ;;  %v5911_v35 = vld [vmem:[#allocation3 + $0x27] ss:$0 sm:$0xff]  ;;  %5861 = vst [vmem:[#allocation3 + $0x28] sm:$0xff] %v5853_v37  ;;  %v15925_v42 = vld [vmem:[#allocation4 + $0x8] sm:$0xff] }
 0x7c9   :  { %v5993_v38 = vld [vmem:[#allocation4] sm:$0xff]  ;;  %5912 = vst.msk [vmem:[#allocation4 + $0x2e] sm:$0x1] %vm5865_vm12, %v5911_v35  ;;  %v12490_v63 = vld [vmem:[%s17449_s6 + $0x134] ss:$8 sps:$4 sm:$0xff]   ;;  %v15935_v21 = vrot.slane %v15925_v42, %v15815_v27 }
 0x7ca   :  { %v6016_v39 = vrot.slane %v5993_v38, %v15815_v27  ;;  %v6009_v12 = vcombine.high %v5993_v38, %v5993_v38  ;;  %v12485_v62 = vld [vmem:[%s17449_s6 + $0x120] ss:$8 sps:$4 sm:$0xff]   ;;  %v12488_v32 = vld [vmem:[%s17449_s6 + $0x130] ss:$8 sps:$4 sm:$0xff]   ;;  %v12493_v0 = vld [vmem:[%s17449_s6 + $0x144] ss:$8 sps:$4 sm:$0xff]  }
 0x7cb   :  { %v12491_v1 = vld [vmem:[%s17449_s6 + $0x140] ss:$8 sps:$4 sm:$0xff]   ;;  %v12499_v34 = vld [vmem:[%s17449_s6 + $0x164] ss:$8 sps:$4 sm:$0xff]   ;;  %v12502_v7 = vld [vmem:[%s17449_s6 + $0x174] ss:$8 sps:$4 sm:$0xff]   ;;  %v6041_v24 = vcombine.high %v15935_v21, %v15935_v21 }
 0x7cc   :  { %v6024_v44 = vcombine.high %v6016_v39, %v6016_v39  ;;  %v15829_v46 = vrot.slane %v6009_v12, %v15815_v27  ;;  %v6177_v49 = vpack.c.bf16 %v6016_v39, %v6016_v39  ;;  %v12497_v6 = vld [vmem:[%s17449_s6 + $0x160] ss:$8 sps:$4 sm:$0xff]   ;;  %v12500_v41 = vld [vmem:[%s17449_s6 + $0x170] ss:$8 sps:$4 sm:$0xff]   ;;  %v12505_v43 = vld [vmem:[%s17449_s6 + $0x184] ss:$8 sps:$4 sm:$0xff]  }
 0x7cd   :  { %v12503_v5 = vld [vmem:[%s17449_s6 + $0x180] ss:$8 sps:$4 sm:$0xff]   ;;  %v12508_v48 = vld [vmem:[%s17449_s6 + $0x194] ss:$8 sps:$4 sm:$0xff]   ;;  %v12506_v11 = vld [vmem:[%s17449_s6 + $0x190] ss:$8 sps:$4 sm:$0xff]   ;;  %v6182_v3 = vpack.c.bf16 %v6041_v24, %v6041_v24 }
 0x7ce   :  { %v6178_v40 = vpack.c.bf16 %v6024_v44, %v6024_v44  ;;  %v6025_v47 = vcombine.high %v15829_v46, %v15829_v46  ;;  %v12511_v13 = vld [vmem:[%s17449_s6 + $0x1a4] ss:$8 sps:$4 sm:$0xff]   ;;  %v12509_v14 = vld [vmem:[%s17449_s6 + $0x1a0] ss:$8 sps:$4 sm:$0xff]   ;;  %v12514_v15 = vld [vmem:[%s17449_s6 + $0x1b4] ss:$8 sps:$4 sm:$0xff]   ;;  %v6179_v26 = vpack.c.bf16 %v15829_v46, %v15829_v46 }
 0x7cf   :  { %v5961_v50 = vld [vmem:[#allocation3 + $0x28] ss:$0 sm:$0xff]  ;;  %v5963_v36 = vld [vmem:[#allocation3 + $0x29] ss:$0 sm:$0xff]  ;;  %v5965_v52 = vld [vmem:[#allocation3 + $0x2a] ss:$0 sm:$0xff] }
 0x7d0   :  { %9325 = vmatprep.mubr.bf16.mxu1 %v6178_v40  ;;  %v6180_v60 = vpack.c.bf16 %v6025_v47, %v6025_v47  ;;  %5962 = vst.msk [vmem:[#allocation4 + $0x21] sm:$0x1] %vm5865_vm12, %v5961_v50  ;;  %5964 = vst.msk [vmem:[#allocation4 + $0x23] sm:$0x1] %vm5865_vm12, %v5963_v36  ;;  %v5967_v53 = vld [vmem:[#allocation3 + $0x2b] ss:$0 sm:$0xff] }
 0x7d1   :  { %9326 = vmatmul.mubr.bf16.vlgmr.msra.gmra.mrb[24].mxu1 %v6177_v49  ;;  %5966 = vst.msk [vmem:[#allocation4 + $0x25] sm:$0x1] %vm5865_vm12, %v5965_v52  ;;  %v5969_v55 = vld [vmem:[#allocation3 + $0x2c] ss:$0 sm:$0xff]  ;;  %v5971_v56 = vld [vmem:[#allocation3 + $0x2d] ss:$0 sm:$0xff]  ;;  %v5773_v52 = vpop.permute.xlu1 %5772 }
 0x7d2   :  { %9335 = vmatpush1.bf16.msra.mxu1 %v12478_v45  ;;  %9366 = vmatprep.mubr.bf16.mxu1 %v6180_v60  ;;  %5968 = vst.msk [vmem:[#allocation4 + $0x27] sm:$0x1] %vm5865_vm12, %v5967_v53  ;;  %5970 = vst.msk [vmem:[#allocation4 + $0x29] sm:$0x1] %vm5865_vm12, %v5969_v55  ;;  %v5973_v57 = vld [vmem:[#allocation3 + $0x2e] ss:$0 sm:$0xff] }
 0x7d3   :  { %9336 = vmatprep.subr.bf16.mxu1 %v12484_v58  ;;  %5972 = vst.msk [vmem:[#allocation4 + $0x2b] sm:$0x1] %vm5865_vm12, %v5971_v56  ;;  %v5975_v10 = vld [vmem:[#allocation3 + $0x2f] ss:$0 sm:$0xff]  ;;  %5974 = vst.msk [vmem:[#allocation4 + $0x2d] sm:$0x1] %vm5865_vm12, %v5973_v57 }
 0x7d4   :  { %5976 = vst.msk [vmem:[#allocation4 + $0x2f] sm:$0x1] %vm5865_vm12, %v5975_v10  ;;  %v12512_v4 = vld [vmem:[%s17449_s6 + $0x1b0] ss:$8 sps:$4 sm:$0xff]   ;;  %v12515_v9 = vld [vmem:[%s17449_s6 + $0x1c0] ss:$8 sps:$4 sm:$0xff]  }
 0x7d5   :  { %v12520_v17 = vld [vmem:[%s17449_s6 + $0x1d4] ss:$8 sps:$4 sm:$0xff]   ;;  %v12518_v18 = vld [vmem:[%s17449_s6 + $0x1d0] ss:$8 sps:$4 sm:$0xff]   ;;  %v12523_v8 = vld [vmem:[%s17449_s6 + $0x1e4] ss:$8 sps:$4 sm:$0xff]  }
 0x7d6   :  { %9337 = vmatpush1.bf16.msra.mxu1 %v12482_v51  ;;  %v12521_v19 = vld [vmem:[%s17449_s6 + $0x1e0] ss:$8 sps:$4 sm:$0xff]   ;;  %v12526_v20 = vld [vmem:[%s17449_s6 + $0x1f4] ss:$8 sps:$4 sm:$0xff]   ;;  %v12524_v22 = vld [vmem:[%s17449_s6 + $0x1f0] ss:$8 sps:$4 sm:$0xff]  }
 0x7d7   :  { %9338 = vmatprep.subr.bf16.mxu1 %v12487_v59  ;;  %v12529_v23 = vld [vmem:[%s17449_s6 + $0x204] ss:$8 sps:$4 sm:$0xff]   ;;  %v12527_v25 = vld [vmem:[%s17449_s6 + $0x200] ss:$8 sps:$4 sm:$0xff]   ;;  %v12532_v28 = vld [vmem:[%s17449_s6 + $0x214] ss:$8 sps:$4 sm:$0xff]  }
 0x7d8   :  { %v12530_v29 = vld [vmem:[%s17449_s6 + $0x210] ss:$8 sps:$4 sm:$0xff]   ;;  %v12535_v30 = vld [vmem:[%s17449_s6 + $0x224] ss:$8 sps:$4 sm:$0xff]   ;;  %v12533_v31 = vld [vmem:[%s17449_s6 + $0x220] ss:$8 sps:$4 sm:$0xff]  }
 0x7d9   :  { %v12538_v61 = vld [vmem:[%s17449_s6 + $0x234] ss:$8 sps:$4 sm:$0xff]   ;;  %v12536_v35 = vld [vmem:[%s17449_s6 + $0x230] ss:$8 sps:$4 sm:$0xff]   ;;  %v12541_v37 = vld [vmem:[%s17449_s6 + $0x244] ss:$8 sps:$4 sm:$0xff]  }
 0x7da   :  { %9339 = vmatpush1.bf16.msra.mxu1 %v12485_v62  ;;  %v12539_v38 = vld [vmem:[%s17449_s6 + $0x240] ss:$8 sps:$4 sm:$0xff]   ;;  %v12544_v39 = vld [vmem:[%s17449_s6 + $0x254] ss:$8 sps:$4 sm:$0xff]   ;;  %v12542_v12 = vld [vmem:[%s17449_s6 + $0x250] ss:$8 sps:$4 sm:$0xff]  }
 0x7db   :  { %9340 = vmatprep.subr.bf16.mxu1 %v12490_v63  ;;  %v12547_v44 = vld [vmem:[%s17449_s6 + $0x264] ss:$8 sps:$4 sm:$0xff]   ;;  %v12545_v46 = vld [vmem:[%s17449_s6 + $0x260] ss:$8 sps:$4 sm:$0xff]   ;;  %v12550_v40 = vld [vmem:[%s17449_s6 + $0x274] ss:$8 sps:$4 sm:$0xff]  }
 0x7dc   :  { %v12548_v45 = vld [vmem:[%s17449_s6 + $0x270] ss:$8 sps:$4 sm:$0xff]   ;;  %v12553_v47 = vld [vmem:[%s17449_s6 + $0x284] ss:$8 sps:$4 sm:$0xff]   ;;  %v12551_v49 = vld [vmem:[%s17449_s6 + $0x280] ss:$8 sps:$4 sm:$0xff]  }
 0x7dd   :  { %v12556_v58 = vld [vmem:[%s17449_s6 + $0x294] ss:$8 sps:$4 sm:$0xff]   ;;  %v12554_v60 = vld [vmem:[%s17449_s6 + $0x290] ss:$8 sps:$4 sm:$0xff]   ;;  %v5843_v51 = vpop.f32.mrb[74].mxu0 }
 0x7de   :  { %9341 = vmatpush1.bf16.msra.mxu1 %v12488_v32  ;;  %v12559_v59 = vld [vmem:[%s17449_s6 + $0x2a4] ss:$8 sps:$4 sm:$0xff]   ;;  %v5845_v50 = vpop.f32.mrb[75].mxu0  ;;  %v12557_v36 = vld [vmem:[%s17449_s6 + $0x2a0] ss:$8 sps:$4 sm:$0xff]   ;;  %v5844_v55 = vadd.f32 %v5843_v51, %v5773_v52 }
 0x7df   :  { %9342 = vmatprep.subr.bf16.mxu1 %v12493_v0  ;;  %v12562_v53 = vld [vmem:[%s17449_s6 + $0x2b4] ss:$8 sps:$4 sm:$0xff]   ;;  %v5846_v56 = vadd.f32 %v5845_v50, %v5773_v52  ;;  %v12560_v62 = vld [vmem:[%s17449_s6 + $0x2b0] ss:$8 sps:$4 sm:$0xff]   ;;  %v12565_v63 = vld [vmem:[%s17449_s6 + $0x2c4] ss:$8 sps:$4 sm:$0xff]  }
 0x7e0   :  { %v5854_v57 = vmax.f32 %v5844_v55, 0.0  ;;  %v12563_v32 = vld [vmem:[%s17449_s6 + $0x2c0] ss:$8 sps:$4 sm:$0xff]   ;;  %v12568_v0 = vld [vmem:[%s17449_s6 + $0x2d4] ss:$8 sps:$4 sm:$0xff]  }
 0x7e1   :  { %v5855_v10 = vmax.f32 %v5846_v56, 0.0  ;;  %v12575_v24 = vld [vmem:[%s17449_s6 + $0x300] ss:$8 sps:$4 sm:$0xff]   ;;  %v12611_v51 = vld [vmem:[%s17449_s6 + $0x3b4] ss:$8 sps:$4 sm:$0xff]  }
 0x7e2   :  { %9343 = vmatpush1.bf16.msra.mxu1 %v12491_v1  ;;  %5862 = vst [vmem:[#allocation3 + $0x30] sm:$0xff] %v5854_v57  ;;  %v12566_v1 = vld [vmem:[%s17449_s6 + $0x2d0] ss:$8 sps:$4 sm:$0xff]   ;;  %v12614_v50 = vld [vmem:[%s17449_s6 + $0x3c4] ss:$8 sps:$4 sm:$0xff]  }
 0x7e3   :  { %9344 = vmatprep.subr.bf16.mxu1 %v12496_v2  ;;  %5863 = vst [vmem:[#allocation3 + $0x38] sm:$0xff] %v5855_v10  ;;  %v12571_v2 = vld [vmem:[%s17449_s6 + $0x2e4] ss:$8 sps:$4 sm:$0xff]   ;;  %v12617_v52 = vld [vmem:[%s17449_s6 + $0x3d4] ss:$8 sps:$4 sm:$0xff]  }
 0x7e4   :  { %v12620_v55 = vld [vmem:[%s17449_s6 + $0x3e4] ss:$8 sps:$4 sm:$0xff]   ;;  %v16152_v56 = vld [vmem:[#allocation4 + $0x10] sm:$0xff]  ;;  %v12618_v57 = vld [vmem:[%s17449_s6 + $0x3e0] ss:$8 sps:$4 sm:$0xff]  }
 0x7e5   :  { %v12623_v10 = vld [vmem:[%s17449_s6 + $0x3f4] ss:$8 sps:$4 sm:$0xff]  }
 0x7e6   :  { %9345 = vmatpush1.bf16.msra.mxu1 %v12494_v33 }
 0x7e7   :  { %9346 = vmatprep.subr.bf16.mxu1 %v12499_v34 }
 0x7e9   :  { %v5913_v33 = vld [vmem:[#allocation3 + $0x30] ss:$0 sm:$0xff]  ;;  %v5915_v34 = vld [vmem:[#allocation3 + $0x31] ss:$0 sm:$0xff] }
 0x7ea   :  { %9347 = vmatpush1.bf16.msra.mxu1 %v12497_v6  ;;  %v5917_v6 = vld [vmem:[#allocation3 + $0x32] ss:$0 sm:$0xff]  ;;  %5914 = vst.msk [vmem:[#allocation4 + $0x30] sm:$0x1] %vm5865_vm12, %v5913_v33  ;;  %5916 = vst.msk [vmem:[#allocation4 + $0x32] sm:$0x1] %vm5865_vm12, %v5915_v34 }
 0x7eb   :  { %9348 = vmatprep.subr.bf16.mxu1 %v12502_v7  ;;  %5918 = vst.msk [vmem:[#allocation4 + $0x34] sm:$0x1] %vm5865_vm12, %v5917_v6  ;;  %v5919_v7 = vld [vmem:[#allocation3 + $0x33] ss:$0 sm:$0xff]  ;;  %v12629_v33 = vld [vmem:[%s17449_s6 + $0x414] ss:$8 sps:$4 sm:$0xff]  }
 0x7ec   :  { %5920 = vst.msk [vmem:[#allocation4 + $0x36] sm:$0x1] %vm5865_vm12, %v5919_v7  ;;  %v12627_v6 = vld [vmem:[%s17449_s6 + $0x410] ss:$8 sps:$4 sm:$0xff]   ;;  %v12632_v7 = vld [vmem:[%s17449_s6 + $0x424] ss:$8 sps:$4 sm:$0xff]  }
 0x7ee   :  { %9349 = vmatpush1.bf16.msra.mxu1 %v12500_v41  ;;  %v5921_v41 = vld [vmem:[#allocation3 + $0x34] ss:$0 sm:$0xff] }
 0x7ef   :  { %9350 = vmatprep.subr.bf16.mxu1 %v12505_v43  ;;  %v5923_v43 = vld [vmem:[#allocation3 + $0x35] ss:$0 sm:$0xff]  ;;  %5922 = vst.msk [vmem:[#allocation4 + $0x38] sm:$0x1] %vm5865_vm12, %v5921_v41  ;;  %v12630_v41 = vld [vmem:[%s17449_s6 + $0x420] ss:$8 sps:$4 sm:$0xff]  }
 0x7f0   :  { %5924 = vst.msk [vmem:[#allocation4 + $0x3a] sm:$0x1] %vm5865_vm12, %v5923_v43  ;;  %v12635_v43 = vld [vmem:[%s17449_s6 + $0x434] ss:$8 sps:$4 sm:$0xff]  }
 0x7f2   :  { %9351 = vmatpush1.bf16.msra.mxu1 %v12503_v5  ;;  %v12569_v5 = vld [vmem:[%s17449_s6 + $0x2e0] ss:$8 sps:$4 sm:$0xff]  }
 0x7f3   :  { %9352 = vmatprep.subr.bf16.mxu1 %v12508_v48  ;;  %v6026_v48 = vcombine.high %v15925_v42, %v15925_v42  ;;  %v5991_v42 = vld [vmem:[#allocation3 + $0x3f] ss:$0 sm:$0xff] }
 0x7f4   :  { %5992 = vst.msk [vmem:[#allocation4 + $0x3f] sm:$0x1] %vm5865_vm12, %v5991_v42  ;;  %v12651_v42 = vld [vmem:[%s17449_s6 + $0x490] ss:$8 sps:$4 sm:$0xff]  }
 0x7f6   :  { %9353 = vmatpush1.bf16.msra.mxu1 %v12506_v11  ;;  %v5925_v11 = vld [vmem:[#allocation3 + $0x36] ss:$0 sm:$0xff] }
 0x7f7   :  { %9354 = vmatprep.subr.bf16.mxu1 %v12511_v13  ;;  %v5927_v13 = vld [vmem:[#allocation3 + $0x37] ss:$0 sm:$0xff]  ;;  %5926 = vst.msk [vmem:[#allocation4 + $0x3c] sm:$0x1] %vm5865_vm12, %v5925_v11  ;;  %v12636_v11 = vld [vmem:[%s17449_s6 + $0x440] ss:$8 sps:$4 sm:$0xff]  }
 0x7f8   :  { %5928 = vst.msk [vmem:[#allocation4 + $0x3e] sm:$0x1] %vm5865_vm12, %v5927_v13  ;;  %v12641_v13 = vld [vmem:[%s17449_s6 + $0x454] ss:$8 sps:$4 sm:$0xff]  }
 0x7fa   :  { %9355 = vmatpush1.bf16.msra.mxu1 %v12509_v14  ;;  %v5977_v14 = vld [vmem:[#allocation3 + $0x38] ss:$0 sm:$0xff] }
 0x7fb   :  { %9356 = vmatprep.subr.bf16.mxu1 %v12514_v15  ;;  %5978 = vst.msk [vmem:[#allocation4 + $0x31] sm:$0x1] %vm5865_vm12, %v5977_v14  ;;  %v5979_v15 = vld [vmem:[#allocation3 + $0x39] ss:$0 sm:$0xff] }
 0x7fc   :  { %5980 = vst.msk [vmem:[#allocation4 + $0x33] sm:$0x1] %vm5865_vm12, %v5979_v15  ;;  %v12639_v14 = vld [vmem:[%s17449_s6 + $0x450] ss:$8 sps:$4 sm:$0xff]   ;;  %v12644_v15 = vld [vmem:[%s17449_s6 + $0x464] ss:$8 sps:$4 sm:$0xff]  }
 0x7fe   :  { %9357 = vmatpush1.bf16.msra.mxu1 %v12512_v4  ;;  %v5981_v4 = vld [vmem:[#allocation3 + $0x3a] ss:$0 sm:$0xff] }
 0x7ff   :  { %9358 = vmatprep.subr.bf16.mxu1 %v12517_v16  ;;  %v5983_v16 = vld [vmem:[#allocation3 + $0x3b] ss:$0 sm:$0xff]  ;;  %5982 = vst.msk [vmem:[#allocation4 + $0x35] sm:$0x1] %vm5865_vm12, %v5981_v4  ;;  %v12642_v4 = vld [vmem:[%s17449_s6 + $0x460] ss:$8 sps:$4 sm:$0xff]  }
 0x800   :  { %5984 = vst.msk [vmem:[#allocation4 + $0x37] sm:$0x1] %vm5865_vm12, %v5983_v16  ;;  %v12647_v16 = vld [vmem:[%s17449_s6 + $0x474] ss:$8 sps:$4 sm:$0xff]  }
 0x802   :  { %9359 = vmatpush1.bf16.msra.mxu1 %v12515_v9  ;;  %v5985_v9 = vld [vmem:[#allocation3 + $0x3c] ss:$0 sm:$0xff] }
 0x803   :  { %9360 = vmatprep.subr.bf16.mxu1 %v12520_v17  ;;  %v5987_v17 = vld [vmem:[#allocation3 + $0x3d] ss:$0 sm:$0xff]  ;;  %5986 = vst.msk [vmem:[#allocation4 + $0x39] sm:$0x1] %vm5865_vm12, %v5985_v9  ;;  %v12645_v9 = vld [vmem:[%s17449_s6 + $0x470] ss:$8 sps:$4 sm:$0xff]  }
 0x804   :  { %5988 = vst.msk [vmem:[#allocation4 + $0x3b] sm:$0x1] %vm5865_vm12, %v5987_v17  ;;  %v12650_v17 = vld [vmem:[%s17449_s6 + $0x484] ss:$8 sps:$4 sm:$0xff]  }
 0x806   :  { %9361 = vmatpush1.bf16.msra.mxu1 %v12518_v18  ;;  %v5989_v18 = vld [vmem:[#allocation3 + $0x3e] ss:$0 sm:$0xff] }
 0x807   :  { %9362 = vmatprep.subr.bf16.mxu1 %v12523_v8  ;;  %v12574_v8 = vld [vmem:[%s17449_s6 + $0x2f4] ss:$8 sps:$4 sm:$0xff]   ;;  %5990 = vst.msk [vmem:[#allocation4 + $0x3d] sm:$0x1] %vm5865_vm12, %v5989_v18  ;;  %v12648_v18 = vld [vmem:[%s17449_s6 + $0x480] ss:$8 sps:$4 sm:$0xff]  }
 0x80a   :  { %9363 = vmatpush1.bf16.msra.mxu1 %v12521_v19  ;;  %v16055_v19 = vrot.slane %v6026_v48, %v15815_v27  ;;  %v12638_v48 = vld [vmem:[%s17449_s6 + $0x444] ss:$8 sps:$4 sm:$0xff]  }
 0x80b   :  { %9364 = vmatprep.subr.bf16.mxu1 %v12526_v20  ;;  %v12572_v20 = vld [vmem:[%s17449_s6 + $0x2f0] ss:$8 sps:$4 sm:$0xff]  }
 0x80e   :  { %9365 = vmatpush1.bf16.msra.mxu1 %v12524_v22  ;;  %v12577_v22 = vld [vmem:[%s17449_s6 + $0x304] ss:$8 sps:$4 sm:$0xff]  }
 0x80f   :  { %9375 = vmatprep.subr.bf16.mxu1 %v12529_v23  ;;  %v6042_v23 = vcombine.high %v16055_v19, %v16055_v19 }
 0x811   :  { %9367 = vmatmul.mubr.bf16.vlgmr.msra.gmra.mrb[24].mxu1 %v6179_v26  ;;  %v12581_v26 = vld [vmem:[%s17449_s6 + $0x314] ss:$8 sps:$4 sm:$0xff]  }
 0x812   :  { %9376 = vmatpush1.bf16.msra.mxu1 %v12527_v25  ;;  %9407 = vmatprep.mubr.bf16.mxu1 %v6182_v3  ;;  %v6181_v25 = vpack.c.bf16 %v15935_v21, %v15935_v21  ;;  %v12579_v3 = vld [vmem:[%s17449_s6 + $0x310] ss:$8 sps:$4 sm:$0xff]   ;;  %v12582_v21 = vld [vmem:[%s17449_s6 + $0x320] ss:$8 sps:$4 sm:$0xff]  }
 0x813   :  { %9377 = vmatprep.subr.bf16.mxu1 %v12532_v28  ;;  %v6184_v28 = vpack.c.bf16 %v6042_v23, %v6042_v23  ;;  %v12657_v23 = vld [vmem:[%s17449_s6 + $0x4b0] ss:$8 sps:$4 sm:$0xff]  }
 0x816   :  { %9378 = vmatpush1.bf16.msra.mxu1 %v12530_v29  ;;  %v12584_v29 = vld [vmem:[%s17449_s6 + $0x324] ss:$8 sps:$4 sm:$0xff]  }
 0x817   :  { %9379 = vmatprep.subr.bf16.mxu1 %v12535_v30  ;;  %v12587_v30 = vld [vmem:[%s17449_s6 + $0x334] ss:$8 sps:$4 sm:$0xff]  }
 0x81a   :  { %9380 = vmatpush1.bf16.msra.mxu1 %v12533_v31  ;;  %v12585_v31 = vld [vmem:[%s17449_s6 + $0x330] ss:$8 sps:$4 sm:$0xff]  }
 0x81b   :  { %9381 = vmatprep.subr.bf16.mxu1 %v12538_v61  ;;  %v12590_v61 = vld [vmem:[%s17449_s6 + $0x344] ss:$8 sps:$4 sm:$0xff]  }
 0x81e   :  { %9382 = vmatpush1.bf16.msra.mxu1 %v12536_v35  ;;  %v12588_v35 = vld [vmem:[%s17449_s6 + $0x340] ss:$8 sps:$4 sm:$0xff]  }
 0x81f   :  { %9383 = vmatprep.subr.bf16.mxu1 %v12541_v37  ;;  %v12593_v37 = vld [vmem:[%s17449_s6 + $0x354] ss:$8 sps:$4 sm:$0xff]  }
 0x822   :  { %9384 = vmatpush1.bf16.msra.mxu1 %v12539_v38  ;;  %v12591_v38 = vld [vmem:[%s17449_s6 + $0x350] ss:$8 sps:$4 sm:$0xff]  }
 0x823   :  { %9385 = vmatprep.subr.bf16.mxu1 %v12544_v39  ;;  %v12596_v39 = vld [vmem:[%s17449_s6 + $0x364] ss:$8 sps:$4 sm:$0xff]  }
 0x826   :  { %9386 = vmatpush1.bf16.msra.mxu1 %v12542_v12  ;;  %v12594_v12 = vld [vmem:[%s17449_s6 + $0x360] ss:$8 sps:$4 sm:$0xff]  }
 0x827   :  { %9387 = vmatprep.subr.bf16.mxu1 %v12547_v44  ;;  %v12599_v44 = vld [vmem:[%s17449_s6 + $0x374] ss:$8 sps:$4 sm:$0xff]  }
 0x82a   :  { %9388 = vmatpush1.bf16.msra.mxu1 %v12545_v46  ;;  %v12597_v46 = vld [vmem:[%s17449_s6 + $0x370] ss:$8 sps:$4 sm:$0xff]  }
 0x82b   :  { %9389 = vmatprep.subr.bf16.mxu1 %v12550_v40  ;;  %v12602_v40 = vld [vmem:[%s17449_s6 + $0x384] ss:$8 sps:$4 sm:$0xff]  }
 0x82e   :  { %9390 = vmatpush1.bf16.msra.mxu1 %v12548_v45  ;;  %v12600_v45 = vld [vmem:[%s17449_s6 + $0x380] ss:$8 sps:$4 sm:$0xff]  }
 0x82f   :  { %9391 = vmatprep.subr.bf16.mxu1 %v12553_v47  ;;  %v12605_v47 = vld [vmem:[%s17449_s6 + $0x394] ss:$8 sps:$4 sm:$0xff]  }
 0x832   :  { %9392 = vmatpush1.bf16.msra.mxu1 %v12551_v49  ;;  %v12603_v49 = vld [vmem:[%s17449_s6 + $0x390] ss:$8 sps:$4 sm:$0xff]  }
 0x833   :  { %9393 = vmatprep.subr.bf16.mxu1 %v12556_v58  ;;  %v12608_v58 = vld [vmem:[%s17449_s6 + $0x3a4] ss:$8 sps:$4 sm:$0xff]  }
 0x836   :  { %9394 = vmatpush1.bf16.msra.mxu1 %v12554_v60  ;;  %v12606_v60 = vld [vmem:[%s17449_s6 + $0x3a0] ss:$8 sps:$4 sm:$0xff]  }
 0x837   :  { %9395 = vmatprep.subr.bf16.mxu1 %v12559_v59  ;;  %v12609_v59 = vld [vmem:[%s17449_s6 + $0x3b0] ss:$8 sps:$4 sm:$0xff]  }
 0x83a   :  { %9396 = vmatpush1.bf16.msra.mxu1 %v12557_v36  ;;  %v12612_v36 = vld [vmem:[%s17449_s6 + $0x3c0] ss:$8 sps:$4 sm:$0xff]  }
 0x83b   :  { %9397 = vmatprep.subr.bf16.mxu1 %v12562_v53  ;;  %v12615_v53 = vld [vmem:[%s17449_s6 + $0x3d0] ss:$8 sps:$4 sm:$0xff]  }
 0x83e   :  { %9398 = vmatpush1.bf16.msra.mxu1 %v12560_v62  ;;  %v16162_v62 = vrot.slane %v16152_v56, %v15815_v27 }
 0x83f   :  { %9399 = vmatprep.subr.bf16.mxu1 %v12565_v63  ;;  %v12621_v63 = vld [vmem:[%s17449_s6 + $0x3f0] ss:$8 sps:$4 sm:$0xff]  }
 0x842   :  { %9400 = vmatpush1.bf16.msra.mxu1 %v12563_v32  ;;  %v12626_v32 = vld [vmem:[%s17449_s6 + $0x404] ss:$8 sps:$4 sm:$0xff]  }
 0x843   :  { %9401 = vmatprep.subr.bf16.mxu1 %v12568_v0  ;;  %v6058_v0 = vcombine.high %v16162_v62, %v16162_v62 }
 0x845   :  { %v6186_v34 = vpack.c.bf16 %v6058_v0, %v6058_v0  ;;  %v12705_v0 = vld [vmem:[%s17449_s6 + $0x5b0] ss:$8 sps:$4 sm:$0xff]  }
 0x846   :  { %9402 = vmatpush1.bf16.msra.mxu1 %v12566_v1  ;;  %v12624_v1 = vld [vmem:[%s17449_s6 + $0x400] ss:$8 sps:$4 sm:$0xff]  }
 0x847   :  { %9403 = vmatprep.subr.bf16.mxu1 %v12571_v2  ;;  %v6183_v2 = vpack.c.bf16 %v16055_v19, %v16055_v19  ;;  %v12656_v19 = vld [vmem:[%s17449_s6 + $0x4a4] ss:$8 sps:$4 sm:$0xff]  }
 0x84a   :  { %9404 = vmatpush1.bf16.msra.mxu1 %v12569_v5  ;;  %v12633_v5 = vld [vmem:[%s17449_s6 + $0x430] ss:$8 sps:$4 sm:$0xff]  }
 0x84b   :  { %9405 = vmatprep.subr.bf16.mxu1 %v12574_v8  ;;  %v12653_v8 = vld [vmem:[%s17449_s6 + $0x494] ss:$8 sps:$4 sm:$0xff]  }
 0x84e   :  { %9406 = vmatpush1.bf16.msra.mxu1 %v12572_v20  ;;  %v12654_v20 = vld [vmem:[%s17449_s6 + $0x4a0] ss:$8 sps:$4 sm:$0xff]  }
 0x84f   :  { %9416 = vmatprep.subr.bf16.mxu1 %v12577_v22  ;;  %v12659_v22 = vld [vmem:[%s17449_s6 + $0x4b4] ss:$8 sps:$4 sm:$0xff]  }
 0x851   :  { %9408 = vmatmul.mubr.bf16.vlgmr.msra.gmra.mrb[24].mxu1 %v6181_v25  ;;  %v12660_v25 = vld [vmem:[%s17449_s6 + $0x4c0] ss:$8 sps:$4 sm:$0xff]  }
 0x852   :  { %9417 = vmatpush1.bf16.msra.mxu1 %v12575_v24  ;;  %9448 = vmatprep.mubr.bf16.mxu1 %v6184_v28  ;;  %v12662_v24 = vld [vmem:[%s17449_s6 + $0x4c4] ss:$8 sps:$4 sm:$0xff]   ;;  %v12663_v28 = vld [vmem:[%s17449_s6 + $0x4d0] ss:$8 sps:$4 sm:$0xff]  }
 0x853   :  { %9418 = vmatprep.subr.bf16.mxu1 %v12581_v26  ;;  %v12665_v26 = vld [vmem:[%s17449_s6 + $0x4d4] ss:$8 sps:$4 sm:$0xff]  }
 0x856   :  { %9419 = vmatpush1.bf16.msra.mxu1 %v12579_v3  ;;  %v12668_v3 = vld [vmem:[%s17449_s6 + $0x4e4] ss:$8 sps:$4 sm:$0xff]  }
 0x857   :  { %9420 = vmatprep.subr.bf16.mxu1 %v12584_v29  ;;  %v6043_v29 = vcombine.high %v16152_v56, %v16152_v56  ;;  %v12696_v56 = vld [vmem:[%s17449_s6 + $0x580] ss:$8 sps:$4 sm:$0xff]  }
 0x85a   :  { %9421 = vmatpush1.bf16.msra.mxu1 %v12582_v21  ;;  %v12666_v21 = vld [vmem:[%s17449_s6 + $0x4e0] ss:$8 sps:$4 sm:$0xff]  }
 0x85b   :  { %9422 = vmatprep.subr.bf16.mxu1 %v12587_v30  ;;  %v12671_v30 = vld [vmem:[%s17449_s6 + $0x4f4] ss:$8 sps:$4 sm:$0xff]  }
 0x85e   :  { %9423 = vmatpush1.bf16.msra.mxu1 %v12585_v31  ;;  %v16267_v31 = vrot.slane %v6043_v29, %v15815_v27  ;;  %v12744_v29 = vld [vmem:[%s17449_s6 + $0x680] ss:$8 sps:$4 sm:$0xff]  }
 0x85f   :  { %9424 = vmatprep.subr.bf16.mxu1 %v12590_v61  ;;  %v12669_v61 = vld [vmem:[%s17449_s6 + $0x4f0] ss:$8 sps:$4 sm:$0xff]  }
 0x862   :  { %9425 = vmatpush1.bf16.msra.mxu1 %v12588_v35  ;;  %v12674_v35 = vld [vmem:[%s17449_s6 + $0x504] ss:$8 sps:$4 sm:$0xff]  }
 0x863   :  { %9426 = vmatprep.subr.bf16.mxu1 %v12593_v37  ;;  %v6059_v37 = vcombine.high %v16267_v31, %v16267_v31 }
 0x866   :  { %9427 = vmatpush1.bf16.msra.mxu1 %v12591_v38  ;;  %v12672_v38 = vld [vmem:[%s17449_s6 + $0x500] ss:$8 sps:$4 sm:$0xff]  }
 0x867   :  { %9428 = vmatprep.subr.bf16.mxu1 %v12596_v39  ;;  %v6185_v39 = vpack.c.bf16 %v16162_v62, %v16162_v62  ;;  %v12704_v62 = vld [vmem:[%s17449_s6 + $0x5a4] ss:$8 sps:$4 sm:$0xff]  }
 0x86a   :  { %9429 = vmatpush1.bf16.msra.mxu1 %v12594_v12  ;;  %v12677_v12 = vld [vmem:[%s17449_s6 + $0x514] ss:$8 sps:$4 sm:$0xff]  }
 0x86b   :  { %9430 = vmatprep.subr.bf16.mxu1 %v12599_v44  ;;  %v6188_v44 = vpack.c.bf16 %v6059_v37, %v6059_v37  ;;  %v12753_v37 = vld [vmem:[%s17449_s6 + $0x6b0] ss:$8 sps:$4 sm:$0xff]  }
 0x86e   :  { %9431 = vmatpush1.bf16.msra.mxu1 %v12597_v46  ;;  %v12675_v46 = vld [vmem:[%s17449_s6 + $0x510] ss:$8 sps:$4 sm:$0xff]  }
 0x86f   :  { %9432 = vmatprep.subr.bf16.mxu1 %v12602_v40  ;;  %v12680_v40 = vld [vmem:[%s17449_s6 + $0x524] ss:$8 sps:$4 sm:$0xff]  }
 0x872   :  { %9433 = vmatpush1.bf16.msra.mxu1 %v12600_v45  ;;  %v12678_v45 = vld [vmem:[%s17449_s6 + $0x520] ss:$8 sps:$4 sm:$0xff]  }
 0x873   :  { %9434 = vmatprep.subr.bf16.mxu1 %v12605_v47  ;;  %v12683_v47 = vld [vmem:[%s17449_s6 + $0x534] ss:$8 sps:$4 sm:$0xff]  }
 0x876   :  { %9435 = vmatpush1.bf16.msra.mxu1 %v12603_v49  ;;  %v12681_v49 = vld [vmem:[%s17449_s6 + $0x530] ss:$8 sps:$4 sm:$0xff]  }
 0x877   :  { %9436 = vmatprep.subr.bf16.mxu1 %v12608_v58  ;;  %v12686_v58 = vld [vmem:[%s17449_s6 + $0x544] ss:$8 sps:$4 sm:$0xff]  }
 0x87a   :  { %9437 = vmatpush1.bf16.msra.mxu1 %v12606_v60  ;;  %v12684_v60 = vld [vmem:[%s17449_s6 + $0x540] ss:$8 sps:$4 sm:$0xff]  }
 0x87b   :  { %9438 = vmatprep.subr.bf16.mxu1 %v12611_v51  ;;  %v12689_v51 = vld [vmem:[%s17449_s6 + $0x554] ss:$8 sps:$4 sm:$0xff]  }
 0x87e   :  { %9439 = vmatpush1.bf16.msra.mxu1 %v12609_v59  ;;  %v12687_v59 = vld [vmem:[%s17449_s6 + $0x550] ss:$8 sps:$4 sm:$0xff]  }
 0x87f   :  { %9440 = vmatprep.subr.bf16.mxu1 %v12614_v50  ;;  %v12692_v50 = vld [vmem:[%s17449_s6 + $0x564] ss:$8 sps:$4 sm:$0xff]  }
 0x882   :  { %9441 = vmatpush1.bf16.msra.mxu1 %v12612_v36  ;;  %v12690_v36 = vld [vmem:[%s17449_s6 + $0x560] ss:$8 sps:$4 sm:$0xff]  }
 0x883   :  { %9442 = vmatprep.subr.bf16.mxu1 %v12617_v52  ;;  %v12695_v52 = vld [vmem:[%s17449_s6 + $0x574] ss:$8 sps:$4 sm:$0xff]  }
 0x886   :  { %9443 = vmatpush1.bf16.msra.mxu1 %v12615_v53  ;;  %v12693_v53 = vld [vmem:[%s17449_s6 + $0x570] ss:$8 sps:$4 sm:$0xff]  }
 0x887   :  { %9444 = vmatprep.subr.bf16.mxu1 %v12620_v55  ;;  %v12698_v55 = vld [vmem:[%s17449_s6 + $0x584] ss:$8 sps:$4 sm:$0xff]  }
 0x88a   :  { %9445 = vmatpush1.bf16.msra.mxu1 %v12618_v57  ;;  %v12701_v57 = vld [vmem:[%s17449_s6 + $0x594] ss:$8 sps:$4 sm:$0xff]  }
 0x88b   :  { %9446 = vmatprep.subr.bf16.mxu1 %v12623_v10  ;;  %v12699_v10 = vld [vmem:[%s17449_s6 + $0x590] ss:$8 sps:$4 sm:$0xff]  }
 0x88e   :  { %9447 = vmatpush1.bf16.msra.mxu1 %v12621_v63  ;;  %v12702_v63 = vld [vmem:[%s17449_s6 + $0x5a0] ss:$8 sps:$4 sm:$0xff]  }
 0x88f   :  { %9457 = vmatprep.subr.bf16.mxu1 %v12626_v32  ;;  %v12707_v32 = vld [vmem:[%s17449_s6 + $0x5b4] ss:$8 sps:$4 sm:$0xff]  }
 0x891   :  { %9449 = vmatmul.mubr.bf16.vlgmr.msra.gmra.mrb[24].mxu1 %v6183_v2  ;;  %v12708_v2 = vld [vmem:[%s17449_s6 + $0x5c0] ss:$8 sps:$4 sm:$0xff]  }
 0x892   :  { %9458 = vmatpush1.bf16.msra.mxu1 %v12624_v1  ;;  %9489 = vmatprep.mubr.bf16.mxu1 %v6186_v34  ;;  %v12710_v1 = vld [vmem:[%s17449_s6 + $0x5c4] ss:$8 sps:$4 sm:$0xff]   ;;  %v12711_v34 = vld [vmem:[%s17449_s6 + $0x5d0] ss:$8 sps:$4 sm:$0xff]  }
 0x893   :  { %9459 = vmatprep.subr.bf16.mxu1 %v12629_v33  ;;  %v12713_v33 = vld [vmem:[%s17449_s6 + $0x5d4] ss:$8 sps:$4 sm:$0xff]  }
 0x896   :  { %9460 = vmatpush1.bf16.msra.mxu1 %v12627_v6  ;;  %v12716_v6 = vld [vmem:[%s17449_s6 + $0x5e4] ss:$8 sps:$4 sm:$0xff]  }
 0x897   :  { %9461 = vmatprep.subr.bf16.mxu1 %v12632_v7  ;;  %v16363_v7 = vld [vmem:[#allocation4 + $0x18] sm:$0xff] }
 0x89a   :  { %9462 = vmatpush1.bf16.msra.mxu1 %v12630_v41  ;;  %v12714_v41 = vld [vmem:[%s17449_s6 + $0x5e0] ss:$8 sps:$4 sm:$0xff]  }
 0x89b   :  { %9463 = vmatprep.subr.bf16.mxu1 %v12635_v43  ;;  %v12719_v43 = vld [vmem:[%s17449_s6 + $0x5f4] ss:$8 sps:$4 sm:$0xff]  }
 0x89e   :  { %9464 = vmatpush1.bf16.msra.mxu1 %v12633_v5  ;;  %v16373_v5 = vrot.slane %v16363_v7, %v15815_v27 }
 0x89f   :  { %9465 = vmatprep.subr.bf16.mxu1 %v12638_v48  ;;  %v12717_v48 = vld [vmem:[%s17449_s6 + $0x5f0] ss:$8 sps:$4 sm:$0xff]  }
 0x8a2   :  { %9466 = vmatpush1.bf16.msra.mxu1 %v12636_v11  ;;  %v12722_v11 = vld [vmem:[%s17449_s6 + $0x604] ss:$8 sps:$4 sm:$0xff]  }
 0x8a3   :  { %9467 = vmatprep.subr.bf16.mxu1 %v12641_v13  ;;  %v6075_v13 = vcombine.high %v16373_v5, %v16373_v5 }
 0x8a6   :  { %9468 = vmatpush1.bf16.msra.mxu1 %v12639_v14  ;;  %v12720_v14 = vld [vmem:[%s17449_s6 + $0x600] ss:$8 sps:$4 sm:$0xff]  }
 0x8a7   :  { %9469 = vmatprep.subr.bf16.mxu1 %v12644_v15  ;;  %v6187_v15 = vpack.c.bf16 %v16267_v31, %v16267_v31  ;;  %v12752_v31 = vld [vmem:[%s17449_s6 + $0x6a4] ss:$8 sps:$4 sm:$0xff]  }
 0x8aa   :  { %9470 = vmatpush1.bf16.msra.mxu1 %v12642_v4  ;;  %v12725_v4 = vld [vmem:[%s17449_s6 + $0x614] ss:$8 sps:$4 sm:$0xff]  }
 0x8ab   :  { %9471 = vmatprep.subr.bf16.mxu1 %v12647_v16  ;;  %v6190_v16 = vpack.c.bf16 %v6075_v13, %v6075_v13  ;;  %v12802_v13 = vld [vmem:[%s17449_s6 + $0x7b0] ss:$8 sps:$4 sm:$0xff]  }
 0x8ae   :  { %9472 = vmatpush1.bf16.msra.mxu1 %v12645_v9  ;;  %v12723_v9 = vld [vmem:[%s17449_s6 + $0x610] ss:$8 sps:$4 sm:$0xff]  }
 0x8af   :  { %9473 = vmatprep.subr.bf16.mxu1 %v12650_v17  ;;  %v12728_v17 = vld [vmem:[%s17449_s6 + $0x624] ss:$8 sps:$4 sm:$0xff]  }
 0x8b2   :  { %9474 = vmatpush1.bf16.msra.mxu1 %v12648_v18  ;;  %v12726_v18 = vld [vmem:[%s17449_s6 + $0x620] ss:$8 sps:$4 sm:$0xff]  }
 0x8b3   :  { %9475 = vmatprep.subr.bf16.mxu1 %v12653_v8  ;;  %v12731_v8 = vld [vmem:[%s17449_s6 + $0x634] ss:$8 sps:$4 sm:$0xff]  }
 0x8b6   :  { %9476 = vmatpush1.bf16.msra.mxu1 %v12651_v42  ;;  %v12729_v42 = vld [vmem:[%s17449_s6 + $0x630] ss:$8 sps:$4 sm:$0xff]  }
 0x8b7   :  { %9477 = vmatprep.subr.bf16.mxu1 %v12656_v19  ;;  %v12734_v19 = vld [vmem:[%s17449_s6 + $0x644] ss:$8 sps:$4 sm:$0xff]  }
 0x8ba   :  { %9478 = vmatpush1.bf16.msra.mxu1 %v12654_v20  ;;  %v12732_v20 = vld [vmem:[%s17449_s6 + $0x640] ss:$8 sps:$4 sm:$0xff]  }
 0x8bb   :  { %9479 = vmatprep.subr.bf16.mxu1 %v12659_v22  ;;  %v12737_v22 = vld [vmem:[%s17449_s6 + $0x654] ss:$8 sps:$4 sm:$0xff]  }
 0x8be   :  { %9480 = vmatpush1.bf16.msra.mxu1 %v12657_v23  ;;  %v12735_v23 = vld [vmem:[%s17449_s6 + $0x650] ss:$8 sps:$4 sm:$0xff]  }
 0x8bf   :  { %9481 = vmatprep.subr.bf16.mxu1 %v12662_v24  ;;  %v12740_v24 = vld [vmem:[%s17449_s6 + $0x664] ss:$8 sps:$4 sm:$0xff]  }
 0x8c2   :  { %9482 = vmatpush1.bf16.msra.mxu1 %v12660_v25  ;;  %v12738_v25 = vld [vmem:[%s17449_s6 + $0x660] ss:$8 sps:$4 sm:$0xff]  }
 0x8c3   :  { %9483 = vmatprep.subr.bf16.mxu1 %v12665_v26  ;;  %v12743_v26 = vld [vmem:[%s17449_s6 + $0x674] ss:$8 sps:$4 sm:$0xff]  }
 0x8c6   :  { %9484 = vmatpush1.bf16.msra.mxu1 %v12663_v28  ;;  %v12741_v28 = vld [vmem:[%s17449_s6 + $0x670] ss:$8 sps:$4 sm:$0xff]  }
 0x8c7   :  { %9485 = vmatprep.subr.bf16.mxu1 %v12668_v3  ;;  %v12746_v3 = vld [vmem:[%s17449_s6 + $0x684] ss:$8 sps:$4 sm:$0xff]  }
 0x8ca   :  { %9486 = vmatpush1.bf16.msra.mxu1 %v12666_v21  ;;  %v12749_v21 = vld [vmem:[%s17449_s6 + $0x694] ss:$8 sps:$4 sm:$0xff]  }
 0x8cb   :  { %9487 = vmatprep.subr.bf16.mxu1 %v12671_v30  ;;  %v12747_v30 = vld [vmem:[%s17449_s6 + $0x690] ss:$8 sps:$4 sm:$0xff]  }
 0x8ce   :  { %9488 = vmatpush1.bf16.msra.mxu1 %v12669_v61  ;;  %v12750_v61 = vld [vmem:[%s17449_s6 + $0x6a0] ss:$8 sps:$4 sm:$0xff]  }
 0x8cf   :  { %9498 = vmatprep.subr.bf16.mxu1 %v12674_v35  ;;  %v12755_v35 = vld [vmem:[%s17449_s6 + $0x6b4] ss:$8 sps:$4 sm:$0xff]  }
 0x8d1   :  { %9490 = vmatmul.mubr.bf16.vlgmr.msra.gmra.mrb[24].mxu1 %v6185_v39  ;;  %v12756_v39 = vld [vmem:[%s17449_s6 + $0x6c0] ss:$8 sps:$4 sm:$0xff]  }
 0x8d2   :  { %9499 = vmatpush1.bf16.msra.mxu1 %v12672_v38  ;;  %9530 = vmatprep.mubr.bf16.mxu1 %v6188_v44  ;;  %v12758_v38 = vld [vmem:[%s17449_s6 + $0x6c4] ss:$8 sps:$4 sm:$0xff]   ;;  %v12759_v44 = vld [vmem:[%s17449_s6 + $0x6d0] ss:$8 sps:$4 sm:$0xff]  }
 0x8d3   :  { %9500 = vmatprep.subr.bf16.mxu1 %v12677_v12  ;;  %v12761_v12 = vld [vmem:[%s17449_s6 + $0x6d4] ss:$8 sps:$4 sm:$0xff]  }
 0x8d6   :  { %9501 = vmatpush1.bf16.msra.mxu1 %v12675_v46  ;;  %v12764_v46 = vld [vmem:[%s17449_s6 + $0x6e4] ss:$8 sps:$4 sm:$0xff]  }
 0x8d7   :  { %9502 = vmatprep.subr.bf16.mxu1 %v12680_v40  ;;  %v6060_v40 = vcombine.high %v16363_v7, %v16363_v7  ;;  %v12793_v7 = vld [vmem:[%s17449_s6 + $0x780] ss:$8 sps:$4 sm:$0xff]  }
 0x8da   :  { %9503 = vmatpush1.bf16.msra.mxu1 %v12678_v45  ;;  %v12762_v45 = vld [vmem:[%s17449_s6 + $0x6e0] ss:$8 sps:$4 sm:$0xff]  }
 0x8db   :  { %9504 = vmatprep.subr.bf16.mxu1 %v12683_v47  ;;  %v12767_v47 = vld [vmem:[%s17449_s6 + $0x6f4] ss:$8 sps:$4 sm:$0xff]  }
 0x8de   :  { %9505 = vmatpush1.bf16.msra.mxu1 %v12681_v49  ;;  %v16478_v49 = vrot.slane %v6060_v40, %v15815_v27  ;;  %v12841_v40 = vld [vmem:[%s17449_s6 + $0x880] ss:$8 sps:$4 sm:$0xff]  }
 0x8df   :  { %9506 = vmatprep.subr.bf16.mxu1 %v12686_v58  ;;  %v12765_v58 = vld [vmem:[%s17449_s6 + $0x6f0] ss:$8 sps:$4 sm:$0xff]  }
 0x8e2   :  { %9507 = vmatpush1.bf16.msra.mxu1 %v12684_v60  ;;  %v12770_v60 = vld [vmem:[%s17449_s6 + $0x704] ss:$8 sps:$4 sm:$0xff]  }
 0x8e3   :  { %9508 = vmatprep.subr.bf16.mxu1 %v12689_v51  ;;  %v6076_v51 = vcombine.high %v16478_v49, %v16478_v49 }
 0x8e6   :  { %9509 = vmatpush1.bf16.msra.mxu1 %v12687_v59  ;;  %v12768_v59 = vld [vmem:[%s17449_s6 + $0x700] ss:$8 sps:$4 sm:$0xff]  }
 0x8e7   :  { %9510 = vmatprep.subr.bf16.mxu1 %v12692_v50  ;;  %v6189_v50 = vpack.c.bf16 %v16373_v5, %v16373_v5  ;;  %v12801_v5 = vld [vmem:[%s17449_s6 + $0x7a4] ss:$8 sps:$4 sm:$0xff]  }
 0x8ea   :  { %9511 = vmatpush1.bf16.msra.mxu1 %v12690_v36  ;;  %v12774_v36 = vld [vmem:[%s17449_s6 + $0x714] ss:$8 sps:$4 sm:$0xff]  }
 0x8eb   :  { %9512 = vmatprep.subr.bf16.mxu1 %v12695_v52  ;;  %v6192_v52 = vpack.c.bf16 %v6076_v51, %v6076_v51  ;;  %v12850_v51 = vld [vmem:[%s17449_s6 + $0x8b0] ss:$8 sps:$4 sm:$0xff]  }
 0x8ee   :  { %9513 = vmatpush1.bf16.msra.mxu1 %v12693_v53  ;;  %v12772_v53 = vld [vmem:[%s17449_s6 + $0x710] ss:$8 sps:$4 sm:$0xff]  }
 0x8ef   :  { %9514 = vmatprep.subr.bf16.mxu1 %v12698_v55  ;;  %v12777_v55 = vld [vmem:[%s17449_s6 + $0x724] ss:$8 sps:$4 sm:$0xff]  }
 0x8f2   :  { %9515 = vmatpush1.bf16.msra.mxu1 %v12696_v56  ;;  %v12775_v56 = vld [vmem:[%s17449_s6 + $0x720] ss:$8 sps:$4 sm:$0xff]  }
 0x8f3   :  { %9516 = vmatprep.subr.bf16.mxu1 %v12701_v57  ;;  %v12780_v57 = vld [vmem:[%s17449_s6 + $0x734] ss:$8 sps:$4 sm:$0xff]  }
 0x8f6   :  { %9517 = vmatpush1.bf16.msra.mxu1 %v12699_v10  ;;  %v12778_v10 = vld [vmem:[%s17449_s6 + $0x730] ss:$8 sps:$4 sm:$0xff]  }
 0x8f7   :  { %9518 = vmatprep.subr.bf16.mxu1 %v12704_v62  ;;  %v12783_v62 = vld [vmem:[%s17449_s6 + $0x744] ss:$8 sps:$4 sm:$0xff]  }
 0x8fa   :  { %9519 = vmatpush1.bf16.msra.mxu1 %v12702_v63  ;;  %v12781_v63 = vld [vmem:[%s17449_s6 + $0x740] ss:$8 sps:$4 sm:$0xff]  }
 0x8fb   :  { %9520 = vmatprep.subr.bf16.mxu1 %v12707_v32  ;;  %v12786_v32 = vld [vmem:[%s17449_s6 + $0x754] ss:$8 sps:$4 sm:$0xff]  }
 0x8fe   :  { %9521 = vmatpush1.bf16.msra.mxu1 %v12705_v0  ;;  %v12784_v0 = vld [vmem:[%s17449_s6 + $0x750] ss:$8 sps:$4 sm:$0xff]  }
 0x8ff   :  { %9522 = vmatprep.subr.bf16.mxu1 %v12710_v1  ;;  %v12789_v1 = vld [vmem:[%s17449_s6 + $0x764] ss:$8 sps:$4 sm:$0xff]  }
 0x902   :  { %9523 = vmatpush1.bf16.msra.mxu1 %v12708_v2  ;;  %v12787_v2 = vld [vmem:[%s17449_s6 + $0x760] ss:$8 sps:$4 sm:$0xff]  }
 0x903   :  { %9524 = vmatprep.subr.bf16.mxu1 %v12713_v33  ;;  %v12792_v33 = vld [vmem:[%s17449_s6 + $0x774] ss:$8 sps:$4 sm:$0xff]  }
 0x906   :  { %9525 = vmatpush1.bf16.msra.mxu1 %v12711_v34  ;;  %v12790_v34 = vld [vmem:[%s17449_s6 + $0x770] ss:$8 sps:$4 sm:$0xff]  }
 0x907   :  { %9526 = vmatprep.subr.bf16.mxu1 %v12716_v6  ;;  %v12795_v6 = vld [vmem:[%s17449_s6 + $0x784] ss:$8 sps:$4 sm:$0xff]  }
 0x90a   :  { %9527 = vmatpush1.bf16.msra.mxu1 %v12714_v41  ;;  %v12798_v41 = vld [vmem:[%s17449_s6 + $0x794] ss:$8 sps:$4 sm:$0xff]  }
 0x90b   :  { %9528 = vmatprep.subr.bf16.mxu1 %v12719_v43  ;;  %v12796_v43 = vld [vmem:[%s17449_s6 + $0x790] ss:$8 sps:$4 sm:$0xff]  }
 0x90e   :  { %9529 = vmatpush1.bf16.msra.mxu1 %v12717_v48  ;;  %v12799_v48 = vld [vmem:[%s17449_s6 + $0x7a0] ss:$8 sps:$4 sm:$0xff]  }
 0x90f   :  { %9539 = vmatprep.subr.bf16.mxu1 %v12722_v11  ;;  %v12804_v11 = vld [vmem:[%s17449_s6 + $0x7b4] ss:$8 sps:$4 sm:$0xff]  }
 0x911   :  { %9531 = vmatmul.mubr.bf16.vlgmr.msra.gmra.mrb[24].mxu1 %v6187_v15  ;;  %v12805_v15 = vld [vmem:[%s17449_s6 + $0x7c0] ss:$8 sps:$4 sm:$0xff]  }
 0x912   :  { %9540 = vmatpush1.bf16.msra.mxu1 %v12720_v14  ;;  %9571 = vmatprep.mubr.bf16.mxu1 %v6190_v16  ;;  %v12807_v14 = vld [vmem:[%s17449_s6 + $0x7c4] ss:$8 sps:$4 sm:$0xff]   ;;  %v12808_v16 = vld [vmem:[%s17449_s6 + $0x7d0] ss:$8 sps:$4 sm:$0xff]  }
 0x913   :  { %9541 = vmatprep.subr.bf16.mxu1 %v12725_v4  ;;  %v12810_v4 = vld [vmem:[%s17449_s6 + $0x7d4] ss:$8 sps:$4 sm:$0xff]  }
 0x916   :  { %9542 = vmatpush1.bf16.msra.mxu1 %v12723_v9  ;;  %v12813_v9 = vld [vmem:[%s17449_s6 + $0x7e4] ss:$8 sps:$4 sm:$0xff]  }
 0x917   :  { %9543 = vmatprep.subr.bf16.mxu1 %v12728_v17  ;;  %v16574_v17 = vld [vmem:[#allocation4 + $0x20] sm:$0xff] }
 0x91a   :  { %9544 = vmatpush1.bf16.msra.mxu1 %v12726_v18  ;;  %v12811_v18 = vld [vmem:[%s17449_s6 + $0x7e0] ss:$8 sps:$4 sm:$0xff]  }
 0x91b   :  { %9545 = vmatprep.subr.bf16.mxu1 %v12731_v8  ;;  %v12816_v8 = vld [vmem:[%s17449_s6 + $0x7f4] ss:$8 sps:$4 sm:$0xff]  }
 0x91e   :  { %9546 = vmatpush1.bf16.msra.mxu1 %v12729_v42  ;;  %v16584_v42 = vrot.slane %v16574_v17, %v15815_v27 }
 0x91f   :  { %9547 = vmatprep.subr.bf16.mxu1 %v12734_v19  ;;  %v12814_v19 = vld [vmem:[%s17449_s6 + $0x7f0] ss:$8 sps:$4 sm:$0xff]  }
 0x922   :  { %9548 = vmatpush1.bf16.msra.mxu1 %v12732_v20  ;;  %v12819_v20 = vld [vmem:[%s17449_s6 + $0x804] ss:$8 sps:$4 sm:$0xff]  }
 0x923   :  { %9549 = vmatprep.subr.bf16.mxu1 %v12737_v22  ;;  %v6092_v22 = vcombine.high %v16584_v42, %v16584_v42 }
 0x926   :  { %9550 = vmatpush1.bf16.msra.mxu1 %v12735_v23  ;;  %v12817_v23 = vld [vmem:[%s17449_s6 + $0x800] ss:$8 sps:$4 sm:$0xff]  }
 0x927   :  { %9551 = vmatprep.subr.bf16.mxu1 %v12740_v24  ;;  %v6191_v24 = vpack.c.bf16 %v16478_v49, %v16478_v49  ;;  %v12849_v49 = vld [vmem:[%s17449_s6 + $0x8a4] ss:$8 sps:$4 sm:$0xff]  }
 0x92a   :  { %9552 = vmatpush1.bf16.msra.mxu1 %v12738_v25  ;;  %v12822_v25 = vld [vmem:[%s17449_s6 + $0x814] ss:$8 sps:$4 sm:$0xff]  }
 0x92b   :  { %9553 = vmatprep.subr.bf16.mxu1 %v12743_v26  ;;  %v6194_v26 = vpack.c.bf16 %v6092_v22, %v6092_v22  ;;  %v12899_v22 = vld [vmem:[%s17449_s6 + $0x9b0] ss:$8 sps:$4 sm:$0xff]  }
 0x92e   :  { %9554 = vmatpush1.bf16.msra.mxu1 %v12741_v28  ;;  %v12820_v28 = vld [vmem:[%s17449_s6 + $0x810] ss:$8 sps:$4 sm:$0xff]  }
 0x92f   :  { %9555 = vmatprep.subr.bf16.mxu1 %v12746_v3  ;;  %v12825_v3 = vld [vmem:[%s17449_s6 + $0x824] ss:$8 sps:$4 sm:$0xff]  }
 0x932   :  { %9556 = vmatpush1.bf16.msra.mxu1 %v12744_v29  ;;  %v12823_v29 = vld [vmem:[%s17449_s6 + $0x820] ss:$8 sps:$4 sm:$0xff]  }
 0x933   :  { %9557 = vmatprep.subr.bf16.mxu1 %v12749_v21  ;;  %v12828_v21 = vld [vmem:[%s17449_s6 + $0x834] ss:$8 sps:$4 sm:$0xff]  }
 0x936   :  { %9558 = vmatpush1.bf16.msra.mxu1 %v12747_v30  ;;  %v12826_v30 = vld [vmem:[%s17449_s6 + $0x830] ss:$8 sps:$4 sm:$0xff]  }
 0x937   :  { %9559 = vmatprep.subr.bf16.mxu1 %v12752_v31  ;;  %v12831_v31 = vld [vmem:[%s17449_s6 + $0x844] ss:$8 sps:$4 sm:$0xff]  }
 0x93a   :  { %9560 = vmatpush1.bf16.msra.mxu1 %v12750_v61  ;;  %v12829_v61 = vld [vmem:[%s17449_s6 + $0x840] ss:$8 sps:$4 sm:$0xff]  }
 0x93b   :  { %9561 = vmatprep.subr.bf16.mxu1 %v12755_v35  ;;  %v12834_v35 = vld [vmem:[%s17449_s6 + $0x854] ss:$8 sps:$4 sm:$0xff]  }
 0x93e   :  { %9562 = vmatpush1.bf16.msra.mxu1 %v12753_v37  ;;  %v12832_v37 = vld [vmem:[%s17449_s6 + $0x850] ss:$8 sps:$4 sm:$0xff]  }
 0x93f   :  { %9563 = vmatprep.subr.bf16.mxu1 %v12758_v38  ;;  %v12837_v38 = vld [vmem:[%s17449_s6 + $0x864] ss:$8 sps:$4 sm:$0xff]  }
 0x942   :  { %9564 = vmatpush1.bf16.msra.mxu1 %v12756_v39  ;;  %v12835_v39 = vld [vmem:[%s17449_s6 + $0x860] ss:$8 sps:$4 sm:$0xff]  }
 0x943   :  { %9565 = vmatprep.subr.bf16.mxu1 %v12761_v12  ;;  %v12840_v12 = vld [vmem:[%s17449_s6 + $0x874] ss:$8 sps:$4 sm:$0xff]  }
 0x946   :  { %9566 = vmatpush1.bf16.msra.mxu1 %v12759_v44  ;;  %v12838_v44 = vld [vmem:[%s17449_s6 + $0x870] ss:$8 sps:$4 sm:$0xff]  }
 0x947   :  { %9567 = vmatprep.subr.bf16.mxu1 %v12764_v46  ;;  %v12843_v46 = vld [vmem:[%s17449_s6 + $0x884] ss:$8 sps:$4 sm:$0xff]  }
 0x94a   :  { %9568 = vmatpush1.bf16.msra.mxu1 %v12762_v45  ;;  %v12846_v45 = vld [vmem:[%s17449_s6 + $0x894] ss:$8 sps:$4 sm:$0xff]  }
 0x94b   :  { %9569 = vmatprep.subr.bf16.mxu1 %v12767_v47  ;;  %v12844_v47 = vld [vmem:[%s17449_s6 + $0x890] ss:$8 sps:$4 sm:$0xff]  }
 0x94e   :  { %9570 = vmatpush1.bf16.msra.mxu1 %v12765_v58  ;;  %v12847_v58 = vld [vmem:[%s17449_s6 + $0x8a0] ss:$8 sps:$4 sm:$0xff]  }
 0x94f   :  { %9580 = vmatprep.subr.bf16.mxu1 %v12770_v60  ;;  %v12852_v60 = vld [vmem:[%s17449_s6 + $0x8b4] ss:$8 sps:$4 sm:$0xff]  }
 0x951   :  { %9572 = vmatmul.mubr.bf16.vlgmr.msra.gmra.mrb[24].mxu1 %v6189_v50  ;;  %v12853_v50 = vld [vmem:[%s17449_s6 + $0x8c0] ss:$8 sps:$4 sm:$0xff]  }
 0x952   :  { %9581 = vmatpush1.bf16.msra.mxu1 %v12768_v59  ;;  %9612 = vmatprep.mubr.bf16.mxu1 %v6192_v52  ;;  %v12855_v59 = vld [vmem:[%s17449_s6 + $0x8c4] ss:$8 sps:$4 sm:$0xff]   ;;  %v12856_v52 = vld [vmem:[%s17449_s6 + $0x8d0] ss:$8 sps:$4 sm:$0xff]  }
 0x953   :  { %9582 = vmatprep.subr.bf16.mxu1 %v12774_v36  ;;  %v12858_v36 = vld [vmem:[%s17449_s6 + $0x8d4] ss:$8 sps:$4 sm:$0xff]  }
 0x956   :  { %9583 = vmatpush1.bf16.msra.mxu1 %v12772_v53  ;;  %v12861_v53 = vld [vmem:[%s17449_s6 + $0x8e4] ss:$8 sps:$4 sm:$0xff]  }
 0x957   :  { %9584 = vmatprep.subr.bf16.mxu1 %v12777_v55  ;;  %v6077_v55 = vcombine.high %v16574_v17, %v16574_v17  ;;  %v12890_v17 = vld [vmem:[%s17449_s6 + $0x980] ss:$8 sps:$4 sm:$0xff]  }
 0x95a   :  { %9585 = vmatpush1.bf16.msra.mxu1 %v12775_v56  ;;  %v12859_v56 = vld [vmem:[%s17449_s6 + $0x8e0] ss:$8 sps:$4 sm:$0xff]  }
 0x95b   :  { %9586 = vmatprep.subr.bf16.mxu1 %v12780_v57  ;;  %v12864_v57 = vld [vmem:[%s17449_s6 + $0x8f4] ss:$8 sps:$4 sm:$0xff]  }
 0x95e   :  { %9587 = vmatpush1.bf16.msra.mxu1 %v12778_v10  ;;  %v16689_v10 = vrot.slane %v6077_v55, %v15815_v27  ;;  %v12938_v55 = vld [vmem:[%s17449_s6 + $0xa80] ss:$8 sps:$4 sm:$0xff]  }
 0x95f   :  { %9588 = vmatprep.subr.bf16.mxu1 %v12783_v62  ;;  %v12862_v62 = vld [vmem:[%s17449_s6 + $0x8f0] ss:$8 sps:$4 sm:$0xff]  }
 0x962   :  { %9589 = vmatpush1.bf16.msra.mxu1 %v12781_v63  ;;  %v12867_v63 = vld [vmem:[%s17449_s6 + $0x904] ss:$8 sps:$4 sm:$0xff]  }
 0x963   :  { %9590 = vmatprep.subr.bf16.mxu1 %v12786_v32  ;;  %v6093_v32 = vcombine.high %v16689_v10, %v16689_v10 }
 0x966   :  { %9591 = vmatpush1.bf16.msra.mxu1 %v12784_v0  ;;  %v12865_v0 = vld [vmem:[%s17449_s6 + $0x900] ss:$8 sps:$4 sm:$0xff]  }
 0x967   :  { %9592 = vmatprep.subr.bf16.mxu1 %v12789_v1  ;;  %v6193_v1 = vpack.c.bf16 %v16584_v42, %v16584_v42  ;;  %v12898_v42 = vld [vmem:[%s17449_s6 + $0x9a4] ss:$8 sps:$4 sm:$0xff]  }
 0x96a   :  { %9593 = vmatpush1.bf16.msra.mxu1 %v12787_v2  ;;  %v12871_v2 = vld [vmem:[%s17449_s6 + $0x914] ss:$8 sps:$4 sm:$0xff]  }
 0x96b   :  { %9594 = vmatprep.subr.bf16.mxu1 %v12792_v33  ;;  %v6196_v33 = vpack.c.bf16 %v6093_v32, %v6093_v32  ;;  %v12947_v32 = vld [vmem:[%s17449_s6 + $0xab0] ss:$8 sps:$4 sm:$0xff]  }
 0x96e   :  { %9595 = vmatpush1.bf16.msra.mxu1 %v12790_v34  ;;  %v12869_v34 = vld [vmem:[%s17449_s6 + $0x910] ss:$8 sps:$4 sm:$0xff]  }
 0x96f   :  { %9596 = vmatprep.subr.bf16.mxu1 %v12795_v6  ;;  %v12874_v6 = vld [vmem:[%s17449_s6 + $0x924] ss:$8 sps:$4 sm:$0xff]  }
 0x972   :  { %9597 = vmatpush1.bf16.msra.mxu1 %v12793_v7  ;;  %v12872_v7 = vld [vmem:[%s17449_s6 + $0x920] ss:$8 sps:$4 sm:$0xff]  }
 0x973   :  { %9598 = vmatprep.subr.bf16.mxu1 %v12798_v41  ;;  %v12877_v41 = vld [vmem:[%s17449_s6 + $0x934] ss:$8 sps:$4 sm:$0xff]  }
 0x976   :  { %9599 = vmatpush1.bf16.msra.mxu1 %v12796_v43  ;;  %v12875_v43 = vld [vmem:[%s17449_s6 + $0x930] ss:$8 sps:$4 sm:$0xff]  }
 0x977   :  { %9600 = vmatprep.subr.bf16.mxu1 %v12801_v5  ;;  %v12880_v5 = vld [vmem:[%s17449_s6 + $0x944] ss:$8 sps:$4 sm:$0xff]  }
 0x97a   :  { %9601 = vmatpush1.bf16.msra.mxu1 %v12799_v48  ;;  %v12878_v48 = vld [vmem:[%s17449_s6 + $0x940] ss:$8 sps:$4 sm:$0xff]  }
 0x97b   :  { %9602 = vmatprep.subr.bf16.mxu1 %v12804_v11  ;;  %v12883_v11 = vld [vmem:[%s17449_s6 + $0x954] ss:$8 sps:$4 sm:$0xff]  }
 0x97e   :  { %9603 = vmatpush1.bf16.msra.mxu1 %v12802_v13  ;;  %v12881_v13 = vld [vmem:[%s17449_s6 + $0x950] ss:$8 sps:$4 sm:$0xff]  }
 0x97f   :  { %9604 = vmatprep.subr.bf16.mxu1 %v12807_v14  ;;  %v12886_v14 = vld [vmem:[%s17449_s6 + $0x964] ss:$8 sps:$4 sm:$0xff]  }
 0x982   :  { %9605 = vmatpush1.bf16.msra.mxu1 %v12805_v15  ;;  %v12884_v15 = vld [vmem:[%s17449_s6 + $0x960] ss:$8 sps:$4 sm:$0xff]  }
 0x983   :  { %9606 = vmatprep.subr.bf16.mxu1 %v12810_v4  ;;  %v12889_v4 = vld [vmem:[%s17449_s6 + $0x974] ss:$8 sps:$4 sm:$0xff]  }
 0x986   :  { %9607 = vmatpush1.bf16.msra.mxu1 %v12808_v16  ;;  %v12887_v16 = vld [vmem:[%s17449_s6 + $0x970] ss:$8 sps:$4 sm:$0xff]  }
 0x987   :  { %9608 = vmatprep.subr.bf16.mxu1 %v12813_v9  ;;  %v12892_v9 = vld [vmem:[%s17449_s6 + $0x984] ss:$8 sps:$4 sm:$0xff]  }
 0x98a   :  { %9609 = vmatpush1.bf16.msra.mxu1 %v12811_v18  ;;  %v12895_v18 = vld [vmem:[%s17449_s6 + $0x994] ss:$8 sps:$4 sm:$0xff]  }
 0x98b   :  { %9610 = vmatprep.subr.bf16.mxu1 %v12816_v8  ;;  %v12893_v8 = vld [vmem:[%s17449_s6 + $0x990] ss:$8 sps:$4 sm:$0xff]  }
 0x98e   :  { %9611 = vmatpush1.bf16.msra.mxu1 %v12814_v19  ;;  %v12896_v19 = vld [vmem:[%s17449_s6 + $0x9a0] ss:$8 sps:$4 sm:$0xff]  }
 0x98f   :  { %9621 = vmatprep.subr.bf16.mxu1 %v12819_v20  ;;  %v12901_v20 = vld [vmem:[%s17449_s6 + $0x9b4] ss:$8 sps:$4 sm:$0xff]  }
 0x991   :  { %9613 = vmatmul.mubr.bf16.vlgmr.msra.gmra.mrb[24].mxu1 %v6191_v24  ;;  %v12902_v24 = vld [vmem:[%s17449_s6 + $0x9c0] ss:$8 sps:$4 sm:$0xff]  }
 0x992   :  { %9622 = vmatpush1.bf16.msra.mxu1 %v12817_v23  ;;  %9653 = vmatprep.mubr.bf16.mxu1 %v6194_v26  ;;  %v12904_v23 = vld [vmem:[%s17449_s6 + $0x9c4] ss:$8 sps:$4 sm:$0xff]   ;;  %v12905_v26 = vld [vmem:[%s17449_s6 + $0x9d0] ss:$8 sps:$4 sm:$0xff]  }
 0x993   :  { %9623 = vmatprep.subr.bf16.mxu1 %v12822_v25  ;;  %v12907_v25 = vld [vmem:[%s17449_s6 + $0x9d4] ss:$8 sps:$4 sm:$0xff]  }
 0x996   :  { %9624 = vmatpush1.bf16.msra.mxu1 %v12820_v28  ;;  %v12910_v28 = vld [vmem:[%s17449_s6 + $0x9e4] ss:$8 sps:$4 sm:$0xff]  }
 0x997   :  { %9625 = vmatprep.subr.bf16.mxu1 %v12825_v3  ;;  %v16785_v3 = vld [vmem:[#allocation4 + $0x28] sm:$0xff] }
 0x99a   :  { %9626 = vmatpush1.bf16.msra.mxu1 %v12823_v29  ;;  %v12908_v29 = vld [vmem:[%s17449_s6 + $0x9e0] ss:$8 sps:$4 sm:$0xff]  }
 0x99b   :  { %9627 = vmatprep.subr.bf16.mxu1 %v12828_v21  ;;  %v12913_v21 = vld [vmem:[%s17449_s6 + $0x9f4] ss:$8 sps:$4 sm:$0xff]  }
 0x99e   :  { %9628 = vmatpush1.bf16.msra.mxu1 %v12826_v30  ;;  %v16795_v30 = vrot.slane %v16785_v3, %v15815_v27 }
 0x99f   :  { %9629 = vmatprep.subr.bf16.mxu1 %v12831_v31  ;;  %v12911_v31 = vld [vmem:[%s17449_s6 + $0x9f0] ss:$8 sps:$4 sm:$0xff]  }
 0x9a2   :  { %9630 = vmatpush1.bf16.msra.mxu1 %v12829_v61  ;;  %v12916_v61 = vld [vmem:[%s17449_s6 + $0xa04] ss:$8 sps:$4 sm:$0xff]  }
 0x9a3   :  { %9631 = vmatprep.subr.bf16.mxu1 %v12834_v35  ;;  %v6109_v35 = vcombine.high %v16795_v30, %v16795_v30 }
 0x9a6   :  { %9632 = vmatpush1.bf16.msra.mxu1 %v12832_v37  ;;  %v12914_v37 = vld [vmem:[%s17449_s6 + $0xa00] ss:$8 sps:$4 sm:$0xff]  }
 0x9a7   :  { %9633 = vmatprep.subr.bf16.mxu1 %v12837_v38  ;;  %v6195_v38 = vpack.c.bf16 %v16689_v10, %v16689_v10  ;;  %v12946_v10 = vld [vmem:[%s17449_s6 + $0xaa4] ss:$8 sps:$4 sm:$0xff]  }
 0x9aa   :  { %9634 = vmatpush1.bf16.msra.mxu1 %v12835_v39  ;;  %v12919_v39 = vld [vmem:[%s17449_s6 + $0xa14] ss:$8 sps:$4 sm:$0xff]  }
 0x9ab   :  { %9635 = vmatprep.subr.bf16.mxu1 %v12840_v12  ;;  %v6198_v12 = vpack.c.bf16 %v6109_v35, %v6109_v35  ;;  %v12996_v35 = vld [vmem:[%s17449_s6 + $0xbb0] ss:$8 sps:$4 sm:$0xff]  }
 0x9ae   :  { %9636 = vmatpush1.bf16.msra.mxu1 %v12838_v44  ;;  %v12917_v44 = vld [vmem:[%s17449_s6 + $0xa10] ss:$8 sps:$4 sm:$0xff]  }
 0x9af   :  { %9637 = vmatprep.subr.bf16.mxu1 %v12843_v46  ;;  %v12922_v46 = vld [vmem:[%s17449_s6 + $0xa24] ss:$8 sps:$4 sm:$0xff]  }
 0x9b2   :  { %9638 = vmatpush1.bf16.msra.mxu1 %v12841_v40  ;;  %v12920_v40 = vld [vmem:[%s17449_s6 + $0xa20] ss:$8 sps:$4 sm:$0xff]  }
 0x9b3   :  { %9639 = vmatprep.subr.bf16.mxu1 %v12846_v45  ;;  %v12925_v45 = vld [vmem:[%s17449_s6 + $0xa34] ss:$8 sps:$4 sm:$0xff]  }
 0x9b6   :  { %9640 = vmatpush1.bf16.msra.mxu1 %v12844_v47  ;;  %v12923_v47 = vld [vmem:[%s17449_s6 + $0xa30] ss:$8 sps:$4 sm:$0xff]  }
 0x9b7   :  { %9641 = vmatprep.subr.bf16.mxu1 %v12849_v49  ;;  %v12928_v49 = vld [vmem:[%s17449_s6 + $0xa44] ss:$8 sps:$4 sm:$0xff]  }
 0x9ba   :  { %9642 = vmatpush1.bf16.msra.mxu1 %v12847_v58  ;;  %v12926_v58 = vld [vmem:[%s17449_s6 + $0xa40] ss:$8 sps:$4 sm:$0xff]  }
 0x9bb   :  { %9643 = vmatprep.subr.bf16.mxu1 %v12852_v60  ;;  %v12931_v60 = vld [vmem:[%s17449_s6 + $0xa54] ss:$8 sps:$4 sm:$0xff]  }
 0x9be   :  { %9644 = vmatpush1.bf16.msra.mxu1 %v12850_v51  ;;  %v12929_v51 = vld [vmem:[%s17449_s6 + $0xa50] ss:$8 sps:$4 sm:$0xff]  }
 0x9bf   :  { %9645 = vmatprep.subr.bf16.mxu1 %v12855_v59  ;;  %v12934_v59 = vld [vmem:[%s17449_s6 + $0xa64] ss:$8 sps:$4 sm:$0xff]  }
 0x9c2   :  { %9646 = vmatpush1.bf16.msra.mxu1 %v12853_v50  ;;  %v12932_v50 = vld [vmem:[%s17449_s6 + $0xa60] ss:$8 sps:$4 sm:$0xff]  }
 0x9c3   :  { %9647 = vmatprep.subr.bf16.mxu1 %v12858_v36  ;;  %v12937_v36 = vld [vmem:[%s17449_s6 + $0xa74] ss:$8 sps:$4 sm:$0xff]  }
 0x9c6   :  { %9648 = vmatpush1.bf16.msra.mxu1 %v12856_v52  ;;  %v12935_v52 = vld [vmem:[%s17449_s6 + $0xa70] ss:$8 sps:$4 sm:$0xff]  }
 0x9c7   :  { %9649 = vmatprep.subr.bf16.mxu1 %v12861_v53  ;;  %v12940_v53 = vld [vmem:[%s17449_s6 + $0xa84] ss:$8 sps:$4 sm:$0xff]  }
 0x9ca   :  { %9650 = vmatpush1.bf16.msra.mxu1 %v12859_v56  ;;  %v12943_v56 = vld [vmem:[%s17449_s6 + $0xa94] ss:$8 sps:$4 sm:$0xff]  }
 0x9cb   :  { %9651 = vmatprep.subr.bf16.mxu1 %v12864_v57  ;;  %v12941_v57 = vld [vmem:[%s17449_s6 + $0xa90] ss:$8 sps:$4 sm:$0xff]  }
 0x9ce   :  { %9652 = vmatpush1.bf16.msra.mxu1 %v12862_v62  ;;  %v12944_v62 = vld [vmem:[%s17449_s6 + $0xaa0] ss:$8 sps:$4 sm:$0xff]  }
 0x9cf   :  { %9662 = vmatprep.subr.bf16.mxu1 %v12867_v63  ;;  %v12949_v63 = vld [vmem:[%s17449_s6 + $0xab4] ss:$8 sps:$4 sm:$0xff]  }
 0x9d1   :  { %9654 = vmatmul.mubr.bf16.vlgmr.msra.gmra.mrb[24].mxu1 %v6193_v1  ;;  %v12950_v1 = vld [vmem:[%s17449_s6 + $0xac0] ss:$8 sps:$4 sm:$0xff]  }
 0x9d2   :  { %9663 = vmatpush1.bf16.msra.mxu1 %v12865_v0  ;;  %9694 = vmatprep.mubr.bf16.mxu1 %v6196_v33  ;;  %v12952_v0 = vld [vmem:[%s17449_s6 + $0xac4] ss:$8 sps:$4 sm:$0xff]   ;;  %v12953_v33 = vld [vmem:[%s17449_s6 + $0xad0] ss:$8 sps:$4 sm:$0xff]  }
 0x9d3   :  { %9664 = vmatprep.subr.bf16.mxu1 %v12871_v2  ;;  %v12955_v2 = vld [vmem:[%s17449_s6 + $0xad4] ss:$8 sps:$4 sm:$0xff]  }
 0x9d6   :  { %9665 = vmatpush1.bf16.msra.mxu1 %v12869_v34  ;;  %v12958_v34 = vld [vmem:[%s17449_s6 + $0xae4] ss:$8 sps:$4 sm:$0xff]  }
 0x9d7   :  { %9666 = vmatprep.subr.bf16.mxu1 %v12874_v6  ;;  %v6094_v6 = vcombine.high %v16785_v3, %v16785_v3  ;;  %v12987_v3 = vld [vmem:[%s17449_s6 + $0xb80] ss:$8 sps:$4 sm:$0xff]  }
 0x9da   :  { %9667 = vmatpush1.bf16.msra.mxu1 %v12872_v7  ;;  %v12956_v7 = vld [vmem:[%s17449_s6 + $0xae0] ss:$8 sps:$4 sm:$0xff]  }
 0x9db   :  { %9668 = vmatprep.subr.bf16.mxu1 %v12877_v41  ;;  %v12961_v41 = vld [vmem:[%s17449_s6 + $0xaf4] ss:$8 sps:$4 sm:$0xff]  }
 0x9de   :  { %9669 = vmatpush1.bf16.msra.mxu1 %v12875_v43  ;;  %v16900_v43 = vrot.slane %v6094_v6, %v15815_v27  ;;  %v13035_v6 = vld [vmem:[%s17449_s6 + $0xc80] ss:$8 sps:$4 sm:$0xff]  }
 0x9df   :  { %9670 = vmatprep.subr.bf16.mxu1 %v12880_v5  ;;  %v12959_v5 = vld [vmem:[%s17449_s6 + $0xaf0] ss:$8 sps:$4 sm:$0xff]  }
 0x9e2   :  { %9671 = vmatpush1.bf16.msra.mxu1 %v12878_v48  ;;  %v12964_v48 = vld [vmem:[%s17449_s6 + $0xb04] ss:$8 sps:$4 sm:$0xff]  }
 0x9e3   :  { %9672 = vmatprep.subr.bf16.mxu1 %v12883_v11  ;;  %v6110_v11 = vcombine.high %v16900_v43, %v16900_v43 }
 0x9e6   :  { %9673 = vmatpush1.bf16.msra.mxu1 %v12881_v13  ;;  %v12962_v13 = vld [vmem:[%s17449_s6 + $0xb00] ss:$8 sps:$4 sm:$0xff]  }
 0x9e7   :  { %9674 = vmatprep.subr.bf16.mxu1 %v12886_v14  ;;  %v6197_v14 = vpack.c.bf16 %v16795_v30, %v16795_v30  ;;  %v12995_v30 = vld [vmem:[%s17449_s6 + $0xba4] ss:$8 sps:$4 sm:$0xff]  }
 0x9ea   :  { %9675 = vmatpush1.bf16.msra.mxu1 %v12884_v15  ;;  %v12968_v15 = vld [vmem:[%s17449_s6 + $0xb14] ss:$8 sps:$4 sm:$0xff]  }
 0x9eb   :  { %9676 = vmatprep.subr.bf16.mxu1 %v12889_v4  ;;  %v6200_v4 = vpack.c.bf16 %v6110_v11, %v6110_v11  ;;  %v13044_v11 = vld [vmem:[%s17449_s6 + $0xcb0] ss:$8 sps:$4 sm:$0xff]  }
 0x9ee   :  { %9677 = vmatpush1.bf16.msra.mxu1 %v12887_v16  ;;  %v12966_v16 = vld [vmem:[%s17449_s6 + $0xb10] ss:$8 sps:$4 sm:$0xff]  }
 0x9ef   :  { %9678 = vmatprep.subr.bf16.mxu1 %v12892_v9  ;;  %v12971_v9 = vld [vmem:[%s17449_s6 + $0xb24] ss:$8 sps:$4 sm:$0xff]  }
 0x9f2   :  { %9679 = vmatpush1.bf16.msra.mxu1 %v12890_v17  ;;  %v12969_v17 = vld [vmem:[%s17449_s6 + $0xb20] ss:$8 sps:$4 sm:$0xff]  }
 0x9f3   :  { %9680 = vmatprep.subr.bf16.mxu1 %v12895_v18  ;;  %v12974_v18 = vld [vmem:[%s17449_s6 + $0xb34] ss:$8 sps:$4 sm:$0xff]  }
 0x9f6   :  { %9681 = vmatpush1.bf16.msra.mxu1 %v12893_v8  ;;  %v12972_v8 = vld [vmem:[%s17449_s6 + $0xb30] ss:$8 sps:$4 sm:$0xff]  }
 0x9f7   :  { %9682 = vmatprep.subr.bf16.mxu1 %v12898_v42  ;;  %v12977_v42 = vld [vmem:[%s17449_s6 + $0xb44] ss:$8 sps:$4 sm:$0xff]  }
 0x9fa   :  { %9683 = vmatpush1.bf16.msra.mxu1 %v12896_v19  ;;  %v12975_v19 = vld [vmem:[%s17449_s6 + $0xb40] ss:$8 sps:$4 sm:$0xff]  }
 0x9fb   :  { %9684 = vmatprep.subr.bf16.mxu1 %v12901_v20  ;;  %v12980_v20 = vld [vmem:[%s17449_s6 + $0xb54] ss:$8 sps:$4 sm:$0xff]  }
 0x9fe   :  { %9685 = vmatpush1.bf16.msra.mxu1 %v12899_v22  ;;  %v12978_v22 = vld [vmem:[%s17449_s6 + $0xb50] ss:$8 sps:$4 sm:$0xff]  }
 0x9ff   :  { %9686 = vmatprep.subr.bf16.mxu1 %v12904_v23  ;;  %v12983_v23 = vld [vmem:[%s17449_s6 + $0xb64] ss:$8 sps:$4 sm:$0xff]  }
 0xa02   :  { %9687 = vmatpush1.bf16.msra.mxu1 %v12902_v24  ;;  %v12981_v24 = vld [vmem:[%s17449_s6 + $0xb60] ss:$8 sps:$4 sm:$0xff]  }
 0xa03   :  { %9688 = vmatprep.subr.bf16.mxu1 %v12907_v25  ;;  %v12986_v25 = vld [vmem:[%s17449_s6 + $0xb74] ss:$8 sps:$4 sm:$0xff]  }
 0xa06   :  { %9689 = vmatpush1.bf16.msra.mxu1 %v12905_v26  ;;  %v12984_v26 = vld [vmem:[%s17449_s6 + $0xb70] ss:$8 sps:$4 sm:$0xff]  }
 0xa07   :  { %9690 = vmatprep.subr.bf16.mxu1 %v12910_v28  ;;  %v12989_v28 = vld [vmem:[%s17449_s6 + $0xb84] ss:$8 sps:$4 sm:$0xff]  }
 0xa0a   :  { %9691 = vmatpush1.bf16.msra.mxu1 %v12908_v29  ;;  %v12992_v29 = vld [vmem:[%s17449_s6 + $0xb94] ss:$8 sps:$4 sm:$0xff]  }
 0xa0b   :  { %9692 = vmatprep.subr.bf16.mxu1 %v12913_v21  ;;  %v12990_v21 = vld [vmem:[%s17449_s6 + $0xb90] ss:$8 sps:$4 sm:$0xff]  }
 0xa0e   :  { %9693 = vmatpush1.bf16.msra.mxu1 %v12911_v31  ;;  %v12993_v31 = vld [vmem:[%s17449_s6 + $0xba0] ss:$8 sps:$4 sm:$0xff]  }
 0xa0f   :  { %9703 = vmatprep.subr.bf16.mxu1 %v12916_v61  ;;  %v12998_v61 = vld [vmem:[%s17449_s6 + $0xbb4] ss:$8 sps:$4 sm:$0xff]  }
 0xa11   :  { %9695 = vmatmul.mubr.bf16.vlgmr.msra.gmra.mrb[24].mxu1 %v6195_v38  ;;  %v12999_v38 = vld [vmem:[%s17449_s6 + $0xbc0] ss:$8 sps:$4 sm:$0xff]  }
 0xa12   :  { %9704 = vmatpush1.bf16.msra.mxu1 %v12914_v37  ;;  %9735 = vmatprep.mubr.bf16.mxu1 %v6198_v12  ;;  %v13001_v37 = vld [vmem:[%s17449_s6 + $0xbc4] ss:$8 sps:$4 sm:$0xff]   ;;  %v13002_v12 = vld [vmem:[%s17449_s6 + $0xbd0] ss:$8 sps:$4 sm:$0xff]  }
 0xa13   :  { %9705 = vmatprep.subr.bf16.mxu1 %v12919_v39  ;;  %v13004_v39 = vld [vmem:[%s17449_s6 + $0xbd4] ss:$8 sps:$4 sm:$0xff]  }
 0xa16   :  { %9706 = vmatpush1.bf16.msra.mxu1 %v12917_v44  ;;  %v13007_v44 = vld [vmem:[%s17449_s6 + $0xbe4] ss:$8 sps:$4 sm:$0xff]  }
 0xa17   :  { %9707 = vmatprep.subr.bf16.mxu1 %v12922_v46  ;;  %v16996_v46 = vld [vmem:[#allocation4 + $0x30] sm:$0xff] }
 0xa1a   :  { %9708 = vmatpush1.bf16.msra.mxu1 %v12920_v40  ;;  %v13005_v40 = vld [vmem:[%s17449_s6 + $0xbe0] ss:$8 sps:$4 sm:$0xff]  }
 0xa1b   :  { %9709 = vmatprep.subr.bf16.mxu1 %v12925_v45  ;;  %v13010_v45 = vld [vmem:[%s17449_s6 + $0xbf4] ss:$8 sps:$4 sm:$0xff]  }
 0xa1e   :  { %9710 = vmatpush1.bf16.msra.mxu1 %v12923_v47  ;;  %v17006_v47 = vrot.slane %v16996_v46, %v15815_v27 }
 0xa1f   :  { %9711 = vmatprep.subr.bf16.mxu1 %v12928_v49  ;;  %v13008_v49 = vld [vmem:[%s17449_s6 + $0xbf0] ss:$8 sps:$4 sm:$0xff]  }
 0xa22   :  { %9712 = vmatpush1.bf16.msra.mxu1 %v12926_v58  ;;  %v13013_v58 = vld [vmem:[%s17449_s6 + $0xc04] ss:$8 sps:$4 sm:$0xff]  }
 0xa23   :  { %9713 = vmatprep.subr.bf16.mxu1 %v12931_v60  ;;  %v6126_v60 = vcombine.high %v17006_v47, %v17006_v47 }
 0xa26   :  { %9714 = vmatpush1.bf16.msra.mxu1 %v12929_v51  ;;  %v13011_v51 = vld [vmem:[%s17449_s6 + $0xc00] ss:$8 sps:$4 sm:$0xff]  }
 0xa27   :  { %9715 = vmatprep.subr.bf16.mxu1 %v12934_v59  ;;  %v6199_v59 = vpack.c.bf16 %v16900_v43, %v16900_v43  ;;  %v13043_v43 = vld [vmem:[%s17449_s6 + $0xca4] ss:$8 sps:$4 sm:$0xff]  }
 0xa2a   :  { %9716 = vmatpush1.bf16.msra.mxu1 %v12932_v50  ;;  %v13016_v50 = vld [vmem:[%s17449_s6 + $0xc14] ss:$8 sps:$4 sm:$0xff]  }
 0xa2b   :  { %9717 = vmatprep.subr.bf16.mxu1 %v12937_v36  ;;  %v6202_v36 = vpack.c.bf16 %v6126_v60, %v6126_v60  ;;  %v13093_v60 = vld [vmem:[%s17449_s6 + $0xdb0] ss:$8 sps:$4 sm:$0xff]  }
 0xa2e   :  { %9718 = vmatpush1.bf16.msra.mxu1 %v12935_v52  ;;  %v13014_v52 = vld [vmem:[%s17449_s6 + $0xc10] ss:$8 sps:$4 sm:$0xff]  }
 0xa2f   :  { %9719 = vmatprep.subr.bf16.mxu1 %v12940_v53  ;;  %v13019_v53 = vld [vmem:[%s17449_s6 + $0xc24] ss:$8 sps:$4 sm:$0xff]  }
 0xa32   :  { %9720 = vmatpush1.bf16.msra.mxu1 %v12938_v55  ;;  %v13017_v55 = vld [vmem:[%s17449_s6 + $0xc20] ss:$8 sps:$4 sm:$0xff]  }
 0xa33   :  { %9721 = vmatprep.subr.bf16.mxu1 %v12943_v56  ;;  %v13022_v56 = vld [vmem:[%s17449_s6 + $0xc34] ss:$8 sps:$4 sm:$0xff]  }
 0xa36   :  { %9722 = vmatpush1.bf16.msra.mxu1 %v12941_v57  ;;  %v13020_v57 = vld [vmem:[%s17449_s6 + $0xc30] ss:$8 sps:$4 sm:$0xff]  }
 0xa37   :  { %9723 = vmatprep.subr.bf16.mxu1 %v12946_v10  ;;  %v13025_v10 = vld [vmem:[%s17449_s6 + $0xc44] ss:$8 sps:$4 sm:$0xff]  }
 0xa3a   :  { %9724 = vmatpush1.bf16.msra.mxu1 %v12944_v62  ;;  %v13023_v62 = vld [vmem:[%s17449_s6 + $0xc40] ss:$8 sps:$4 sm:$0xff]  }
 0xa3b   :  { %9725 = vmatprep.subr.bf16.mxu1 %v12949_v63  ;;  %v13028_v63 = vld [vmem:[%s17449_s6 + $0xc54] ss:$8 sps:$4 sm:$0xff]  }
 0xa3e   :  { %9726 = vmatpush1.bf16.msra.mxu1 %v12947_v32  ;;  %v13026_v32 = vld [vmem:[%s17449_s6 + $0xc50] ss:$8 sps:$4 sm:$0xff]  }
 0xa3f   :  { %9727 = vmatprep.subr.bf16.mxu1 %v12952_v0  ;;  %v13031_v0 = vld [vmem:[%s17449_s6 + $0xc64] ss:$8 sps:$4 sm:$0xff]  }
 0xa42   :  { %9728 = vmatpush1.bf16.msra.mxu1 %v12950_v1  ;;  %v13029_v1 = vld [vmem:[%s17449_s6 + $0xc60] ss:$8 sps:$4 sm:$0xff]  }
 0xa43   :  { %9729 = vmatprep.subr.bf16.mxu1 %v12955_v2  ;;  %v13034_v2 = vld [vmem:[%s17449_s6 + $0xc74] ss:$8 sps:$4 sm:$0xff]  }
 0xa46   :  { %9730 = vmatpush1.bf16.msra.mxu1 %v12953_v33  ;;  %v13032_v33 = vld [vmem:[%s17449_s6 + $0xc70] ss:$8 sps:$4 sm:$0xff]  }
 0xa47   :  { %9731 = vmatprep.subr.bf16.mxu1 %v12958_v34  ;;  %v13037_v34 = vld [vmem:[%s17449_s6 + $0xc84] ss:$8 sps:$4 sm:$0xff]  }
 0xa4a   :  { %9732 = vmatpush1.bf16.msra.mxu1 %v12956_v7  ;;  %v13040_v7 = vld [vmem:[%s17449_s6 + $0xc94] ss:$8 sps:$4 sm:$0xff]  }
 0xa4b   :  { %9733 = vmatprep.subr.bf16.mxu1 %v12961_v41  ;;  %v13038_v41 = vld [vmem:[%s17449_s6 + $0xc90] ss:$8 sps:$4 sm:$0xff]  }
 0xa4e   :  { %9734 = vmatpush1.bf16.msra.mxu1 %v12959_v5  ;;  %v13041_v5 = vld [vmem:[%s17449_s6 + $0xca0] ss:$8 sps:$4 sm:$0xff]  }
 0xa4f   :  { %9744 = vmatprep.subr.bf16.mxu1 %v12964_v48  ;;  %v13046_v48 = vld [vmem:[%s17449_s6 + $0xcb4] ss:$8 sps:$4 sm:$0xff]  }
 0xa51   :  { %9736 = vmatmul.mubr.bf16.vlgmr.msra.gmra.mrb[24].mxu1 %v6197_v14  ;;  %v13047_v14 = vld [vmem:[%s17449_s6 + $0xcc0] ss:$8 sps:$4 sm:$0xff]  }
 0xa52   :  { %9745 = vmatpush1.bf16.msra.mxu1 %v12962_v13  ;;  %9776 = vmatprep.mubr.bf16.mxu1 %v6200_v4  ;;  %v13049_v13 = vld [vmem:[%s17449_s6 + $0xcc4] ss:$8 sps:$4 sm:$0xff]   ;;  %v13050_v4 = vld [vmem:[%s17449_s6 + $0xcd0] ss:$8 sps:$4 sm:$0xff]  }
 0xa53   :  { %9746 = vmatprep.subr.bf16.mxu1 %v12968_v15  ;;  %v13052_v15 = vld [vmem:[%s17449_s6 + $0xcd4] ss:$8 sps:$4 sm:$0xff]  }
 0xa56   :  { %9747 = vmatpush1.bf16.msra.mxu1 %v12966_v16  ;;  %v13055_v16 = vld [vmem:[%s17449_s6 + $0xce4] ss:$8 sps:$4 sm:$0xff]  }
 0xa57   :  { %9748 = vmatprep.subr.bf16.mxu1 %v12971_v9  ;;  %v6111_v9 = vcombine.high %v16996_v46, %v16996_v46  ;;  %v13084_v46 = vld [vmem:[%s17449_s6 + $0xd80] ss:$8 sps:$4 sm:$0xff]  }
 0xa5a   :  { %9749 = vmatpush1.bf16.msra.mxu1 %v12969_v17  ;;  %v13053_v17 = vld [vmem:[%s17449_s6 + $0xce0] ss:$8 sps:$4 sm:$0xff]  }
 0xa5b   :  { %9750 = vmatprep.subr.bf16.mxu1 %v12974_v18  ;;  %v13058_v18 = vld [vmem:[%s17449_s6 + $0xcf4] ss:$8 sps:$4 sm:$0xff]  }
 0xa5e   :  { %9751 = vmatpush1.bf16.msra.mxu1 %v12972_v8  ;;  %v17111_v8 = vrot.slane %v6111_v9, %v15815_v27  ;;  %v13132_v9 = vld [vmem:[%s17449_s6 + $0xe80] ss:$8 sps:$4 sm:$0xff]  }
 0xa5f   :  { %9752 = vmatprep.subr.bf16.mxu1 %v12977_v42  ;;  %v13056_v42 = vld [vmem:[%s17449_s6 + $0xcf0] ss:$8 sps:$4 sm:$0xff]  }
 0xa62   :  { %9753 = vmatpush1.bf16.msra.mxu1 %v12975_v19  ;;  %v13061_v19 = vld [vmem:[%s17449_s6 + $0xd04] ss:$8 sps:$4 sm:$0xff]  }
 0xa63   :  { %9754 = vmatprep.subr.bf16.mxu1 %v12980_v20  ;;  %v6127_v20 = vcombine.high %v17111_v8, %v17111_v8 }
 0xa66   :  { %9755 = vmatpush1.bf16.msra.mxu1 %v12978_v22  ;;  %v13059_v22 = vld [vmem:[%s17449_s6 + $0xd00] ss:$8 sps:$4 sm:$0xff]  }
 0xa67   :  { %9756 = vmatprep.subr.bf16.mxu1 %v12983_v23  ;;  %v6201_v23 = vpack.c.bf16 %v17006_v47, %v17006_v47  ;;  %v13092_v47 = vld [vmem:[%s17449_s6 + $0xda4] ss:$8 sps:$4 sm:$0xff]  }
 0xa6a   :  { %9757 = vmatpush1.bf16.msra.mxu1 %v12981_v24  ;;  %v13065_v24 = vld [vmem:[%s17449_s6 + $0xd14] ss:$8 sps:$4 sm:$0xff]  }
 0xa6b   :  { %9758 = vmatprep.subr.bf16.mxu1 %v12986_v25  ;;  %v6204_v25 = vpack.c.bf16 %v6127_v20, %v6127_v20  ;;  %v13141_v20 = vld [vmem:[%s17449_s6 + $0xeb0] ss:$8 sps:$4 sm:$0xff]  }
 0xa6e   :  { %9759 = vmatpush1.bf16.msra.mxu1 %v12984_v26  ;;  %v13063_v26 = vld [vmem:[%s17449_s6 + $0xd10] ss:$8 sps:$4 sm:$0xff]  }
 0xa6f   :  { %9760 = vmatprep.subr.bf16.mxu1 %v12989_v28  ;;  %v13068_v28 = vld [vmem:[%s17449_s6 + $0xd24] ss:$8 sps:$4 sm:$0xff]  }
 0xa72   :  { %9761 = vmatpush1.bf16.msra.mxu1 %v12987_v3  ;;  %v13066_v3 = vld [vmem:[%s17449_s6 + $0xd20] ss:$8 sps:$4 sm:$0xff]  }
 0xa73   :  { %9762 = vmatprep.subr.bf16.mxu1 %v12992_v29  ;;  %v13071_v29 = vld [vmem:[%s17449_s6 + $0xd34] ss:$8 sps:$4 sm:$0xff]  }
 0xa76   :  { %9763 = vmatpush1.bf16.msra.mxu1 %v12990_v21  ;;  %v13069_v21 = vld [vmem:[%s17449_s6 + $0xd30] ss:$8 sps:$4 sm:$0xff]  }
 0xa77   :  { %9764 = vmatprep.subr.bf16.mxu1 %v12995_v30  ;;  %v13074_v30 = vld [vmem:[%s17449_s6 + $0xd44] ss:$8 sps:$4 sm:$0xff]  }
 0xa7a   :  { %9765 = vmatpush1.bf16.msra.mxu1 %v12993_v31  ;;  %v13072_v31 = vld [vmem:[%s17449_s6 + $0xd40] ss:$8 sps:$4 sm:$0xff]  }
 0xa7b   :  { %9766 = vmatprep.subr.bf16.mxu1 %v12998_v61  ;;  %v13077_v61 = vld [vmem:[%s17449_s6 + $0xd54] ss:$8 sps:$4 sm:$0xff]  }
 0xa7e   :  { %9767 = vmatpush1.bf16.msra.mxu1 %v12996_v35  ;;  %v13075_v35 = vld [vmem:[%s17449_s6 + $0xd50] ss:$8 sps:$4 sm:$0xff]  }
 0xa7f   :  { %9768 = vmatprep.subr.bf16.mxu1 %v13001_v37  ;;  %v13080_v37 = vld [vmem:[%s17449_s6 + $0xd64] ss:$8 sps:$4 sm:$0xff]  }
 0xa82   :  { %9769 = vmatpush1.bf16.msra.mxu1 %v12999_v38  ;;  %v13078_v38 = vld [vmem:[%s17449_s6 + $0xd60] ss:$8 sps:$4 sm:$0xff]  }
 0xa83   :  { %9770 = vmatprep.subr.bf16.mxu1 %v13004_v39  ;;  %v13083_v39 = vld [vmem:[%s17449_s6 + $0xd74] ss:$8 sps:$4 sm:$0xff]  }
 0xa86   :  { %9771 = vmatpush1.bf16.msra.mxu1 %v13002_v12  ;;  %v13081_v12 = vld [vmem:[%s17449_s6 + $0xd70] ss:$8 sps:$4 sm:$0xff]  }
 0xa87   :  { %9772 = vmatprep.subr.bf16.mxu1 %v13007_v44  ;;  %v13086_v44 = vld [vmem:[%s17449_s6 + $0xd84] ss:$8 sps:$4 sm:$0xff]  }
 0xa8a   :  { %9773 = vmatpush1.bf16.msra.mxu1 %v13005_v40  ;;  %v13089_v40 = vld [vmem:[%s17449_s6 + $0xd94] ss:$8 sps:$4 sm:$0xff]  }
 0xa8b   :  { %9774 = vmatprep.subr.bf16.mxu1 %v13010_v45  ;;  %v13087_v45 = vld [vmem:[%s17449_s6 + $0xd90] ss:$8 sps:$4 sm:$0xff]  }
 0xa8e   :  { %9775 = vmatpush1.bf16.msra.mxu1 %v13008_v49  ;;  %v13090_v49 = vld [vmem:[%s17449_s6 + $0xda0] ss:$8 sps:$4 sm:$0xff]  }
 0xa8f   :  { %9785 = vmatprep.subr.bf16.mxu1 %v13013_v58  ;;  %v13095_v58 = vld [vmem:[%s17449_s6 + $0xdb4] ss:$8 sps:$4 sm:$0xff]  }
 0xa91   :  { %9777 = vmatmul.mubr.bf16.vlgmr.msra.gmra.mrb[24].mxu1 %v6199_v59  ;;  %v13096_v59 = vld [vmem:[%s17449_s6 + $0xdc0] ss:$8 sps:$4 sm:$0xff]  }
 0xa92   :  { %9786 = vmatpush1.bf16.msra.mxu1 %v13011_v51  ;;  %9817 = vmatprep.mubr.bf16.mxu1 %v6202_v36  ;;  %v13098_v51 = vld [vmem:[%s17449_s6 + $0xdc4] ss:$8 sps:$4 sm:$0xff]   ;;  %v13099_v36 = vld [vmem:[%s17449_s6 + $0xdd0] ss:$8 sps:$4 sm:$0xff]  }
 0xa93   :  { %9787 = vmatprep.subr.bf16.mxu1 %v13016_v50  ;;  %v13101_v50 = vld [vmem:[%s17449_s6 + $0xdd4] ss:$8 sps:$4 sm:$0xff]  }
 0xa96   :  { %9788 = vmatpush1.bf16.msra.mxu1 %v13014_v52  ;;  %v13104_v52 = vld [vmem:[%s17449_s6 + $0xde4] ss:$8 sps:$4 sm:$0xff]  }
 0xa97   :  { %9789 = vmatprep.subr.bf16.mxu1 %v13019_v53  ;;  %v17207_v53 = vld [vmem:[#allocation4 + $0x38] sm:$0xff] }
 0xa9a   :  { %9790 = vmatpush1.bf16.msra.mxu1 %v13017_v55  ;;  %v13102_v55 = vld [vmem:[%s17449_s6 + $0xde0] ss:$8 sps:$4 sm:$0xff]  }
 0xa9b   :  { %9791 = vmatprep.subr.bf16.mxu1 %v13022_v56  ;;  %v13107_v56 = vld [vmem:[%s17449_s6 + $0xdf4] ss:$8 sps:$4 sm:$0xff]  }
 0xa9e   :  { %9792 = vmatpush1.bf16.msra.mxu1 %v13020_v57  ;;  %v17217_v57 = vrot.slane %v17207_v53, %v15815_v27 }
 0xa9f   :  { %9793 = vmatprep.subr.bf16.mxu1 %v13025_v10  ;;  %v13105_v10 = vld [vmem:[%s17449_s6 + $0xdf0] ss:$8 sps:$4 sm:$0xff]  }
 0xaa2   :  { %9794 = vmatpush1.bf16.msra.mxu1 %v13023_v62  ;;  %v13110_v62 = vld [vmem:[%s17449_s6 + $0xe04] ss:$8 sps:$4 sm:$0xff]  }
 0xaa3   :  { %9795 = vmatprep.subr.bf16.mxu1 %v13028_v63  ;;  %v6143_v63 = vcombine.high %v17217_v57, %v17217_v57 }
 0xaa6   :  { %9796 = vmatpush1.bf16.msra.mxu1 %v13026_v32  ;;  %v13108_v32 = vld [vmem:[%s17449_s6 + $0xe00] ss:$8 sps:$4 sm:$0xff]  }
 0xaa7   :  { %9797 = vmatprep.subr.bf16.mxu1 %v13031_v0  ;;  %v6203_v0 = vpack.c.bf16 %v17111_v8, %v17111_v8  ;;  %v13140_v8 = vld [vmem:[%s17449_s6 + $0xea4] ss:$8 sps:$4 sm:$0xff]  }
 0xaaa   :  { %9798 = vmatpush1.bf16.msra.mxu1 %v13029_v1  ;;  %v13113_v1 = vld [vmem:[%s17449_s6 + $0xe14] ss:$8 sps:$4 sm:$0xff]  }
 0xaab   :  { %9799 = vmatprep.subr.bf16.mxu1 %v13034_v2  ;;  %v6206_v2 = vpack.c.bf16 %v6143_v63, %v6143_v63  ;;  %v13195_v63 = vld [vmem:[%s17449_s6 + $0xfc4] ss:$8 sps:$4 sm:$0xff]  }
 0xaae   :  { %9800 = vmatpush1.bf16.msra.mxu1 %v13032_v33  ;;  %v13111_v33 = vld [vmem:[%s17449_s6 + $0xe10] ss:$8 sps:$4 sm:$0xff]  }
 0xaaf   :  { %9801 = vmatprep.subr.bf16.mxu1 %v13037_v34  ;;  %v13116_v34 = vld [vmem:[%s17449_s6 + $0xe24] ss:$8 sps:$4 sm:$0xff]  }
 0xab2   :  { %9802 = vmatpush1.bf16.msra.mxu1 %v13035_v6  ;;  %v13114_v6 = vld [vmem:[%s17449_s6 + $0xe20] ss:$8 sps:$4 sm:$0xff]  }
 0xab3   :  { %9803 = vmatprep.subr.bf16.mxu1 %v13040_v7  ;;  %v13119_v7 = vld [vmem:[%s17449_s6 + $0xe34] ss:$8 sps:$4 sm:$0xff]  }
 0xab6   :  { %9804 = vmatpush1.bf16.msra.mxu1 %v13038_v41  ;;  %v13117_v41 = vld [vmem:[%s17449_s6 + $0xe30] ss:$8 sps:$4 sm:$0xff]  }
 0xab7   :  { %9805 = vmatprep.subr.bf16.mxu1 %v13043_v43  ;;  %v13122_v43 = vld [vmem:[%s17449_s6 + $0xe44] ss:$8 sps:$4 sm:$0xff]  }
 0xaba   :  { %9806 = vmatpush1.bf16.msra.mxu1 %v13041_v5  ;;  %v13120_v5 = vld [vmem:[%s17449_s6 + $0xe40] ss:$8 sps:$4 sm:$0xff]  }
 0xabb   :  { %9807 = vmatprep.subr.bf16.mxu1 %v13046_v48  ;;  %v13125_v48 = vld [vmem:[%s17449_s6 + $0xe54] ss:$8 sps:$4 sm:$0xff]  }
 0xabe   :  { %9808 = vmatpush1.bf16.msra.mxu1 %v13044_v11  ;;  %v13123_v11 = vld [vmem:[%s17449_s6 + $0xe50] ss:$8 sps:$4 sm:$0xff]  }
 0xabf   :  { %9809 = vmatprep.subr.bf16.mxu1 %v13049_v13  ;;  %v13128_v13 = vld [vmem:[%s17449_s6 + $0xe64] ss:$8 sps:$4 sm:$0xff]  }
 0xac2   :  { %9810 = vmatpush1.bf16.msra.mxu1 %v13047_v14  ;;  %v13126_v14 = vld [vmem:[%s17449_s6 + $0xe60] ss:$8 sps:$4 sm:$0xff]  }
 0xac3   :  { %9811 = vmatprep.subr.bf16.mxu1 %v13052_v15  ;;  %v13131_v15 = vld [vmem:[%s17449_s6 + $0xe74] ss:$8 sps:$4 sm:$0xff]  }
 0xac6   :  { %9812 = vmatpush1.bf16.msra.mxu1 %v13050_v4  ;;  %v13129_v4 = vld [vmem:[%s17449_s6 + $0xe70] ss:$8 sps:$4 sm:$0xff]  }
 0xac7   :  { %9813 = vmatprep.subr.bf16.mxu1 %v13055_v16  ;;  %v13134_v16 = vld [vmem:[%s17449_s6 + $0xe84] ss:$8 sps:$4 sm:$0xff]  }
 0xaca   :  { %9814 = vmatpush1.bf16.msra.mxu1 %v13053_v17  ;;  %v13137_v17 = vld [vmem:[%s17449_s6 + $0xe94] ss:$8 sps:$4 sm:$0xff]  }
 0xacb   :  { %9815 = vmatprep.subr.bf16.mxu1 %v13058_v18  ;;  %v13135_v18 = vld [vmem:[%s17449_s6 + $0xe90] ss:$8 sps:$4 sm:$0xff]  }
 0xace   :  { %9816 = vmatpush1.bf16.msra.mxu1 %v13056_v42  ;;  %v13138_v42 = vld [vmem:[%s17449_s6 + $0xea0] ss:$8 sps:$4 sm:$0xff]  }
 0xacf   :  { %9826 = vmatprep.subr.bf16.mxu1 %v13061_v19  ;;  %v13143_v19 = vld [vmem:[%s17449_s6 + $0xeb4] ss:$8 sps:$4 sm:$0xff]  }
 0xad1   :  { %9818 = vmatmul.mubr.bf16.vlgmr.msra.gmra.mrb[24].mxu1 %v6201_v23  ;;  %v13144_v23 = vld [vmem:[%s17449_s6 + $0xec0] ss:$8 sps:$4 sm:$0xff]  }
 0xad2   :  { %9827 = vmatpush1.bf16.msra.mxu1 %v13059_v22  ;;  %9858 = vmatprep.mubr.bf16.mxu1 %v6204_v25  ;;  %v13146_v22 = vld [vmem:[%s17449_s6 + $0xec4] ss:$8 sps:$4 sm:$0xff]   ;;  %v13147_v25 = vld [vmem:[%s17449_s6 + $0xed0] ss:$8 sps:$4 sm:$0xff]  }
 0xad3   :  { %9828 = vmatprep.subr.bf16.mxu1 %v13065_v24  ;;  %v13149_v24 = vld [vmem:[%s17449_s6 + $0xed4] ss:$8 sps:$4 sm:$0xff]  }
 0xad6   :  { %9829 = vmatpush1.bf16.msra.mxu1 %v13063_v26  ;;  %v13152_v26 = vld [vmem:[%s17449_s6 + $0xee4] ss:$8 sps:$4 sm:$0xff]  }
 0xad7   :  { %9830 = vmatprep.subr.bf16.mxu1 %v13068_v28  ;;  %v6128_v28 = vcombine.high %v17207_v53, %v17207_v53  ;;  %v13186_v53 = vld [vmem:[%s17449_s6 + $0xf94] ss:$8 sps:$4 sm:$0xff]  }
 0xada   :  { %9831 = vmatpush1.bf16.msra.mxu1 %v13066_v3  ;;  %v13150_v3 = vld [vmem:[%s17449_s6 + $0xee0] ss:$8 sps:$4 sm:$0xff]  }
 0xadb   :  { %9832 = vmatprep.subr.bf16.mxu1 %v13071_v29  ;;  %v13155_v29 = vld [vmem:[%s17449_s6 + $0xef4] ss:$8 sps:$4 sm:$0xff]  }
 0xade   :  { %9833 = vmatpush1.bf16.msra.mxu1 %v13069_v21  ;;  %v17322_v21 = vrot.slane %v6128_v28, %v15815_v27  ;;  %v6205_v27 = vpack.c.bf16 %v17217_v57, %v17217_v57  ;;  %v13187_v57 = vld [vmem:[%s17449_s6 + $0xfa0] ss:$8 sps:$4 sm:$0xff]  }
 0xadf   :  { %9834 = vmatprep.subr.bf16.mxu1 %v13074_v30  ;;  %v13153_v30 = vld [vmem:[%s17449_s6 + $0xef0] ss:$8 sps:$4 sm:$0xff]  }
 0xae2   :  { %9835 = vmatpush1.bf16.msra.mxu1 %v13072_v31  ;;  %v13158_v31 = vld [vmem:[%s17449_s6 + $0xf04] ss:$8 sps:$4 sm:$0xff]  }
 0xae3   :  { %9836 = vmatprep.subr.bf16.mxu1 %v13077_v61  ;;  %v6144_v61 = vcombine.high %v17322_v21, %v17322_v21 }
 0xae6   :  { %9837 = vmatpush1.bf16.msra.mxu1 %v13075_v35  ;;  %v13156_v35 = vld [vmem:[%s17449_s6 + $0xf00] ss:$8 sps:$4 sm:$0xff]  }
 0xae7   :  { %9838 = vmatprep.subr.bf16.mxu1 %v13080_v37  ;;  %v13162_v37 = vld [vmem:[%s17449_s6 + $0xf14] ss:$8 sps:$4 sm:$0xff]  }
 0xaea   :  { %9839 = vmatpush1.bf16.msra.mxu1 %v13078_v38  ;;  %v6208_v38 = vpack.c.bf16 %v6144_v61, %v6144_v61 }
 0xaeb   :  { %9840 = vmatprep.subr.bf16.mxu1 %v13083_v39  ;;  %v13160_v39 = vld [vmem:[%s17449_s6 + $0xf10] ss:$8 sps:$4 sm:$0xff]  }
 0xaee   :  { %9841 = vmatpush1.bf16.msra.mxu1 %v13081_v12  ;;  %v13165_v12 = vld [vmem:[%s17449_s6 + $0xf24] ss:$8 sps:$4 sm:$0xff]  }
 0xaef   :  { %9842 = vmatprep.subr.bf16.mxu1 %v13086_v44  ;;  %v13163_v44 = vld [vmem:[%s17449_s6 + $0xf20] ss:$8 sps:$4 sm:$0xff]  }
 0xaf2   :  { %9843 = vmatpush1.bf16.msra.mxu1 %v13084_v46  ;;  %v13168_v46 = vld [vmem:[%s17449_s6 + $0xf34] ss:$8 sps:$4 sm:$0xff]  }
 0xaf3   :  { %9844 = vmatprep.subr.bf16.mxu1 %v13089_v40  ;;  %v13166_v40 = vld [vmem:[%s17449_s6 + $0xf30] ss:$8 sps:$4 sm:$0xff]  }
 0xaf6   :  { %9845 = vmatpush1.bf16.msra.mxu1 %v13087_v45  ;;  %v13171_v45 = vld [vmem:[%s17449_s6 + $0xf44] ss:$8 sps:$4 sm:$0xff]  }
 0xaf7   :  { %9846 = vmatprep.subr.bf16.mxu1 %v13092_v47  ;;  %v13169_v47 = vld [vmem:[%s17449_s6 + $0xf40] ss:$8 sps:$4 sm:$0xff]  }
 0xafa   :  { %9847 = vmatpush1.bf16.msra.mxu1 %v13090_v49  ;;  %v13174_v49 = vld [vmem:[%s17449_s6 + $0xf54] ss:$8 sps:$4 sm:$0xff]  }
 0xafb   :  { %9848 = vmatprep.subr.bf16.mxu1 %v13095_v58  ;;  %v13172_v58 = vld [vmem:[%s17449_s6 + $0xf50] ss:$8 sps:$4 sm:$0xff]  }
 0xafe   :  { %9849 = vmatpush1.bf16.msra.mxu1 %v13093_v60  ;;  %v13177_v60 = vld [vmem:[%s17449_s6 + $0xf64] ss:$8 sps:$4 sm:$0xff]  }
 0xaff   :  { %9850 = vmatprep.subr.bf16.mxu1 %v13098_v51  ;;  %v13175_v51 = vld [vmem:[%s17449_s6 + $0xf60] ss:$8 sps:$4 sm:$0xff]  }
 0xb02   :  { %9851 = vmatpush1.bf16.msra.mxu1 %v13096_v59  ;;  %v13180_v59 = vld [vmem:[%s17449_s6 + $0xf74] ss:$8 sps:$4 sm:$0xff]  }
 0xb03   :  { %9852 = vmatprep.subr.bf16.mxu1 %v13101_v50  ;;  %v13178_v50 = vld [vmem:[%s17449_s6 + $0xf70] ss:$8 sps:$4 sm:$0xff]  }
 0xb06   :  { %9853 = vmatpush1.bf16.msra.mxu1 %v13099_v36  ;;  %v13183_v36 = vld [vmem:[%s17449_s6 + $0xf84] ss:$8 sps:$4 sm:$0xff]  }
 0xb07   :  { %9854 = vmatprep.subr.bf16.mxu1 %v13104_v52  ;;  %v13181_v52 = vld [vmem:[%s17449_s6 + $0xf80] ss:$8 sps:$4 sm:$0xff]  }
 0xb0a   :  { %9855 = vmatpush1.bf16.msra.mxu1 %v13102_v55  ;;  %v13184_v55 = vld [vmem:[%s17449_s6 + $0xf90] ss:$8 sps:$4 sm:$0xff]  }
 0xb0b   :  { %9856 = vmatprep.subr.bf16.mxu1 %v13107_v56  ;;  %v13189_v56 = vld [vmem:[%s17449_s6 + $0xfa4] ss:$8 sps:$4 sm:$0xff]  }
 0xb0e   :  { %9857 = vmatpush1.bf16.msra.mxu1 %v13105_v10  ;;  %v13192_v10 = vld [vmem:[%s17449_s6 + $0xfb4] ss:$8 sps:$4 sm:$0xff]  }
 0xb0f   :  { %9867 = vmatprep.subr.bf16.mxu1 %v13110_v62  ;;  %v13190_v62 = vld [vmem:[%s17449_s6 + $0xfb0] ss:$8 sps:$4 sm:$0xff]  }
 0xb11   :  { %9859 = vmatmul.mubr.bf16.vlgmr.msra.gmra.mrb[24].mxu1 %v6203_v0  ;;  %v13198_v0 = vld [vmem:[%s17449_s6 + $0xfd4] ss:$8 sps:$4 sm:$0xff]  }
 0xb12   :  { %9868 = vmatpush1.bf16.msra.mxu1 %v13108_v32  ;;  %9899 = vmatprep.mubr.bf16.mxu1 %v6206_v2  ;;  %v13193_v32 = vld [vmem:[%s17449_s6 + $0xfc0] ss:$8 sps:$4 sm:$0xff]   ;;  %v13201_v2 = vld [vmem:[%s17449_s6 + $0xfe4] ss:$8 sps:$4 sm:$0xff]  }
 0xb13   :  { %9869 = vmatprep.subr.bf16.mxu1 %v13113_v1  ;;  %v13196_v1 = vld [vmem:[%s17449_s6 + $0xfd0] ss:$8 sps:$4 sm:$0xff]  }
 0xb16   :  { %9870 = vmatpush1.bf16.msra.mxu1 %v13111_v33  ;;  %v13199_v33 = vld [vmem:[%s17449_s6 + $0xfe0] ss:$8 sps:$4 sm:$0xff]  }
 0xb17   :  { %9871 = vmatprep.subr.bf16.mxu1 %v13116_v34  ;;  %v13204_v34 = vld [vmem:[%s17449_s6 + $0xff4] ss:$8 sps:$4 sm:$0xff]  }
 0xb1a   :  { %9872 = vmatpush1.bf16.msra.mxu1 %v13114_v6  ;;  %v13202_v6 = vld [vmem:[%s17449_s6 + $0xff0] ss:$8 sps:$4 sm:$0xff]  }
 0xb1b   :  { %9873 = vmatprep.subr.bf16.mxu1 %v13119_v7  ;;  %v6207_v7 = vpack.c.bf16 %v17322_v21, %v17322_v21 }
 0xb1e   :  { %9874 = vmatpush1.bf16.msra.mxu1 %v13117_v41  ;;  %v15_v41 = vstv %s17450_s9 }
 0xb1f   :  { %9875 = vmatprep.subr.bf16.mxu1 %v13122_v43  ;;  %16 = vst [vmem:[#allocation5] sm:$0x1] %v15_v41  ;;  %v6725_v43 = vsub.s32 0, %v15780_v54 }
 0xb22   :  { %9876 = vmatpush1.bf16.msra.mxu1 %v13120_v5  ;;  %v6721_v5 = vld [vmem:[%s17451_s7] sm:$0x3] }
 0xb23   :  { %9877 = vmatprep.subr.bf16.mxu1 %v13125_v48  ;;  %v6729_v48 = vsub.s32 1, %v15780_v54 }
 0xb26   :  { %9878 = vmatpush1.bf16.msra.mxu1 %v13123_v11  ;;  %v6726_v11 = vrot.slane %v6721_v5, %v6725_v43 }
 0xb27   :  { %9879 = vmatprep.subr.bf16.mxu1 %v13128_v13  ;;  %v9951_v13 = vld [vmem:[%s17452_s8] sm:$0x3] }
 0xb2a   :  { %9880 = vmatpush1.bf16.msra.mxu1 %v13126_v14  ;;  %v6730_v14 = vrot.slane %v6721_v5, %v6729_v48 }
 0xb2b   :  { %9881 = vmatprep.subr.bf16.mxu1 %v13131_v15 }
 0xb2e   :  { %9882 = vmatpush1.bf16.msra.mxu1 %v13129_v4 }
 0xb2f   :  { %9883 = vmatprep.subr.bf16.mxu1 %v13134_v16  ;;  %v9956_v16 = vrot.slane %v9951_v13, %v6725_v43 }
 0xb32   :  { %9884 = vmatpush1.bf16.msra.mxu1 %v13132_v9 }
 0xb33   :  { %9885 = vmatprep.subr.bf16.mxu1 %v13137_v17 }
 0xb36   :  { %9886 = vmatpush1.bf16.msra.mxu1 %v13135_v18  ;;  %v9960_v18 = vrot.slane %v9951_v13, %v6729_v48 }
 0xb37   :  { %9887 = vmatprep.subr.bf16.mxu1 %v13140_v8 }
 0xb3a   :  { %9888 = vmatpush1.bf16.msra.mxu1 %v13138_v42 }
 0xb3b   :  { %9889 = vmatprep.subr.bf16.mxu1 %v13143_v19 }
 0xb3e   :  { %9890 = vmatpush1.bf16.msra.mxu1 %v13141_v20 }
 0xb3f   :  { %9891 = vmatprep.subr.bf16.mxu1 %v13146_v22 }
 0xb42   :  { %9892 = vmatpush1.bf16.msra.mxu1 %v13144_v23 }
 0xb43   :  { %9893 = vmatprep.subr.bf16.mxu1 %v13149_v24 }
 0xb46   :  { %9894 = vmatpush1.bf16.msra.mxu1 %v13147_v25 }
 0xb47   :  { %9895 = vmatprep.subr.bf16.mxu1 %v13152_v26  ;;  %v11259_v26 = vld [vmem:[#allocation5] ss:$0 sm:$0xff] }
 0xb4a   :  { %9896 = vmatpush1.bf16.msra.mxu1 %v13150_v3 }
 0xb4b   :  { %9897 = vmatprep.subr.bf16.mxu1 %v13155_v29 }
 0xb4e   :  { %9898 = vmatpush1.bf16.msra.mxu1 %v13153_v30 }
 0xb4f   :  { %9908 = vmatprep.subr.bf16.mxu1 %v13158_v31 }
 0xb51   :  { %9900 = vmatmul.mubr.bf16.vlgmr.msra.gmra.mrb[24].mxu1 %v6205_v27 }
 0xb52   :  { %9909 = vmatpush1.bf16.msra.mxu1 %v13156_v35  ;;  %9940 = vmatprep.mubr.bf16.mxu1 %v6208_v38 }
 0xb53   :  { %9910 = vmatprep.subr.bf16.mxu1 %v13162_v37 }
 0xb56   :  { %9911 = vmatpush1.bf16.msra.mxu1 %v13160_v39 }
 0xb57   :  { %9912 = vmatprep.subr.bf16.mxu1 %v13165_v12 }
 0xb5a   :  { %9913 = vmatpush1.bf16.msra.mxu1 %v13163_v44 }
 0xb5b   :  { %9914 = vmatprep.subr.bf16.mxu1 %v13168_v46 }
 0xb5e   :  { %9915 = vmatpush1.bf16.msra.mxu1 %v13166_v40 }
 0xb5f   :  { %9916 = vmatprep.subr.bf16.mxu1 %v13171_v45 }
 0xb62   :  { %9917 = vmatpush1.bf16.msra.mxu1 %v13169_v47 }
 0xb63   :  { %9918 = vmatprep.subr.bf16.mxu1 %v13174_v49 }
 0xb66   :  { %9919 = vmatpush1.bf16.msra.mxu1 %v13172_v58 }
 0xb67   :  { %9920 = vmatprep.subr.bf16.mxu1 %v13177_v60 }
 0xb6a   :  { %9921 = vmatpush1.bf16.msra.mxu1 %v13175_v51 }
 0xb6b   :  { %9922 = vmatprep.subr.bf16.mxu1 %v13180_v59 }
 0xb6e   :  { %9923 = vmatpush1.bf16.msra.mxu1 %v13178_v50 }
 0xb6f   :  { %9924 = vmatprep.subr.bf16.mxu1 %v13183_v36 }
 0xb72   :  { %9925 = vmatpush1.bf16.msra.mxu1 %v13181_v52 }
 0xb73   :  { %9926 = vmatprep.subr.bf16.mxu1 %v13186_v53 }
 0xb76   :  { %9927 = vmatpush1.bf16.msra.mxu1 %v13184_v55 }
 0xb77   :  { %9928 = vmatprep.subr.bf16.mxu1 %v13189_v56 }
 0xb7a   :  { %9929 = vmatpush1.bf16.msra.mxu1 %v13187_v57 }
 0xb7b   :  { %9930 = vmatprep.subr.bf16.mxu1 %v13192_v10 }
 0xb7e   :  { %9931 = vmatpush1.bf16.msra.mxu1 %v13190_v62 }
 0xb7f   :  { %9932 = vmatprep.subr.bf16.mxu1 %v13195_v63 }
 0xb82   :  { %9933 = vmatpush1.bf16.msra.mxu1 %v13193_v32 }
 0xb83   :  { %9934 = vmatprep.subr.bf16.mxu1 %v13198_v0 }
 0xb86   :  { %9935 = vmatpush1.bf16.msra.mxu1 %v13196_v1 }
 0xb87   :  { %9936 = vmatprep.subr.bf16.mxu1 %v13201_v2 }
 0xb8a   :  { %9937 = vmatpush1.bf16.msra.mxu1 %v13199_v33 }
 0xb8b   :  { %9938 = vmatprep.subr.bf16.mxu1 %v13204_v34 }
 0xb8e   :  { %9939 = vmatpush1.bf16.msra.mxu1 %v13202_v6 }
 0xb91   :  { %9941 = vmatmul.mubr.bf16.vlgmr.msra.gmra.mrb[24].mxu1 %v6207_v7 }
 0xc64   :  { %v9942_v15 = vpop.f32.mrb[24].mxu1 }
 0xc65   :  { %v11324_v4 = vadd.f32 %v9942_v15, %v6726_v11  ;;  %v9944_v9 = vpop.f32.mrb[25].mxu1 }
 0xc66   :  { %v11325_v17 = vadd.f32 %v9944_v9, %v6730_v14  ;;  %v9946_v8 = vpop.f32.mrb[26].mxu1 }
 0xc67   :  { %v9949_v42 = vmax.f32 %v11324_v4, 0.0  ;;  %v9947_v19 = vpop.f32.mrb[27].mxu1 }
 0xc68   :  { %v9950_v20 = vmax.f32 %v11325_v17, 0.0 }
 0xc69   :  { %v9963_v22 = vmul.f32 %v9956_v16, %v9949_v42 }
 0xc6a   :  { %v9964_v23 = vmul.f32 %v9960_v18, %v9950_v20 }
 0xc6b   :  { %v9966_v54 = vsel %vm9965_vm13, %v9963_v22, 0.0 }
 0xc6c   :  { %v9967_v24 = vsel %vm9965_vm13, %v9964_v23, 0.0 }
 0xc6d   :  { %v9968_v25 = vadd.f32 %v9967_v24, %v9966_v54 }
 0xc6f   :  { %9969 = vadd.xlane.f32.xlu0 %v9968_v25 }
 0xcfc   :  { %v9970_v28 = vpop.xlane.xlu0 %9969 }
 0xcfd   :  { %v9978_v3 = vadd.f32 %v11259_v26, %v9970_v28 }
 0xcff   :  { %9980 = vst.msk [vmem:[%s17453_s10] sm:$0x3] %vm9979_vm14, %v9978_v3 }

</bundles_post_ra>
